<compile_context>
chip_gen: v7x
topology: tpu7x:2x2x1
jax: 0.10.0
libtpu: 0.0.40
codegen_flags: <defaults>
</compile_context>

<pallas_src>
import functools
import math

import jax
import jax.numpy as jnp
from jax import lax
from jax.experimental import pallas as pl
from jax.experimental.pallas import tpu as pltpu

_LANE = 128
_SUB = 8


def _round_up(x, m):
    return ((x + m - 1) // m) * m


# --------------------------------------------------------------------------
# Fused Pallas kernel: masked biGRU + LayerNorm + attention + pooling
# --------------------------------------------------------------------------

def _gru_attn_kernel(h_true, hp,
                     lens_col_ref, lens_row_ref, x_ref,
                     wi_ref, whf_ref, whb_ref, bi_ref, bhf_ref, bhb_ref,
                     gamma_ref, beta_ref, watt_ref, batt_ref, v_ref,
                     pooled_ref, w_ref,
                     gi_sc, y_sc):
    """One batch tile of: biGRU -> LayerNorm -> Linear+tanh -> score
    -> masked softmax over valid timesteps -> weighted sum of raw GRU states.

    x_ref  : [T, Nt, Ep]  bf16 time-major inputs
    wi_ref : [Ep, 6hp]    bf16 packed input weights (fwd||bwd, gates r|z|n)
    whf/whb: [hp, 3hp]    bf16 recurrent weights per direction
    bi/bhf/bhb            fp32 biases (padded gate lanes are zero)
    watt   : [2hp, Ap]    bf16 attention projection; v_ref [1,1,Ap] score vec
    pooled : [Nt, 2hp]    fp32 attention-pooled GRU states (padded lanes zero)
    w_ref  : [T, Nt]      fp32 attention weights
    """
    T, Nt, E = x_ref.shape
    F = 2 * hp
    H3 = 3 * hp

    lens_col = lens_col_ref[...]                           # [Nt, 1] int32

    # ---- hoisted packed input projection: one MXU matmul for all timesteps ----
    x_flat = x_ref[...].reshape(T * Nt, E)                 # bf16
    gi = jnp.dot(x_flat, wi_ref[...],
                 preferred_element_type=jnp.float32) + bi_ref[...]
    gi_sc[...] = gi.reshape(T, Nt, 2 * H3).astype(jnp.bfloat16)

    # loop-invariant loads hoisted out of the recurrence
    whf = whf_ref[...]
    whb = whb_ref[...]
    bhf = bhf_ref[...]
    bhb = bhb_ref[...]

    def step(s, carry):
        hf, hb = carry                                     # [Nt, hp] fp32 (registers)
        tf = s
        tb = T - 1 - s
        ghf = jnp.dot(hf.astype(jnp.bfloat16), whf,
                      preferred_element_type=jnp.float32) + bhf     # [Nt, 3hp]
        ghb = jnp.dot(hb.astype(jnp.bfloat16), whb,
                      preferred_element_type=jnp.float32) + bhb
        gif = gi_sc[tf].astype(jnp.float32)                # fwd gates: cols [:3hp]
        gib = gi_sc[tb].astype(jnp.float32)                # bwd gates: cols [3hp:]

        # forward direction at time tf (PyTorch gate order r, z, n; b_hn stays
        # inside r * (.) because bh was added with the recurrent matmul)
        r_f = jax.nn.sigmoid(gif[:, 0:hp] + ghf[:, 0:hp])
        z_f = jax.nn.sigmoid(gif[:, hp:2 * hp] + ghf[:, hp:2 * hp])
        n_f = jnp.tanh(gif[:, 2 * hp:3 * hp] + r_f * ghf[:, 2 * hp:3 * hp])
        hf_new = (1.0 - z_f) * n_f + z_f * hf

        # backward direction at time tb
        r_b = jax.nn.sigmoid(gib[:, H3:H3 + hp] + ghb[:, 0:hp])
        z_b = jax.nn.sigmoid(gib[:, H3 + hp:H3 + 2 * hp] + ghb[:, hp:2 * hp])
        n_b = jnp.tanh(gib[:, H3 + 2 * hp:] + r_b * ghb[:, 2 * hp:3 * hp])
        hb_new = (1.0 - z_b) * n_b + z_b * hb

        mf = tf < lens_col                                 # [Nt, 1]
        mb = tb < lens_col
        # 128-aligned lane slices -> unmasked stores into the fused output tile
        y_sc[tf, :, 0:hp] = jnp.where(mf, hf_new, 0.0)
        y_sc[tb, :, hp:2 * hp] = jnp.where(mb, hb_new, 0.0)
        return jnp.where(mf, hf_new, hf), jnp.where(mb, hb_new, hb)

    h0 = jnp.zeros((Nt, hp), jnp.float32)
    lax.fori_loop(0, T, step, (h0, h0), unroll=True if T <= 32 else 8)

    # ---- LayerNorm -> Linear+tanh -> score -> masked softmax -> pooling ----
    h = y_sc[...]                                          # [T, Nt, F] fp32, pads == 0
    lane = lax.broadcasted_iota(jnp.int32, (1, 1, F), 2)
    lane_valid = (lane % hp) < h_true                      # true lanes of fwd||bwd
    inv_f = 1.0 / float(2 * h_true)
    mean = jnp.sum(h, axis=-1, keepdims=True) * inv_f      # pads are exactly zero
    diff = h - mean
    var = jnp.sum(jnp.where(lane_valid, diff * diff, 0.0),
                  axis=-1, keepdims=True) * inv_f
    normed = diff * lax.rsqrt(var + 1e-5) * gamma_ref[...] + beta_ref[...]

    flat = normed.reshape(T * Nt, F).astype(jnp.bfloat16)
    att = jnp.tanh(
        jnp.dot(flat, watt_ref[...], preferred_element_type=jnp.float32)
        + batt_ref[...])
    A = watt_ref.shape[-1]
    score = jnp.sum(att.reshape(T, Nt, A) * v_ref[...], axis=-1)    # [T, Nt]

    t_idx = lax.broadcasted_iota(jnp.int32, (T, Nt), 0)
    mask = t_idx < lens_row_ref[...]                       # [T, Nt]
    score = jnp.where(mask, score, jnp.float32(-1e30))
    m = jnp.max(score, axis=0, keepdims=True)              # cancels in softmax
    e = jnp.where(mask, jnp.exp(score - m), 0.0)
    denom = jnp.sum(e, axis=0, keepdims=True)              # [1, Nt], >= 1
    w = e / denom                                          # exact: weights sum to 1
    w_ref[...] = w
    # weighted sum of the RAW GRU states over (small) T, matching PyTorch.
    pooled_ref[...] = jnp.sum(w[:, :, None] * h, axis=0)   # [Nt, F]


# --------------------------------------------------------------------------
# Wrapper (grid / BlockSpec plumbing / VMEM budgeting)
# --------------------------------------------------------------------------

def _vmem_budget():
    """(scoped vmem limit, working-set budget), per TPU generation."""
    try:
        cap = int(pltpu.get_tpu_info().vmem_capacity_bytes)
    except Exception:
        cap = 64 * 1024 * 1024
    limit = min(cap * 3 // 4, 100 * 1024 * 1024)   # ~96 MiB v5e/v6e, ~48 MiB v7x
    return limit, limit * 2 // 3


def _tile_bytes(T, ep, hp, ap):
    """(fixed bytes, bytes per batch row) incl. double-buffered pipeline copies."""
    f = 2 * hp
    fixed = 2 * 2 * (ep * 6 * hp + 2 * hp * 3 * hp + f * ap)     # bf16 weights x2 bufs
    per_row = (2 * 2 * T * ep                                    # x (bf16) x2 bufs
               + 2 * 4 * (f + T)                                 # pooled + w out x2 bufs
               + 2 * T * 6 * hp                                  # gi_sc (bf16)
               + 4 * T * f                                       # y_sc (fp32)
               + 4 * (16 * hp + 4 * f))                          # gate temps / carries
    return fixed, per_row


def _pad_batch(n):
    np_rows = _round_up(max(n, _SUB), _SUB)
    if np_rows > _LANE:
        np_rows = _round_up(np_rows, _LANE)   # tiled [.., nt] blocks need 128 lanes
    return np_rows


def _pick_nt(np_rows, fixed, per_row, budget):
    if np_rows <= _LANE:
        return np_rows                        # single tile: block == full array
    nt = _round_up(np_rows // 2, _LANE)       # >=2 grid steps: keep both v7x TCs busy
    while nt > _LANE and fixed + nt * per_row > budget:
        nt -= _LANE
    return nt


def bigru_attn_pool(x_tm, lens, gp, ap, h_true):
    """x_tm: [T, N, Ep] bf16 time-major; lens: [N] int (>= 1).
    Returns pooled [N, 2hp] fp32 (padded lanes zero) and weights [T, N] fp32."""
    T, N, Ep = x_tm.shape
    hp = gp['whf'].shape[0]
    F = 2 * hp
    Ap = ap['w'].shape[-1]
    Np = _pad_batch(N)
    if Np != N:
        x_tm = jnp.pad(x_tm, ((0, 0), (0, Np - N), (0, 0)))
        lens = jnp.pad(lens, (0, Np - N), constant_values=1)
    lens = lens.astype(jnp.int32)
    vmem_limit, budget = _vmem_budget()
    fixed, per_row = _tile_bytes(T, Ep, hp, Ap)
    nt = _pick_nt(Np, fixed, per_row, budget)
    grid = (pl.cdiv(Np, nt),)

    kernel = functools.partial(_gru_attn_kernel, h_true, hp)

    pooled, w = pl.pallas_call(
        kernel,
        grid=grid,
        in_specs=[
            pl.BlockSpec((nt, 1), lambda i: (i, 0)),             # lens (sublane form)
            pl.BlockSpec((1, nt), lambda i: (0, i)),             # lens (lane form)
            pl.BlockSpec((T, nt, Ep), lambda i: (0, i, 0)),      # x (bf16)
            pl.BlockSpec((Ep, 6 * hp), lambda i: (0, 0)),        # Wi packed
            pl.BlockSpec((hp, 3 * hp), lambda i: (0, 0)),        # Wh fwd
            pl.BlockSpec((hp, 3 * hp), lambda i: (0, 0)),        # Wh bwd
            pl.BlockSpec((1, 6 * hp), lambda i: (0, 0)),         # bi packed
            pl.BlockSpec((1, 3 * hp), lambda i: (0, 0)),         # bh fwd
            pl.BlockSpec((1, 3 * hp), lambda i: (0, 0)),         # bh bwd
            pl.BlockSpec((1, 1, F), lambda i: (0, 0, 0)),        # LayerNorm gamma
            pl.BlockSpec((1, 1, F), lambda i: (0, 0, 0)),        # LayerNorm beta
            pl.BlockSpec((F, Ap), lambda i: (0, 0)),             # W_att
            pl.BlockSpec((1, Ap), lambda i: (0, 0)),             # b_att
            pl.BlockSpec((1, 1, Ap), lambda i: (0, 0, 0)),       # score vector
        ],
        out_specs=(
            pl.BlockSpec((nt, F), lambda i: (i, 0)),             # pooled (lane-dense)
            pl.BlockSpec((T, nt), lambda i: (0, i)),             # attention weights
        ),
        out_shape=(jax.ShapeDtypeStruct((Np, F), jnp.float32),
                   jax.ShapeDtypeStruct((T, Np), jnp.float32)),
        scratch_shapes=[
            pltpu.VMEM((T, nt, 6 * hp), jnp.bfloat16),   # hoisted input projection
            pltpu.VMEM((T, nt, F), jnp.float32),         # fused fwd||bwd GRU outputs
        ],
        compiler_params=pltpu.CompilerParams(
            dimension_semantics=("parallel",),
            vmem_limit_bytes=vmem_limit),
    )(lens.reshape(Np, 1), lens.reshape(1, Np), x_tm,
      gp['wi6'], gp['whf'], gp['whb'], gp['bi6'], gp['bhf'], gp['bhb'],
      ap['gamma'].reshape(1, 1, F), ap['beta'].reshape(1, 1, F),
      ap['w'], ap['b'].reshape(1, Ap), ap['v'].reshape(1, 1, Ap))

    if Np != N:
        pooled = pooled[:N]
        w = w[:, :N]
    return pooled, w


# --------------------------------------------------------------------------
# Parameter init (deterministic, PyTorch-style uniform fan-in init),
# zero-padded to 128-lane multiples so the padded lanes are inert.
# --------------------------------------------------------------------------

def _uniform(key, shape, scale):
    return jax.random.uniform(key, shape, jnp.float32, minval=-scale, maxval=scale)


def _scatter_rows(block, segs, rows_pad):
    out = jnp.zeros((rows_pad,) + block.shape[1:], block.dtype)
    r = 0
    for off, n in segs:
        out = out.at[off:off + n].set(block[r:r + n])
        r += n
    return out


def _pad_gates(m, h, hp):
    """[..., 3h] -> [..., 3hp]: each r/z/n gate block zero-padded to hp lanes."""
    r_, z_, n_ = jnp.split(m, 3, axis=-1)
    pad = [(0, 0)] * (m.ndim - 1) + [(0, hp - h)]
    return jnp.concatenate([jnp.pad(r_, pad), jnp.pad(z_, pad), jnp.pad(n_, pad)],
                           axis=-1)


def init_gru_params(key, in_segs, in_pad, h, hp):
    """Packed, lane-padded biGRU params.  in_segs gives where the true input
    features live inside the padded input lanes."""
    k = 1.0 / math.sqrt(h)
    e_true = sum(n for _, n in in_segs)
    ks = jax.random.split(key, 8)
    wi_f = _scatter_rows(_pad_gates(_uniform(ks[0], (e_true, 3 * h), k), h, hp),
                         in_segs, in_pad)
    wi_b = _scatter_rows(_pad_gates(_uniform(ks[1], (e_true, 3 * h), k), h, hp),
                         in_segs, in_pad)
    wh_f = _scatter_rows(_pad_gates(_uniform(ks[2], (h, 3 * h), k), h, hp),
                         [(0, h)], hp)
    wh_b = _scatter_rows(_pad_gates(_uniform(ks[3], (h, 3 * h), k), h, hp),
                         [(0, h)], hp)
    bi_f = _pad_gates(_uniform(ks[4], (1, 3 * h), k), h, hp)
    bi_b = _pad_gates(_uniform(ks[5], (1, 3 * h), k), h, hp)
    bh_f = _pad_gates(_uniform(ks[6], (1, 3 * h), k), h, hp)
    bh_b = _pad_gates(_uniform(ks[7], (1, 3 * h), k), h, hp)
    return dict(wi6=jnp.concatenate([wi_f, wi_b], axis=1).astype(jnp.bfloat16),
                whf=wh_f.astype(jnp.bfloat16), whb=wh_b.astype(jnp.bfloat16),
                bi6=jnp.concatenate([bi_f, bi_b], axis=1),
                bhf=bh_f, bhb=bh_b)


def init_attn_params(key, h, hp, a, ap):
    """LayerNorm(2h) + Linear(2h->a)+tanh + score vector(a), lane-padded."""
    ks = jax.random.split(key, 3)
    segs = [(0, h), (hp, h)]
    ka = 1.0 / math.sqrt(2 * h)
    w_att = _scatter_rows(
        jnp.pad(_uniform(ks[0], (2 * h, a), ka), ((0, 0), (0, ap - a))),
        segs, 2 * hp)
    b_att = jnp.pad(_uniform(ks[1], (a,), ka), (0, ap - a))
    v = jnp.pad(_uniform(ks[2], (a,), 1.0 / math.sqrt(a)), (0, ap - a))
    gamma = _scatter_rows(jnp.ones((2 * h,), jnp.float32), segs, 2 * hp)
    beta = jnp.zeros((2 * hp,), jnp.float32)
    return dict(w=w_att.astype(jnp.bfloat16), b=b_att, v=v, gamma=gamma, beta=beta)


def init_params(key, vocab_size, embed_dim, word_h, att_dim, block_h, block_att_dim):
    ep = _round_up(embed_dim, _LANE)
    hwp = _round_up(word_h, _LANE)
    hbp = _round_up(block_h, _LANE)
    ap_w = _round_up(att_dim, _LANE)
    ap_b = _round_up(block_att_dim, _LANE)
    ks = jax.random.split(key, 5)
    p = {}
    # TODO(synk): BERT encoder replaced by a deterministic embedding lookup.
    emb = 0.02 * jax.random.normal(ks[0], (vocab_size, embed_dim), jnp.float32)
    p['embedding'] = jnp.pad(emb, ((0, 0), (0, ep - embed_dim))).astype(jnp.bfloat16)
    p['word_gru'] = init_gru_params(ks[1], [(0, embed_dim)], ep, word_h, hwp)
    p['word_att'] = init_attn_params(ks[2], word_h, hwp, att_dim, ap_w)
    # block-level GRU consumes the pooled word vectors: true features live at
    # lanes [0:word_h) (fwd) and [hwp:hwp+word_h) (bwd) of the padded input.
    p['block_gru'] = init_gru_params(ks[3], [(0, word_h), (hwp, word_h)],
                                     2 * hwp, block_h, hbp)
    p['block_att'] = init_attn_params(ks[4], block_h, hbp, block_att_dim, ap_b)
    return p


# --------------------------------------------------------------------------
# BlockAttention forward
# --------------------------------------------------------------------------

@functools.partial(jax.jit, static_argnames=("word_h", "block_h"))
def block_attention_forward(params, docs, docs_lengths, blocks_lengths,
                            attention_mask, *, word_h, block_h):
    # attention_mask is unused, matching the reference forward; dropout is
    # identity (eval mode). The sort-by-length / unsort permutation of the
    # PyTorch code is a net identity and is replaced by length masks.
    B, D, W = docs.shape
    hwp = params['word_gru']['whf'].shape[0]
    hbp = params['block_gru']['whf'].shape[0]

    docs_lengths = jnp.maximum(docs_lengths, 1).astype(jnp.int32)

    # Word-level input gathered directly into time-major [W, D*B, Ep] (bf16);
    # row order n = d*B + b lets the pooled block vectors reshape straight into
    # the block-level time-major layout (no activation-sized transposes).
    ids_tm = jnp.transpose(docs, (2, 1, 0)).reshape(W, D * B)
    x_tm = jnp.take(params['embedding'], ids_tm, axis=0)

    block_valid = jnp.arange(D)[None, :] < docs_lengths[:, None]        # [B, D]
    word_lens = jnp.where(block_valid, jnp.clip(blocks_lengths, 1, W), 1)
    word_lens_tm = jnp.transpose(word_lens).reshape(D * B)

    # ---- word level: fused biGRU + attention pooling ----
    block_vecs, word_w = bigru_attn_pool(
        x_tm, word_lens_tm, params['word_gru'], params['word_att'], word_h)
    word_att_weight = (jnp.transpose(word_w.reshape(W, D, B), (2, 1, 0))
                       * block_valid[:, :, None].astype(jnp.float32))

    # ---- block level ----
    bv_tm = block_vecs.reshape(D, B, 2 * hwp).astype(jnp.bfloat16)      # time-major
    docs_vec_p, block_w = bigru_attn_pool(
        bv_tm, docs_lengths, params['block_gru'], params['block_att'], block_h)
    blocks_att_weight = jnp.transpose(block_w)                          # [B, D]

    # un-pad: true features live at lanes [0:block_h) and [hbp:hbp+block_h)
    docs_vec = jnp.concatenate(
        [docs_vec_p[:, :block_h], docs_vec_p[:, hbp:hbp + block_h]], axis=-1)
    return docs_vec, word_att_weight, blocks_att_weight


# --------------------------------------------------------------------------

if __name__ == "__main__":
    vocab_size, embed_dim = 64, 32
    word_h, att_dim = 16, 16
    block_h, block_att_dim = 16, 16
    B, D, W = 2, 4, 8   # docs, max blocks per doc, max words per block

    key = jax.random.PRNGKey(0)
    kp, kd, kl = jax.random.split(key, 3)
    params = init_params(kp, vocab_size, embed_dim, word_h, att_dim,
                         block_h, block_att_dim)

    docs = jax.random.randint(kd, (B, D, W), 0, vocab_size, dtype=jnp.int32)
    docs_lengths = jnp.array([3, 4], dtype=jnp.int32)
    blocks_lengths = jax.random.randint(kl, (B, D), 2, W + 1, dtype=jnp.int32)
    attention_mask = jnp.ones((B, D, W), dtype=jnp.int32)

    docs_vec, word_att_weight, blocks_att_weight = jax.block_until_ready(
        block_attention_forward(params, docs, docs_lengths, blocks_lengths,
                                attention_mask, word_h=word_h, block_h=block_h))

    assert docs_vec.shape == (B, 2 * block_h)
    assert word_att_weight.shape == (B, D, W)
    assert blocks_att_weight.shape == (B, D)
    assert bool(jnp.all(jnp.isfinite(docs_vec)))
    assert bool(jnp.all(jnp.isfinite(word_att_weight)))
    assert bool(jnp.all(jnp.isfinite(blocks_att_weight)))
    # block attention weights over the valid blocks of each doc sum to ~1
    row_sums = jnp.sum(blocks_att_weight, axis=1)
    assert bool(jnp.all(jnp.abs(row_sums - 1.0) < 1e-3))
    # word attention weights: valid blocks sum to ~1, padded blocks are 0
    block_valid = jnp.arange(D)[None, :] < docs_lengths[:, None]
    word_sums = jnp.sum(word_att_weight, axis=-1)
    assert bool(jnp.all(jnp.where(block_valid,
                                  jnp.abs(word_sums - 1.0) < 1e-3,
                                  word_sums == 0.0)))

    print("KERNEL_OK")
</pallas_src>

<mosaic_0001>
module attributes {stable_mosaic.version = 11 : i64} {
  func.func @_gru_attn_kernel(%arg0: i32, %arg1: memref<8x1xi32, #tpu.memory_space<vmem>>, %arg2: memref<1x8xi32, #tpu.memory_space<vmem>>, %arg3: memref<8x8x128xbf16, #tpu.memory_space<vmem>>, %arg4: memref<128x768xbf16, #tpu.memory_space<vmem>>, %arg5: memref<128x384xbf16, #tpu.memory_space<vmem>>, %arg6: memref<128x384xbf16, #tpu.memory_space<vmem>>, %arg7: memref<1x768xf32, #tpu.memory_space<vmem>>, %arg8: memref<1x384xf32, #tpu.memory_space<vmem>>, %arg9: memref<1x384xf32, #tpu.memory_space<vmem>>, %arg10: memref<1x1x256xf32, #tpu.memory_space<vmem>>, %arg11: memref<1x1x256xf32, #tpu.memory_space<vmem>>, %arg12: memref<256x128xbf16, #tpu.memory_space<vmem>>, %arg13: memref<1x128xf32, #tpu.memory_space<vmem>>, %arg14: memref<1x1x128xf32, #tpu.memory_space<vmem>>, %arg15: memref<8x256xf32, #tpu.memory_space<vmem>>, %arg16: memref<8x8xf32, #tpu.memory_space<vmem>>, %arg17: memref<8x8x768xbf16, #tpu.memory_space<vmem>>, %arg18: memref<8x8x256xf32, #tpu.memory_space<vmem>>) attributes {dimension_semantics = [#tpu.dimension_semantics<parallel>], iteration_bounds = array<i64: 1>, scalar_prefetch = 0 : i64, scratch_operands = 2 : i64, tpu.core_type = #tpu.core_type<tc>, window_params = [{transform_indices = @transform_0, window_bounds = array<i64: 8, 1>}, {transform_indices = @transform_1, window_bounds = array<i64: 1, 8>}, {transform_indices = @transform_2, window_bounds = array<i64: 8, 8, 128>}, {pipeline_mode = #tpu.pipeline_mode<synchronous>, transform_indices = @transform_3, window_bounds = array<i64: 128, 768>}, {pipeline_mode = #tpu.pipeline_mode<synchronous>, transform_indices = @transform_4, window_bounds = array<i64: 128, 384>}, {pipeline_mode = #tpu.pipeline_mode<synchronous>, transform_indices = @transform_5, window_bounds = array<i64: 128, 384>}, {pipeline_mode = #tpu.pipeline_mode<synchronous>, transform_indices = @transform_6, window_bounds = array<i64: 1, 768>}, {pipeline_mode = #tpu.pipeline_mode<synchronous>, transform_indices = @transform_7, window_bounds = array<i64: 1, 384>}, {pipeline_mode = #tpu.pipeline_mode<synchronous>, transform_indices = @transform_8, window_bounds = array<i64: 1, 384>}, {pipeline_mode = #tpu.pipeline_mode<synchronous>, transform_indices = @transform_9, window_bounds = array<i64: 1, 1, 256>}, {pipeline_mode = #tpu.pipeline_mode<synchronous>, transform_indices = @transform_10, window_bounds = array<i64: 1, 1, 256>}, {pipeline_mode = #tpu.pipeline_mode<synchronous>, transform_indices = @transform_11, window_bounds = array<i64: 256, 128>}, {pipeline_mode = #tpu.pipeline_mode<synchronous>, transform_indices = @transform_12, window_bounds = array<i64: 1, 128>}, {pipeline_mode = #tpu.pipeline_mode<synchronous>, transform_indices = @transform_13, window_bounds = array<i64: 1, 1, 128>}, {transform_indices = @transform_14, window_bounds = array<i64: 8, 256>}, {transform_indices = @transform_15, window_bounds = array<i64: 8, 8>}]} {
    %c0 = arith.constant 0 : index
    %c0_0 = arith.constant 0 : index
    %0 = vector.load %arg1[%c0, %c0_0] : memref<8x1xi32, #tpu.memory_space<vmem>>, vector<8x1xi32>
    %c0_1 = arith.constant 0 : index
    %c0_2 = arith.constant 0 : index
    %c0_3 = arith.constant 0 : index
    %1 = vector.load %arg3[%c0_1, %c0_2, %c0_3] : memref<8x8x128xbf16, #tpu.memory_space<vmem>>, vector<8x8x128xbf16>
    %2 = vector.shape_cast %1 : vector<8x8x128xbf16> to vector<64x128xbf16>
    %c0_4 = arith.constant 0 : index
    %c0_5 = arith.constant 0 : index
    %3 = vector.load %arg4[%c0_4, %c0_5] : memref<128x768xbf16, #tpu.memory_space<vmem>>, vector<128x768xbf16>
    %cst = arith.constant dense<0.000000e+00> : vector<64x768xf32>
    %4 = tpu.matmul %2, %3, %cst {dimension_numbers = #tpu.dot_dimension_numbers<[1], [0], [0], [1], [0, 0, 1, 1], [], []>} : vector<64x128xbf16>, vector<128x768xbf16>, vector<64x768xf32> -> vector<64x768xf32>
    %c0_6 = arith.constant 0 : index
    %c0_7 = arith.constant 0 : index
    %5 = vector.load %arg7[%c0_6, %c0_7] : memref<1x768xf32, #tpu.memory_space<vmem>>, vector<1x768xf32>
    %6 = vector.broadcast %5 : vector<1x768xf32> to vector<64x768xf32>
    %7 = arith.addf %4, %6 : vector<64x768xf32>
    %8 = vector.shape_cast %7 : vector<64x768xf32> to vector<8x8x768xf32>
    %9 = arith.truncf %8 : vector<8x8x768xf32> to vector<8x8x768xbf16>
    %c0_8 = arith.constant 0 : index
    %c0_9 = arith.constant 0 : index
    %c0_10 = arith.constant 0 : index
    %10 = vector.load %arg17[%c0_8, %c0_9, %c0_10] : memref<8x8x768xbf16, #tpu.memory_space<vmem>>, vector<8x8x768xbf16>
    tpu.vector_store %arg17[%c0_8, %c0_9, %c0_10], %9 {strides = array<i32>} : memref<8x8x768xbf16, #tpu.memory_space<vmem>>, vector<8x8x768xbf16>,
    %c0_11 = arith.constant 0 : index
    %c0_12 = arith.constant 0 : index
    %11 = vector.load %arg5[%c0_11, %c0_12] : memref<128x384xbf16, #tpu.memory_space<vmem>>, vector<128x384xbf16>
    %c0_13 = arith.constant 0 : index
    %c0_14 = arith.constant 0 : index
    %12 = vector.load %arg6[%c0_13, %c0_14] : memref<128x384xbf16, #tpu.memory_space<vmem>>, vector<128x384xbf16>
    %c0_15 = arith.constant 0 : index
    %c0_16 = arith.constant 0 : index
    %13 = vector.load %arg8[%c0_15, %c0_16] : memref<1x384xf32, #tpu.memory_space<vmem>>, vector<1x384xf32>
    %c0_17 = arith.constant 0 : index
    %c0_18 = arith.constant 0 : index
    %14 = vector.load %arg9[%c0_17, %c0_18] : memref<1x384xf32, #tpu.memory_space<vmem>>, vector<1x384xf32>
    %cst_19 = arith.constant 0.000000e+00 : f32
    %15 = vector.broadcast %cst_19 : f32 to vector<8x128xf32>
    %c0_i32 = arith.constant 0 : i32
    %c7_i32 = arith.constant 7 : i32
    %16 = arith.subi %c7_i32, %c0_i32 : i32
    %17 = arith.truncf %15 : vector<8x128xf32> to vector<8x128xbf16>
    %cst_20 = arith.constant dense<0.000000e+00> : vector<8x384xf32>
    %18 = tpu.matmul %17, %11, %cst_20 {dimension_numbers = #tpu.dot_dimension_numbers<[1], [0], [0], [1], [0, 0, 1, 1], [], []>} : vector<8x128xbf16>, vector<128x384xbf16>, vector<8x384xf32> -> vector<8x384xf32>
    %19 = vector.broadcast %13 : vector<1x384xf32> to vector<8x384xf32>
    %20 = arith.addf %18, %19 : vector<8x384xf32>
    %21 = arith.truncf %15 : vector<8x128xf32> to vector<8x128xbf16>
    %cst_21 = arith.constant dense<0.000000e+00> : vector<8x384xf32>
    %22 = tpu.matmul %21, %12, %cst_21 {dimension_numbers = #tpu.dot_dimension_numbers<[1], [0], [0], [1], [0, 0, 1, 1], [], []>} : vector<8x128xbf16>, vector<128x384xbf16>, vector<8x384xf32> -> vector<8x384xf32>
    %23 = vector.broadcast %14 : vector<1x384xf32> to vector<8x384xf32>
    %24 = arith.addf %22, %23 : vector<8x384xf32>
    %25 = arith.index_cast %c0_i32 : i32 to index
    %c0_22 = arith.constant 0 : index
    %c0_23 = arith.constant 0 : index
    %26 = vector.load %arg17[%25, %c0_22, %c0_23] : memref<8x8x768xbf16, #tpu.memory_space<vmem>>, vector<1x8x768xbf16>
    %27 = vector.shape_cast %26 : vector<1x8x768xbf16> to vector<8x768xbf16>
    %28 = arith.extf %27 : vector<8x768xbf16> to vector<8x768xf32>
    %29 = arith.index_cast %16 : i32 to index
    %c0_24 = arith.constant 0 : index
    %c0_25 = arith.constant 0 : index
    %30 = vector.load %arg17[%29, %c0_24, %c0_25] : memref<8x8x768xbf16, #tpu.memory_space<vmem>>, vector<1x8x768xbf16>
    %31 = vector.shape_cast %30 : vector<1x8x768xbf16> to vector<8x768xbf16>
    %32 = arith.extf %31 : vector<8x768xbf16> to vector<8x768xf32>
    %33 = vector.extract_strided_slice %28 {offsets = [0, 0], sizes = [8, 128], strides = [1, 1]} : vector<8x768xf32> to vector<8x128xf32>
    %34 = vector.extract_strided_slice %20 {offsets = [0, 0], sizes = [8, 128], strides = [1, 1]} : vector<8x384xf32> to vector<8x128xf32>
    %35 = arith.addf %33, %34 : vector<8x128xf32>
    %36 = arith.negf %35 : vector<8x128xf32>
    %37 = math.exp %36 : vector<8x128xf32>
    %cst_26 = arith.constant 1.000000e+00 : f32
    %38 = vector.broadcast %cst_26 : f32 to vector<8x128xf32>
    %39 = arith.addf %38, %37 : vector<8x128xf32>
    %40 = arith.divf %38, %39 : vector<8x128xf32>
    %41 = vector.extract_strided_slice %28 {offsets = [0, 128], sizes = [8, 128], strides = [1, 1]} : vector<8x768xf32> to vector<8x128xf32>
    %42 = vector.extract_strided_slice %20 {offsets = [0, 128], sizes = [8, 128], strides = [1, 1]} : vector<8x384xf32> to vector<8x128xf32>
    %43 = arith.addf %41, %42 : vector<8x128xf32>
    %44 = arith.negf %43 : vector<8x128xf32>
    %45 = math.exp %44 : vector<8x128xf32>
    %cst_27 = arith.constant 1.000000e+00 : f32
    %46 = vector.broadcast %cst_27 : f32 to vector<8x128xf32>
    %47 = arith.addf %46, %45 : vector<8x128xf32>
    %48 = arith.divf %46, %47 : vector<8x128xf32>
    %49 = vector.extract_strided_slice %28 {offsets = [0, 256], sizes = [8, 128], strides = [1, 1]} : vector<8x768xf32> to vector<8x128xf32>
    %50 = vector.extract_strided_slice %20 {offsets = [0, 256], sizes = [8, 128], strides = [1, 1]} : vector<8x384xf32> to vector<8x128xf32>
    %51 = arith.mulf %40, %50 : vector<8x128xf32>
    %52 = arith.addf %49, %51 : vector<8x128xf32>
    %53 = math.tanh %52 : vector<8x128xf32>
    %cst_28 = arith.constant 1.000000e+00 : f32
    %54 = vector.broadcast %cst_28 : f32 to vector<8x128xf32>
    %55 = arith.subf %54, %48 : vector<8x128xf32>
    %56 = arith.mulf %55, %53 : vector<8x128xf32>
    %57 = arith.mulf %48, %15 : vector<8x128xf32>
    %58 = arith.addf %56, %57 : vector<8x128xf32>
    %59 = vector.extract_strided_slice %32 {offsets = [0, 384], sizes = [8, 128], strides = [1, 1]} : vector<8x768xf32> to vector<8x128xf32>
    %60 = vector.extract_strided_slice %24 {offsets = [0, 0], sizes = [8, 128], strides = [1, 1]} : vector<8x384xf32> to vector<8x128xf32>
    %61 = arith.addf %59, %60 : vector<8x128xf32>
    %62 = arith.negf %61 : vector<8x128xf32>
    %63 = math.exp %62 : vector<8x128xf32>
    %cst_29 = arith.constant 1.000000e+00 : f32
    %64 = vector.broadcast %cst_29 : f32 to vector<8x128xf32>
    %65 = arith.addf %64, %63 : vector<8x128xf32>
    %66 = arith.divf %64, %65 : vector<8x128xf32>
    %67 = vector.extract_strided_slice %32 {offsets = [0, 512], sizes = [8, 128], strides = [1, 1]} : vector<8x768xf32> to vector<8x128xf32>
    %68 = vector.extract_strided_slice %24 {offsets = [0, 128], sizes = [8, 128], strides = [1, 1]} : vector<8x384xf32> to vector<8x128xf32>
    %69 = arith.addf %67, %68 : vector<8x128xf32>
    %70 = arith.negf %69 : vector<8x128xf32>
    %71 = math.exp %70 : vector<8x128xf32>
    %cst_30 = arith.constant 1.000000e+00 : f32
    %72 = vector.broadcast %cst_30 : f32 to vector<8x128xf32>
    %73 = arith.addf %72, %71 : vector<8x128xf32>
    %74 = arith.divf %72, %73 : vector<8x128xf32>
    %75 = vector.extract_strided_slice %32 {offsets = [0, 640], sizes = [8, 128], strides = [1, 1]} : vector<8x768xf32> to vector<8x128xf32>
    %76 = vector.extract_strided_slice %24 {offsets = [0, 256], sizes = [8, 128], strides = [1, 1]} : vector<8x384xf32> to vector<8x128xf32>
    %77 = arith.mulf %66, %76 : vector<8x128xf32>
    %78 = arith.addf %75, %77 : vector<8x128xf32>
    %79 = math.tanh %78 : vector<8x128xf32>
    %cst_31 = arith.constant 1.000000e+00 : f32
    %80 = vector.broadcast %cst_31 : f32 to vector<8x128xf32>
    %81 = arith.subf %80, %74 : vector<8x128xf32>
    %82 = arith.mulf %81, %79 : vector<8x128xf32>
    %83 = arith.mulf %74, %15 : vector<8x128xf32>
    %84 = arith.addf %82, %83 : vector<8x128xf32>
    %85 = vector.broadcast %c0_i32 : i32 to vector<8x1xi32>
    %86 = arith.cmpi slt, %85, %0 : vector<8x1xi32>
    %87 = vector.broadcast %16 : i32 to vector<8x1xi32>
    %88 = arith.cmpi slt, %87, %0 : vector<8x1xi32>
    %cst_32 = arith.constant 0.000000e+00 : f32
    %89 = vector.shape_cast %86 : vector<8x1xi1> to vector<8x1xi1>
    %90 = vector.broadcast %89 : vector<8x1xi1> to vector<8x128xi1>
    %91 = vector.broadcast %cst_32 : f32 to vector<8x128xf32>
    %92 = arith.select %90, %58, %91 : vector<8x128xi1>, vector<8x128xf32>
    %93 = arith.index_cast %c0_i32 : i32 to index
    %c0_33 = arith.constant 0 : index
    %c0_34 = arith.constant 0 : index
    %94 = vector.load %arg18[%93, %c0_33, %c0_34] : memref<8x8x256xf32, #tpu.memory_space<vmem>>, vector<1x8x128xf32>
    %95 = vector.shape_cast %94 : vector<1x8x128xf32> to vector<8x128xf32>
    %96 = vector.shape_cast %92 : vector<8x128xf32> to vector<1x8x128xf32>
    tpu.vector_store %arg18[%93, %c0_33, %c0_34], %96 {strides = array<i32>} : memref<8x8x256xf32, #tpu.memory_space<vmem>>, vector<1x8x128xf32>,
    %cst_35 = arith.constant 0.000000e+00 : f32
    %97 = vector.shape_cast %88 : vector<8x1xi1> to vector<8x1xi1>
    %98 = vector.broadcast %97 : vector<8x1xi1> to vector<8x128xi1>
    %99 = vector.broadcast %cst_35 : f32 to vector<8x128xf32>
    %100 = arith.select %98, %84, %99 : vector<8x128xi1>, vector<8x128xf32>
    %101 = arith.index_cast %16 : i32 to index
    %c0_36 = arith.constant 0 : index
    %c128 = arith.constant 128 : index
    %102 = vector.load %arg18[%101, %c0_36, %c128] : memref<8x8x256xf32, #tpu.memory_space<vmem>>, vector<1x8x128xf32>
    %103 = vector.shape_cast %102 : vector<1x8x128xf32> to vector<8x128xf32>
    %104 = vector.shape_cast %100 : vector<8x128xf32> to vector<1x8x128xf32>
    tpu.vector_store %arg18[%101, %c0_36, %c128], %104 {strides = array<i32>} : memref<8x8x256xf32, #tpu.memory_space<vmem>>, vector<1x8x128xf32>,
    %105 = vector.shape_cast %86 : vector<8x1xi1> to vector<8x1xi1>
    %106 = vector.broadcast %105 : vector<8x1xi1> to vector<8x128xi1>
    %107 = arith.select %106, %58, %15 : vector<8x128xi1>, vector<8x128xf32>
    %108 = vector.shape_cast %88 : vector<8x1xi1> to vector<8x1xi1>
    %109 = vector.broadcast %108 : vector<8x1xi1> to vector<8x128xi1>
    %110 = arith.select %109, %84, %15 : vector<8x128xi1>, vector<8x128xf32>
    %c1_i32 = arith.constant 1 : i32
    %c7_i32_37 = arith.constant 7 : i32
    %111 = arith.subi %c7_i32_37, %c1_i32 : i32
    %112 = arith.truncf %107 : vector<8x128xf32> to vector<8x128xbf16>
    %cst_38 = arith.constant dense<0.000000e+00> : vector<8x384xf32>
    %113 = tpu.matmul %112, %11, %cst_38 {dimension_numbers = #tpu.dot_dimension_numbers<[1], [0], [0], [1], [0, 0, 1, 1], [], []>} : vector<8x128xbf16>, vector<128x384xbf16>, vector<8x384xf32> -> vector<8x384xf32>
    %114 = vector.broadcast %13 : vector<1x384xf32> to vector<8x384xf32>
    %115 = arith.addf %113, %114 : vector<8x384xf32>
    %116 = arith.truncf %110 : vector<8x128xf32> to vector<8x128xbf16>
    %cst_39 = arith.constant dense<0.000000e+00> : vector<8x384xf32>
    %117 = tpu.matmul %116, %12, %cst_39 {dimension_numbers = #tpu.dot_dimension_numbers<[1], [0], [0], [1], [0, 0, 1, 1], [], []>} : vector<8x128xbf16>, vector<128x384xbf16>, vector<8x384xf32> -> vector<8x384xf32>
    %118 = vector.broadcast %14 : vector<1x384xf32> to vector<8x384xf32>
    %119 = arith.addf %117, %118 : vector<8x384xf32>
    %120 = arith.index_cast %c1_i32 : i32 to index
    %c0_40 = arith.constant 0 : index
    %c0_41 = arith.constant 0 : index
    %121 = vector.load %arg17[%120, %c0_40, %c0_41] : memref<8x8x768xbf16, #tpu.memory_space<vmem>>, vector<1x8x768xbf16>
    %122 = vector.shape_cast %121 : vector<1x8x768xbf16> to vector<8x768xbf16>
    %123 = arith.extf %122 : vector<8x768xbf16> to vector<8x768xf32>
    %124 = arith.index_cast %111 : i32 to index
    %c0_42 = arith.constant 0 : index
    %c0_43 = arith.constant 0 : index
    %125 = vector.load %arg17[%124, %c0_42, %c0_43] : memref<8x8x768xbf16, #tpu.memory_space<vmem>>, vector<1x8x768xbf16>
    %126 = vector.shape_cast %125 : vector<1x8x768xbf16> to vector<8x768xbf16>
    %127 = arith.extf %126 : vector<8x768xbf16> to vector<8x768xf32>
    %128 = vector.extract_strided_slice %123 {offsets = [0, 0], sizes = [8, 128], strides = [1, 1]} : vector<8x768xf32> to vector<8x128xf32>
    %129 = vector.extract_strided_slice %115 {offsets = [0, 0], sizes = [8, 128], strides = [1, 1]} : vector<8x384xf32> to vector<8x128xf32>
    %130 = arith.addf %128, %129 : vector<8x128xf32>
    %131 = arith.negf %130 : vector<8x128xf32>
    %132 = math.exp %131 : vector<8x128xf32>
    %cst_44 = arith.constant 1.000000e+00 : f32
    %133 = vector.broadcast %cst_44 : f32 to vector<8x128xf32>
    %134 = arith.addf %133, %132 : vector<8x128xf32>
    %135 = arith.divf %133, %134 : vector<8x128xf32>
    %136 = vector.extract_strided_slice %123 {offsets = [0, 128], sizes = [8, 128], strides = [1, 1]} : vector<8x768xf32> to vector<8x128xf32>
    %137 = vector.extract_strided_slice %115 {offsets = [0, 128], sizes = [8, 128], strides = [1, 1]} : vector<8x384xf32> to vector<8x128xf32>
    %138 = arith.addf %136, %137 : vector<8x128xf32>
    %139 = arith.negf %138 : vector<8x128xf32>
    %140 = math.exp %139 : vector<8x128xf32>
    %cst_45 = arith.constant 1.000000e+00 : f32
    %141 = vector.broadcast %cst_45 : f32 to vector<8x128xf32>
    %142 = arith.addf %141, %140 : vector<8x128xf32>
    %143 = arith.divf %141, %142 : vector<8x128xf32>
    %144 = vector.extract_strided_slice %123 {offsets = [0, 256], sizes = [8, 128], strides = [1, 1]} : vector<8x768xf32> to vector<8x128xf32>
    %145 = vector.extract_strided_slice %115 {offsets = [0, 256], sizes = [8, 128], strides = [1, 1]} : vector<8x384xf32> to vector<8x128xf32>
    %146 = arith.mulf %135, %145 : vector<8x128xf32>
    %147 = arith.addf %144, %146 : vector<8x128xf32>
    %148 = math.tanh %147 : vector<8x128xf32>
    %cst_46 = arith.constant 1.000000e+00 : f32
    %149 = vector.broadcast %cst_46 : f32 to vector<8x128xf32>
    %150 = arith.subf %149, %143 : vector<8x128xf32>
    %151 = arith.mulf %150, %148 : vector<8x128xf32>
    %152 = arith.mulf %143, %107 : vector<8x128xf32>
    %153 = arith.addf %151, %152 : vector<8x128xf32>
    %154 = vector.extract_strided_slice %127 {offsets = [0, 384], sizes = [8, 128], strides = [1, 1]} : vector<8x768xf32> to vector<8x128xf32>
    %155 = vector.extract_strided_slice %119 {offsets = [0, 0], sizes = [8, 128], strides = [1, 1]} : vector<8x384xf32> to vector<8x128xf32>
    %156 = arith.addf %154, %155 : vector<8x128xf32>
    %157 = arith.negf %156 : vector<8x128xf32>
    %158 = math.exp %157 : vector<8x128xf32>
    %cst_47 = arith.constant 1.000000e+00 : f32
    %159 = vector.broadcast %cst_47 : f32 to vector<8x128xf32>
    %160 = arith.addf %159, %158 : vector<8x128xf32>
    %161 = arith.divf %159, %160 : vector<8x128xf32>
    %162 = vector.extract_strided_slice %127 {offsets = [0, 512], sizes = [8, 128], strides = [1, 1]} : vector<8x768xf32> to vector<8x128xf32>
    %163 = vector.extract_strided_slice %119 {offsets = [0, 128], sizes = [8, 128], strides = [1, 1]} : vector<8x384xf32> to vector<8x128xf32>
    %164 = arith.addf %162, %163 : vector<8x128xf32>
    %165 = arith.negf %164 : vector<8x128xf32>
    %166 = math.exp %165 : vector<8x128xf32>
    %cst_48 = arith.constant 1.000000e+00 : f32
    %167 = vector.broadcast %cst_48 : f32 to vector<8x128xf32>
    %168 = arith.addf %167, %166 : vector<8x128xf32>
    %169 = arith.divf %167, %168 : vector<8x128xf32>
    %170 = vector.extract_strided_slice %127 {offsets = [0, 640], sizes = [8, 128], strides = [1, 1]} : vector<8x768xf32> to vector<8x128xf32>
    %171 = vector.extract_strided_slice %119 {offsets = [0, 256], sizes = [8, 128], strides = [1, 1]} : vector<8x384xf32> to vector<8x128xf32>
    %172 = arith.mulf %161, %171 : vector<8x128xf32>
    %173 = arith.addf %170, %172 : vector<8x128xf32>
    %174 = math.tanh %173 : vector<8x128xf32>
    %cst_49 = arith.constant 1.000000e+00 : f32
    %175 = vector.broadcast %cst_49 : f32 to vector<8x128xf32>
    %176 = arith.subf %175, %169 : vector<8x128xf32>
    %177 = arith.mulf %176, %174 : vector<8x128xf32>
    %178 = arith.mulf %169, %110 : vector<8x128xf32>
    %179 = arith.addf %177, %178 : vector<8x128xf32>
    %180 = vector.broadcast %c1_i32 : i32 to vector<8x1xi32>
    %181 = arith.cmpi slt, %180, %0 : vector<8x1xi32>
    %182 = vector.broadcast %111 : i32 to vector<8x1xi32>
    %183 = arith.cmpi slt, %182, %0 : vector<8x1xi32>
    %cst_50 = arith.constant 0.000000e+00 : f32
    %184 = vector.shape_cast %181 : vector<8x1xi1> to vector<8x1xi1>
    %185 = vector.broadcast %184 : vector<8x1xi1> to vector<8x128xi1>
    %186 = vector.broadcast %cst_50 : f32 to vector<8x128xf32>
    %187 = arith.select %185, %153, %186 : vector<8x128xi1>, vector<8x128xf32>
    %188 = arith.index_cast %c1_i32 : i32 to index
    %c0_51 = arith.constant 0 : index
    %c0_52 = arith.constant 0 : index
    %189 = vector.load %arg18[%188, %c0_51, %c0_52] : memref<8x8x256xf32, #tpu.memory_space<vmem>>, vector<1x8x128xf32>
    %190 = vector.shape_cast %189 : vector<1x8x128xf32> to vector<8x128xf32>
    %191 = vector.shape_cast %187 : vector<8x128xf32> to vector<1x8x128xf32>
    tpu.vector_store %arg18[%188, %c0_51, %c0_52], %191 {strides = array<i32>} : memref<8x8x256xf32, #tpu.memory_space<vmem>>, vector<1x8x128xf32>,
    %cst_53 = arith.constant 0.000000e+00 : f32
    %192 = vector.shape_cast %183 : vector<8x1xi1> to vector<8x1xi1>
    %193 = vector.broadcast %192 : vector<8x1xi1> to vector<8x128xi1>
    %194 = vector.broadcast %cst_53 : f32 to vector<8x128xf32>
    %195 = arith.select %193, %179, %194 : vector<8x128xi1>, vector<8x128xf32>
    %196 = arith.index_cast %111 : i32 to index
    %c0_54 = arith.constant 0 : index
    %c128_55 = arith.constant 128 : index
    %197 = vector.load %arg18[%196, %c0_54, %c128_55] : memref<8x8x256xf32, #tpu.memory_space<vmem>>, vector<1x8x128xf32>
    %198 = vector.shape_cast %197 : vector<1x8x128xf32> to vector<8x128xf32>
    %199 = vector.shape_cast %195 : vector<8x128xf32> to vector<1x8x128xf32>
    tpu.vector_store %arg18[%196, %c0_54, %c128_55], %199 {strides = array<i32>} : memref<8x8x256xf32, #tpu.memory_space<vmem>>, vector<1x8x128xf32>,
    %200 = vector.shape_cast %181 : vector<8x1xi1> to vector<8x1xi1>
    %201 = vector.broadcast %200 : vector<8x1xi1> to vector<8x128xi1>
    %202 = arith.select %201, %153, %107 : vector<8x128xi1>, vector<8x128xf32>
    %203 = vector.shape_cast %183 : vector<8x1xi1> to vector<8x1xi1>
    %204 = vector.broadcast %203 : vector<8x1xi1> to vector<8x128xi1>
    %205 = arith.select %204, %179, %110 : vector<8x128xi1>, vector<8x128xf32>
    %c2_i32 = arith.constant 2 : i32
    %c7_i32_56 = arith.constant 7 : i32
    %206 = arith.subi %c7_i32_56, %c2_i32 : i32
    %207 = arith.truncf %202 : vector<8x128xf32> to vector<8x128xbf16>
    %cst_57 = arith.constant dense<0.000000e+00> : vector<8x384xf32>
    %208 = tpu.matmul %207, %11, %cst_57 {dimension_numbers = #tpu.dot_dimension_numbers<[1], [0], [0], [1], [0, 0, 1, 1], [], []>} : vector<8x128xbf16>, vector<128x384xbf16>, vector<8x384xf32> -> vector<8x384xf32>
    %209 = vector.broadcast %13 : vector<1x384xf32> to vector<8x384xf32>
    %210 = arith.addf %208, %209 : vector<8x384xf32>
    %211 = arith.truncf %205 : vector<8x128xf32> to vector<8x128xbf16>
    %cst_58 = arith.constant dense<0.000000e+00> : vector<8x384xf32>
    %212 = tpu.matmul %211, %12, %cst_58 {dimension_numbers = #tpu.dot_dimension_numbers<[1], [0], [0], [1], [0, 0, 1, 1], [], []>} : vector<8x128xbf16>, vector<128x384xbf16>, vector<8x384xf32> -> vector<8x384xf32>
    %213 = vector.broadcast %14 : vector<1x384xf32> to vector<8x384xf32>
    %214 = arith.addf %212, %213 : vector<8x384xf32>
    %215 = arith.index_cast %c2_i32 : i32 to index
    %c0_59 = arith.constant 0 : index
    %c0_60 = arith.constant 0 : index
    %216 = vector.load %arg17[%215, %c0_59, %c0_60] : memref<8x8x768xbf16, #tpu.memory_space<vmem>>, vector<1x8x768xbf16>
    %217 = vector.shape_cast %216 : vector<1x8x768xbf16> to vector<8x768xbf16>
    %218 = arith.extf %217 : vector<8x768xbf16> to vector<8x768xf32>
    %219 = arith.index_cast %206 : i32 to index
    %c0_61 = arith.constant 0 : index
    %c0_62 = arith.constant 0 : index
    %220 = vector.load %arg17[%219, %c0_61, %c0_62] : memref<8x8x768xbf16, #tpu.memory_space<vmem>>, vector<1x8x768xbf16>
    %221 = vector.shape_cast %220 : vector<1x8x768xbf16> to vector<8x768xbf16>
    %222 = arith.extf %221 : vector<8x768xbf16> to vector<8x768xf32>
    %223 = vector.extract_strided_slice %218 {offsets = [0, 0], sizes = [8, 128], strides = [1, 1]} : vector<8x768xf32> to vector<8x128xf32>
    %224 = vector.extract_strided_slice %210 {offsets = [0, 0], sizes = [8, 128], strides = [1, 1]} : vector<8x384xf32> to vector<8x128xf32>
    %225 = arith.addf %223, %224 : vector<8x128xf32>
    %226 = arith.negf %225 : vector<8x128xf32>
    %227 = math.exp %226 : vector<8x128xf32>
    %cst_63 = arith.constant 1.000000e+00 : f32
    %228 = vector.broadcast %cst_63 : f32 to vector<8x128xf32>
    %229 = arith.addf %228, %227 : vector<8x128xf32>
    %230 = arith.divf %228, %229 : vector<8x128xf32>
    %231 = vector.extract_strided_slice %218 {offsets = [0, 128], sizes = [8, 128], strides = [1, 1]} : vector<8x768xf32> to vector<8x128xf32>
    %232 = vector.extract_strided_slice %210 {offsets = [0, 128], sizes = [8, 128], strides = [1, 1]} : vector<8x384xf32> to vector<8x128xf32>
    %233 = arith.addf %231, %232 : vector<8x128xf32>
    %234 = arith.negf %233 : vector<8x128xf32>
    %235 = math.exp %234 : vector<8x128xf32>
    %cst_64 = arith.constant 1.000000e+00 : f32
    %236 = vector.broadcast %cst_64 : f32 to vector<8x128xf32>
    %237 = arith.addf %236, %235 : vector<8x128xf32>
    %238 = arith.divf %236, %237 : vector<8x128xf32>
    %239 = vector.extract_strided_slice %218 {offsets = [0, 256], sizes = [8, 128], strides = [1, 1]} : vector<8x768xf32> to vector<8x128xf32>
    %240 = vector.extract_strided_slice %210 {offsets = [0, 256], sizes = [8, 128], strides = [1, 1]} : vector<8x384xf32> to vector<8x128xf32>
    %241 = arith.mulf %230, %240 : vector<8x128xf32>
    %242 = arith.addf %239, %241 : vector<8x128xf32>
    %243 = math.tanh %242 : vector<8x128xf32>
    %cst_65 = arith.constant 1.000000e+00 : f32
    %244 = vector.broadcast %cst_65 : f32 to vector<8x128xf32>
    %245 = arith.subf %244, %238 : vector<8x128xf32>
    %246 = arith.mulf %245, %243 : vector<8x128xf32>
    %247 = arith.mulf %238, %202 : vector<8x128xf32>
    %248 = arith.addf %246, %247 : vector<8x128xf32>
    %249 = vector.extract_strided_slice %222 {offsets = [0, 384], sizes = [8, 128], strides = [1, 1]} : vector<8x768xf32> to vector<8x128xf32>
    %250 = vector.extract_strided_slice %214 {offsets = [0, 0], sizes = [8, 128], strides = [1, 1]} : vector<8x384xf32> to vector<8x128xf32>
    %251 = arith.addf %249, %250 : vector<8x128xf32>
    %252 = arith.negf %251 : vector<8x128xf32>
    %253 = math.exp %252 : vector<8x128xf32>
    %cst_66 = arith.constant 1.000000e+00 : f32
    %254 = vector.broadcast %cst_66 : f32 to vector<8x128xf32>
    %255 = arith.addf %254, %253 : vector<8x128xf32>
    %256 = arith.divf %254, %255 : vector<8x128xf32>
    %257 = vector.extract_strided_slice %222 {offsets = [0, 512], sizes = [8, 128], strides = [1, 1]} : vector<8x768xf32> to vector<8x128xf32>
    %258 = vector.extract_strided_slice %214 {offsets = [0, 128], sizes = [8, 128], strides = [1, 1]} : vector<8x384xf32> to vector<8x128xf32>
    %259 = arith.addf %257, %258 : vector<8x128xf32>
    %260 = arith.negf %259 : vector<8x128xf32>
    %261 = math.exp %260 : vector<8x128xf32>
    %cst_67 = arith.constant 1.000000e+00 : f32
    %262 = vector.broadcast %cst_67 : f32 to vector<8x128xf32>
    %263 = arith.addf %262, %261 : vector<8x128xf32>
    %264 = arith.divf %262, %263 : vector<8x128xf32>
    %265 = vector.extract_strided_slice %222 {offsets = [0, 640], sizes = [8, 128], strides = [1, 1]} : vector<8x768xf32> to vector<8x128xf32>
    %266 = vector.extract_strided_slice %214 {offsets = [0, 256], sizes = [8, 128], strides = [1, 1]} : vector<8x384xf32> to vector<8x128xf32>
    %267 = arith.mulf %256, %266 : vector<8x128xf32>
    %268 = arith.addf %265, %267 : vector<8x128xf32>
    %269 = math.tanh %268 : vector<8x128xf32>
    %cst_68 = arith.constant 1.000000e+00 : f32
    %270 = vector.broadcast %cst_68 : f32 to vector<8x128xf32>
    %271 = arith.subf %270, %264 : vector<8x128xf32>
    %272 = arith.mulf %271, %269 : vector<8x128xf32>
    %273 = arith.mulf %264, %205 : vector<8x128xf32>
    %274 = arith.addf %272, %273 : vector<8x128xf32>
    %275 = vector.broadcast %c2_i32 : i32 to vector<8x1xi32>
    %276 = arith.cmpi slt, %275, %0 : vector<8x1xi32>
    %277 = vector.broadcast %206 : i32 to vector<8x1xi32>
    %278 = arith.cmpi slt, %277, %0 : vector<8x1xi32>
    %cst_69 = arith.constant 0.000000e+00 : f32
    %279 = vector.shape_cast %276 : vector<8x1xi1> to vector<8x1xi1>
    %280 = vector.broadcast %279 : vector<8x1xi1> to vector<8x128xi1>
    %281 = vector.broadcast %cst_69 : f32 to vector<8x128xf32>
    %282 = arith.select %280, %248, %281 : vector<8x128xi1>, vector<8x128xf32>
    %283 = arith.index_cast %c2_i32 : i32 to index
    %c0_70 = arith.constant 0 : index
    %c0_71 = arith.constant 0 : index
    %284 = vector.load %arg18[%283, %c0_70, %c0_71] : memref<8x8x256xf32, #tpu.memory_space<vmem>>, vector<1x8x128xf32>
    %285 = vector.shape_cast %284 : vector<1x8x128xf32> to vector<8x128xf32>
    %286 = vector.shape_cast %282 : vector<8x128xf32> to vector<1x8x128xf32>
    tpu.vector_store %arg18[%283, %c0_70, %c0_71], %286 {strides = array<i32>} : memref<8x8x256xf32, #tpu.memory_space<vmem>>, vector<1x8x128xf32>,
    %cst_72 = arith.constant 0.000000e+00 : f32
    %287 = vector.shape_cast %278 : vector<8x1xi1> to vector<8x1xi1>
    %288 = vector.broadcast %287 : vector<8x1xi1> to vector<8x128xi1>
    %289 = vector.broadcast %cst_72 : f32 to vector<8x128xf32>
    %290 = arith.select %288, %274, %289 : vector<8x128xi1>, vector<8x128xf32>
    %291 = arith.index_cast %206 : i32 to index
    %c0_73 = arith.constant 0 : index
    %c128_74 = arith.constant 128 : index
    %292 = vector.load %arg18[%291, %c0_73, %c128_74] : memref<8x8x256xf32, #tpu.memory_space<vmem>>, vector<1x8x128xf32>
    %293 = vector.shape_cast %292 : vector<1x8x128xf32> to vector<8x128xf32>
    %294 = vector.shape_cast %290 : vector<8x128xf32> to vector<1x8x128xf32>
    tpu.vector_store %arg18[%291, %c0_73, %c128_74], %294 {strides = array<i32>} : memref<8x8x256xf32, #tpu.memory_space<vmem>>, vector<1x8x128xf32>,
    %295 = vector.shape_cast %276 : vector<8x1xi1> to vector<8x1xi1>
    %296 = vector.broadcast %295 : vector<8x1xi1> to vector<8x128xi1>
    %297 = arith.select %296, %248, %202 : vector<8x128xi1>, vector<8x128xf32>
    %298 = vector.shape_cast %278 : vector<8x1xi1> to vector<8x1xi1>
    %299 = vector.broadcast %298 : vector<8x1xi1> to vector<8x128xi1>
    %300 = arith.select %299, %274, %205 : vector<8x128xi1>, vector<8x128xf32>
    %c3_i32 = arith.constant 3 : i32
    %c7_i32_75 = arith.constant 7 : i32
    %301 = arith.subi %c7_i32_75, %c3_i32 : i32
    %302 = arith.truncf %297 : vector<8x128xf32> to vector<8x128xbf16>
    %cst_76 = arith.constant dense<0.000000e+00> : vector<8x384xf32>
    %303 = tpu.matmul %302, %11, %cst_76 {dimension_numbers = #tpu.dot_dimension_numbers<[1], [0], [0], [1], [0, 0, 1, 1], [], []>} : vector<8x128xbf16>, vector<128x384xbf16>, vector<8x384xf32> -> vector<8x384xf32>
    %304 = vector.broadcast %13 : vector<1x384xf32> to vector<8x384xf32>
    %305 = arith.addf %303, %304 : vector<8x384xf32>
    %306 = arith.truncf %300 : vector<8x128xf32> to vector<8x128xbf16>
    %cst_77 = arith.constant dense<0.000000e+00> : vector<8x384xf32>
    %307 = tpu.matmul %306, %12, %cst_77 {dimension_numbers = #tpu.dot_dimension_numbers<[1], [0], [0], [1], [0, 0, 1, 1], [], []>} : vector<8x128xbf16>, vector<128x384xbf16>, vector<8x384xf32> -> vector<8x384xf32>
    %308 = vector.broadcast %14 : vector<1x384xf32> to vector<8x384xf32>
    %309 = arith.addf %307, %308 : vector<8x384xf32>
    %310 = arith.index_cast %c3_i32 : i32 to index
    %c0_78 = arith.constant 0 : index
    %c0_79 = arith.constant 0 : index
    %311 = vector.load %arg17[%310, %c0_78, %c0_79] : memref<8x8x768xbf16, #tpu.memory_space<vmem>>, vector<1x8x768xbf16>
    %312 = vector.shape_cast %311 : vector<1x8x768xbf16> to vector<8x768xbf16>
    %313 = arith.extf %312 : vector<8x768xbf16> to vector<8x768xf32>
    %314 = arith.index_cast %301 : i32 to index
    %c0_80 = arith.constant 0 : index
    %c0_81 = arith.constant 0 : index
    %315 = vector.load %arg17[%314, %c0_80, %c0_81] : memref<8x8x768xbf16, #tpu.memory_space<vmem>>, vector<1x8x768xbf16>
    %316 = vector.shape_cast %315 : vector<1x8x768xbf16> to vector<8x768xbf16>
    %317 = arith.extf %316 : vector<8x768xbf16> to vector<8x768xf32>
    %318 = vector.extract_strided_slice %313 {offsets = [0, 0], sizes = [8, 128], strides = [1, 1]} : vector<8x768xf32> to vector<8x128xf32>
    %319 = vector.extract_strided_slice %305 {offsets = [0, 0], sizes = [8, 128], strides = [1, 1]} : vector<8x384xf32> to vector<8x128xf32>
    %320 = arith.addf %318, %319 : vector<8x128xf32>
    %321 = arith.negf %320 : vector<8x128xf32>
    %322 = math.exp %321 : vector<8x128xf32>
    %cst_82 = arith.constant 1.000000e+00 : f32
    %323 = vector.broadcast %cst_82 : f32 to vector<8x128xf32>
    %324 = arith.addf %323, %322 : vector<8x128xf32>
    %325 = arith.divf %323, %324 : vector<8x128xf32>
    %326 = vector.extract_strided_slice %313 {offsets = [0, 128], sizes = [8, 128], strides = [1, 1]} : vector<8x768xf32> to vector<8x128xf32>
    %327 = vector.extract_strided_slice %305 {offsets = [0, 128], sizes = [8, 128], strides = [1, 1]} : vector<8x384xf32> to vector<8x128xf32>
    %328 = arith.addf %326, %327 : vector<8x128xf32>
    %329 = arith.negf %328 : vector<8x128xf32>
    %330 = math.exp %329 : vector<8x128xf32>
    %cst_83 = arith.constant 1.000000e+00 : f32
    %331 = vector.broadcast %cst_83 : f32 to vector<8x128xf32>
    %332 = arith.addf %331, %330 : vector<8x128xf32>
    %333 = arith.divf %331, %332 : vector<8x128xf32>
    %334 = vector.extract_strided_slice %313 {offsets = [0, 256], sizes = [8, 128], strides = [1, 1]} : vector<8x768xf32> to vector<8x128xf32>
    %335 = vector.extract_strided_slice %305 {offsets = [0, 256], sizes = [8, 128], strides = [1, 1]} : vector<8x384xf32> to vector<8x128xf32>
    %336 = arith.mulf %325, %335 : vector<8x128xf32>
    %337 = arith.addf %334, %336 : vector<8x128xf32>
    %338 = math.tanh %337 : vector<8x128xf32>
    %cst_84 = arith.constant 1.000000e+00 : f32
    %339 = vector.broadcast %cst_84 : f32 to vector<8x128xf32>
    %340 = arith.subf %339, %333 : vector<8x128xf32>
    %341 = arith.mulf %340, %338 : vector<8x128xf32>
    %342 = arith.mulf %333, %297 : vector<8x128xf32>
    %343 = arith.addf %341, %342 : vector<8x128xf32>
    %344 = vector.extract_strided_slice %317 {offsets = [0, 384], sizes = [8, 128], strides = [1, 1]} : vector<8x768xf32> to vector<8x128xf32>
    %345 = vector.extract_strided_slice %309 {offsets = [0, 0], sizes = [8, 128], strides = [1, 1]} : vector<8x384xf32> to vector<8x128xf32>
    %346 = arith.addf %344, %345 : vector<8x128xf32>
    %347 = arith.negf %346 : vector<8x128xf32>
    %348 = math.exp %347 : vector<8x128xf32>
    %cst_85 = arith.constant 1.000000e+00 : f32
    %349 = vector.broadcast %cst_85 : f32 to vector<8x128xf32>
    %350 = arith.addf %349, %348 : vector<8x128xf32>
    %351 = arith.divf %349, %350 : vector<8x128xf32>
    %352 = vector.extract_strided_slice %317 {offsets = [0, 512], sizes = [8, 128], strides = [1, 1]} : vector<8x768xf32> to vector<8x128xf32>
    %353 = vector.extract_strided_slice %309 {offsets = [0, 128], sizes = [8, 128], strides = [1, 1]} : vector<8x384xf32> to vector<8x128xf32>
    %354 = arith.addf %352, %353 : vector<8x128xf32>
    %355 = arith.negf %354 : vector<8x128xf32>
    %356 = math.exp %355 : vector<8x128xf32>
    %cst_86 = arith.constant 1.000000e+00 : f32
    %357 = vector.broadcast %cst_86 : f32 to vector<8x128xf32>
    %358 = arith.addf %357, %356 : vector<8x128xf32>
    %359 = arith.divf %357, %358 : vector<8x128xf32>
    %360 = vector.extract_strided_slice %317 {offsets = [0, 640], sizes = [8, 128], strides = [1, 1]} : vector<8x768xf32> to vector<8x128xf32>
    %361 = vector.extract_strided_slice %309 {offsets = [0, 256], sizes = [8, 128], strides = [1, 1]} : vector<8x384xf32> to vector<8x128xf32>
    %362 = arith.mulf %351, %361 : vector<8x128xf32>
    %363 = arith.addf %360, %362 : vector<8x128xf32>
    %364 = math.tanh %363 : vector<8x128xf32>
    %cst_87 = arith.constant 1.000000e+00 : f32
    %365 = vector.broadcast %cst_87 : f32 to vector<8x128xf32>
    %366 = arith.subf %365, %359 : vector<8x128xf32>
    %367 = arith.mulf %366, %364 : vector<8x128xf32>
    %368 = arith.mulf %359, %300 : vector<8x128xf32>
    %369 = arith.addf %367, %368 : vector<8x128xf32>
    %370 = vector.broadcast %c3_i32 : i32 to vector<8x1xi32>
    %371 = arith.cmpi slt, %370, %0 : vector<8x1xi32>
    %372 = vector.broadcast %301 : i32 to vector<8x1xi32>
    %373 = arith.cmpi slt, %372, %0 : vector<8x1xi32>
    %cst_88 = arith.constant 0.000000e+00 : f32
    %374 = vector.shape_cast %371 : vector<8x1xi1> to vector<8x1xi1>
    %375 = vector.broadcast %374 : vector<8x1xi1> to vector<8x128xi1>
    %376 = vector.broadcast %cst_88 : f32 to vector<8x128xf32>
    %377 = arith.select %375, %343, %376 : vector<8x128xi1>, vector<8x128xf32>
    %378 = arith.index_cast %c3_i32 : i32 to index
    %c0_89 = arith.constant 0 : index
    %c0_90 = arith.constant 0 : index
    %379 = vector.load %arg18[%378, %c0_89, %c0_90] : memref<8x8x256xf32, #tpu.memory_space<vmem>>, vector<1x8x128xf32>
    %380 = vector.shape_cast %379 : vector<1x8x128xf32> to vector<8x128xf32>
    %381 = vector.shape_cast %377 : vector<8x128xf32> to vector<1x8x128xf32>
    tpu.vector_store %arg18[%378, %c0_89, %c0_90], %381 {strides = array<i32>} : memref<8x8x256xf32, #tpu.memory_space<vmem>>, vector<1x8x128xf32>,
    %cst_91 = arith.constant 0.000000e+00 : f32
    %382 = vector.shape_cast %373 : vector<8x1xi1> to vector<8x1xi1>
    %383 = vector.broadcast %382 : vector<8x1xi1> to vector<8x128xi1>
    %384 = vector.broadcast %cst_91 : f32 to vector<8x128xf32>
    %385 = arith.select %383, %369, %384 : vector<8x128xi1>, vector<8x128xf32>
    %386 = arith.index_cast %301 : i32 to index
    %c0_92 = arith.constant 0 : index
    %c128_93 = arith.constant 128 : index
    %387 = vector.load %arg18[%386, %c0_92, %c128_93] : memref<8x8x256xf32, #tpu.memory_space<vmem>>, vector<1x8x128xf32>
    %388 = vector.shape_cast %387 : vector<1x8x128xf32> to vector<8x128xf32>
    %389 = vector.shape_cast %385 : vector<8x128xf32> to vector<1x8x128xf32>
    tpu.vector_store %arg18[%386, %c0_92, %c128_93], %389 {strides = array<i32>} : memref<8x8x256xf32, #tpu.memory_space<vmem>>, vector<1x8x128xf32>,
    %390 = vector.shape_cast %371 : vector<8x1xi1> to vector<8x1xi1>
    %391 = vector.broadcast %390 : vector<8x1xi1> to vector<8x128xi1>
    %392 = arith.select %391, %343, %297 : vector<8x128xi1>, vector<8x128xf32>
    %393 = vector.shape_cast %373 : vector<8x1xi1> to vector<8x1xi1>
    %394 = vector.broadcast %393 : vector<8x1xi1> to vector<8x128xi1>
    %395 = arith.select %394, %369, %300 : vector<8x128xi1>, vector<8x128xf32>
    %c4_i32 = arith.constant 4 : i32
    %c7_i32_94 = arith.constant 7 : i32
    %396 = arith.subi %c7_i32_94, %c4_i32 : i32
    %397 = arith.truncf %392 : vector<8x128xf32> to vector<8x128xbf16>
    %cst_95 = arith.constant dense<0.000000e+00> : vector<8x384xf32>
    %398 = tpu.matmul %397, %11, %cst_95 {dimension_numbers = #tpu.dot_dimension_numbers<[1], [0], [0], [1], [0, 0, 1, 1], [], []>} : vector<8x128xbf16>, vector<128x384xbf16>, vector<8x384xf32> -> vector<8x384xf32>
    %399 = vector.broadcast %13 : vector<1x384xf32> to vector<8x384xf32>
    %400 = arith.addf %398, %399 : vector<8x384xf32>
    %401 = arith.truncf %395 : vector<8x128xf32> to vector<8x128xbf16>
    %cst_96 = arith.constant dense<0.000000e+00> : vector<8x384xf32>
    %402 = tpu.matmul %401, %12, %cst_96 {dimension_numbers = #tpu.dot_dimension_numbers<[1], [0], [0], [1], [0, 0, 1, 1], [], []>} : vector<8x128xbf16>, vector<128x384xbf16>, vector<8x384xf32> -> vector<8x384xf32>
    %403 = vector.broadcast %14 : vector<1x384xf32> to vector<8x384xf32>
    %404 = arith.addf %402, %403 : vector<8x384xf32>
    %405 = arith.index_cast %c4_i32 : i32 to index
    %c0_97 = arith.constant 0 : index
    %c0_98 = arith.constant 0 : index
    %406 = vector.load %arg17[%405, %c0_97, %c0_98] : memref<8x8x768xbf16, #tpu.memory_space<vmem>>, vector<1x8x768xbf16>
    %407 = vector.shape_cast %406 : vector<1x8x768xbf16> to vector<8x768xbf16>
    %408 = arith.extf %407 : vector<8x768xbf16> to vector<8x768xf32>
    %409 = arith.index_cast %396 : i32 to index
    %c0_99 = arith.constant 0 : index
    %c0_100 = arith.constant 0 : index
    %410 = vector.load %arg17[%409, %c0_99, %c0_100] : memref<8x8x768xbf16, #tpu.memory_space<vmem>>, vector<1x8x768xbf16>
    %411 = vector.shape_cast %410 : vector<1x8x768xbf16> to vector<8x768xbf16>
    %412 = arith.extf %411 : vector<8x768xbf16> to vector<8x768xf32>
    %413 = vector.extract_strided_slice %408 {offsets = [0, 0], sizes = [8, 128], strides = [1, 1]} : vector<8x768xf32> to vector<8x128xf32>
    %414 = vector.extract_strided_slice %400 {offsets = [0, 0], sizes = [8, 128], strides = [1, 1]} : vector<8x384xf32> to vector<8x128xf32>
    %415 = arith.addf %413, %414 : vector<8x128xf32>
    %416 = arith.negf %415 : vector<8x128xf32>
    %417 = math.exp %416 : vector<8x128xf32>
    %cst_101 = arith.constant 1.000000e+00 : f32
    %418 = vector.broadcast %cst_101 : f32 to vector<8x128xf32>
    %419 = arith.addf %418, %417 : vector<8x128xf32>
    %420 = arith.divf %418, %419 : vector<8x128xf32>
    %421 = vector.extract_strided_slice %408 {offsets = [0, 128], sizes = [8, 128], strides = [1, 1]} : vector<8x768xf32> to vector<8x128xf32>
    %422 = vector.extract_strided_slice %400 {offsets = [0, 128], sizes = [8, 128], strides = [1, 1]} : vector<8x384xf32> to vector<8x128xf32>
    %423 = arith.addf %421, %422 : vector<8x128xf32>
    %424 = arith.negf %423 : vector<8x128xf32>
    %425 = math.exp %424 : vector<8x128xf32>
    %cst_102 = arith.constant 1.000000e+00 : f32
    %426 = vector.broadcast %cst_102 : f32 to vector<8x128xf32>
    %427 = arith.addf %426, %425 : vector<8x128xf32>
    %428 = arith.divf %426, %427 : vector<8x128xf32>
    %429 = vector.extract_strided_slice %408 {offsets = [0, 256], sizes = [8, 128], strides = [1, 1]} : vector<8x768xf32> to vector<8x128xf32>
    %430 = vector.extract_strided_slice %400 {offsets = [0, 256], sizes = [8, 128], strides = [1, 1]} : vector<8x384xf32> to vector<8x128xf32>
    %431 = arith.mulf %420, %430 : vector<8x128xf32>
    %432 = arith.addf %429, %431 : vector<8x128xf32>
    %433 = math.tanh %432 : vector<8x128xf32>
    %cst_103 = arith.constant 1.000000e+00 : f32
    %434 = vector.broadcast %cst_103 : f32 to vector<8x128xf32>
    %435 = arith.subf %434, %428 : vector<8x128xf32>
    %436 = arith.mulf %435, %433 : vector<8x128xf32>
    %437 = arith.mulf %428, %392 : vector<8x128xf32>
    %438 = arith.addf %436, %437 : vector<8x128xf32>
    %439 = vector.extract_strided_slice %412 {offsets = [0, 384], sizes = [8, 128], strides = [1, 1]} : vector<8x768xf32> to vector<8x128xf32>
    %440 = vector.extract_strided_slice %404 {offsets = [0, 0], sizes = [8, 128], strides = [1, 1]} : vector<8x384xf32> to vector<8x128xf32>
    %441 = arith.addf %439, %440 : vector<8x128xf32>
    %442 = arith.negf %441 : vector<8x128xf32>
    %443 = math.exp %442 : vector<8x128xf32>
    %cst_104 = arith.constant 1.000000e+00 : f32
    %444 = vector.broadcast %cst_104 : f32 to vector<8x128xf32>
    %445 = arith.addf %444, %443 : vector<8x128xf32>
    %446 = arith.divf %444, %445 : vector<8x128xf32>
    %447 = vector.extract_strided_slice %412 {offsets = [0, 512], sizes = [8, 128], strides = [1, 1]} : vector<8x768xf32> to vector<8x128xf32>
    %448 = vector.extract_strided_slice %404 {offsets = [0, 128], sizes = [8, 128], strides = [1, 1]} : vector<8x384xf32> to vector<8x128xf32>
    %449 = arith.addf %447, %448 : vector<8x128xf32>
    %450 = arith.negf %449 : vector<8x128xf32>
    %451 = math.exp %450 : vector<8x128xf32>
    %cst_105 = arith.constant 1.000000e+00 : f32
    %452 = vector.broadcast %cst_105 : f32 to vector<8x128xf32>
    %453 = arith.addf %452, %451 : vector<8x128xf32>
    %454 = arith.divf %452, %453 : vector<8x128xf32>
    %455 = vector.extract_strided_slice %412 {offsets = [0, 640], sizes = [8, 128], strides = [1, 1]} : vector<8x768xf32> to vector<8x128xf32>
    %456 = vector.extract_strided_slice %404 {offsets = [0, 256], sizes = [8, 128], strides = [1, 1]} : vector<8x384xf32> to vector<8x128xf32>
    %457 = arith.mulf %446, %456 : vector<8x128xf32>
    %458 = arith.addf %455, %457 : vector<8x128xf32>
    %459 = math.tanh %458 : vector<8x128xf32>
    %cst_106 = arith.constant 1.000000e+00 : f32
    %460 = vector.broadcast %cst_106 : f32 to vector<8x128xf32>
    %461 = arith.subf %460, %454 : vector<8x128xf32>
    %462 = arith.mulf %461, %459 : vector<8x128xf32>
    %463 = arith.mulf %454, %395 : vector<8x128xf32>
    %464 = arith.addf %462, %463 : vector<8x128xf32>
    %465 = vector.broadcast %c4_i32 : i32 to vector<8x1xi32>
    %466 = arith.cmpi slt, %465, %0 : vector<8x1xi32>
    %467 = vector.broadcast %396 : i32 to vector<8x1xi32>
    %468 = arith.cmpi slt, %467, %0 : vector<8x1xi32>
    %cst_107 = arith.constant 0.000000e+00 : f32
    %469 = vector.shape_cast %466 : vector<8x1xi1> to vector<8x1xi1>
    %470 = vector.broadcast %469 : vector<8x1xi1> to vector<8x128xi1>
    %471 = vector.broadcast %cst_107 : f32 to vector<8x128xf32>
    %472 = arith.select %470, %438, %471 : vector<8x128xi1>, vector<8x128xf32>
    %473 = arith.index_cast %c4_i32 : i32 to index
    %c0_108 = arith.constant 0 : index
    %c0_109 = arith.constant 0 : index
    %474 = vector.load %arg18[%473, %c0_108, %c0_109] : memref<8x8x256xf32, #tpu.memory_space<vmem>>, vector<1x8x128xf32>
    %475 = vector.shape_cast %474 : vector<1x8x128xf32> to vector<8x128xf32>
    %476 = vector.shape_cast %472 : vector<8x128xf32> to vector<1x8x128xf32>
    tpu.vector_store %arg18[%473, %c0_108, %c0_109], %476 {strides = array<i32>} : memref<8x8x256xf32, #tpu.memory_space<vmem>>, vector<1x8x128xf32>,
    %cst_110 = arith.constant 0.000000e+00 : f32
    %477 = vector.shape_cast %468 : vector<8x1xi1> to vector<8x1xi1>
    %478 = vector.broadcast %477 : vector<8x1xi1> to vector<8x128xi1>
    %479 = vector.broadcast %cst_110 : f32 to vector<8x128xf32>
    %480 = arith.select %478, %464, %479 : vector<8x128xi1>, vector<8x128xf32>
    %481 = arith.index_cast %396 : i32 to index
    %c0_111 = arith.constant 0 : index
    %c128_112 = arith.constant 128 : index
    %482 = vector.load %arg18[%481, %c0_111, %c128_112] : memref<8x8x256xf32, #tpu.memory_space<vmem>>, vector<1x8x128xf32>
    %483 = vector.shape_cast %482 : vector<1x8x128xf32> to vector<8x128xf32>
    %484 = vector.shape_cast %480 : vector<8x128xf32> to vector<1x8x128xf32>
    tpu.vector_store %arg18[%481, %c0_111, %c128_112], %484 {strides = array<i32>} : memref<8x8x256xf32, #tpu.memory_space<vmem>>, vector<1x8x128xf32>,
    %485 = vector.shape_cast %466 : vector<8x1xi1> to vector<8x1xi1>
    %486 = vector.broadcast %485 : vector<8x1xi1> to vector<8x128xi1>
    %487 = arith.select %486, %438, %392 : vector<8x128xi1>, vector<8x128xf32>
    %488 = vector.shape_cast %468 : vector<8x1xi1> to vector<8x1xi1>
    %489 = vector.broadcast %488 : vector<8x1xi1> to vector<8x128xi1>
    %490 = arith.select %489, %464, %395 : vector<8x128xi1>, vector<8x128xf32>
    %c5_i32 = arith.constant 5 : i32
    %c7_i32_113 = arith.constant 7 : i32
    %491 = arith.subi %c7_i32_113, %c5_i32 : i32
    %492 = arith.truncf %487 : vector<8x128xf32> to vector<8x128xbf16>
    %cst_114 = arith.constant dense<0.000000e+00> : vector<8x384xf32>
    %493 = tpu.matmul %492, %11, %cst_114 {dimension_numbers = #tpu.dot_dimension_numbers<[1], [0], [0], [1], [0, 0, 1, 1], [], []>} : vector<8x128xbf16>, vector<128x384xbf16>, vector<8x384xf32> -> vector<8x384xf32>
    %494 = vector.broadcast %13 : vector<1x384xf32> to vector<8x384xf32>
    %495 = arith.addf %493, %494 : vector<8x384xf32>
    %496 = arith.truncf %490 : vector<8x128xf32> to vector<8x128xbf16>
    %cst_115 = arith.constant dense<0.000000e+00> : vector<8x384xf32>
    %497 = tpu.matmul %496, %12, %cst_115 {dimension_numbers = #tpu.dot_dimension_numbers<[1], [0], [0], [1], [0, 0, 1, 1], [], []>} : vector<8x128xbf16>, vector<128x384xbf16>, vector<8x384xf32> -> vector<8x384xf32>
    %498 = vector.broadcast %14 : vector<1x384xf32> to vector<8x384xf32>
    %499 = arith.addf %497, %498 : vector<8x384xf32>
    %500 = arith.index_cast %c5_i32 : i32 to index
    %c0_116 = arith.constant 0 : index
    %c0_117 = arith.constant 0 : index
    %501 = vector.load %arg17[%500, %c0_116, %c0_117] : memref<8x8x768xbf16, #tpu.memory_space<vmem>>, vector<1x8x768xbf16>
    %502 = vector.shape_cast %501 : vector<1x8x768xbf16> to vector<8x768xbf16>
    %503 = arith.extf %502 : vector<8x768xbf16> to vector<8x768xf32>
    %504 = arith.index_cast %491 : i32 to index
    %c0_118 = arith.constant 0 : index
    %c0_119 = arith.constant 0 : index
    %505 = vector.load %arg17[%504, %c0_118, %c0_119] : memref<8x8x768xbf16, #tpu.memory_space<vmem>>, vector<1x8x768xbf16>
    %506 = vector.shape_cast %505 : vector<1x8x768xbf16> to vector<8x768xbf16>
    %507 = arith.extf %506 : vector<8x768xbf16> to vector<8x768xf32>
    %508 = vector.extract_strided_slice %503 {offsets = [0, 0], sizes = [8, 128], strides = [1, 1]} : vector<8x768xf32> to vector<8x128xf32>
    %509 = vector.extract_strided_slice %495 {offsets = [0, 0], sizes = [8, 128], strides = [1, 1]} : vector<8x384xf32> to vector<8x128xf32>
    %510 = arith.addf %508, %509 : vector<8x128xf32>
    %511 = arith.negf %510 : vector<8x128xf32>
    %512 = math.exp %511 : vector<8x128xf32>
    %cst_120 = arith.constant 1.000000e+00 : f32
    %513 = vector.broadcast %cst_120 : f32 to vector<8x128xf32>
    %514 = arith.addf %513, %512 : vector<8x128xf32>
    %515 = arith.divf %513, %514 : vector<8x128xf32>
    %516 = vector.extract_strided_slice %503 {offsets = [0, 128], sizes = [8, 128], strides = [1, 1]} : vector<8x768xf32> to vector<8x128xf32>
    %517 = vector.extract_strided_slice %495 {offsets = [0, 128], sizes = [8, 128], strides = [1, 1]} : vector<8x384xf32> to vector<8x128xf32>
    %518 = arith.addf %516, %517 : vector<8x128xf32>
    %519 = arith.negf %518 : vector<8x128xf32>
    %520 = math.exp %519 : vector<8x128xf32>
    %cst_121 = arith.constant 1.000000e+00 : f32
    %521 = vector.broadcast %cst_121 : f32 to vector<8x128xf32>
    %522 = arith.addf %521, %520 : vector<8x128xf32>
    %523 = arith.divf %521, %522 : vector<8x128xf32>
    %524 = vector.extract_strided_slice %503 {offsets = [0, 256], sizes = [8, 128], strides = [1, 1]} : vector<8x768xf32> to vector<8x128xf32>
    %525 = vector.extract_strided_slice %495 {offsets = [0, 256], sizes = [8, 128], strides = [1, 1]} : vector<8x384xf32> to vector<8x128xf32>
    %526 = arith.mulf %515, %525 : vector<8x128xf32>
    %527 = arith.addf %524, %526 : vector<8x128xf32>
    %528 = math.tanh %527 : vector<8x128xf32>
    %cst_122 = arith.constant 1.000000e+00 : f32
    %529 = vector.broadcast %cst_122 : f32 to vector<8x128xf32>
    %530 = arith.subf %529, %523 : vector<8x128xf32>
    %531 = arith.mulf %530, %528 : vector<8x128xf32>
    %532 = arith.mulf %523, %487 : vector<8x128xf32>
    %533 = arith.addf %531, %532 : vector<8x128xf32>
    %534 = vector.extract_strided_slice %507 {offsets = [0, 384], sizes = [8, 128], strides = [1, 1]} : vector<8x768xf32> to vector<8x128xf32>
    %535 = vector.extract_strided_slice %499 {offsets = [0, 0], sizes = [8, 128], strides = [1, 1]} : vector<8x384xf32> to vector<8x128xf32>
    %536 = arith.addf %534, %535 : vector<8x128xf32>
    %537 = arith.negf %536 : vector<8x128xf32>
    %538 = math.exp %537 : vector<8x128xf32>
    %cst_123 = arith.constant 1.000000e+00 : f32
    %539 = vector.broadcast %cst_123 : f32 to vector<8x128xf32>
    %540 = arith.addf %539, %538 : vector<8x128xf32>
    %541 = arith.divf %539, %540 : vector<8x128xf32>
    %542 = vector.extract_strided_slice %507 {offsets = [0, 512], sizes = [8, 128], strides = [1, 1]} : vector<8x768xf32> to vector<8x128xf32>
    %543 = vector.extract_strided_slice %499 {offsets = [0, 128], sizes = [8, 128], strides = [1, 1]} : vector<8x384xf32> to vector<8x128xf32>
    %544 = arith.addf %542, %543 : vector<8x128xf32>
    %545 = arith.negf %544 : vector<8x128xf32>
    %546 = math.exp %545 : vector<8x128xf32>
    %cst_124 = arith.constant 1.000000e+00 : f32
    %547 = vector.broadcast %cst_124 : f32 to vector<8x128xf32>
    %548 = arith.addf %547, %546 : vector<8x128xf32>
    %549 = arith.divf %547, %548 : vector<8x128xf32>
    %550 = vector.extract_strided_slice %507 {offsets = [0, 640], sizes = [8, 128], strides = [1, 1]} : vector<8x768xf32> to vector<8x128xf32>
    %551 = vector.extract_strided_slice %499 {offsets = [0, 256], sizes = [8, 128], strides = [1, 1]} : vector<8x384xf32> to vector<8x128xf32>
    %552 = arith.mulf %541, %551 : vector<8x128xf32>
    %553 = arith.addf %550, %552 : vector<8x128xf32>
    %554 = math.tanh %553 : vector<8x128xf32>
    %cst_125 = arith.constant 1.000000e+00 : f32
    %555 = vector.broadcast %cst_125 : f32 to vector<8x128xf32>
    %556 = arith.subf %555, %549 : vector<8x128xf32>
    %557 = arith.mulf %556, %554 : vector<8x128xf32>
    %558 = arith.mulf %549, %490 : vector<8x128xf32>
    %559 = arith.addf %557, %558 : vector<8x128xf32>
    %560 = vector.broadcast %c5_i32 : i32 to vector<8x1xi32>
    %561 = arith.cmpi slt, %560, %0 : vector<8x1xi32>
    %562 = vector.broadcast %491 : i32 to vector<8x1xi32>
    %563 = arith.cmpi slt, %562, %0 : vector<8x1xi32>
    %cst_126 = arith.constant 0.000000e+00 : f32
    %564 = vector.shape_cast %561 : vector<8x1xi1> to vector<8x1xi1>
    %565 = vector.broadcast %564 : vector<8x1xi1> to vector<8x128xi1>
    %566 = vector.broadcast %cst_126 : f32 to vector<8x128xf32>
    %567 = arith.select %565, %533, %566 : vector<8x128xi1>, vector<8x128xf32>
    %568 = arith.index_cast %c5_i32 : i32 to index
    %c0_127 = arith.constant 0 : index
    %c0_128 = arith.constant 0 : index
    %569 = vector.load %arg18[%568, %c0_127, %c0_128] : memref<8x8x256xf32, #tpu.memory_space<vmem>>, vector<1x8x128xf32>
    %570 = vector.shape_cast %569 : vector<1x8x128xf32> to vector<8x128xf32>
    %571 = vector.shape_cast %567 : vector<8x128xf32> to vector<1x8x128xf32>
    tpu.vector_store %arg18[%568, %c0_127, %c0_128], %571 {strides = array<i32>} : memref<8x8x256xf32, #tpu.memory_space<vmem>>, vector<1x8x128xf32>,
    %cst_129 = arith.constant 0.000000e+00 : f32
    %572 = vector.shape_cast %563 : vector<8x1xi1> to vector<8x1xi1>
    %573 = vector.broadcast %572 : vector<8x1xi1> to vector<8x128xi1>
    %574 = vector.broadcast %cst_129 : f32 to vector<8x128xf32>
    %575 = arith.select %573, %559, %574 : vector<8x128xi1>, vector<8x128xf32>
    %576 = arith.index_cast %491 : i32 to index
    %c0_130 = arith.constant 0 : index
    %c128_131 = arith.constant 128 : index
    %577 = vector.load %arg18[%576, %c0_130, %c128_131] : memref<8x8x256xf32, #tpu.memory_space<vmem>>, vector<1x8x128xf32>
    %578 = vector.shape_cast %577 : vector<1x8x128xf32> to vector<8x128xf32>
    %579 = vector.shape_cast %575 : vector<8x128xf32> to vector<1x8x128xf32>
    tpu.vector_store %arg18[%576, %c0_130, %c128_131], %579 {strides = array<i32>} : memref<8x8x256xf32, #tpu.memory_space<vmem>>, vector<1x8x128xf32>,
    %580 = vector.shape_cast %561 : vector<8x1xi1> to vector<8x1xi1>
    %581 = vector.broadcast %580 : vector<8x1xi1> to vector<8x128xi1>
    %582 = arith.select %581, %533, %487 : vector<8x128xi1>, vector<8x128xf32>
    %583 = vector.shape_cast %563 : vector<8x1xi1> to vector<8x1xi1>
    %584 = vector.broadcast %583 : vector<8x1xi1> to vector<8x128xi1>
    %585 = arith.select %584, %559, %490 : vector<8x128xi1>, vector<8x128xf32>
    %c6_i32 = arith.constant 6 : i32
    %c7_i32_132 = arith.constant 7 : i32
    %586 = arith.subi %c7_i32_132, %c6_i32 : i32
    %587 = arith.truncf %582 : vector<8x128xf32> to vector<8x128xbf16>
    %cst_133 = arith.constant dense<0.000000e+00> : vector<8x384xf32>
    %588 = tpu.matmul %587, %11, %cst_133 {dimension_numbers = #tpu.dot_dimension_numbers<[1], [0], [0], [1], [0, 0, 1, 1], [], []>} : vector<8x128xbf16>, vector<128x384xbf16>, vector<8x384xf32> -> vector<8x384xf32>
    %589 = vector.broadcast %13 : vector<1x384xf32> to vector<8x384xf32>
    %590 = arith.addf %588, %589 : vector<8x384xf32>
    %591 = arith.truncf %585 : vector<8x128xf32> to vector<8x128xbf16>
    %cst_134 = arith.constant dense<0.000000e+00> : vector<8x384xf32>
    %592 = tpu.matmul %591, %12, %cst_134 {dimension_numbers = #tpu.dot_dimension_numbers<[1], [0], [0], [1], [0, 0, 1, 1], [], []>} : vector<8x128xbf16>, vector<128x384xbf16>, vector<8x384xf32> -> vector<8x384xf32>
    %593 = vector.broadcast %14 : vector<1x384xf32> to vector<8x384xf32>
    %594 = arith.addf %592, %593 : vector<8x384xf32>
    %595 = arith.index_cast %c6_i32 : i32 to index
    %c0_135 = arith.constant 0 : index
    %c0_136 = arith.constant 0 : index
    %596 = vector.load %arg17[%595, %c0_135, %c0_136] : memref<8x8x768xbf16, #tpu.memory_space<vmem>>, vector<1x8x768xbf16>
    %597 = vector.shape_cast %596 : vector<1x8x768xbf16> to vector<8x768xbf16>
    %598 = arith.extf %597 : vector<8x768xbf16> to vector<8x768xf32>
    %599 = arith.index_cast %586 : i32 to index
    %c0_137 = arith.constant 0 : index
    %c0_138 = arith.constant 0 : index
    %600 = vector.load %arg17[%599, %c0_137, %c0_138] : memref<8x8x768xbf16, #tpu.memory_space<vmem>>, vector<1x8x768xbf16>
    %601 = vector.shape_cast %600 : vector<1x8x768xbf16> to vector<8x768xbf16>
    %602 = arith.extf %601 : vector<8x768xbf16> to vector<8x768xf32>
    %603 = vector.extract_strided_slice %598 {offsets = [0, 0], sizes = [8, 128], strides = [1, 1]} : vector<8x768xf32> to vector<8x128xf32>
    %604 = vector.extract_strided_slice %590 {offsets = [0, 0], sizes = [8, 128], strides = [1, 1]} : vector<8x384xf32> to vector<8x128xf32>
    %605 = arith.addf %603, %604 : vector<8x128xf32>
    %606 = arith.negf %605 : vector<8x128xf32>
    %607 = math.exp %606 : vector<8x128xf32>
    %cst_139 = arith.constant 1.000000e+00 : f32
    %608 = vector.broadcast %cst_139 : f32 to vector<8x128xf32>
    %609 = arith.addf %608, %607 : vector<8x128xf32>
    %610 = arith.divf %608, %609 : vector<8x128xf32>
    %611 = vector.extract_strided_slice %598 {offsets = [0, 128], sizes = [8, 128], strides = [1, 1]} : vector<8x768xf32> to vector<8x128xf32>
    %612 = vector.extract_strided_slice %590 {offsets = [0, 128], sizes = [8, 128], strides = [1, 1]} : vector<8x384xf32> to vector<8x128xf32>
    %613 = arith.addf %611, %612 : vector<8x128xf32>
    %614 = arith.negf %613 : vector<8x128xf32>
    %615 = math.exp %614 : vector<8x128xf32>
    %cst_140 = arith.constant 1.000000e+00 : f32
    %616 = vector.broadcast %cst_140 : f32 to vector<8x128xf32>
    %617 = arith.addf %616, %615 : vector<8x128xf32>
    %618 = arith.divf %616, %617 : vector<8x128xf32>
    %619 = vector.extract_strided_slice %598 {offsets = [0, 256], sizes = [8, 128], strides = [1, 1]} : vector<8x768xf32> to vector<8x128xf32>
    %620 = vector.extract_strided_slice %590 {offsets = [0, 256], sizes = [8, 128], strides = [1, 1]} : vector<8x384xf32> to vector<8x128xf32>
    %621 = arith.mulf %610, %620 : vector<8x128xf32>
    %622 = arith.addf %619, %621 : vector<8x128xf32>
    %623 = math.tanh %622 : vector<8x128xf32>
    %cst_141 = arith.constant 1.000000e+00 : f32
    %624 = vector.broadcast %cst_141 : f32 to vector<8x128xf32>
    %625 = arith.subf %624, %618 : vector<8x128xf32>
    %626 = arith.mulf %625, %623 : vector<8x128xf32>
    %627 = arith.mulf %618, %582 : vector<8x128xf32>
    %628 = arith.addf %626, %627 : vector<8x128xf32>
    %629 = vector.extract_strided_slice %602 {offsets = [0, 384], sizes = [8, 128], strides = [1, 1]} : vector<8x768xf32> to vector<8x128xf32>
    %630 = vector.extract_strided_slice %594 {offsets = [0, 0], sizes = [8, 128], strides = [1, 1]} : vector<8x384xf32> to vector<8x128xf32>
    %631 = arith.addf %629, %630 : vector<8x128xf32>
    %632 = arith.negf %631 : vector<8x128xf32>
    %633 = math.exp %632 : vector<8x128xf32>
    %cst_142 = arith.constant 1.000000e+00 : f32
    %634 = vector.broadcast %cst_142 : f32 to vector<8x128xf32>
    %635 = arith.addf %634, %633 : vector<8x128xf32>
    %636 = arith.divf %634, %635 : vector<8x128xf32>
    %637 = vector.extract_strided_slice %602 {offsets = [0, 512], sizes = [8, 128], strides = [1, 1]} : vector<8x768xf32> to vector<8x128xf32>
    %638 = vector.extract_strided_slice %594 {offsets = [0, 128], sizes = [8, 128], strides = [1, 1]} : vector<8x384xf32> to vector<8x128xf32>
    %639 = arith.addf %637, %638 : vector<8x128xf32>
    %640 = arith.negf %639 : vector<8x128xf32>
    %641 = math.exp %640 : vector<8x128xf32>
    %cst_143 = arith.constant 1.000000e+00 : f32
    %642 = vector.broadcast %cst_143 : f32 to vector<8x128xf32>
    %643 = arith.addf %642, %641 : vector<8x128xf32>
    %644 = arith.divf %642, %643 : vector<8x128xf32>
    %645 = vector.extract_strided_slice %602 {offsets = [0, 640], sizes = [8, 128], strides = [1, 1]} : vector<8x768xf32> to vector<8x128xf32>
    %646 = vector.extract_strided_slice %594 {offsets = [0, 256], sizes = [8, 128], strides = [1, 1]} : vector<8x384xf32> to vector<8x128xf32>
    %647 = arith.mulf %636, %646 : vector<8x128xf32>
    %648 = arith.addf %645, %647 : vector<8x128xf32>
    %649 = math.tanh %648 : vector<8x128xf32>
    %cst_144 = arith.constant 1.000000e+00 : f32
    %650 = vector.broadcast %cst_144 : f32 to vector<8x128xf32>
    %651 = arith.subf %650, %644 : vector<8x128xf32>
    %652 = arith.mulf %651, %649 : vector<8x128xf32>
    %653 = arith.mulf %644, %585 : vector<8x128xf32>
    %654 = arith.addf %652, %653 : vector<8x128xf32>
    %655 = vector.broadcast %c6_i32 : i32 to vector<8x1xi32>
    %656 = arith.cmpi slt, %655, %0 : vector<8x1xi32>
    %657 = vector.broadcast %586 : i32 to vector<8x1xi32>
    %658 = arith.cmpi slt, %657, %0 : vector<8x1xi32>
    %cst_145 = arith.constant 0.000000e+00 : f32
    %659 = vector.shape_cast %656 : vector<8x1xi1> to vector<8x1xi1>
    %660 = vector.broadcast %659 : vector<8x1xi1> to vector<8x128xi1>
    %661 = vector.broadcast %cst_145 : f32 to vector<8x128xf32>
    %662 = arith.select %660, %628, %661 : vector<8x128xi1>, vector<8x128xf32>
    %663 = arith.index_cast %c6_i32 : i32 to index
    %c0_146 = arith.constant 0 : index
    %c0_147 = arith.constant 0 : index
    %664 = vector.load %arg18[%663, %c0_146, %c0_147] : memref<8x8x256xf32, #tpu.memory_space<vmem>>, vector<1x8x128xf32>
    %665 = vector.shape_cast %664 : vector<1x8x128xf32> to vector<8x128xf32>
    %666 = vector.shape_cast %662 : vector<8x128xf32> to vector<1x8x128xf32>
    tpu.vector_store %arg18[%663, %c0_146, %c0_147], %666 {strides = array<i32>} : memref<8x8x256xf32, #tpu.memory_space<vmem>>, vector<1x8x128xf32>,
    %cst_148 = arith.constant 0.000000e+00 : f32
    %667 = vector.shape_cast %658 : vector<8x1xi1> to vector<8x1xi1>
    %668 = vector.broadcast %667 : vector<8x1xi1> to vector<8x128xi1>
    %669 = vector.broadcast %cst_148 : f32 to vector<8x128xf32>
    %670 = arith.select %668, %654, %669 : vector<8x128xi1>, vector<8x128xf32>
    %671 = arith.index_cast %586 : i32 to index
    %c0_149 = arith.constant 0 : index
    %c128_150 = arith.constant 128 : index
    %672 = vector.load %arg18[%671, %c0_149, %c128_150] : memref<8x8x256xf32, #tpu.memory_space<vmem>>, vector<1x8x128xf32>
    %673 = vector.shape_cast %672 : vector<1x8x128xf32> to vector<8x128xf32>
    %674 = vector.shape_cast %670 : vector<8x128xf32> to vector<1x8x128xf32>
    tpu.vector_store %arg18[%671, %c0_149, %c128_150], %674 {strides = array<i32>} : memref<8x8x256xf32, #tpu.memory_space<vmem>>, vector<1x8x128xf32>,
    %675 = vector.shape_cast %656 : vector<8x1xi1> to vector<8x1xi1>
    %676 = vector.broadcast %675 : vector<8x1xi1> to vector<8x128xi1>
    %677 = arith.select %676, %628, %582 : vector<8x128xi1>, vector<8x128xf32>
    %678 = vector.shape_cast %658 : vector<8x1xi1> to vector<8x1xi1>
    %679 = vector.broadcast %678 : vector<8x1xi1> to vector<8x128xi1>
    %680 = arith.select %679, %654, %585 : vector<8x128xi1>, vector<8x128xf32>
    %c7_i32_151 = arith.constant 7 : i32
    %c7_i32_152 = arith.constant 7 : i32
    %681 = arith.subi %c7_i32_152, %c7_i32_151 : i32
    %682 = arith.truncf %677 : vector<8x128xf32> to vector<8x128xbf16>
    %cst_153 = arith.constant dense<0.000000e+00> : vector<8x384xf32>
    %683 = tpu.matmul %682, %11, %cst_153 {dimension_numbers = #tpu.dot_dimension_numbers<[1], [0], [0], [1], [0, 0, 1, 1], [], []>} : vector<8x128xbf16>, vector<128x384xbf16>, vector<8x384xf32> -> vector<8x384xf32>
    %684 = vector.broadcast %13 : vector<1x384xf32> to vector<8x384xf32>
    %685 = arith.addf %683, %684 : vector<8x384xf32>
    %686 = arith.truncf %680 : vector<8x128xf32> to vector<8x128xbf16>
    %cst_154 = arith.constant dense<0.000000e+00> : vector<8x384xf32>
    %687 = tpu.matmul %686, %12, %cst_154 {dimension_numbers = #tpu.dot_dimension_numbers<[1], [0], [0], [1], [0, 0, 1, 1], [], []>} : vector<8x128xbf16>, vector<128x384xbf16>, vector<8x384xf32> -> vector<8x384xf32>
    %688 = vector.broadcast %14 : vector<1x384xf32> to vector<8x384xf32>
    %689 = arith.addf %687, %688 : vector<8x384xf32>
    %690 = arith.index_cast %c7_i32_151 : i32 to index
    %c0_155 = arith.constant 0 : index
    %c0_156 = arith.constant 0 : index
    %691 = vector.load %arg17[%690, %c0_155, %c0_156] : memref<8x8x768xbf16, #tpu.memory_space<vmem>>, vector<1x8x768xbf16>
    %692 = vector.shape_cast %691 : vector<1x8x768xbf16> to vector<8x768xbf16>
    %693 = arith.extf %692 : vector<8x768xbf16> to vector<8x768xf32>
    %694 = arith.index_cast %681 : i32 to index
    %c0_157 = arith.constant 0 : index
    %c0_158 = arith.constant 0 : index
    %695 = vector.load %arg17[%694, %c0_157, %c0_158] : memref<8x8x768xbf16, #tpu.memory_space<vmem>>, vector<1x8x768xbf16>
    %696 = vector.shape_cast %695 : vector<1x8x768xbf16> to vector<8x768xbf16>
    %697 = arith.extf %696 : vector<8x768xbf16> to vector<8x768xf32>
    %698 = vector.extract_strided_slice %693 {offsets = [0, 0], sizes = [8, 128], strides = [1, 1]} : vector<8x768xf32> to vector<8x128xf32>
    %699 = vector.extract_strided_slice %685 {offsets = [0, 0], sizes = [8, 128], strides = [1, 1]} : vector<8x384xf32> to vector<8x128xf32>
    %700 = arith.addf %698, %699 : vector<8x128xf32>
    %701 = arith.negf %700 : vector<8x128xf32>
    %702 = math.exp %701 : vector<8x128xf32>
    %cst_159 = arith.constant 1.000000e+00 : f32
    %703 = vector.broadcast %cst_159 : f32 to vector<8x128xf32>
    %704 = arith.addf %703, %702 : vector<8x128xf32>
    %705 = arith.divf %703, %704 : vector<8x128xf32>
    %706 = vector.extract_strided_slice %693 {offsets = [0, 128], sizes = [8, 128], strides = [1, 1]} : vector<8x768xf32> to vector<8x128xf32>
    %707 = vector.extract_strided_slice %685 {offsets = [0, 128], sizes = [8, 128], strides = [1, 1]} : vector<8x384xf32> to vector<8x128xf32>
    %708 = arith.addf %706, %707 : vector<8x128xf32>
    %709 = arith.negf %708 : vector<8x128xf32>
    %710 = math.exp %709 : vector<8x128xf32>
    %cst_160 = arith.constant 1.000000e+00 : f32
    %711 = vector.broadcast %cst_160 : f32 to vector<8x128xf32>
    %712 = arith.addf %711, %710 : vector<8x128xf32>
    %713 = arith.divf %711, %712 : vector<8x128xf32>
    %714 = vector.extract_strided_slice %693 {offsets = [0, 256], sizes = [8, 128], strides = [1, 1]} : vector<8x768xf32> to vector<8x128xf32>
    %715 = vector.extract_strided_slice %685 {offsets = [0, 256], sizes = [8, 128], strides = [1, 1]} : vector<8x384xf32> to vector<8x128xf32>
    %716 = arith.mulf %705, %715 : vector<8x128xf32>
    %717 = arith.addf %714, %716 : vector<8x128xf32>
    %718 = math.tanh %717 : vector<8x128xf32>
    %cst_161 = arith.constant 1.000000e+00 : f32
    %719 = vector.broadcast %cst_161 : f32 to vector<8x128xf32>
    %720 = arith.subf %719, %713 : vector<8x128xf32>
    %721 = arith.mulf %720, %718 : vector<8x128xf32>
    %722 = arith.mulf %713, %677 : vector<8x128xf32>
    %723 = arith.addf %721, %722 : vector<8x128xf32>
    %724 = vector.extract_strided_slice %697 {offsets = [0, 384], sizes = [8, 128], strides = [1, 1]} : vector<8x768xf32> to vector<8x128xf32>
    %725 = vector.extract_strided_slice %689 {offsets = [0, 0], sizes = [8, 128], strides = [1, 1]} : vector<8x384xf32> to vector<8x128xf32>
    %726 = arith.addf %724, %725 : vector<8x128xf32>
    %727 = arith.negf %726 : vector<8x128xf32>
    %728 = math.exp %727 : vector<8x128xf32>
    %cst_162 = arith.constant 1.000000e+00 : f32
    %729 = vector.broadcast %cst_162 : f32 to vector<8x128xf32>
    %730 = arith.addf %729, %728 : vector<8x128xf32>
    %731 = arith.divf %729, %730 : vector<8x128xf32>
    %732 = vector.extract_strided_slice %697 {offsets = [0, 512], sizes = [8, 128], strides = [1, 1]} : vector<8x768xf32> to vector<8x128xf32>
    %733 = vector.extract_strided_slice %689 {offsets = [0, 128], sizes = [8, 128], strides = [1, 1]} : vector<8x384xf32> to vector<8x128xf32>
    %734 = arith.addf %732, %733 : vector<8x128xf32>
    %735 = arith.negf %734 : vector<8x128xf32>
    %736 = math.exp %735 : vector<8x128xf32>
    %cst_163 = arith.constant 1.000000e+00 : f32
    %737 = vector.broadcast %cst_163 : f32 to vector<8x128xf32>
    %738 = arith.addf %737, %736 : vector<8x128xf32>
    %739 = arith.divf %737, %738 : vector<8x128xf32>
    %740 = vector.extract_strided_slice %697 {offsets = [0, 640], sizes = [8, 128], strides = [1, 1]} : vector<8x768xf32> to vector<8x128xf32>
    %741 = vector.extract_strided_slice %689 {offsets = [0, 256], sizes = [8, 128], strides = [1, 1]} : vector<8x384xf32> to vector<8x128xf32>
    %742 = arith.mulf %731, %741 : vector<8x128xf32>
    %743 = arith.addf %740, %742 : vector<8x128xf32>
    %744 = math.tanh %743 : vector<8x128xf32>
    %cst_164 = arith.constant 1.000000e+00 : f32
    %745 = vector.broadcast %cst_164 : f32 to vector<8x128xf32>
    %746 = arith.subf %745, %739 : vector<8x128xf32>
    %747 = arith.mulf %746, %744 : vector<8x128xf32>
    %748 = arith.mulf %739, %680 : vector<8x128xf32>
    %749 = arith.addf %747, %748 : vector<8x128xf32>
    %750 = vector.broadcast %c7_i32_151 : i32 to vector<8x1xi32>
    %751 = arith.cmpi slt, %750, %0 : vector<8x1xi32>
    %752 = vector.broadcast %681 : i32 to vector<8x1xi32>
    %753 = arith.cmpi slt, %752, %0 : vector<8x1xi32>
    %cst_165 = arith.constant 0.000000e+00 : f32
    %754 = vector.shape_cast %751 : vector<8x1xi1> to vector<8x1xi1>
    %755 = vector.broadcast %754 : vector<8x1xi1> to vector<8x128xi1>
    %756 = vector.broadcast %cst_165 : f32 to vector<8x128xf32>
    %757 = arith.select %755, %723, %756 : vector<8x128xi1>, vector<8x128xf32>
    %758 = arith.index_cast %c7_i32_151 : i32 to index
    %c0_166 = arith.constant 0 : index
    %c0_167 = arith.constant 0 : index
    %759 = vector.load %arg18[%758, %c0_166, %c0_167] : memref<8x8x256xf32, #tpu.memory_space<vmem>>, vector<1x8x128xf32>
    %760 = vector.shape_cast %759 : vector<1x8x128xf32> to vector<8x128xf32>
    %761 = vector.shape_cast %757 : vector<8x128xf32> to vector<1x8x128xf32>
    tpu.vector_store %arg18[%758, %c0_166, %c0_167], %761 {strides = array<i32>} : memref<8x8x256xf32, #tpu.memory_space<vmem>>, vector<1x8x128xf32>,
    %cst_168 = arith.constant 0.000000e+00 : f32
    %762 = vector.shape_cast %753 : vector<8x1xi1> to vector<8x1xi1>
    %763 = vector.broadcast %762 : vector<8x1xi1> to vector<8x128xi1>
    %764 = vector.broadcast %cst_168 : f32 to vector<8x128xf32>
    %765 = arith.select %763, %749, %764 : vector<8x128xi1>, vector<8x128xf32>
    %766 = arith.index_cast %681 : i32 to index
    %c0_169 = arith.constant 0 : index
    %c128_170 = arith.constant 128 : index
    %767 = vector.load %arg18[%766, %c0_169, %c128_170] : memref<8x8x256xf32, #tpu.memory_space<vmem>>, vector<1x8x128xf32>
    %768 = vector.shape_cast %767 : vector<1x8x128xf32> to vector<8x128xf32>
    %769 = vector.shape_cast %765 : vector<8x128xf32> to vector<1x8x128xf32>
    tpu.vector_store %arg18[%766, %c0_169, %c128_170], %769 {strides = array<i32>} : memref<8x8x256xf32, #tpu.memory_space<vmem>>, vector<1x8x128xf32>,
    %770 = vector.shape_cast %751 : vector<8x1xi1> to vector<8x1xi1>
    %771 = vector.broadcast %770 : vector<8x1xi1> to vector<8x128xi1>
    %772 = arith.select %771, %723, %677 : vector<8x128xi1>, vector<8x128xf32>
    %773 = vector.shape_cast %753 : vector<8x1xi1> to vector<8x1xi1>
    %774 = vector.broadcast %773 : vector<8x1xi1> to vector<8x128xi1>
    %775 = arith.select %774, %749, %680 : vector<8x128xi1>, vector<8x128xf32>
    %c8_i32 = arith.constant 8 : i32
    %c0_171 = arith.constant 0 : index
    %c0_172 = arith.constant 0 : index
    %c0_173 = arith.constant 0 : index
    %776 = vector.load %arg18[%c0_171, %c0_172, %c0_173] : memref<8x8x256xf32, #tpu.memory_space<vmem>>, vector<8x8x256xf32>
    %777 = tpu.iota {dimensions = array<i32: 2>} : vector<1x1x256xi32>
    %c128_i32 = arith.constant 128 : i32
    %c0_i32_174 = arith.constant 0 : i32
    %778 = arith.cmpi eq, %c128_i32, %c0_i32_174 : i32
    %c1_i32_175 = arith.constant 1 : i32
    %779 = arith.select %778, %c1_i32_175, %c128_i32 : i32
    %780 = vector.broadcast %779 : i32 to vector<1x1x256xi32>
    %781 = arith.remsi %777, %780 : vector<1x1x256xi32>
    %c0_i32_176 = arith.constant 0 : i32
    %782 = vector.broadcast %c0_i32_176 : i32 to vector<1x1x256xi32>
    %783 = arith.cmpi ne, %781, %782 : vector<1x1x256xi32>
    %c0_i32_177 = arith.constant 0 : i32
    %784 = vector.broadcast %c0_i32_177 : i32 to vector<1x1x256xi32>
    %785 = arith.cmpi slt, %781, %784 : vector<1x1x256xi32>
    %c0_i32_178 = arith.constant 0 : i32
    %786 = arith.cmpi slt, %779, %c0_i32_178 : i32
    %787 = vector.broadcast %786 : i1 to vector<1x1x256xi1>
    %788 = vector.broadcast %787 : vector<1x1x256xi1> to vector<1x1x256xi1>
    %789 = arith.xori %785, %788 : vector<1x1x256xi1>
    %790 = arith.andi %789, %783 : vector<1x1x256xi1>
    %791 = vector.broadcast %779 : i32 to vector<1x1x256xi32>
    %792 = arith.addi %781, %791 : vector<1x1x256xi32>
    %793 = arith.select %790, %792, %781 : vector<1x1x256xi1>, vector<1x1x256xi32>
    %c16_i32 = arith.constant 16 : i32
    %794 = vector.broadcast %c16_i32 : i32 to vector<1x1x256xi32>
    %795 = arith.cmpi slt, %793, %794 : vector<1x1x256xi32>
    %cst_179 = arith.constant dense<0.000000e+00> : vector<8x8xf32>
    %796 = vector.multi_reduction <add>, %776, %cst_179 [2] : vector<8x8x256xf32> to vector<8x8xf32>
    %797 = vector.shape_cast %796 : vector<8x8xf32> to vector<8x8x1xf32>
    %cst_180 = arith.constant 3.125000e-02 : f32
    %798 = vector.broadcast %cst_180 : f32 to vector<8x8x1xf32>
    %799 = arith.mulf %797, %798 : vector<8x8x1xf32>
    %800 = vector.broadcast %799 : vector<8x8x1xf32> to vector<8x8x256xf32>
    %801 = arith.subf %776, %800 : vector<8x8x256xf32>
    %802 = arith.mulf %801, %801 : vector<8x8x256xf32>
    %cst_181 = arith.constant 0.000000e+00 : f32
    %803 = vector.shape_cast %795 : vector<1x1x256xi1> to vector<1x1x256xi1>
    %804 = vector.broadcast %803 : vector<1x1x256xi1> to vector<8x8x256xi1>
    %805 = vector.broadcast %cst_181 : f32 to vector<8x8x256xf32>
    %806 = arith.select %804, %802, %805 : vector<8x8x256xi1>, vector<8x8x256xf32>
    %cst_182 = arith.constant dense<0.000000e+00> : vector<8x8xf32>
    %807 = vector.multi_reduction <add>, %806, %cst_182 [2] : vector<8x8x256xf32> to vector<8x8xf32>
    %808 = vector.shape_cast %807 : vector<8x8xf32> to vector<8x8x1xf32>
    %cst_183 = arith.constant 3.125000e-02 : f32
    %809 = vector.broadcast %cst_183 : f32 to vector<8x8x1xf32>
    %810 = arith.mulf %808, %809 : vector<8x8x1xf32>
    %cst_184 = arith.constant 9.99999974E-6 : f32
    %811 = vector.broadcast %cst_184 : f32 to vector<8x8x1xf32>
    %812 = arith.addf %810, %811 : vector<8x8x1xf32>
    %813 = math.rsqrt %812 : vector<8x8x1xf32>
    %814 = vector.broadcast %813 : vector<8x8x1xf32> to vector<8x8x256xf32>
    %815 = arith.mulf %801, %814 : vector<8x8x256xf32>
    %c0_185 = arith.constant 0 : index
    %c0_186 = arith.constant 0 : index
    %c0_187 = arith.constant 0 : index
    %816 = vector.load %arg10[%c0_185, %c0_186, %c0_187] : memref<1x1x256xf32, #tpu.memory_space<vmem>>, vector<1x1x256xf32>
    %817 = vector.broadcast %816 : vector<1x1x256xf32> to vector<8x8x256xf32>
    %818 = arith.mulf %815, %817 : vector<8x8x256xf32>
    %c0_188 = arith.constant 0 : index
    %c0_189 = arith.constant 0 : index
    %c0_190 = arith.constant 0 : index
    %819 = vector.load %arg11[%c0_188, %c0_189, %c0_190] : memref<1x1x256xf32, #tpu.memory_space<vmem>>, vector<1x1x256xf32>
    %820 = vector.broadcast %819 : vector<1x1x256xf32> to vector<8x8x256xf32>
    %821 = arith.addf %818, %820 : vector<8x8x256xf32>
    %822 = vector.shape_cast %821 : vector<8x8x256xf32> to vector<64x256xf32>
    %823 = arith.truncf %822 : vector<64x256xf32> to vector<64x256xbf16>
    %c0_191 = arith.constant 0 : index
    %c0_192 = arith.constant 0 : index
    %824 = vector.load %arg12[%c0_191, %c0_192] : memref<256x128xbf16, #tpu.memory_space<vmem>>, vector<256x128xbf16>
    %cst_193 = arith.constant dense<0.000000e+00> : vector<64x128xf32>
    %825 = tpu.matmul %823, %824, %cst_193 {dimension_numbers = #tpu.dot_dimension_numbers<[1], [0], [0], [1], [0, 0, 1, 1], [], []>} : vector<64x256xbf16>, vector<256x128xbf16>, vector<64x128xf32> -> vector<64x128xf32>
    %c0_194 = arith.constant 0 : index
    %c0_195 = arith.constant 0 : index
    %826 = vector.load %arg13[%c0_194, %c0_195] : memref<1x128xf32, #tpu.memory_space<vmem>>, vector<1x128xf32>
    %827 = vector.broadcast %826 : vector<1x128xf32> to vector<64x128xf32>
    %828 = arith.addf %825, %827 : vector<64x128xf32>
    %829 = math.tanh %828 : vector<64x128xf32>
    %830 = vector.shape_cast %829 : vector<64x128xf32> to vector<8x8x128xf32>
    %c0_196 = arith.constant 0 : index
    %c0_197 = arith.constant 0 : index
    %c0_198 = arith.constant 0 : index
    %831 = vector.load %arg14[%c0_196, %c0_197, %c0_198] : memref<1x1x128xf32, #tpu.memory_space<vmem>>, vector<1x1x128xf32>
    %832 = vector.broadcast %831 : vector<1x1x128xf32> to vector<8x8x128xf32>
    %833 = arith.mulf %830, %832 : vector<8x8x128xf32>
    %cst_199 = arith.constant dense<0.000000e+00> : vector<8x8xf32>
    %834 = vector.multi_reduction <add>, %833, %cst_199 [2] : vector<8x8x128xf32> to vector<8x8xf32>
    %835 = tpu.iota {dimensions = array<i32: 0>} : vector<8x8xi32>
    %c0_200 = arith.constant 0 : index
    %c0_201 = arith.constant 0 : index
    %836 = vector.load %arg2[%c0_200, %c0_201] : memref<1x8xi32, #tpu.memory_space<vmem>>, vector<1x8xi32>
    %837 = vector.broadcast %836 : vector<1x8xi32> to vector<8x8xi32>
    %838 = arith.cmpi slt, %835, %837 : vector<8x8xi32>
    %cst_202 = arith.constant -1.000000e+30 : f32
    %839 = vector.broadcast %cst_202 : f32 to vector<8x8xf32>
    %840 = arith.select %838, %834, %839 : vector<8x8xi1>, vector<8x8xf32>
    %cst_203 = arith.constant dense<0xFF800000> : vector<8xf32>
    %841 = vector.multi_reduction <maximumf>, %840, %cst_203 [0] : vector<8x8xf32> to vector<8xf32>
    %842 = vector.shape_cast %841 : vector<8xf32> to vector<1x8xf32>
    %843 = vector.broadcast %842 : vector<1x8xf32> to vector<8x8xf32>
    %844 = arith.subf %840, %843 : vector<8x8xf32>
    %845 = math.exp %844 : vector<8x8xf32>
    %cst_204 = arith.constant 0.000000e+00 : f32
    %846 = vector.broadcast %cst_204 : f32 to vector<8x8xf32>
    %847 = arith.select %838, %845, %846 : vector<8x8xi1>, vector<8x8xf32>
    %cst_205 = arith.constant dense<0.000000e+00> : vector<8xf32>
    %848 = vector.multi_reduction <add>, %847, %cst_205 [0] : vector<8x8xf32> to vector<8xf32>
    %849 = vector.shape_cast %848 : vector<8xf32> to vector<1x8xf32>
    %850 = vector.broadcast %849 : vector<1x8xf32> to vector<8x8xf32>
    %851 = arith.divf %847, %850 : vector<8x8xf32>
    %c0_206 = arith.constant 0 : index
    %c0_207 = arith.constant 0 : index
    %852 = vector.load %arg16[%c0_206, %c0_207] : memref<8x8xf32, #tpu.memory_space<vmem>>, vector<8x8xf32>
    tpu.vector_store %arg16[%c0_206, %c0_207], %851 {strides = array<i32>} : memref<8x8xf32, #tpu.memory_space<vmem>>, vector<8x8xf32>,
    %853 = vector.shape_cast %851 : vector<8x8xf32> to vector<8x8x1xf32>
    %854 = vector.broadcast %853 : vector<8x8x1xf32> to vector<8x8x256xf32>
    %855 = arith.mulf %854, %776 : vector<8x8x256xf32>
    %cst_208 = arith.constant dense<0.000000e+00> : vector<8x256xf32>
    %856 = vector.multi_reduction <add>, %855, %cst_208 [0] : vector<8x8x256xf32> to vector<8x256xf32>
    %c0_209 = arith.constant 0 : index
    %c0_210 = arith.constant 0 : index
    %857 = vector.load %arg15[%c0_209, %c0_210] : memref<8x256xf32, #tpu.memory_space<vmem>>, vector<8x256xf32>
    tpu.vector_store %arg15[%c0_209, %c0_210], %856 {strides = array<i32>} : memref<8x256xf32, #tpu.memory_space<vmem>>, vector<8x256xf32>,
    return
  }
  func.func @transform_0(%arg0: i32) -> (i32, i32) {
    %c0_i32 = arith.constant 0 : i32
    %c0_i32_0 = arith.constant 0 : i32
    return %arg0, %c0_i32 : i32, i32
  }
  func.func @transform_1(%arg0: i32) -> (i32, i32) {
    %c0_i32 = arith.constant 0 : i32
    %c0_i32_0 = arith.constant 0 : i32
    return %c0_i32, %arg0 : i32, i32
  }
  func.func @transform_2(%arg0: i32) -> (i32, i32, i32) {
    %c0_i32 = arith.constant 0 : i32
    %c0_i32_0 = arith.constant 0 : i32
    %c0_i32_1 = arith.constant 0 : i32
    return %c0_i32, %arg0, %c0_i32_0 : i32, i32, i32
  }
  func.func @transform_3(%arg0: i32) -> (i32, i32) {
    %c0_i32 = arith.constant 0 : i32
    %c0_i32_0 = arith.constant 0 : i32
    %c0_i32_1 = arith.constant 0 : i32
    return %c0_i32, %c0_i32_0 : i32, i32
  }
  func.func @transform_4(%arg0: i32) -> (i32, i32) {
    %c0_i32 = arith.constant 0 : i32
    %c0_i32_0 = arith.constant 0 : i32
    %c0_i32_1 = arith.constant 0 : i32
    return %c0_i32, %c0_i32_0 : i32, i32
  }
  func.func @transform_5(%arg0: i32) -> (i32, i32) {
    %c0_i32 = arith.constant 0 : i32
    %c0_i32_0 = arith.constant 0 : i32
    %c0_i32_1 = arith.constant 0 : i32
    return %c0_i32, %c0_i32_0 : i32, i32
  }
  func.func @transform_6(%arg0: i32) -> (i32, i32) {
    %c0_i32 = arith.constant 0 : i32
    %c0_i32_0 = arith.constant 0 : i32
    %c0_i32_1 = arith.constant 0 : i32
    return %c0_i32, %c0_i32_0 : i32, i32
  }
  func.func @transform_7(%arg0: i32) -> (i32, i32) {
    %c0_i32 = arith.constant 0 : i32
    %c0_i32_0 = arith.constant 0 : i32
    %c0_i32_1 = arith.constant 0 : i32
    return %c0_i32, %c0_i32_0 : i32, i32
  }
  func.func @transform_8(%arg0: i32) -> (i32, i32) {
    %c0_i32 = arith.constant 0 : i32
    %c0_i32_0 = arith.constant 0 : i32
    %c0_i32_1 = arith.constant 0 : i32
    return %c0_i32, %c0_i32_0 : i32, i32
  }
  func.func @transform_9(%arg0: i32) -> (i32, i32, i32) {
    %c0_i32 = arith.constant 0 : i32
    %c0_i32_0 = arith.constant 0 : i32
    %c0_i32_1 = arith.constant 0 : i32
    %c0_i32_2 = arith.constant 0 : i32
    return %c0_i32, %c0_i32_0, %c0_i32_1 : i32, i32, i32
  }
  func.func @transform_10(%arg0: i32) -> (i32, i32, i32) {
    %c0_i32 = arith.constant 0 : i32
    %c0_i32_0 = arith.constant 0 : i32
    %c0_i32_1 = arith.constant 0 : i32
    %c0_i32_2 = arith.constant 0 : i32
    return %c0_i32, %c0_i32_0, %c0_i32_1 : i32, i32, i32
  }
  func.func @transform_11(%arg0: i32) -> (i32, i32) {
    %c0_i32 = arith.constant 0 : i32
    %c0_i32_0 = arith.constant 0 : i32
    %c0_i32_1 = arith.constant 0 : i32
    return %c0_i32, %c0_i32_0 : i32, i32
  }
  func.func @transform_12(%arg0: i32) -> (i32, i32) {
    %c0_i32 = arith.constant 0 : i32
    %c0_i32_0 = arith.constant 0 : i32
    %c0_i32_1 = arith.constant 0 : i32
    return %c0_i32, %c0_i32_0 : i32, i32
  }
  func.func @transform_13(%arg0: i32) -> (i32, i32, i32) {
    %c0_i32 = arith.constant 0 : i32
    %c0_i32_0 = arith.constant 0 : i32
    %c0_i32_1 = arith.constant 0 : i32
    %c0_i32_2 = arith.constant 0 : i32
    return %c0_i32, %c0_i32_0, %c0_i32_1 : i32, i32, i32
  }
  func.func @transform_14(%arg0: i32) -> (i32, i32) {
    %c0_i32 = arith.constant 0 : i32
    %c0_i32_0 = arith.constant 0 : i32
    return %arg0, %c0_i32 : i32, i32
  }
  func.func @transform_15(%arg0: i32) -> (i32, i32) {
    %c0_i32 = arith.constant 0 : i32
    %c0_i32_0 = arith.constant 0 : i32
    return %c0_i32, %arg0 : i32, i32
  }
}

module attributes {stable_mosaic.version = 11 : i64} {
  func.func @_gru_attn_kernel(%arg0: i32, %arg1: memref<8x1xi32, #tpu.memory_space<vmem>>, %arg2: memref<1x8xi32, #tpu.memory_space<vmem>>, %arg3: memref<4x8x256xbf16, #tpu.memory_space<vmem>>, %arg4: memref<256x768xbf16, #tpu.memory_space<vmem>>, %arg5: memref<128x384xbf16, #tpu.memory_space<vmem>>, %arg6: memref<128x384xbf16, #tpu.memory_space<vmem>>, %arg7: memref<1x768xf32, #tpu.memory_space<vmem>>, %arg8: memref<1x384xf32, #tpu.memory_space<vmem>>, %arg9: memref<1x384xf32, #tpu.memory_space<vmem>>, %arg10: memref<1x1x256xf32, #tpu.memory_space<vmem>>, %arg11: memref<1x1x256xf32, #tpu.memory_space<vmem>>, %arg12: memref<256x128xbf16, #tpu.memory_space<vmem>>, %arg13: memref<1x128xf32, #tpu.memory_space<vmem>>, %arg14: memref<1x1x128xf32, #tpu.memory_space<vmem>>, %arg15: memref<8x256xf32, #tpu.memory_space<vmem>>, %arg16: memref<4x8xf32, #tpu.memory_space<vmem>>, %arg17: memref<4x8x768xbf16, #tpu.memory_space<vmem>>, %arg18: memref<4x8x256xf32, #tpu.memory_space<vmem>>) attributes {dimension_semantics = [#tpu.dimension_semantics<parallel>], iteration_bounds = array<i64: 1>, scalar_prefetch = 0 : i64, scratch_operands = 2 : i64, tpu.core_type = #tpu.core_type<tc>, window_params = [{transform_indices = @transform_0, window_bounds = array<i64: 8, 1>}, {transform_indices = @transform_1, window_bounds = array<i64: 1, 8>}, {transform_indices = @transform_2, window_bounds = array<i64: 4, 8, 256>}, {pipeline_mode = #tpu.pipeline_mode<synchronous>, transform_indices = @transform_3, window_bounds = array<i64: 256, 768>}, {pipeline_mode = #tpu.pipeline_mode<synchronous>, transform_indices = @transform_4, window_bounds = array<i64: 128, 384>}, {pipeline_mode = #tpu.pipeline_mode<synchronous>, transform_indices = @transform_5, window_bounds = array<i64: 128, 384>}, {pipeline_mode = #tpu.pipeline_mode<synchronous>, transform_indices = @transform_6, window_bounds = array<i64: 1, 768>}, {pipeline_mode = #tpu.pipeline_mode<synchronous>, transform_indices = @transform_7, window_bounds = array<i64: 1, 384>}, {pipeline_mode = #tpu.pipeline_mode<synchronous>, transform_indices = @transform_8, window_bounds = array<i64: 1, 384>}, {pipeline_mode = #tpu.pipeline_mode<synchronous>, transform_indices = @transform_9, window_bounds = array<i64: 1, 1, 256>}, {pipeline_mode = #tpu.pipeline_mode<synchronous>, transform_indices = @transform_10, window_bounds = array<i64: 1, 1, 256>}, {pipeline_mode = #tpu.pipeline_mode<synchronous>, transform_indices = @transform_11, window_bounds = array<i64: 256, 128>}, {pipeline_mode = #tpu.pipeline_mode<synchronous>, transform_indices = @transform_12, window_bounds = array<i64: 1, 128>}, {pipeline_mode = #tpu.pipeline_mode<synchronous>, transform_indices = @transform_13, window_bounds = array<i64: 1, 1, 128>}, {transform_indices = @transform_14, window_bounds = array<i64: 8, 256>}, {transform_indices = @transform_15, window_bounds = array<i64: 4, 8>}]} {
    %c0 = arith.constant 0 : index
    %c0_0 = arith.constant 0 : index
    %0 = vector.load %arg1[%c0, %c0_0] : memref<8x1xi32, #tpu.memory_space<vmem>>, vector<8x1xi32>
    %c0_1 = arith.constant 0 : index
    %c0_2 = arith.constant 0 : index
    %c0_3 = arith.constant 0 : index
    %1 = vector.load %arg3[%c0_1, %c0_2, %c0_3] : memref<4x8x256xbf16, #tpu.memory_space<vmem>>, vector<4x8x256xbf16>
    %2 = vector.shape_cast %1 : vector<4x8x256xbf16> to vector<32x256xbf16>
    %c0_4 = arith.constant 0 : index
    %c0_5 = arith.constant 0 : index
    %3 = vector.load %arg4[%c0_4, %c0_5] : memref<256x768xbf16, #tpu.memory_space<vmem>>, vector<256x768xbf16>
    %cst = arith.constant dense<0.000000e+00> : vector<32x768xf32>
    %4 = tpu.matmul %2, %3, %cst {dimension_numbers = #tpu.dot_dimension_numbers<[1], [0], [0], [1], [0, 0, 1, 1], [], []>} : vector<32x256xbf16>, vector<256x768xbf16>, vector<32x768xf32> -> vector<32x768xf32>
    %c0_6 = arith.constant 0 : index
    %c0_7 = arith.constant 0 : index
    %5 = vector.load %arg7[%c0_6, %c0_7] : memref<1x768xf32, #tpu.memory_space<vmem>>, vector<1x768xf32>
    %6 = vector.broadcast %5 : vector<1x768xf32> to vector<32x768xf32>
    %7 = arith.addf %4, %6 : vector<32x768xf32>
    %8 = vector.shape_cast %7 : vector<32x768xf32> to vector<4x8x768xf32>
    %9 = arith.truncf %8 : vector<4x8x768xf32> to vector<4x8x768xbf16>
    %c0_8 = arith.constant 0 : index
    %c0_9 = arith.constant 0 : index
    %c0_10 = arith.constant 0 : index
    %10 = vector.load %arg17[%c0_8, %c0_9, %c0_10] : memref<4x8x768xbf16, #tpu.memory_space<vmem>>, vector<4x8x768xbf16>
    tpu.vector_store %arg17[%c0_8, %c0_9, %c0_10], %9 {strides = array<i32>} : memref<4x8x768xbf16, #tpu.memory_space<vmem>>, vector<4x8x768xbf16>,
    %c0_11 = arith.constant 0 : index
    %c0_12 = arith.constant 0 : index
    %11 = vector.load %arg5[%c0_11, %c0_12] : memref<128x384xbf16, #tpu.memory_space<vmem>>, vector<128x384xbf16>
    %c0_13 = arith.constant 0 : index
    %c0_14 = arith.constant 0 : index
    %12 = vector.load %arg6[%c0_13, %c0_14] : memref<128x384xbf16, #tpu.memory_space<vmem>>, vector<128x384xbf16>
    %c0_15 = arith.constant 0 : index
    %c0_16 = arith.constant 0 : index
    %13 = vector.load %arg8[%c0_15, %c0_16] : memref<1x384xf32, #tpu.memory_space<vmem>>, vector<1x384xf32>
    %c0_17 = arith.constant 0 : index
    %c0_18 = arith.constant 0 : index
    %14 = vector.load %arg9[%c0_17, %c0_18] : memref<1x384xf32, #tpu.memory_space<vmem>>, vector<1x384xf32>
    %cst_19 = arith.constant 0.000000e+00 : f32
    %15 = vector.broadcast %cst_19 : f32 to vector<8x128xf32>
    %c0_i32 = arith.constant 0 : i32
    %c3_i32 = arith.constant 3 : i32
    %16 = arith.subi %c3_i32, %c0_i32 : i32
    %17 = arith.truncf %15 : vector<8x128xf32> to vector<8x128xbf16>
    %cst_20 = arith.constant dense<0.000000e+00> : vector<8x384xf32>
    %18 = tpu.matmul %17, %11, %cst_20 {dimension_numbers = #tpu.dot_dimension_numbers<[1], [0], [0], [1], [0, 0, 1, 1], [], []>} : vector<8x128xbf16>, vector<128x384xbf16>, vector<8x384xf32> -> vector<8x384xf32>
    %19 = vector.broadcast %13 : vector<1x384xf32> to vector<8x384xf32>
    %20 = arith.addf %18, %19 : vector<8x384xf32>
    %21 = arith.truncf %15 : vector<8x128xf32> to vector<8x128xbf16>
    %cst_21 = arith.constant dense<0.000000e+00> : vector<8x384xf32>
    %22 = tpu.matmul %21, %12, %cst_21 {dimension_numbers = #tpu.dot_dimension_numbers<[1], [0], [0], [1], [0, 0, 1, 1], [], []>} : vector<8x128xbf16>, vector<128x384xbf16>, vector<8x384xf32> -> vector<8x384xf32>
    %23 = vector.broadcast %14 : vector<1x384xf32> to vector<8x384xf32>
    %24 = arith.addf %22, %23 : vector<8x384xf32>
    %25 = arith.index_cast %c0_i32 : i32 to index
    %c0_22 = arith.constant 0 : index
    %c0_23 = arith.constant 0 : index
    %26 = vector.load %arg17[%25, %c0_22, %c0_23] : memref<4x8x768xbf16, #tpu.memory_space<vmem>>, vector<1x8x768xbf16>
    %27 = vector.shape_cast %26 : vector<1x8x768xbf16> to vector<8x768xbf16>
    %28 = arith.extf %27 : vector<8x768xbf16> to vector<8x768xf32>
    %29 = arith.index_cast %16 : i32 to index
    %c0_24 = arith.constant 0 : index
    %c0_25 = arith.constant 0 : index
    %30 = vector.load %arg17[%29, %c0_24, %c0_25] : memref<4x8x768xbf16, #tpu.memory_space<vmem>>, vector<1x8x768xbf16>
    %31 = vector.shape_cast %30 : vector<1x8x768xbf16> to vector<8x768xbf16>
    %32 = arith.extf %31 : vector<8x768xbf16> to vector<8x768xf32>
    %33 = vector.extract_strided_slice %28 {offsets = [0, 0], sizes = [8, 128], strides = [1, 1]} : vector<8x768xf32> to vector<8x128xf32>
    %34 = vector.extract_strided_slice %20 {offsets = [0, 0], sizes = [8, 128], strides = [1, 1]} : vector<8x384xf32> to vector<8x128xf32>
    %35 = arith.addf %33, %34 : vector<8x128xf32>
    %36 = arith.negf %35 : vector<8x128xf32>
    %37 = math.exp %36 : vector<8x128xf32>
    %cst_26 = arith.constant 1.000000e+00 : f32
    %38 = vector.broadcast %cst_26 : f32 to vector<8x128xf32>
    %39 = arith.addf %38, %37 : vector<8x128xf32>
    %40 = arith.divf %38, %39 : vector<8x128xf32>
    %41 = vector.extract_strided_slice %28 {offsets = [0, 128], sizes = [8, 128], strides = [1, 1]} : vector<8x768xf32> to vector<8x128xf32>
    %42 = vector.extract_strided_slice %20 {offsets = [0, 128], sizes = [8, 128], strides = [1, 1]} : vector<8x384xf32> to vector<8x128xf32>
    %43 = arith.addf %41, %42 : vector<8x128xf32>
    %44 = arith.negf %43 : vector<8x128xf32>
    %45 = math.exp %44 : vector<8x128xf32>
    %cst_27 = arith.constant 1.000000e+00 : f32
    %46 = vector.broadcast %cst_27 : f32 to vector<8x128xf32>
    %47 = arith.addf %46, %45 : vector<8x128xf32>
    %48 = arith.divf %46, %47 : vector<8x128xf32>
    %49 = vector.extract_strided_slice %28 {offsets = [0, 256], sizes = [8, 128], strides = [1, 1]} : vector<8x768xf32> to vector<8x128xf32>
    %50 = vector.extract_strided_slice %20 {offsets = [0, 256], sizes = [8, 128], strides = [1, 1]} : vector<8x384xf32> to vector<8x128xf32>
    %51 = arith.mulf %40, %50 : vector<8x128xf32>
    %52 = arith.addf %49, %51 : vector<8x128xf32>
    %53 = math.tanh %52 : vector<8x128xf32>
    %cst_28 = arith.constant 1.000000e+00 : f32
    %54 = vector.broadcast %cst_28 : f32 to vector<8x128xf32>
    %55 = arith.subf %54, %48 : vector<8x128xf32>
    %56 = arith.mulf %55, %53 : vector<8x128xf32>
    %57 = arith.mulf %48, %15 : vector<8x128xf32>
    %58 = arith.addf %56, %57 : vector<8x128xf32>
    %59 = vector.extract_strided_slice %32 {offsets = [0, 384], sizes = [8, 128], strides = [1, 1]} : vector<8x768xf32> to vector<8x128xf32>
    %60 = vector.extract_strided_slice %24 {offsets = [0, 0], sizes = [8, 128], strides = [1, 1]} : vector<8x384xf32> to vector<8x128xf32>
    %61 = arith.addf %59, %60 : vector<8x128xf32>
    %62 = arith.negf %61 : vector<8x128xf32>
    %63 = math.exp %62 : vector<8x128xf32>
    %cst_29 = arith.constant 1.000000e+00 : f32
    %64 = vector.broadcast %cst_29 : f32 to vector<8x128xf32>
    %65 = arith.addf %64, %63 : vector<8x128xf32>
    %66 = arith.divf %64, %65 : vector<8x128xf32>
    %67 = vector.extract_strided_slice %32 {offsets = [0, 512], sizes = [8, 128], strides = [1, 1]} : vector<8x768xf32> to vector<8x128xf32>
    %68 = vector.extract_strided_slice %24 {offsets = [0, 128], sizes = [8, 128], strides = [1, 1]} : vector<8x384xf32> to vector<8x128xf32>
    %69 = arith.addf %67, %68 : vector<8x128xf32>
    %70 = arith.negf %69 : vector<8x128xf32>
    %71 = math.exp %70 : vector<8x128xf32>
    %cst_30 = arith.constant 1.000000e+00 : f32
    %72 = vector.broadcast %cst_30 : f32 to vector<8x128xf32>
    %73 = arith.addf %72, %71 : vector<8x128xf32>
    %74 = arith.divf %72, %73 : vector<8x128xf32>
    %75 = vector.extract_strided_slice %32 {offsets = [0, 640], sizes = [8, 128], strides = [1, 1]} : vector<8x768xf32> to vector<8x128xf32>
    %76 = vector.extract_strided_slice %24 {offsets = [0, 256], sizes = [8, 128], strides = [1, 1]} : vector<8x384xf32> to vector<8x128xf32>
    %77 = arith.mulf %66, %76 : vector<8x128xf32>
    %78 = arith.addf %75, %77 : vector<8x128xf32>
    %79 = math.tanh %78 : vector<8x128xf32>
    %cst_31 = arith.constant 1.000000e+00 : f32
    %80 = vector.broadcast %cst_31 : f32 to vector<8x128xf32>
    %81 = arith.subf %80, %74 : vector<8x128xf32>
    %82 = arith.mulf %81, %79 : vector<8x128xf32>
    %83 = arith.mulf %74, %15 : vector<8x128xf32>
    %84 = arith.addf %82, %83 : vector<8x128xf32>
    %85 = vector.broadcast %c0_i32 : i32 to vector<8x1xi32>
    %86 = arith.cmpi slt, %85, %0 : vector<8x1xi32>
    %87 = vector.broadcast %16 : i32 to vector<8x1xi32>
    %88 = arith.cmpi slt, %87, %0 : vector<8x1xi32>
    %cst_32 = arith.constant 0.000000e+00 : f32
    %89 = vector.shape_cast %86 : vector<8x1xi1> to vector<8x1xi1>
    %90 = vector.broadcast %89 : vector<8x1xi1> to vector<8x128xi1>
    %91 = vector.broadcast %cst_32 : f32 to vector<8x128xf32>
    %92 = arith.select %90, %58, %91 : vector<8x128xi1>, vector<8x128xf32>
    %93 = arith.index_cast %c0_i32 : i32 to index
    %c0_33 = arith.constant 0 : index
    %c0_34 = arith.constant 0 : index
    %94 = vector.load %arg18[%93, %c0_33, %c0_34] : memref<4x8x256xf32, #tpu.memory_space<vmem>>, vector<1x8x128xf32>
    %95 = vector.shape_cast %94 : vector<1x8x128xf32> to vector<8x128xf32>
    %96 = vector.shape_cast %92 : vector<8x128xf32> to vector<1x8x128xf32>
    tpu.vector_store %arg18[%93, %c0_33, %c0_34], %96 {strides = array<i32>} : memref<4x8x256xf32, #tpu.memory_space<vmem>>, vector<1x8x128xf32>,
    %cst_35 = arith.constant 0.000000e+00 : f32
    %97 = vector.shape_cast %88 : vector<8x1xi1> to vector<8x1xi1>
    %98 = vector.broadcast %97 : vector<8x1xi1> to vector<8x128xi1>
    %99 = vector.broadcast %cst_35 : f32 to vector<8x128xf32>
    %100 = arith.select %98, %84, %99 : vector<8x128xi1>, vector<8x128xf32>
    %101 = arith.index_cast %16 : i32 to index
    %c0_36 = arith.constant 0 : index
    %c128 = arith.constant 128 : index
    %102 = vector.load %arg18[%101, %c0_36, %c128] : memref<4x8x256xf32, #tpu.memory_space<vmem>>, vector<1x8x128xf32>
    %103 = vector.shape_cast %102 : vector<1x8x128xf32> to vector<8x128xf32>
    %104 = vector.shape_cast %100 : vector<8x128xf32> to vector<1x8x128xf32>
    tpu.vector_store %arg18[%101, %c0_36, %c128], %104 {strides = array<i32>} : memref<4x8x256xf32, #tpu.memory_space<vmem>>, vector<1x8x128xf32>,
    %105 = vector.shape_cast %86 : vector<8x1xi1> to vector<8x1xi1>
    %106 = vector.broadcast %105 : vector<8x1xi1> to vector<8x128xi1>
    %107 = arith.select %106, %58, %15 : vector<8x128xi1>, vector<8x128xf32>
    %108 = vector.shape_cast %88 : vector<8x1xi1> to vector<8x1xi1>
    %109 = vector.broadcast %108 : vector<8x1xi1> to vector<8x128xi1>
    %110 = arith.select %109, %84, %15 : vector<8x128xi1>, vector<8x128xf32>
    %c1_i32 = arith.constant 1 : i32
    %c3_i32_37 = arith.constant 3 : i32
    %111 = arith.subi %c3_i32_37, %c1_i32 : i32
    %112 = arith.truncf %107 : vector<8x128xf32> to vector<8x128xbf16>
    %cst_38 = arith.constant dense<0.000000e+00> : vector<8x384xf32>
    %113 = tpu.matmul %112, %11, %cst_38 {dimension_numbers = #tpu.dot_dimension_numbers<[1], [0], [0], [1], [0, 0, 1, 1], [], []>} : vector<8x128xbf16>, vector<128x384xbf16>, vector<8x384xf32> -> vector<8x384xf32>
    %114 = vector.broadcast %13 : vector<1x384xf32> to vector<8x384xf32>
    %115 = arith.addf %113, %114 : vector<8x384xf32>
    %116 = arith.truncf %110 : vector<8x128xf32> to vector<8x128xbf16>
    %cst_39 = arith.constant dense<0.000000e+00> : vector<8x384xf32>
    %117 = tpu.matmul %116, %12, %cst_39 {dimension_numbers = #tpu.dot_dimension_numbers<[1], [0], [0], [1], [0, 0, 1, 1], [], []>} : vector<8x128xbf16>, vector<128x384xbf16>, vector<8x384xf32> -> vector<8x384xf32>
    %118 = vector.broadcast %14 : vector<1x384xf32> to vector<8x384xf32>
    %119 = arith.addf %117, %118 : vector<8x384xf32>
    %120 = arith.index_cast %c1_i32 : i32 to index
    %c0_40 = arith.constant 0 : index
    %c0_41 = arith.constant 0 : index
    %121 = vector.load %arg17[%120, %c0_40, %c0_41] : memref<4x8x768xbf16, #tpu.memory_space<vmem>>, vector<1x8x768xbf16>
    %122 = vector.shape_cast %121 : vector<1x8x768xbf16> to vector<8x768xbf16>
    %123 = arith.extf %122 : vector<8x768xbf16> to vector<8x768xf32>
    %124 = arith.index_cast %111 : i32 to index
    %c0_42 = arith.constant 0 : index
    %c0_43 = arith.constant 0 : index
    %125 = vector.load %arg17[%124, %c0_42, %c0_43] : memref<4x8x768xbf16, #tpu.memory_space<vmem>>, vector<1x8x768xbf16>
    %126 = vector.shape_cast %125 : vector<1x8x768xbf16> to vector<8x768xbf16>
    %127 = arith.extf %126 : vector<8x768xbf16> to vector<8x768xf32>
    %128 = vector.extract_strided_slice %123 {offsets = [0, 0], sizes = [8, 128], strides = [1, 1]} : vector<8x768xf32> to vector<8x128xf32>
    %129 = vector.extract_strided_slice %115 {offsets = [0, 0], sizes = [8, 128], strides = [1, 1]} : vector<8x384xf32> to vector<8x128xf32>
    %130 = arith.addf %128, %129 : vector<8x128xf32>
    %131 = arith.negf %130 : vector<8x128xf32>
    %132 = math.exp %131 : vector<8x128xf32>
    %cst_44 = arith.constant 1.000000e+00 : f32
    %133 = vector.broadcast %cst_44 : f32 to vector<8x128xf32>
    %134 = arith.addf %133, %132 : vector<8x128xf32>
    %135 = arith.divf %133, %134 : vector<8x128xf32>
    %136 = vector.extract_strided_slice %123 {offsets = [0, 128], sizes = [8, 128], strides = [1, 1]} : vector<8x768xf32> to vector<8x128xf32>
    %137 = vector.extract_strided_slice %115 {offsets = [0, 128], sizes = [8, 128], strides = [1, 1]} : vector<8x384xf32> to vector<8x128xf32>
    %138 = arith.addf %136, %137 : vector<8x128xf32>
    %139 = arith.negf %138 : vector<8x128xf32>
    %140 = math.exp %139 : vector<8x128xf32>
    %cst_45 = arith.constant 1.000000e+00 : f32
    %141 = vector.broadcast %cst_45 : f32 to vector<8x128xf32>
    %142 = arith.addf %141, %140 : vector<8x128xf32>
    %143 = arith.divf %141, %142 : vector<8x128xf32>
    %144 = vector.extract_strided_slice %123 {offsets = [0, 256], sizes = [8, 128], strides = [1, 1]} : vector<8x768xf32> to vector<8x128xf32>
    %145 = vector.extract_strided_slice %115 {offsets = [0, 256], sizes = [8, 128], strides = [1, 1]} : vector<8x384xf32> to vector<8x128xf32>
    %146 = arith.mulf %135, %145 : vector<8x128xf32>
    %147 = arith.addf %144, %146 : vector<8x128xf32>
    %148 = math.tanh %147 : vector<8x128xf32>
    %cst_46 = arith.constant 1.000000e+00 : f32
    %149 = vector.broadcast %cst_46 : f32 to vector<8x128xf32>
    %150 = arith.subf %149, %143 : vector<8x128xf32>
    %151 = arith.mulf %150, %148 : vector<8x128xf32>
    %152 = arith.mulf %143, %107 : vector<8x128xf32>
    %153 = arith.addf %151, %152 : vector<8x128xf32>
    %154 = vector.extract_strided_slice %127 {offsets = [0, 384], sizes = [8, 128], strides = [1, 1]} : vector<8x768xf32> to vector<8x128xf32>
    %155 = vector.extract_strided_slice %119 {offsets = [0, 0], sizes = [8, 128], strides = [1, 1]} : vector<8x384xf32> to vector<8x128xf32>
    %156 = arith.addf %154, %155 : vector<8x128xf32>
    %157 = arith.negf %156 : vector<8x128xf32>
    %158 = math.exp %157 : vector<8x128xf32>
    %cst_47 = arith.constant 1.000000e+00 : f32
    %159 = vector.broadcast %cst_47 : f32 to vector<8x128xf32>
    %160 = arith.addf %159, %158 : vector<8x128xf32>
    %161 = arith.divf %159, %160 : vector<8x128xf32>
    %162 = vector.extract_strided_slice %127 {offsets = [0, 512], sizes = [8, 128], strides = [1, 1]} : vector<8x768xf32> to vector<8x128xf32>
    %163 = vector.extract_strided_slice %119 {offsets = [0, 128], sizes = [8, 128], strides = [1, 1]} : vector<8x384xf32> to vector<8x128xf32>
    %164 = arith.addf %162, %163 : vector<8x128xf32>
    %165 = arith.negf %164 : vector<8x128xf32>
    %166 = math.exp %165 : vector<8x128xf32>
    %cst_48 = arith.constant 1.000000e+00 : f32
    %167 = vector.broadcast %cst_48 : f32 to vector<8x128xf32>
    %168 = arith.addf %167, %166 : vector<8x128xf32>
    %169 = arith.divf %167, %168 : vector<8x128xf32>
    %170 = vector.extract_strided_slice %127 {offsets = [0, 640], sizes = [8, 128], strides = [1, 1]} : vector<8x768xf32> to vector<8x128xf32>
    %171 = vector.extract_strided_slice %119 {offsets = [0, 256], sizes = [8, 128], strides = [1, 1]} : vector<8x384xf32> to vector<8x128xf32>
    %172 = arith.mulf %161, %171 : vector<8x128xf32>
    %173 = arith.addf %170, %172 : vector<8x128xf32>
    %174 = math.tanh %173 : vector<8x128xf32>
    %cst_49 = arith.constant 1.000000e+00 : f32
    %175 = vector.broadcast %cst_49 : f32 to vector<8x128xf32>
    %176 = arith.subf %175, %169 : vector<8x128xf32>
    %177 = arith.mulf %176, %174 : vector<8x128xf32>
    %178 = arith.mulf %169, %110 : vector<8x128xf32>
    %179 = arith.addf %177, %178 : vector<8x128xf32>
    %180 = vector.broadcast %c1_i32 : i32 to vector<8x1xi32>
    %181 = arith.cmpi slt, %180, %0 : vector<8x1xi32>
    %182 = vector.broadcast %111 : i32 to vector<8x1xi32>
    %183 = arith.cmpi slt, %182, %0 : vector<8x1xi32>
    %cst_50 = arith.constant 0.000000e+00 : f32
    %184 = vector.shape_cast %181 : vector<8x1xi1> to vector<8x1xi1>
    %185 = vector.broadcast %184 : vector<8x1xi1> to vector<8x128xi1>
    %186 = vector.broadcast %cst_50 : f32 to vector<8x128xf32>
    %187 = arith.select %185, %153, %186 : vector<8x128xi1>, vector<8x128xf32>
    %188 = arith.index_cast %c1_i32 : i32 to index
    %c0_51 = arith.constant 0 : index
    %c0_52 = arith.constant 0 : index
    %189 = vector.load %arg18[%188, %c0_51, %c0_52] : memref<4x8x256xf32, #tpu.memory_space<vmem>>, vector<1x8x128xf32>
    %190 = vector.shape_cast %189 : vector<1x8x128xf32> to vector<8x128xf32>
    %191 = vector.shape_cast %187 : vector<8x128xf32> to vector<1x8x128xf32>
    tpu.vector_store %arg18[%188, %c0_51, %c0_52], %191 {strides = array<i32>} : memref<4x8x256xf32, #tpu.memory_space<vmem>>, vector<1x8x128xf32>,
    %cst_53 = arith.constant 0.000000e+00 : f32
    %192 = vector.shape_cast %183 : vector<8x1xi1> to vector<8x1xi1>
    %193 = vector.broadcast %192 : vector<8x1xi1> to vector<8x128xi1>
    %194 = vector.broadcast %cst_53 : f32 to vector<8x128xf32>
    %195 = arith.select %193, %179, %194 : vector<8x128xi1>, vector<8x128xf32>
    %196 = arith.index_cast %111 : i32 to index
    %c0_54 = arith.constant 0 : index
    %c128_55 = arith.constant 128 : index
    %197 = vector.load %arg18[%196, %c0_54, %c128_55] : memref<4x8x256xf32, #tpu.memory_space<vmem>>, vector<1x8x128xf32>
    %198 = vector.shape_cast %197 : vector<1x8x128xf32> to vector<8x128xf32>
    %199 = vector.shape_cast %195 : vector<8x128xf32> to vector<1x8x128xf32>
    tpu.vector_store %arg18[%196, %c0_54, %c128_55], %199 {strides = array<i32>} : memref<4x8x256xf32, #tpu.memory_space<vmem>>, vector<1x8x128xf32>,
    %200 = vector.shape_cast %181 : vector<8x1xi1> to vector<8x1xi1>
    %201 = vector.broadcast %200 : vector<8x1xi1> to vector<8x128xi1>
    %202 = arith.select %201, %153, %107 : vector<8x128xi1>, vector<8x128xf32>
    %203 = vector.shape_cast %183 : vector<8x1xi1> to vector<8x1xi1>
    %204 = vector.broadcast %203 : vector<8x1xi1> to vector<8x128xi1>
    %205 = arith.select %204, %179, %110 : vector<8x128xi1>, vector<8x128xf32>
    %c2_i32 = arith.constant 2 : i32
    %c3_i32_56 = arith.constant 3 : i32
    %206 = arith.subi %c3_i32_56, %c2_i32 : i32
    %207 = arith.truncf %202 : vector<8x128xf32> to vector<8x128xbf16>
    %cst_57 = arith.constant dense<0.000000e+00> : vector<8x384xf32>
    %208 = tpu.matmul %207, %11, %cst_57 {dimension_numbers = #tpu.dot_dimension_numbers<[1], [0], [0], [1], [0, 0, 1, 1], [], []>} : vector<8x128xbf16>, vector<128x384xbf16>, vector<8x384xf32> -> vector<8x384xf32>
    %209 = vector.broadcast %13 : vector<1x384xf32> to vector<8x384xf32>
    %210 = arith.addf %208, %209 : vector<8x384xf32>
    %211 = arith.truncf %205 : vector<8x128xf32> to vector<8x128xbf16>
    %cst_58 = arith.constant dense<0.000000e+00> : vector<8x384xf32>
    %212 = tpu.matmul %211, %12, %cst_58 {dimension_numbers = #tpu.dot_dimension_numbers<[1], [0], [0], [1], [0, 0, 1, 1], [], []>} : vector<8x128xbf16>, vector<128x384xbf16>, vector<8x384xf32> -> vector<8x384xf32>
    %213 = vector.broadcast %14 : vector<1x384xf32> to vector<8x384xf32>
    %214 = arith.addf %212, %213 : vector<8x384xf32>
    %215 = arith.index_cast %c2_i32 : i32 to index
    %c0_59 = arith.constant 0 : index
    %c0_60 = arith.constant 0 : index
    %216 = vector.load %arg17[%215, %c0_59, %c0_60] : memref<4x8x768xbf16, #tpu.memory_space<vmem>>, vector<1x8x768xbf16>
    %217 = vector.shape_cast %216 : vector<1x8x768xbf16> to vector<8x768xbf16>
    %218 = arith.extf %217 : vector<8x768xbf16> to vector<8x768xf32>
    %219 = arith.index_cast %206 : i32 to index
    %c0_61 = arith.constant 0 : index
    %c0_62 = arith.constant 0 : index
    %220 = vector.load %arg17[%219, %c0_61, %c0_62] : memref<4x8x768xbf16, #tpu.memory_space<vmem>>, vector<1x8x768xbf16>
    %221 = vector.shape_cast %220 : vector<1x8x768xbf16> to vector<8x768xbf16>
    %222 = arith.extf %221 : vector<8x768xbf16> to vector<8x768xf32>
    %223 = vector.extract_strided_slice %218 {offsets = [0, 0], sizes = [8, 128], strides = [1, 1]} : vector<8x768xf32> to vector<8x128xf32>
    %224 = vector.extract_strided_slice %210 {offsets = [0, 0], sizes = [8, 128], strides = [1, 1]} : vector<8x384xf32> to vector<8x128xf32>
    %225 = arith.addf %223, %224 : vector<8x128xf32>
    %226 = arith.negf %225 : vector<8x128xf32>
    %227 = math.exp %226 : vector<8x128xf32>
    %cst_63 = arith.constant 1.000000e+00 : f32
    %228 = vector.broadcast %cst_63 : f32 to vector<8x128xf32>
    %229 = arith.addf %228, %227 : vector<8x128xf32>
    %230 = arith.divf %228, %229 : vector<8x128xf32>
    %231 = vector.extract_strided_slice %218 {offsets = [0, 128], sizes = [8, 128], strides = [1, 1]} : vector<8x768xf32> to vector<8x128xf32>
    %232 = vector.extract_strided_slice %210 {offsets = [0, 128], sizes = [8, 128], strides = [1, 1]} : vector<8x384xf32> to vector<8x128xf32>
    %233 = arith.addf %231, %232 : vector<8x128xf32>
    %234 = arith.negf %233 : vector<8x128xf32>
    %235 = math.exp %234 : vector<8x128xf32>
    %cst_64 = arith.constant 1.000000e+00 : f32
    %236 = vector.broadcast %cst_64 : f32 to vector<8x128xf32>
    %237 = arith.addf %236, %235 : vector<8x128xf32>
    %238 = arith.divf %236, %237 : vector<8x128xf32>
    %239 = vector.extract_strided_slice %218 {offsets = [0, 256], sizes = [8, 128], strides = [1, 1]} : vector<8x768xf32> to vector<8x128xf32>
    %240 = vector.extract_strided_slice %210 {offsets = [0, 256], sizes = [8, 128], strides = [1, 1]} : vector<8x384xf32> to vector<8x128xf32>
    %241 = arith.mulf %230, %240 : vector<8x128xf32>
    %242 = arith.addf %239, %241 : vector<8x128xf32>
    %243 = math.tanh %242 : vector<8x128xf32>
    %cst_65 = arith.constant 1.000000e+00 : f32
    %244 = vector.broadcast %cst_65 : f32 to vector<8x128xf32>
    %245 = arith.subf %244, %238 : vector<8x128xf32>
    %246 = arith.mulf %245, %243 : vector<8x128xf32>
    %247 = arith.mulf %238, %202 : vector<8x128xf32>
    %248 = arith.addf %246, %247 : vector<8x128xf32>
    %249 = vector.extract_strided_slice %222 {offsets = [0, 384], sizes = [8, 128], strides = [1, 1]} : vector<8x768xf32> to vector<8x128xf32>
    %250 = vector.extract_strided_slice %214 {offsets = [0, 0], sizes = [8, 128], strides = [1, 1]} : vector<8x384xf32> to vector<8x128xf32>
    %251 = arith.addf %249, %250 : vector<8x128xf32>
    %252 = arith.negf %251 : vector<8x128xf32>
    %253 = math.exp %252 : vector<8x128xf32>
    %cst_66 = arith.constant 1.000000e+00 : f32
    %254 = vector.broadcast %cst_66 : f32 to vector<8x128xf32>
    %255 = arith.addf %254, %253 : vector<8x128xf32>
    %256 = arith.divf %254, %255 : vector<8x128xf32>
    %257 = vector.extract_strided_slice %222 {offsets = [0, 512], sizes = [8, 128], strides = [1, 1]} : vector<8x768xf32> to vector<8x128xf32>
    %258 = vector.extract_strided_slice %214 {offsets = [0, 128], sizes = [8, 128], strides = [1, 1]} : vector<8x384xf32> to vector<8x128xf32>
    %259 = arith.addf %257, %258 : vector<8x128xf32>
    %260 = arith.negf %259 : vector<8x128xf32>
    %261 = math.exp %260 : vector<8x128xf32>
    %cst_67 = arith.constant 1.000000e+00 : f32
    %262 = vector.broadcast %cst_67 : f32 to vector<8x128xf32>
    %263 = arith.addf %262, %261 : vector<8x128xf32>
    %264 = arith.divf %262, %263 : vector<8x128xf32>
    %265 = vector.extract_strided_slice %222 {offsets = [0, 640], sizes = [8, 128], strides = [1, 1]} : vector<8x768xf32> to vector<8x128xf32>
    %266 = vector.extract_strided_slice %214 {offsets = [0, 256], sizes = [8, 128], strides = [1, 1]} : vector<8x384xf32> to vector<8x128xf32>
    %267 = arith.mulf %256, %266 : vector<8x128xf32>
    %268 = arith.addf %265, %267 : vector<8x128xf32>
    %269 = math.tanh %268 : vector<8x128xf32>
    %cst_68 = arith.constant 1.000000e+00 : f32
    %270 = vector.broadcast %cst_68 : f32 to vector<8x128xf32>
    %271 = arith.subf %270, %264 : vector<8x128xf32>
    %272 = arith.mulf %271, %269 : vector<8x128xf32>
    %273 = arith.mulf %264, %205 : vector<8x128xf32>
    %274 = arith.addf %272, %273 : vector<8x128xf32>
    %275 = vector.broadcast %c2_i32 : i32 to vector<8x1xi32>
    %276 = arith.cmpi slt, %275, %0 : vector<8x1xi32>
    %277 = vector.broadcast %206 : i32 to vector<8x1xi32>
    %278 = arith.cmpi slt, %277, %0 : vector<8x1xi32>
    %cst_69 = arith.constant 0.000000e+00 : f32
    %279 = vector.shape_cast %276 : vector<8x1xi1> to vector<8x1xi1>
    %280 = vector.broadcast %279 : vector<8x1xi1> to vector<8x128xi1>
    %281 = vector.broadcast %cst_69 : f32 to vector<8x128xf32>
    %282 = arith.select %280, %248, %281 : vector<8x128xi1>, vector<8x128xf32>
    %283 = arith.index_cast %c2_i32 : i32 to index
    %c0_70 = arith.constant 0 : index
    %c0_71 = arith.constant 0 : index
    %284 = vector.load %arg18[%283, %c0_70, %c0_71] : memref<4x8x256xf32, #tpu.memory_space<vmem>>, vector<1x8x128xf32>
    %285 = vector.shape_cast %284 : vector<1x8x128xf32> to vector<8x128xf32>
    %286 = vector.shape_cast %282 : vector<8x128xf32> to vector<1x8x128xf32>
    tpu.vector_store %arg18[%283, %c0_70, %c0_71], %286 {strides = array<i32>} : memref<4x8x256xf32, #tpu.memory_space<vmem>>, vector<1x8x128xf32>,
    %cst_72 = arith.constant 0.000000e+00 : f32
    %287 = vector.shape_cast %278 : vector<8x1xi1> to vector<8x1xi1>
    %288 = vector.broadcast %287 : vector<8x1xi1> to vector<8x128xi1>
    %289 = vector.broadcast %cst_72 : f32 to vector<8x128xf32>
    %290 = arith.select %288, %274, %289 : vector<8x128xi1>, vector<8x128xf32>
    %291 = arith.index_cast %206 : i32 to index
    %c0_73 = arith.constant 0 : index
    %c128_74 = arith.constant 128 : index
    %292 = vector.load %arg18[%291, %c0_73, %c128_74] : memref<4x8x256xf32, #tpu.memory_space<vmem>>, vector<1x8x128xf32>
    %293 = vector.shape_cast %292 : vector<1x8x128xf32> to vector<8x128xf32>
    %294 = vector.shape_cast %290 : vector<8x128xf32> to vector<1x8x128xf32>
    tpu.vector_store %arg18[%291, %c0_73, %c128_74], %294 {strides = array<i32>} : memref<4x8x256xf32, #tpu.memory_space<vmem>>, vector<1x8x128xf32>,
    %295 = vector.shape_cast %276 : vector<8x1xi1> to vector<8x1xi1>
    %296 = vector.broadcast %295 : vector<8x1xi1> to vector<8x128xi1>
    %297 = arith.select %296, %248, %202 : vector<8x128xi1>, vector<8x128xf32>
    %298 = vector.shape_cast %278 : vector<8x1xi1> to vector<8x1xi1>
    %299 = vector.broadcast %298 : vector<8x1xi1> to vector<8x128xi1>
    %300 = arith.select %299, %274, %205 : vector<8x128xi1>, vector<8x128xf32>
    %c3_i32_75 = arith.constant 3 : i32
    %c3_i32_76 = arith.constant 3 : i32
    %301 = arith.subi %c3_i32_76, %c3_i32_75 : i32
    %302 = arith.truncf %297 : vector<8x128xf32> to vector<8x128xbf16>
    %cst_77 = arith.constant dense<0.000000e+00> : vector<8x384xf32>
    %303 = tpu.matmul %302, %11, %cst_77 {dimension_numbers = #tpu.dot_dimension_numbers<[1], [0], [0], [1], [0, 0, 1, 1], [], []>} : vector<8x128xbf16>, vector<128x384xbf16>, vector<8x384xf32> -> vector<8x384xf32>
    %304 = vector.broadcast %13 : vector<1x384xf32> to vector<8x384xf32>
    %305 = arith.addf %303, %304 : vector<8x384xf32>
    %306 = arith.truncf %300 : vector<8x128xf32> to vector<8x128xbf16>
    %cst_78 = arith.constant dense<0.000000e+00> : vector<8x384xf32>
    %307 = tpu.matmul %306, %12, %cst_78 {dimension_numbers = #tpu.dot_dimension_numbers<[1], [0], [0], [1], [0, 0, 1, 1], [], []>} : vector<8x128xbf16>, vector<128x384xbf16>, vector<8x384xf32> -> vector<8x384xf32>
    %308 = vector.broadcast %14 : vector<1x384xf32> to vector<8x384xf32>
    %309 = arith.addf %307, %308 : vector<8x384xf32>
    %310 = arith.index_cast %c3_i32_75 : i32 to index
    %c0_79 = arith.constant 0 : index
    %c0_80 = arith.constant 0 : index
    %311 = vector.load %arg17[%310, %c0_79, %c0_80] : memref<4x8x768xbf16, #tpu.memory_space<vmem>>, vector<1x8x768xbf16>
    %312 = vector.shape_cast %311 : vector<1x8x768xbf16> to vector<8x768xbf16>
    %313 = arith.extf %312 : vector<8x768xbf16> to vector<8x768xf32>
    %314 = arith.index_cast %301 : i32 to index
    %c0_81 = arith.constant 0 : index
    %c0_82 = arith.constant 0 : index
    %315 = vector.load %arg17[%314, %c0_81, %c0_82] : memref<4x8x768xbf16, #tpu.memory_space<vmem>>, vector<1x8x768xbf16>
    %316 = vector.shape_cast %315 : vector<1x8x768xbf16> to vector<8x768xbf16>
    %317 = arith.extf %316 : vector<8x768xbf16> to vector<8x768xf32>
    %318 = vector.extract_strided_slice %313 {offsets = [0, 0], sizes = [8, 128], strides = [1, 1]} : vector<8x768xf32> to vector<8x128xf32>
    %319 = vector.extract_strided_slice %305 {offsets = [0, 0], sizes = [8, 128], strides = [1, 1]} : vector<8x384xf32> to vector<8x128xf32>
    %320 = arith.addf %318, %319 : vector<8x128xf32>
    %321 = arith.negf %320 : vector<8x128xf32>
    %322 = math.exp %321 : vector<8x128xf32>
    %cst_83 = arith.constant 1.000000e+00 : f32
    %323 = vector.broadcast %cst_83 : f32 to vector<8x128xf32>
    %324 = arith.addf %323, %322 : vector<8x128xf32>
    %325 = arith.divf %323, %324 : vector<8x128xf32>
    %326 = vector.extract_strided_slice %313 {offsets = [0, 128], sizes = [8, 128], strides = [1, 1]} : vector<8x768xf32> to vector<8x128xf32>
    %327 = vector.extract_strided_slice %305 {offsets = [0, 128], sizes = [8, 128], strides = [1, 1]} : vector<8x384xf32> to vector<8x128xf32>
    %328 = arith.addf %326, %327 : vector<8x128xf32>
    %329 = arith.negf %328 : vector<8x128xf32>
    %330 = math.exp %329 : vector<8x128xf32>
    %cst_84 = arith.constant 1.000000e+00 : f32
    %331 = vector.broadcast %cst_84 : f32 to vector<8x128xf32>
    %332 = arith.addf %331, %330 : vector<8x128xf32>
    %333 = arith.divf %331, %332 : vector<8x128xf32>
    %334 = vector.extract_strided_slice %313 {offsets = [0, 256], sizes = [8, 128], strides = [1, 1]} : vector<8x768xf32> to vector<8x128xf32>
    %335 = vector.extract_strided_slice %305 {offsets = [0, 256], sizes = [8, 128], strides = [1, 1]} : vector<8x384xf32> to vector<8x128xf32>
    %336 = arith.mulf %325, %335 : vector<8x128xf32>
    %337 = arith.addf %334, %336 : vector<8x128xf32>
    %338 = math.tanh %337 : vector<8x128xf32>
    %cst_85 = arith.constant 1.000000e+00 : f32
    %339 = vector.broadcast %cst_85 : f32 to vector<8x128xf32>
    %340 = arith.subf %339, %333 : vector<8x128xf32>
    %341 = arith.mulf %340, %338 : vector<8x128xf32>
    %342 = arith.mulf %333, %297 : vector<8x128xf32>
    %343 = arith.addf %341, %342 : vector<8x128xf32>
    %344 = vector.extract_strided_slice %317 {offsets = [0, 384], sizes = [8, 128], strides = [1, 1]} : vector<8x768xf32> to vector<8x128xf32>
    %345 = vector.extract_strided_slice %309 {offsets = [0, 0], sizes = [8, 128], strides = [1, 1]} : vector<8x384xf32> to vector<8x128xf32>
    %346 = arith.addf %344, %345 : vector<8x128xf32>
    %347 = arith.negf %346 : vector<8x128xf32>
    %348 = math.exp %347 : vector<8x128xf32>
    %cst_86 = arith.constant 1.000000e+00 : f32
    %349 = vector.broadcast %cst_86 : f32 to vector<8x128xf32>
    %350 = arith.addf %349, %348 : vector<8x128xf32>
    %351 = arith.divf %349, %350 : vector<8x128xf32>
    %352 = vector.extract_strided_slice %317 {offsets = [0, 512], sizes = [8, 128], strides = [1, 1]} : vector<8x768xf32> to vector<8x128xf32>
    %353 = vector.extract_strided_slice %309 {offsets = [0, 128], sizes = [8, 128], strides = [1, 1]} : vector<8x384xf32> to vector<8x128xf32>
    %354 = arith.addf %352, %353 : vector<8x128xf32>
    %355 = arith.negf %354 : vector<8x128xf32>
    %356 = math.exp %355 : vector<8x128xf32>
    %cst_87 = arith.constant 1.000000e+00 : f32
    %357 = vector.broadcast %cst_87 : f32 to vector<8x128xf32>
    %358 = arith.addf %357, %356 : vector<8x128xf32>
    %359 = arith.divf %357, %358 : vector<8x128xf32>
    %360 = vector.extract_strided_slice %317 {offsets = [0, 640], sizes = [8, 128], strides = [1, 1]} : vector<8x768xf32> to vector<8x128xf32>
    %361 = vector.extract_strided_slice %309 {offsets = [0, 256], sizes = [8, 128], strides = [1, 1]} : vector<8x384xf32> to vector<8x128xf32>
    %362 = arith.mulf %351, %361 : vector<8x128xf32>
    %363 = arith.addf %360, %362 : vector<8x128xf32>
    %364 = math.tanh %363 : vector<8x128xf32>
    %cst_88 = arith.constant 1.000000e+00 : f32
    %365 = vector.broadcast %cst_88 : f32 to vector<8x128xf32>
    %366 = arith.subf %365, %359 : vector<8x128xf32>
    %367 = arith.mulf %366, %364 : vector<8x128xf32>
    %368 = arith.mulf %359, %300 : vector<8x128xf32>
    %369 = arith.addf %367, %368 : vector<8x128xf32>
    %370 = vector.broadcast %c3_i32_75 : i32 to vector<8x1xi32>
    %371 = arith.cmpi slt, %370, %0 : vector<8x1xi32>
    %372 = vector.broadcast %301 : i32 to vector<8x1xi32>
    %373 = arith.cmpi slt, %372, %0 : vector<8x1xi32>
    %cst_89 = arith.constant 0.000000e+00 : f32
    %374 = vector.shape_cast %371 : vector<8x1xi1> to vector<8x1xi1>
    %375 = vector.broadcast %374 : vector<8x1xi1> to vector<8x128xi1>
    %376 = vector.broadcast %cst_89 : f32 to vector<8x128xf32>
    %377 = arith.select %375, %343, %376 : vector<8x128xi1>, vector<8x128xf32>
    %378 = arith.index_cast %c3_i32_75 : i32 to index
    %c0_90 = arith.constant 0 : index
    %c0_91 = arith.constant 0 : index
    %379 = vector.load %arg18[%378, %c0_90, %c0_91] : memref<4x8x256xf32, #tpu.memory_space<vmem>>, vector<1x8x128xf32>
    %380 = vector.shape_cast %379 : vector<1x8x128xf32> to vector<8x128xf32>
    %381 = vector.shape_cast %377 : vector<8x128xf32> to vector<1x8x128xf32>
    tpu.vector_store %arg18[%378, %c0_90, %c0_91], %381 {strides = array<i32>} : memref<4x8x256xf32, #tpu.memory_space<vmem>>, vector<1x8x128xf32>,
    %cst_92 = arith.constant 0.000000e+00 : f32
    %382 = vector.shape_cast %373 : vector<8x1xi1> to vector<8x1xi1>
    %383 = vector.broadcast %382 : vector<8x1xi1> to vector<8x128xi1>
    %384 = vector.broadcast %cst_92 : f32 to vector<8x128xf32>
    %385 = arith.select %383, %369, %384 : vector<8x128xi1>, vector<8x128xf32>
    %386 = arith.index_cast %301 : i32 to index
    %c0_93 = arith.constant 0 : index
    %c128_94 = arith.constant 128 : index
    %387 = vector.load %arg18[%386, %c0_93, %c128_94] : memref<4x8x256xf32, #tpu.memory_space<vmem>>, vector<1x8x128xf32>
    %388 = vector.shape_cast %387 : vector<1x8x128xf32> to vector<8x128xf32>
    %389 = vector.shape_cast %385 : vector<8x128xf32> to vector<1x8x128xf32>
    tpu.vector_store %arg18[%386, %c0_93, %c128_94], %389 {strides = array<i32>} : memref<4x8x256xf32, #tpu.memory_space<vmem>>, vector<1x8x128xf32>,
    %390 = vector.shape_cast %371 : vector<8x1xi1> to vector<8x1xi1>
    %391 = vector.broadcast %390 : vector<8x1xi1> to vector<8x128xi1>
    %392 = arith.select %391, %343, %297 : vector<8x128xi1>, vector<8x128xf32>
    %393 = vector.shape_cast %373 : vector<8x1xi1> to vector<8x1xi1>
    %394 = vector.broadcast %393 : vector<8x1xi1> to vector<8x128xi1>
    %395 = arith.select %394, %369, %300 : vector<8x128xi1>, vector<8x128xf32>
    %c4_i32 = arith.constant 4 : i32
    %c0_95 = arith.constant 0 : index
    %c0_96 = arith.constant 0 : index
    %c0_97 = arith.constant 0 : index
    %396 = vector.load %arg18[%c0_95, %c0_96, %c0_97] : memref<4x8x256xf32, #tpu.memory_space<vmem>>, vector<4x8x256xf32>
    %397 = tpu.iota {dimensions = array<i32: 2>} : vector<1x1x256xi32>
    %c128_i32 = arith.constant 128 : i32
    %c0_i32_98 = arith.constant 0 : i32
    %398 = arith.cmpi eq, %c128_i32, %c0_i32_98 : i32
    %c1_i32_99 = arith.constant 1 : i32
    %399 = arith.select %398, %c1_i32_99, %c128_i32 : i32
    %400 = vector.broadcast %399 : i32 to vector<1x1x256xi32>
    %401 = arith.remsi %397, %400 : vector<1x1x256xi32>
    %c0_i32_100 = arith.constant 0 : i32
    %402 = vector.broadcast %c0_i32_100 : i32 to vector<1x1x256xi32>
    %403 = arith.cmpi ne, %401, %402 : vector<1x1x256xi32>
    %c0_i32_101 = arith.constant 0 : i32
    %404 = vector.broadcast %c0_i32_101 : i32 to vector<1x1x256xi32>
    %405 = arith.cmpi slt, %401, %404 : vector<1x1x256xi32>
    %c0_i32_102 = arith.constant 0 : i32
    %406 = arith.cmpi slt, %399, %c0_i32_102 : i32
    %407 = vector.broadcast %406 : i1 to vector<1x1x256xi1>
    %408 = vector.broadcast %407 : vector<1x1x256xi1> to vector<1x1x256xi1>
    %409 = arith.xori %405, %408 : vector<1x1x256xi1>
    %410 = arith.andi %409, %403 : vector<1x1x256xi1>
    %411 = vector.broadcast %399 : i32 to vector<1x1x256xi32>
    %412 = arith.addi %401, %411 : vector<1x1x256xi32>
    %413 = arith.select %410, %412, %401 : vector<1x1x256xi1>, vector<1x1x256xi32>
    %c16_i32 = arith.constant 16 : i32
    %414 = vector.broadcast %c16_i32 : i32 to vector<1x1x256xi32>
    %415 = arith.cmpi slt, %413, %414 : vector<1x1x256xi32>
    %cst_103 = arith.constant dense<0.000000e+00> : vector<4x8xf32>
    %416 = vector.multi_reduction <add>, %396, %cst_103 [2] : vector<4x8x256xf32> to vector<4x8xf32>
    %417 = vector.shape_cast %416 : vector<4x8xf32> to vector<4x8x1xf32>
    %cst_104 = arith.constant 3.125000e-02 : f32
    %418 = vector.broadcast %cst_104 : f32 to vector<4x8x1xf32>
    %419 = arith.mulf %417, %418 : vector<4x8x1xf32>
    %420 = vector.broadcast %419 : vector<4x8x1xf32> to vector<4x8x256xf32>
    %421 = arith.subf %396, %420 : vector<4x8x256xf32>
    %422 = arith.mulf %421, %421 : vector<4x8x256xf32>
    %cst_105 = arith.constant 0.000000e+00 : f32
    %423 = vector.shape_cast %415 : vector<1x1x256xi1> to vector<1x1x256xi1>
    %424 = vector.broadcast %423 : vector<1x1x256xi1> to vector<4x8x256xi1>
    %425 = vector.broadcast %cst_105 : f32 to vector<4x8x256xf32>
    %426 = arith.select %424, %422, %425 : vector<4x8x256xi1>, vector<4x8x256xf32>
    %cst_106 = arith.constant dense<0.000000e+00> : vector<4x8xf32>
    %427 = vector.multi_reduction <add>, %426, %cst_106 [2] : vector<4x8x256xf32> to vector<4x8xf32>
    %428 = vector.shape_cast %427 : vector<4x8xf32> to vector<4x8x1xf32>
    %cst_107 = arith.constant 3.125000e-02 : f32
    %429 = vector.broadcast %cst_107 : f32 to vector<4x8x1xf32>
    %430 = arith.mulf %428, %429 : vector<4x8x1xf32>
    %cst_108 = arith.constant 9.99999974E-6 : f32
    %431 = vector.broadcast %cst_108 : f32 to vector<4x8x1xf32>
    %432 = arith.addf %430, %431 : vector<4x8x1xf32>
    %433 = math.rsqrt %432 : vector<4x8x1xf32>
    %434 = vector.broadcast %433 : vector<4x8x1xf32> to vector<4x8x256xf32>
    %435 = arith.mulf %421, %434 : vector<4x8x256xf32>
    %c0_109 = arith.constant 0 : index
    %c0_110 = arith.constant 0 : index
    %c0_111 = arith.constant 0 : index
    %436 = vector.load %arg10[%c0_109, %c0_110, %c0_111] : memref<1x1x256xf32, #tpu.memory_space<vmem>>, vector<1x1x256xf32>
    %437 = vector.broadcast %436 : vector<1x1x256xf32> to vector<4x8x256xf32>
    %438 = arith.mulf %435, %437 : vector<4x8x256xf32>
    %c0_112 = arith.constant 0 : index
    %c0_113 = arith.constant 0 : index
    %c0_114 = arith.constant 0 : index
    %439 = vector.load %arg11[%c0_112, %c0_113, %c0_114] : memref<1x1x256xf32, #tpu.memory_space<vmem>>, vector<1x1x256xf32>
    %440 = vector.broadcast %439 : vector<1x1x256xf32> to vector<4x8x256xf32>
    %441 = arith.addf %438, %440 : vector<4x8x256xf32>
    %442 = vector.shape_cast %441 : vector<4x8x256xf32> to vector<32x256xf32>
    %443 = arith.truncf %442 : vector<32x256xf32> to vector<32x256xbf16>
    %c0_115 = arith.constant 0 : index
    %c0_116 = arith.constant 0 : index
    %444 = vector.load %arg12[%c0_115, %c0_116] : memref<256x128xbf16, #tpu.memory_space<vmem>>, vector<256x128xbf16>
    %cst_117 = arith.constant dense<0.000000e+00> : vector<32x128xf32>
    %445 = tpu.matmul %443, %444, %cst_117 {dimension_numbers = #tpu.dot_dimension_numbers<[1], [0], [0], [1], [0, 0, 1, 1], [], []>} : vector<32x256xbf16>, vector<256x128xbf16>, vector<32x128xf32> -> vector<32x128xf32>
    %c0_118 = arith.constant 0 : index
    %c0_119 = arith.constant 0 : index
    %446 = vector.load %arg13[%c0_118, %c0_119] : memref<1x128xf32, #tpu.memory_space<vmem>>, vector<1x128xf32>
    %447 = vector.broadcast %446 : vector<1x128xf32> to vector<32x128xf32>
    %448 = arith.addf %445, %447 : vector<32x128xf32>
    %449 = math.tanh %448 : vector<32x128xf32>
    %450 = vector.shape_cast %449 : vector<32x128xf32> to vector<4x8x128xf32>
    %c0_120 = arith.constant 0 : index
    %c0_121 = arith.constant 0 : index
    %c0_122 = arith.constant 0 : index
    %451 = vector.load %arg14[%c0_120, %c0_121, %c0_122] : memref<1x1x128xf32, #tpu.memory_space<vmem>>, vector<1x1x128xf32>
    %452 = vector.broadcast %451 : vector<1x1x128xf32> to vector<4x8x128xf32>
    %453 = arith.mulf %450, %452 : vector<4x8x128xf32>
    %cst_123 = arith.constant dense<0.000000e+00> : vector<4x8xf32>
    %454 = vector.multi_reduction <add>, %453, %cst_123 [2] : vector<4x8x128xf32> to vector<4x8xf32>
    %455 = tpu.iota {dimensions = array<i32: 0>} : vector<4x8xi32>
    %c0_124 = arith.constant 0 : index
    %c0_125 = arith.constant 0 : index
    %456 = vector.load %arg2[%c0_124, %c0_125] : memref<1x8xi32, #tpu.memory_space<vmem>>, vector<1x8xi32>
    %457 = vector.broadcast %456 : vector<1x8xi32> to vector<4x8xi32>
    %458 = arith.cmpi slt, %455, %457 : vector<4x8xi32>
    %cst_126 = arith.constant -1.000000e+30 : f32
    %459 = vector.broadcast %cst_126 : f32 to vector<4x8xf32>
    %460 = arith.select %458, %454, %459 : vector<4x8xi1>, vector<4x8xf32>
    %cst_127 = arith.constant dense<0xFF800000> : vector<8xf32>
    %461 = vector.multi_reduction <maximumf>, %460, %cst_127 [0] : vector<4x8xf32> to vector<8xf32>
    %462 = vector.shape_cast %461 : vector<8xf32> to vector<1x8xf32>
    %463 = vector.broadcast %462 : vector<1x8xf32> to vector<4x8xf32>
    %464 = arith.subf %460, %463 : vector<4x8xf32>
    %465 = math.exp %464 : vector<4x8xf32>
    %cst_128 = arith.constant 0.000000e+00 : f32
    %466 = vector.broadcast %cst_128 : f32 to vector<4x8xf32>
    %467 = arith.select %458, %465, %466 : vector<4x8xi1>, vector<4x8xf32>
    %cst_129 = arith.constant dense<0.000000e+00> : vector<8xf32>
    %468 = vector.multi_reduction <add>, %467, %cst_129 [0] : vector<4x8xf32> to vector<8xf32>
    %469 = vector.shape_cast %468 : vector<8xf32> to vector<1x8xf32>
    %470 = vector.broadcast %469 : vector<1x8xf32> to vector<4x8xf32>
    %471 = arith.divf %467, %470 : vector<4x8xf32>
    %c0_130 = arith.constant 0 : index
    %c0_131 = arith.constant 0 : index
    %472 = vector.load %arg16[%c0_130, %c0_131] : memref<4x8xf32, #tpu.memory_space<vmem>>, vector<4x8xf32>
    tpu.vector_store %arg16[%c0_130, %c0_131], %471 {strides = array<i32>} : memref<4x8xf32, #tpu.memory_space<vmem>>, vector<4x8xf32>,
    %473 = vector.shape_cast %471 : vector<4x8xf32> to vector<4x8x1xf32>
    %474 = vector.broadcast %473 : vector<4x8x1xf32> to vector<4x8x256xf32>
    %475 = arith.mulf %474, %396 : vector<4x8x256xf32>
    %cst_132 = arith.constant dense<0.000000e+00> : vector<8x256xf32>
    %476 = vector.multi_reduction <add>, %475, %cst_132 [0] : vector<4x8x256xf32> to vector<8x256xf32>
    %c0_133 = arith.constant 0 : index
    %c0_134 = arith.constant 0 : index
    %477 = vector.load %arg15[%c0_133, %c0_134] : memref<8x256xf32, #tpu.memory_space<vmem>>, vector<8x256xf32>
    tpu.vector_store %arg15[%c0_133, %c0_134], %476 {strides = array<i32>} : memref<8x256xf32, #tpu.memory_space<vmem>>, vector<8x256xf32>,
    return
  }
  func.func @transform_0(%arg0: i32) -> (i32, i32) {
    %c0_i32 = arith.constant 0 : i32
    %c0_i32_0 = arith.constant 0 : i32
    return %arg0, %c0_i32 : i32, i32
  }
  func.func @transform_1(%arg0: i32) -> (i32, i32) {
    %c0_i32 = arith.constant 0 : i32
    %c0_i32_0 = arith.constant 0 : i32
    return %c0_i32, %arg0 : i32, i32
  }
  func.func @transform_2(%arg0: i32) -> (i32, i32, i32) {
    %c0_i32 = arith.constant 0 : i32
    %c0_i32_0 = arith.constant 0 : i32
    %c0_i32_1 = arith.constant 0 : i32
    return %c0_i32, %arg0, %c0_i32_0 : i32, i32, i32
  }
  func.func @transform_3(%arg0: i32) -> (i32, i32) {
    %c0_i32 = arith.constant 0 : i32
    %c0_i32_0 = arith.constant 0 : i32
    %c0_i32_1 = arith.constant 0 : i32
    return %c0_i32, %c0_i32_0 : i32, i32
  }
  func.func @transform_4(%arg0: i32) -> (i32, i32) {
    %c0_i32 = arith.constant 0 : i32
    %c0_i32_0 = arith.constant 0 : i32
    %c0_i32_1 = arith.constant 0 : i32
    return %c0_i32, %c0_i32_0 : i32, i32
  }
  func.func @transform_5(%arg0: i32) -> (i32, i32) {
    %c0_i32 = arith.constant 0 : i32
    %c0_i32_0 = arith.constant 0 : i32
    %c0_i32_1 = arith.constant 0 : i32
    return %c0_i32, %c0_i32_0 : i32, i32
  }
  func.func @transform_6(%arg0: i32) -> (i32, i32) {
    %c0_i32 = arith.constant 0 : i32
    %c0_i32_0 = arith.constant 0 : i32
    %c0_i32_1 = arith.constant 0 : i32
    return %c0_i32, %c0_i32_0 : i32, i32
  }
  func.func @transform_7(%arg0: i32) -> (i32, i32) {
    %c0_i32 = arith.constant 0 : i32
    %c0_i32_0 = arith.constant 0 : i32
    %c0_i32_1 = arith.constant 0 : i32
    return %c0_i32, %c0_i32_0 : i32, i32
  }
  func.func @transform_8(%arg0: i32) -> (i32, i32) {
    %c0_i32 = arith.constant 0 : i32
    %c0_i32_0 = arith.constant 0 : i32
    %c0_i32_1 = arith.constant 0 : i32
    return %c0_i32, %c0_i32_0 : i32, i32
  }
  func.func @transform_9(%arg0: i32) -> (i32, i32, i32) {
    %c0_i32 = arith.constant 0 : i32
    %c0_i32_0 = arith.constant 0 : i32
    %c0_i32_1 = arith.constant 0 : i32
    %c0_i32_2 = arith.constant 0 : i32
    return %c0_i32, %c0_i32_0, %c0_i32_1 : i32, i32, i32
  }
  func.func @transform_10(%arg0: i32) -> (i32, i32, i32) {
    %c0_i32 = arith.constant 0 : i32
    %c0_i32_0 = arith.constant 0 : i32
    %c0_i32_1 = arith.constant 0 : i32
    %c0_i32_2 = arith.constant 0 : i32
    return %c0_i32, %c0_i32_0, %c0_i32_1 : i32, i32, i32
  }
  func.func @transform_11(%arg0: i32) -> (i32, i32) {
    %c0_i32 = arith.constant 0 : i32
    %c0_i32_0 = arith.constant 0 : i32
    %c0_i32_1 = arith.constant 0 : i32
    return %c0_i32, %c0_i32_0 : i32, i32
  }
  func.func @transform_12(%arg0: i32) -> (i32, i32) {
    %c0_i32 = arith.constant 0 : i32
    %c0_i32_0 = arith.constant 0 : i32
    %c0_i32_1 = arith.constant 0 : i32
    return %c0_i32, %c0_i32_0 : i32, i32
  }
  func.func @transform_13(%arg0: i32) -> (i32, i32, i32) {
    %c0_i32 = arith.constant 0 : i32
    %c0_i32_0 = arith.constant 0 : i32
    %c0_i32_1 = arith.constant 0 : i32
    %c0_i32_2 = arith.constant 0 : i32
    return %c0_i32, %c0_i32_0, %c0_i32_1 : i32, i32, i32
  }
  func.func @transform_14(%arg0: i32) -> (i32, i32) {
    %c0_i32 = arith.constant 0 : i32
    %c0_i32_0 = arith.constant 0 : i32
    return %arg0, %c0_i32 : i32, i32
  }
  func.func @transform_15(%arg0: i32) -> (i32, i32) {
    %c0_i32 = arith.constant 0 : i32
    %c0_i32_0 = arith.constant 0 : i32
    return %c0_i32, %arg0 : i32, i32
  }
}

</mosaic_0001>

<bundles_post_ra>
// kernel: block_attention_forward.3
= control target key start
LH: loop header
LB: loop body
LE: loop exit
PB: predicated region body
PF: predicated region fallthrough
CT: control target
= control target key end

     0   :  { %21 = vsyncpa [#allocation5], 0  ;;  %s3583_s18 = smov [#allocation4]   ;;  %s5002_s0 = inlined_call_operand.vmem [shape: s32[8,1], index: 0, kind: input, shape index: {}]   ;;  %s5003_s1 = inlined_call_operand.vmem [shape: s32[1,8], index: 1, kind: input, shape index: {}]   ;;  %s5004_s2 = inlined_call_operand.vmem [shape: bf16[4,8,256], index: 2, kind: input, shape index: {}]   ;;  %s5005_s3 = inlined_call_operand.vmem [shape: bf16[256,768], index: 3, kind: input, shape index: {}]   ;;  %s5006_s4 = inlined_call_operand.vmem [shape: bf16[128,384], index: 4, kind: input, shape index: {}]   ;;  %s5007_s5 = inlined_call_operand.vmem [shape: bf16[128,384], index: 5, kind: input, shape index: {}]   ;;  %s5008_s6 = inlined_call_operand.vmem [shape: f32[1,768], index: 6, kind: input, shape index: {}]   ;;  %s5009_s7 = inlined_call_operand.vmem [shape: f32[1,384], index: 7, kind: input, shape index: {}]   ;;  %s5010_s8 = inlined_call_operand.vmem [shape: f32[1,384], index: 8, kind: input, shape index: {}]   ;;  %s5011_s9 = inlined_call_operand.vmem [shape: f32[1,1,256], index: 9, kind: input, shape index: {}]   ;;  %s5012_s10 = inlined_call_operand.vmem [shape: f32[1,1,256], index: 10, kind: input, shape index: {}]   ;;  %s5013_s11 = inlined_call_operand.hbm [shape: bf16[256,128], index: 11, kind: input, shape index: {}]   ;;  %s5014_s12 = inlined_call_operand.vmem [shape: f32[1,128], index: 12, kind: input, shape index: {}]   ;;  %s5015_s13 = inlined_call_operand.vmem [shape: f32[1,1,128], index: 13, kind: input, shape index: {}]   ;;  %s5016_s14 = inlined_call_operand.vmem [shape: f32[8,256], index: 14, kind: output, shape index: {0}]   ;;  %s5017_s15 = inlined_call_operand.vmem [shape: f32[4,8], index: 15, kind: output, shape index: {1}]  }
   0x1   :  { %s49_s19 = sshll.u32 %s3583_s18, 4  ;;  %s3559_s22 = scalar_lea.hbm %s5013_s11, 2048  ;;  %s50_s19 = int_to_ptr.vmem [resolvable:$true] %s49_s19 }
   0x2   :  { %p3560_p0 = scmp.ne.s32.totalorder %s5013_s11, %s3559_s22  ;;  %p3563_p1 = scmp.lt.u32.totalorder %s3559_s22, %s5013_s11 }
   0x4   :  { %p3565_p2 = pnand %p3563_p1, %p3560_p0 }
   0x6   :  { %3568 = shalt.err (!%p3565_p2)
}
   0x7   :  { %s3569_s27 = scalar_lea.vmem %s50_s19, 2048  ;;  %p3574_p4 = scmp.lt.s32.totalorder %s50_s19, %s50_s19 }
   0x8   :  { %p3570_p3 = scmp.ne.s32.totalorder %s50_s19, %s3569_s27  ;;  %p3575_p5 = scmp.lt.s32.totalorder %s3569_s27, %s3569_s27 }
   0xa   :  { %p3576_p6 = por %p3575_p5, %p3574_p4 }
   0xc   :  { %p3577_p7 = pnand %p3576_p6, %p3570_p3 }
   0xe   :  { %3580 = shalt.err (!%p3577_p7)
}
   0xf   :  { %s3584_s28 = smov 64   ;;  %s3585_s29 = smov 4  }
  0x10   :  { %55 = dma.hbm_to_vmem [thread:$0]  %s5013_s11, 2048, %s50_s19, [#allocation5], %s3584_s28, %s3584_s28, %s3585_s29  }
  0x11   :  { %3581 = dma.done.wait [#allocation5], 2048  }
  0x12   :  { %3582 = vsyncadd [#allocation5], 4294965248  ;;  %v5022_v0 = vmov 0   ;;  %v3192_v1 = vld [vmem:[%s5005_s3 + $0xc] ss:$24 sps:$4 sm:$0xff]   ;;  %vm3588_vm0 = vmmov 0  }
  0x13   :  { %3190 = vset.pattern.permute.xlu0 %v5022_v0  ;;  %3191 = vset.pattern.permute.xlu1 %v5022_v0  ;;  %v3194_v2 = vld [vmem:[%s5005_s3 + $0x8] ss:$24 sps:$4 sm:$0xff]   ;;  %v3195_v3 = vld [vmem:[%s5005_s3 + $0x3c] ss:$24 sps:$4 sm:$0xff]   ;;  %v3197_v4 = vld [vmem:[%s5005_s3 + $0x38] ss:$24 sps:$4 sm:$0xff]  }
  0x14   :  { %750 = vmatprep.subr.bf16.mxu1 %v3192_v1  ;;  %v3198_v5 = vld [vmem:[%s5005_s3 + $0x6c] ss:$24 sps:$4 sm:$0xff]   ;;  %v3200_v6 = vld [vmem:[%s5005_s3 + $0x68] ss:$24 sps:$4 sm:$0xff]   ;;  %v3201_v9 = vld [vmem:[%s5005_s3 + $0x9c] ss:$24 sps:$4 sm:$0xff]  }
  0x15   :  { %751 = vmatpush1.bf16.msra.mxu1 %v3194_v2  ;;  %v3207_v7 = vld [vmem:[%s5005_s3 + $0x4] ss:$24 sps:$4 sm:$0xff]   ;;  %v3209_v8 = vld [vmem:[%s5005_s3] ss:$24 sps:$4 sm:$0xff]   ;;  %v3213_v10 = vld [vmem:[%s5005_s3 + $0x34] ss:$24 sps:$4 sm:$0xff]  }
  0x16   :  { %752 = vmatprep.subr.bf16.mxu1 %v3195_v3  ;;  %697 = vmatprep.subr.bf16.mxu0 %v3207_v7  ;;  %v3215_v11 = vld [vmem:[%s5005_s3 + $0x30] ss:$24 sps:$4 sm:$0xff]   ;;  %v3204_v13 = vld [vmem:[%s5005_s3 + $0xcc] ss:$24 sps:$4 sm:$0xff]   ;;  %v3221_v15 = vld [vmem:[%s5005_s3 + $0x60] ss:$24 sps:$4 sm:$0xff]  }
  0x17   :  { %698 = vmatpush1.bf16.msra.mxu0 %v3209_v8  ;;  %v3203_v12 = vld [vmem:[%s5005_s3 + $0x98] ss:$24 sps:$4 sm:$0xff]   ;;  %v3219_v14 = vld [vmem:[%s5005_s3 + $0x64] ss:$24 sps:$4 sm:$0xff]   ;;  %v3206_v16 = vld [vmem:[%s5005_s3 + $0xc8] ss:$24 sps:$4 sm:$0xff]  }
  0x18   :  { %699 = vmatprep.subr.bf16.mxu0 %v3213_v10  ;;  %v3225_v17 = vld [vmem:[%s5005_s3 + $0x94] ss:$24 sps:$4 sm:$0xff]   ;;  %v3227_v19 = vld [vmem:[%s5005_s3 + $0x90] ss:$24 sps:$4 sm:$0xff]   ;;  %v3231_v21 = vld [vmem:[%s5005_s3 + $0xc4] ss:$24 sps:$4 sm:$0xff]  }
  0x19   :  { %753 = vmatpush1.bf16.msra.mxu1 %v3197_v4  ;;  %v3210_v18 = vld [vmem:[%s5005_s3 + $0xfc] ss:$24 sps:$4 sm:$0xff]   ;;  %v3212_v20 = vld [vmem:[%s5005_s3 + $0xf8] ss:$24 sps:$4 sm:$0xff]   ;;  %v3216_v22 = vld [vmem:[%s5005_s3 + $0x12c] ss:$24 sps:$4 sm:$0xff]  }
  0x1a   :  { %754 = vmatprep.subr.bf16.mxu1 %v3198_v5  ;;  %v3233_v23 = vld [vmem:[%s5005_s3 + $0xc0] ss:$24 sps:$4 sm:$0xff]   ;;  %v3237_v25 = vld [vmem:[%s5005_s3 + $0xf4] ss:$24 sps:$4 sm:$0xff]   ;;  %v3239_v27 = vld [vmem:[%s5005_s3 + $0xf0] ss:$24 sps:$4 sm:$0xff]  }
  0x1b   :  { %700 = vmatpush1.bf16.msra.mxu0 %v3215_v11  ;;  %v3218_v24 = vld [vmem:[%s5005_s3 + $0x128] ss:$24 sps:$4 sm:$0xff]   ;;  %v3222_v26 = vld [vmem:[%s5005_s3 + $0x15c] ss:$24 sps:$4 sm:$0xff]   ;;  %v3224_v28 = vld [vmem:[%s5005_s3 + $0x158] ss:$24 sps:$4 sm:$0xff]  }
  0x1c   :  { %701 = vmatprep.subr.bf16.mxu0 %v3219_v14  ;;  %v3243_v29 = vld [vmem:[%s5005_s3 + $0x124] ss:$24 sps:$4 sm:$0xff]   ;;  %v3245_v31 = vld [vmem:[%s5005_s3 + $0x120] ss:$24 sps:$4 sm:$0xff]   ;;  %v3249_v33 = vld [vmem:[%s5005_s3 + $0x154] ss:$24 sps:$4 sm:$0xff]  }
  0x1d   :  { %755 = vmatpush1.bf16.msra.mxu1 %v3200_v6  ;;  %v3228_v30 = vld [vmem:[%s5005_s3 + $0x18c] ss:$24 sps:$4 sm:$0xff]   ;;  %v3230_v32 = vld [vmem:[%s5005_s3 + $0x188] ss:$24 sps:$4 sm:$0xff]   ;;  %v3234_v34 = vld [vmem:[%s5005_s3 + $0x1bc] ss:$24 sps:$4 sm:$0xff]  }
  0x1e   :  { %756 = vmatprep.subr.bf16.mxu1 %v3201_v9  ;;  %v3251_v35 = vld [vmem:[%s5005_s3 + $0x150] ss:$24 sps:$4 sm:$0xff]   ;;  %v3255_v37 = vld [vmem:[%s5005_s3 + $0x184] ss:$24 sps:$4 sm:$0xff]   ;;  %v3257_v39 = vld [vmem:[%s5005_s3 + $0x180] ss:$24 sps:$4 sm:$0xff]  }
  0x1f   :  { %702 = vmatpush1.bf16.msra.mxu0 %v3221_v15  ;;  %v3236_v36 = vld [vmem:[%s5005_s3 + $0x1b8] ss:$24 sps:$4 sm:$0xff]   ;;  %v3240_v38 = vld [vmem:[%s5005_s3 + $0x1ec] ss:$24 sps:$4 sm:$0xff]   ;;  %v3242_v41 = vld [vmem:[%s5005_s3 + $0x1e8] ss:$24 sps:$4 sm:$0xff]  }
  0x20   :  { %703 = vmatprep.subr.bf16.mxu0 %v3225_v17  ;;  %v3803_v40 = vld [vmem:[%s5004_s2 + $0x4] ss:$8 sps:$4 sm:$0xff]   ;;  %v3246_v43 = vld [vmem:[%s5005_s3 + $0x21c] ss:$24 sps:$4 sm:$0xff]   ;;  %v3263_v44 = vld [vmem:[%s5005_s3 + $0x1b0] ss:$24 sps:$4 sm:$0xff]  }
  0x21   :  { %757 = vmatpush1.bf16.msra.mxu1 %v3203_v12  ;;  %v3261_v42 = vld [vmem:[%s5005_s3 + $0x1b4] ss:$24 sps:$4 sm:$0xff]   ;;  %782 = vmatprep.mubr.bf16.mxu1 %v3803_v40  ;;  %v3248_v45 = vld [vmem:[%s5005_s3 + $0x218] ss:$24 sps:$4 sm:$0xff]   ;;  %v3267_v46 = vld [vmem:[%s5005_s3 + $0x1e4] ss:$24 sps:$4 sm:$0xff]  }
  0x22   :  { %758 = vmatprep.subr.bf16.mxu1 %v3204_v13  ;;  %729 = vmatprep.mubr.bf16.mxu0 %v3803_v40  ;;  %v3252_v47 = vld [vmem:[%s5005_s3 + $0x24c] ss:$24 sps:$4 sm:$0xff]   ;;  %v3269_v48 = vld [vmem:[%s5005_s3 + $0x1e0] ss:$24 sps:$4 sm:$0xff]   ;;  %v3258_v51 = vld [vmem:[%s5005_s3 + $0x27c] ss:$24 sps:$4 sm:$0xff]  }
  0x23   :  { %704 = vmatpush1.bf16.msra.mxu0 %v3227_v19  ;;  %v3254_v49 = vld [vmem:[%s5005_s3 + $0x248] ss:$24 sps:$4 sm:$0xff]   ;;  %v3273_v50 = vld [vmem:[%s5005_s3 + $0x214] ss:$24 sps:$4 sm:$0xff]   ;;  %v3260_v53 = vld [vmem:[%s5005_s3 + $0x278] ss:$24 sps:$4 sm:$0xff]  }
  0x24   :  { %705 = vmatprep.subr.bf16.mxu0 %v3231_v21  ;;  %v3275_v52 = vld [vmem:[%s5005_s3 + $0x210] ss:$24 sps:$4 sm:$0xff]   ;;  %v3282_v54 = vld [vmem:[%s5005_s3 + $0x244] ss:$24 sps:$4 sm:$0xff]   ;;  %v3284_v56 = vld [vmem:[%s5005_s3 + $0x240] ss:$24 sps:$4 sm:$0xff]  }
  0x25   :  { %759 = vmatpush1.bf16.msra.mxu1 %v3206_v16  ;;  %v3264_v55 = vld [vmem:[%s5005_s3 + $0x2ac] ss:$24 sps:$4 sm:$0xff]   ;;  %v3266_v57 = vld [vmem:[%s5005_s3 + $0x2a8] ss:$24 sps:$4 sm:$0xff]   ;;  %v3270_v59 = vld [vmem:[%s5005_s3 + $0x2dc] ss:$24 sps:$4 sm:$0xff]  }
  0x26   :  { %760 = vmatprep.subr.bf16.mxu1 %v3210_v18  ;;  %v3288_v58 = vld [vmem:[%s5005_s3 + $0x274] ss:$24 sps:$4 sm:$0xff]   ;;  %v3290_v60 = vld [vmem:[%s5005_s3 + $0x270] ss:$24 sps:$4 sm:$0xff]   ;;  %v3294_v62 = vld [vmem:[%s5005_s3 + $0x2a4] ss:$24 sps:$4 sm:$0xff]  }
  0x27   :  { %706 = vmatpush1.bf16.msra.mxu0 %v3233_v23  ;;  %v3272_v61 = vld [vmem:[%s5005_s3 + $0x2d8] ss:$24 sps:$4 sm:$0xff]   ;;  %v3876_v63 = vld [vmem:[%s5004_s2] ss:$8 sps:$4 sm:$0xff]   ;;  %v3300_v5 = vld [vmem:[%s5005_s3 + $0x2d4] ss:$24 sps:$4 sm:$0xff]  }
  0x28   :  { %707 = vmatprep.subr.bf16.mxu0 %v3237_v25  ;;  %v3881_v1 = vld [vmem:[%s5006_s4 + $0x4] ss:$12 sps:$4 sm:$0xff]   ;;  %v3886_v2 = vld [vmem:[%s5006_s4] ss:$12 sps:$4 sm:$0xff]   ;;  %v3894_v4 = vld [vmem:[%s5006_s4 + $0x1c] ss:$12 sps:$4 sm:$0xff]  }
  0x29   :  { %761 = vmatpush1.bf16.msra.mxu1 %v3212_v20  ;;  %v3296_v3 = vld [vmem:[%s5005_s3 + $0x2a0] ss:$24 sps:$4 sm:$0xff]   ;;  %v3903_v6 = vld [vmem:[%s5004_s2 + $0x14] ss:$8 sps:$4 sm:$0xff]   ;;  %v3302_v8 = vld [vmem:[%s5005_s3 + $0x2d0] ss:$24 sps:$4 sm:$0xff]  }
  0x2a   :  { %762 = vmatprep.subr.bf16.mxu1 %v3216_v22  ;;  %v3908_v7 = vld [vmem:[%s5006_s4 + $0x18] ss:$12 sps:$4 sm:$0xff]   ;;  %v3308_v9 = vld [vmem:[%s5005_s3 + $0x14] ss:$24 sps:$4 sm:$0xff]   ;;  %v3928_v11 = vld [vmem:[%s5006_s4 + $0x30] ss:$12 sps:$4 sm:$0xff]  }
  0x2b   :  { %708 = vmatpush1.bf16.msra.mxu0 %v3239_v27  ;;  %v3922_v10 = vld [vmem:[%s5006_s4 + $0x34] ss:$12 sps:$4 sm:$0xff]   ;;  %v3306_v12 = vld [vmem:[%s5005_s3 + $0x10] ss:$24 sps:$4 sm:$0xff]   ;;  %v3317_v14 = vld [vmem:[%s5005_s3 + $0x44] ss:$24 sps:$4 sm:$0xff]  }
  0x2c   :  { %709 = vmatprep.subr.bf16.mxu0 %v3243_v29  ;;  %v3936_v13 = vld [vmem:[%s5004_s2 + $0x10] ss:$8 sps:$4 sm:$0xff]   ;;  %v3951_v16 = vld [vmem:[%s5006_s4 + $0x48] ss:$12 sps:$4 sm:$0xff]   ;;  %v3977_v21 = vld [vmem:[%s5006_s4 + $0x60] ss:$12 sps:$4 sm:$0xff]  }
  0x2d   :  { %763 = vmatpush1.bf16.msra.mxu1 %v3218_v24  ;;  %v3946_v15 = vld [vmem:[%s5006_s4 + $0x4c] ss:$12 sps:$4 sm:$0xff]   ;;  %v3966_v19 = vld [vmem:[%s5006_s4 + $0x64] ss:$12 sps:$4 sm:$0xff]   ;;  %v3986_v23 = vld [vmem:[%s5006_s4 + $0x7c] ss:$12 sps:$4 sm:$0xff]  }
  0x2e   :  { %764 = vmatprep.subr.bf16.mxu1 %v3222_v26  ;;  %v3315_v17 = vld [vmem:[%s5005_s3 + $0x40] ss:$24 sps:$4 sm:$0xff]   ;;  %v3323_v18 = vld [vmem:[%s5005_s3 + $0x74] ss:$24 sps:$4 sm:$0xff]   ;;  %v3321_v20 = vld [vmem:[%s5005_s3 + $0x70] ss:$24 sps:$4 sm:$0xff]  }
  0x2f   :  { %710 = vmatpush1.bf16.msra.mxu0 %v3245_v31  ;;  %v3329_v22 = vld [vmem:[%s5005_s3 + $0xa4] ss:$24 sps:$4 sm:$0xff]   ;;  %v3327_v24 = vld [vmem:[%s5005_s3 + $0xa0] ss:$24 sps:$4 sm:$0xff]   ;;  %v3333_v26 = vld [vmem:[%s5005_s3 + $0xd4] ss:$24 sps:$4 sm:$0xff]  }
  0x30   :  { %711 = vmatprep.subr.bf16.mxu0 %v3249_v33  ;;  %v3997_v25 = vld [vmem:[%s5006_s4 + $0x78] ss:$12 sps:$4 sm:$0xff]   ;;  %v4006_v27 = vld [vmem:[%s5006_s4 + $0x94] ss:$12 sps:$4 sm:$0xff]   ;;  %v4015_v29 = vld [vmem:[%s5006_s4 + $0x90] ss:$12 sps:$4 sm:$0xff]  }
  0x31   :  { %765 = vmatpush1.bf16.msra.mxu1 %v3224_v28  ;;  %5055 = vst [vmem:[#allocation7_spill] sm:$0xff] %v3997_v25  ;;  %5056 = vst [vmem:[#allocation8_spill] sm:$0xff] %v4006_v27  ;;  %v3331_v28 = vld [vmem:[%s5005_s3 + $0xd0] ss:$24 sps:$4 sm:$0xff]   ;;  %v4024_v31 = vld [vmem:[%s5006_s4 + $0xac] ss:$12 sps:$4 sm:$0xff]  }
  0x32   :  { %766 = vmatprep.subr.bf16.mxu1 %v3228_v30  ;;  %5057 = vst [vmem:[#allocation9_spill] sm:$0xff] %v4015_v29  ;;  %v3337_v30 = vld [vmem:[%s5005_s3 + $0x104] ss:$24 sps:$4 sm:$0xff]   ;;  %5058 = vst [vmem:[#allocation10_spill] sm:$0xff] %v4024_v31  ;;  %v4033_v33 = vld [vmem:[%s5006_s4 + $0xa8] ss:$12 sps:$4 sm:$0xff]  }
  0x33   :  { %712 = vmatpush1.bf16.msra.mxu0 %v3251_v35  ;;  %5059 = vst [vmem:[#allocation11_spill] sm:$0xff] %v4033_v33  ;;  %v3339_v35 = vld [vmem:[%s5005_s3 + $0x130] ss:$24 sps:$4 sm:$0xff]   ;;  %vm2622_vm13 = vcmask 1041409   ;;  %vm2624_vm14 = vcmask 1042434   ;;  %vm2626_vm15 = vcmask 1043459  }
  0x34   :  { %713 = vmatprep.subr.bf16.mxu0 %v3255_v37  ;;  %v3345_v37 = vld [vmem:[%s5005_s3 + $0x164] ss:$24 sps:$4 sm:$0xff]  }
  0x35   :  { %767 = vmatpush1.bf16.msra.mxu1 %v3230_v32  ;;  %v3335_v32 = vld [vmem:[%s5005_s3 + $0x100] ss:$24 sps:$4 sm:$0xff]  }
  0x36   :  { %768 = vmatprep.subr.bf16.mxu1 %v3234_v34  ;;  %v3341_v34 = vld [vmem:[%s5005_s3 + $0x134] ss:$24 sps:$4 sm:$0xff]  }
  0x37   :  { %714 = vmatpush1.bf16.msra.mxu0 %v3257_v39  ;;  %v4055_v39 = vld [vmem:[%s5006_s4 + $0x20] ss:$12 sps:$4 sm:$0xff]  }
  0x38   :  { %715 = vmatprep.subr.bf16.mxu0 %v3261_v42  ;;  %v4071_v42 = vld [vmem:[%s5006_s4 + $0x38] ss:$12 sps:$4 sm:$0xff]  }
  0x39   :  { %769 = vmatpush1.bf16.msra.mxu1 %v3236_v36  ;;  %v4046_v36 = vld [vmem:[%s5006_s4 + $0x8] ss:$12 sps:$4 sm:$0xff]  }
  0x3a   :  { %770 = vmatprep.subr.bf16.mxu1 %v3240_v38  ;;  %v5020_v38 = vmov 0.0  }
  0x3b   :  { %716 = vmatpush1.bf16.msra.mxu0 %v3263_v44  ;;  %v3353_v44 = vld [vmem:[%s5005_s3 + $0x1c4] ss:$24 sps:$4 sm:$0xff]  }
  0x3c   :  { %717 = vmatprep.subr.bf16.mxu0 %v3267_v46  ;;  %v4087_v46 = vld [vmem:[%s5002_s0] sm:$0xff] }
  0x3d   :  { %771 = vmatpush1.bf16.msra.mxu1 %v3242_v41  ;;  %v3349_v41 = vld [vmem:[%s5005_s3 + $0x194] ss:$24 sps:$4 sm:$0xff]   ;;  %vm1533_vm1 = vcmp.gt.s32.totalorder %v4087_v46, 0  ;;  %vm1534_vm2 = vcmp.gt.s32.totalorder %v4087_v46, 3  ;;  %vm1768_vm3 = vcmp.gt.s32.totalorder %v4087_v46, 1  ;;  %vm1769_vm4 = vcmp.gt.s32.totalorder %v4087_v46, 2 }
  0x3e   :  { %772 = vmatprep.subr.bf16.mxu1 %v3246_v43  ;;  %v3347_v43 = vld [vmem:[%s5005_s3 + $0x190] ss:$24 sps:$4 sm:$0xff]  }
  0x3f   :  { %718 = vmatpush1.bf16.msra.mxu0 %v3269_v48  ;;  %v3357_v48 = vld [vmem:[%s5005_s3 + $0x1f4] ss:$24 sps:$4 sm:$0xff]  }
  0x40   :  { %719 = vmatprep.subr.bf16.mxu0 %v3273_v50  ;;  %v1542_v50 = vsel %vm1534_vm2, 1, %v5022_v0 }
  0x41   :  { %773 = vmatpush1.bf16.msra.mxu1 %v3248_v45  ;;  %v3351_v45 = vld [vmem:[%s5005_s3 + $0x1c0] ss:$24 sps:$4 sm:$0xff]  }
  0x42   :  { %774 = vmatprep.subr.bf16.mxu1 %v3252_v47  ;;  %v4092_v47 = vld [vmem:[%s5006_s4 + $0x50] ss:$12 sps:$4 sm:$0xff]  }
  0x43   :  { %720 = vmatpush1.bf16.msra.mxu0 %v3275_v52  ;;  %v4109_v52 = vld [vmem:[%s5006_s4 + $0x68] ss:$12 sps:$4 sm:$0xff]  }
  0x44   :  { %721 = vmatprep.subr.bf16.mxu0 %v3282_v54  ;;  %v3359_v54 = vld [vmem:[%s5005_s3 + $0x220] ss:$24 sps:$4 sm:$0xff]  }
  0x45   :  { %775 = vmatpush1.bf16.msra.mxu1 %v3254_v49  ;;  %v1535_v49 = vsel %vm1533_vm1, 1, %v5022_v0  ;;  %vm2630_vm1 = vcmask 60416  }
  0x46   :  { %776 = vmatprep.subr.bf16.mxu1 %v3258_v51  ;;  %v3355_v51 = vld [vmem:[%s5005_s3 + $0x1f0] ss:$24 sps:$4 sm:$0xff]   ;;  %1537 = vperm.xlu0 %3190, %v1535_v49  }
  0x47   :  { %722 = vmatpush1.bf16.msra.mxu0 %v3284_v56  ;;  %v3367_v56 = vld [vmem:[%s5005_s3 + $0x254] ss:$24 sps:$4 sm:$0xff]  }
  0x48   :  { %723 = vmatprep.subr.bf16.mxu0 %v3288_v58  ;;  %v4136_v58 = vld [vmem:[%s5006_s4 + $0x98] ss:$12 sps:$4 sm:$0xff]  }
  0x49   :  { %777 = vmatpush1.bf16.msra.mxu1 %v3260_v53  ;;  %v3361_v53 = vld [vmem:[%s5005_s3 + $0x224] ss:$24 sps:$4 sm:$0xff]   ;;  %5061 = vst [vmem:[#allocation13_spill] sm:$0xff] %v4136_v58 }
  0x4a   :  { %778 = vmatprep.subr.bf16.mxu1 %v3264_v55  ;;  %1544 = vperm.xlu0 %3190, %v1542_v50   ;;  %v4122_v55 = vld [vmem:[%s5006_s4 + $0x80] ss:$12 sps:$4 sm:$0xff]  }
  0x4b   :  { %724 = vmatpush1.bf16.msra.mxu0 %v3290_v60  ;;  %5060 = vst [vmem:[#allocation12_spill] sm:$0xff] %v4122_v55  ;;  %v3371_v60 = vld [vmem:[%s5005_s3 + $0x280] ss:$24 sps:$4 sm:$0xff]  }
  0x4c   :  { %725 = vmatprep.subr.bf16.mxu0 %v3294_v62  ;;  %v3379_v62 = vld [vmem:[%s5005_s3 + $0x2b4] ss:$24 sps:$4 sm:$0xff]  }
  0x4d   :  { %779 = vmatpush1.bf16.msra.mxu1 %v3266_v57  ;;  %v3365_v57 = vld [vmem:[%s5005_s3 + $0x250] ss:$24 sps:$4 sm:$0xff]  }
  0x4e   :  { %780 = vmatprep.subr.bf16.mxu1 %v3270_v59  ;;  %v3373_v59 = vld [vmem:[%s5005_s3 + $0x284] ss:$24 sps:$4 sm:$0xff]  }
  0x4f   :  { %726 = vmatpush1.bf16.msra.mxu0 %v3296_v3  ;;  %v4158_v3 = vld [vmem:[%s5007_s5 + $0x4] ss:$12 sps:$4 sm:$0xff]  }
  0x50   :  { %727 = vmatprep.subr.bf16.mxu0 %v3300_v5  ;;  %5063 = vst [vmem:[#allocation15_spill] sm:$0xff] %v4158_v3  ;;  %v3377_v5 = vld [vmem:[%s5005_s3 + $0x2b0] ss:$24 sps:$4 sm:$0xff]  }
  0x51   :  { %781 = vmatpush1.bf16.msra.mxu1 %v3272_v61  ;;  %v4149_v61 = vld [vmem:[%s5006_s4 + $0xb0] ss:$12 sps:$4 sm:$0xff]  }
  0x52   :  { %1174 = vmatprep.subr.bf16.mxu1 %v3881_v1  ;;  %5062 = vst [vmem:[#allocation14_spill] sm:$0xff] %v4149_v61 }
  0x53   :  { %728 = vmatpush1.bf16.msra.mxu0 %v3302_v8  ;;  %v4167_v8 = vld [vmem:[%s5007_s5] ss:$12 sps:$4 sm:$0xff]  }
  0x54   :  { %783 = vmatmul.mubr.bf16.vlgmr.msra.gmra.mrb[0].mxu1 %v3876_v63  ;;  %803 = vmatprep.subr.bf16.mxu0 %v3308_v9  ;;  %v3385_v9 = vld [vmem:[%s5005_s3 + $0x2e4] ss:$24 sps:$4 sm:$0xff]  }
  0x55   :  { %1175 = vmatpush1.bf16.msra.mxu1 %v3886_v2  ;;  %792 = vmatprep.mubr.bf16.mxu1 %v3903_v6 }
  0x56   :  { %1176 = vmatprep.subr.bf16.mxu1 %v3894_v4  ;;  %730 = vmatmul.mubr.bf16.vlgmr.msra.gmra.mrb[0].mxu0 %v3876_v63 }
  0x57   :  { %804 = vmatpush1.bf16.msra.mxu0 %v3306_v12  ;;  %739 = vmatprep.mubr.bf16.mxu0 %v3903_v6  ;;  %v4176_v12 = vld [vmem:[%s5007_s5 + $0x1c] ss:$12 sps:$4 sm:$0xff]  }
  0x58   :  { %805 = vmatprep.subr.bf16.mxu0 %v3317_v14  ;;  %v3383_v14 = vld [vmem:[%s5005_s3 + $0x2e0] ss:$24 sps:$4 sm:$0xff]  }
  0x59   :  { %1177 = vmatpush1.bf16.msra.mxu1 %v3908_v7 }
  0x5a   :  { %1178 = vmatprep.subr.bf16.mxu1 %v3922_v10 }
  0x5b   :  { %806 = vmatpush1.bf16.msra.mxu0 %v3315_v17  ;;  %v4186_v17 = vld [vmem:[%s5007_s5 + $0x18] ss:$12 sps:$4 sm:$0xff]  }
  0x5c   :  { %793 = vmatmul.mubr.bf16.gmra.mrb[4].mxu1 %v3936_v13  ;;  %807 = vmatprep.subr.bf16.mxu0 %v3323_v18  ;;  %v4192_v18 = vld [vmem:[%s5007_s5 + $0x34] ss:$12 sps:$4 sm:$0xff]  }
  0x5d   :  { %1179 = vmatpush1.bf16.msra.mxu1 %v3928_v11  ;;  %1206 = vmatprep.mubr.bf16.mxu1 %v5022_v0 }
  0x5e   :  { %1180 = vmatprep.subr.bf16.mxu1 %v3946_v15  ;;  %740 = vmatmul.mubr.bf16.gmra.mrb[4].mxu0 %v3936_v13 }
  0x5f   :  { %808 = vmatpush1.bf16.msra.mxu0 %v3321_v20  ;;  %835 = vmatprep.mubr.bf16.mxu0 %v3803_v40  ;;  %v3343_v40 = vld [vmem:[%s5005_s3 + $0x160] ss:$24 sps:$4 sm:$0xff]   ;;  %v4199_v20 = vld [vmem:[%s5007_s5 + $0x30] ss:$12 sps:$4 sm:$0xff]  }
  0x60   :  { %809 = vmatprep.subr.bf16.mxu0 %v3329_v22  ;;  %v4206_v22 = vld [vmem:[%s5007_s5 + $0x4c] ss:$12 sps:$4 sm:$0xff]  }
  0x61   :  { %1181 = vmatpush1.bf16.msra.mxu1 %v3951_v16 }
  0x62   :  { %1182 = vmatprep.subr.bf16.mxu1 %v3966_v19 }
  0x63   :  { %810 = vmatpush1.bf16.msra.mxu0 %v3327_v24  ;;  %v4215_v24 = vld [vmem:[%s5007_s5 + $0x48] ss:$12 sps:$4 sm:$0xff]  }
  0x64   :  { %811 = vmatprep.subr.bf16.mxu0 %v3333_v26  ;;  %v4318_v26 = vld [vmem:[%s5007_s5 + $0x68] ss:$12 sps:$4 sm:$0xff]  }
  0x65   :  { %1183 = vmatpush1.bf16.msra.mxu1 %v3977_v21 }
  0x66   :  { %1184 = vmatprep.subr.bf16.mxu1 %v3986_v23 }
  0x67   :  { %812 = vmatpush1.bf16.msra.mxu0 %v3331_v28  ;;  %v4325_v28 = vld [vmem:[%s5007_s5 + $0x80] ss:$12 sps:$4 sm:$0xff]  }
  0x68   :  { %813 = vmatprep.subr.bf16.mxu0 %v3337_v30  ;;  %v4332_v30 = vld [vmem:[%s5007_s5 + $0x98] ss:$12 sps:$4 sm:$0xff]  }
  0x69   :  { %1185 = vmatpush1.bf16.msra.mxu1 %v3997_v25 }
  0x6a   :  { %1186 = vmatprep.subr.bf16.mxu1 %v4006_v27 }
  0x6b   :  { %814 = vmatpush1.bf16.msra.mxu0 %v3335_v32  ;;  %v4339_v32 = vld [vmem:[%s5007_s5 + $0xb0] ss:$12 sps:$4 sm:$0xff]  }
  0x6c   :  { %815 = vmatprep.subr.bf16.mxu0 %v3341_v34  ;;  %v5019_v34 = vlaneseq }
  0x6d   :  { %1187 = vmatpush1.bf16.msra.mxu1 %v4015_v29 }
  0x6e   :  { %1188 = vmatprep.subr.bf16.mxu1 %v4024_v31 }
  0x6f   :  { %816 = vmatpush1.bf16.msra.mxu0 %v3339_v35  ;;  %v4364_v35 = vshrl.u32 %v5019_v34, 7 }
  0x70   :  { %817 = vmatprep.subr.bf16.mxu0 %v3345_v37 }
  0x71   :  { %1189 = vmatpush1.bf16.msra.mxu1 %v4033_v33  ;;  %5064 = vst [vmem:[#allocation16_spill] sm:$0xff] %v4364_v35  ;;  %v4367_v37 = vsub.s32 2, %v4364_v35 }
  0x72   :  { %3024 = vmatprep.subr.bf16.mxu1 %v5020_v38 }
  0x73   :  { %818 = vmatpush1.bf16.msra.mxu0 %v3343_v40  ;;  %5065 = vst [vmem:[#allocation17_spill] sm:$0xff] %v4367_v37  ;;  %v4372_v40 = vld [vmem:[%s5008_s6] sm:$0x3f] }
  0x74   :  { %1207 = vmatmul.mubr.bf16.vlgmr.msra.gmra.mrb[8].mxu1 %v5022_v0  ;;  %819 = vmatprep.subr.bf16.mxu0 %v3349_v41  ;;  %v5018_v41 = vsub.s32 3, %v4364_v35 }
  0x75   :  { %3025 = vmatpush3.bf16.msra.mxu1 %v4046_v36  ;;  %3040 = vmatprep.mubr.msk.bf16.mxu1 %vm3588_vm0, %v5020_v38 }
  0x76   :  { %3026 = vmatprep.subr.bf16.mxu1 %v5020_v38 }
  0x77   :  { %820 = vmatpush1.bf16.msra.mxu0 %v3347_v43  ;;  %v178_v43 = vrot.slane %v4372_v40, %v4367_v37 }
  0x78   :  { %821 = vmatprep.subr.bf16.mxu0 %v3353_v44  ;;  %v182_v44 = vrot.slane %v4372_v40, %v5018_v41 }
  0x79   :  { %3027 = vmatpush3.bf16.msra.mxu1 %v4055_v39 }
  0x7a   :  { %3028 = vmatprep.subr.bf16.mxu1 %v5020_v38 }
  0x7b   :  { %822 = vmatpush1.bf16.msra.mxu0 %v3351_v45 }
  0x7c   :  { %823 = vmatprep.subr.bf16.mxu0 %v3357_v48  ;;  %v4381_v48 = vsub.s32 0, %v4364_v35 }
  0x7d   :  { %3029 = vmatpush3.bf16.msra.mxu1 %v4071_v42 }
  0x7e   :  { %3030 = vmatprep.subr.bf16.mxu1 %v5020_v38  ;;  %5066 = vst [vmem:[#allocation18_spill] sm:$0xff] %v4381_v48 }
  0x7f   :  { %824 = vmatpush1.bf16.msra.mxu0 %v3355_v51  ;;  %v4384_v51 = vsub.s32 1, %v4364_v35 }
  0x80   :  { %825 = vmatprep.subr.bf16.mxu0 %v3361_v53 }
  0x81   :  { %3031 = vmatpush3.bf16.msra.mxu1 %v4092_v47  ;;  %5067 = vst [vmem:[#allocation19_spill] sm:$0xff] %v4384_v51 }
  0x82   :  { %3032 = vmatprep.subr.bf16.mxu1 %v5020_v38 }
  0x83   :  { %826 = vmatpush1.bf16.msra.mxu0 %v3359_v54 }
  0x84   :  { %827 = vmatprep.subr.bf16.mxu0 %v3367_v56 }
  0x85   :  { %3033 = vmatpush3.bf16.msra.mxu1 %v4109_v52 }
  0x86   :  { %3034 = vmatprep.subr.bf16.mxu1 %v5020_v38 }
  0x87   :  { %828 = vmatpush1.bf16.msra.mxu0 %v3365_v57 }
  0x88   :  { %829 = vmatprep.subr.bf16.mxu0 %v3373_v59 }
  0x89   :  { %3035 = vmatpush3.bf16.msra.mxu1 %v4122_v55 }
  0x8a   :  { %3036 = vmatprep.subr.bf16.mxu1 %v5020_v38 }
  0x8b   :  { %830 = vmatpush1.bf16.msra.mxu0 %v3371_v60 }
  0x8c   :  { %831 = vmatprep.subr.bf16.mxu0 %v3379_v62  ;;  %v170_v62 = vrot.slane %v4372_v40, %v4381_v48 }
  0x8d   :  { %3037 = vmatpush3.bf16.msra.mxu1 %v4136_v58 }
  0x8e   :  { %3038 = vmatprep.subr.bf16.mxu1 %v5020_v38 }
  0x8f   :  { %832 = vmatpush1.bf16.msra.mxu0 %v3377_v5  ;;  %v174_v5 = vrot.slane %v4372_v40, %v4384_v51 }
  0x90   :  { %833 = vmatprep.subr.bf16.mxu0 %v3385_v9 }
  0x91   :  { %3039 = vmatpush3.bf16.msra.mxu1 %v4149_v61 }
  0x92   :  { %1399 = vmatprep.subr.bf16.mxu1 %v4158_v3 }
  0x93   :  { %834 = vmatpush1.bf16.msra.mxu0 %v3383_v14 }
  0x94   :  { %3041 = vmatmul.mubr.bf16.vlgmr.msra.gmra.mrb[12].mxu1 %v5022_v0  ;;  %1551 = vmatprep.subr.bf16.mxu0 %v3881_v1  ;;  %v4222_v1 = vld [vmem:[%s5007_s5 + $0x64] ss:$12 sps:$4 sm:$0xff]  }
  0x95   :  { %1400 = vmatpush1.bf16.msra.mxu1 %v4167_v8  ;;  %1431 = vmatprep.mubr.bf16.mxu1 %v5022_v0 }
  0x96   :  { %1401 = vmatprep.subr.bf16.mxu1 %v4176_v12  ;;  %836 = vmatmul.mubr.bf16.vlgmr.msra.gmra.mrb[8].mxu0 %v3876_v63  ;;  %v4229_v63 = vld [vmem:[%s5007_s5 + $0x60] ss:$12 sps:$4 sm:$0xff]  }
  0x97   :  { %845 = vmatprep.mubr.bf16.mxu0 %v3903_v6  ;;  %1552 = vmatpush1.bf16.msra.mxu0 %v3886_v2  ;;  %v4236_v2 = vld [vmem:[%s5007_s5 + $0x7c] ss:$12 sps:$4 sm:$0xff]   ;;  %v4252_v6 = vld [vmem:[%s5007_s5 + $0x94] ss:$12 sps:$4 sm:$0xff]  }
  0x98   :  { %1553 = vmatprep.subr.bf16.mxu0 %v3894_v4  ;;  %v4245_v4 = vld [vmem:[%s5007_s5 + $0x78] ss:$12 sps:$4 sm:$0xff]  }
  0x99   :  { %1402 = vmatpush1.bf16.msra.mxu1 %v4186_v17 }
  0x9a   :  { %1403 = vmatprep.subr.bf16.mxu1 %v4192_v18 }
  0x9b   :  { %1554 = vmatpush1.bf16.msra.mxu0 %v3908_v7  ;;  %v4259_v7 = vld [vmem:[%s5007_s5 + $0x90] ss:$12 sps:$4 sm:$0xff]  }
  0x9c   :  { %1555 = vmatprep.subr.bf16.mxu0 %v3922_v10  ;;  %v4266_v10 = vld [vmem:[%s5007_s5 + $0xac] ss:$12 sps:$4 sm:$0xff]  }
  0x9d   :  { %1404 = vmatpush1.bf16.msra.mxu1 %v4199_v20 }
  0x9e   :  { %1405 = vmatprep.subr.bf16.mxu1 %v4206_v22  ;;  %846 = vmatmul.mubr.bf16.gmra.mrb[12].mxu0 %v3936_v13  ;;  %v4282_v13 = vld [vmem:[%s5007_s5 + $0x8] ss:$12 sps:$4 sm:$0xff]  }
  0x9f   :  { %1556 = vmatpush1.bf16.msra.mxu0 %v3928_v11  ;;  %1583 = vmatprep.mubr.bf16.mxu0 %v5022_v0  ;;  %v4273_v11 = vld [vmem:[%s5007_s5 + $0xa8] ss:$12 sps:$4 sm:$0xff]  }
  0xa0   :  { %1557 = vmatprep.subr.bf16.mxu0 %v3946_v15  ;;  %v4292_v15 = vld [vmem:[%s5007_s5 + $0x20] ss:$12 sps:$4 sm:$0xff]  }
  0xa1   :  { %1406 = vmatpush1.bf16.msra.mxu1 %v4215_v24 }
  0xa2   :  { %1407 = vmatprep.subr.bf16.mxu1 %v4222_v1 }
  0xa3   :  { %1558 = vmatpush1.bf16.msra.mxu0 %v3951_v16  ;;  %v4303_v16 = vld [vmem:[%s5007_s5 + $0x38] ss:$12 sps:$4 sm:$0xff]  }
  0xa4   :  { %1559 = vmatprep.subr.bf16.mxu0 %v3966_v19  ;;  %v4311_v19 = vld [vmem:[%s5007_s5 + $0x50] ss:$12 sps:$4 sm:$0xff]  }
  0xa5   :  { %1408 = vmatpush1.bf16.msra.mxu1 %v4229_v63 }
  0xa6   :  { %1409 = vmatprep.subr.bf16.mxu1 %v4236_v2 }
  0xa7   :  { %1560 = vmatpush1.bf16.msra.mxu0 %v3977_v21 }
  0xa8   :  { %1561 = vmatprep.subr.bf16.mxu0 %v3986_v23 }
  0xa9   :  { %1410 = vmatpush1.bf16.msra.mxu1 %v4245_v4 }
  0xaa   :  { %1411 = vmatprep.subr.bf16.mxu1 %v4252_v6 }
  0xab   :  { %1562 = vmatpush1.bf16.msra.mxu0 %v3997_v25 }
  0xac   :  { %1563 = vmatprep.subr.bf16.mxu0 %v4006_v27 }
  0xad   :  { %1412 = vmatpush1.bf16.msra.mxu1 %v4259_v7 }
  0xae   :  { %1413 = vmatprep.subr.bf16.mxu1 %v4266_v10 }
  0xaf   :  { %1564 = vmatpush1.bf16.msra.mxu0 %v4015_v29 }
  0xb0   :  { %1565 = vmatprep.subr.bf16.mxu0 %v4024_v31 }
  0xb1   :  { %1414 = vmatpush1.bf16.msra.mxu1 %v4273_v11 }
  0xb2   :  { %3044 = vmatprep.subr.bf16.mxu1 %v5020_v38 }
  0xb3   :  { %1566 = vmatpush1.bf16.msra.mxu0 %v4033_v33 }
  0xb4   :  { %1432 = vmatmul.mubr.bf16.vlgmr.msra.gmra.mrb[16].mxu1 %v5022_v0  ;;  %1633 = vmatprep.subr.bf16.mxu0 %v4158_v3 }
  0xb5   :  { %3045 = vmatpush3.bf16.msra.mxu1 %v4282_v13  ;;  %3060 = vmatprep.mubr.msk.bf16.mxu1 %vm3588_vm0, %v5020_v38 }
  0xb6   :  { %3046 = vmatprep.subr.bf16.mxu1 %v5020_v38 }
  0xb9   :  { %3047 = vmatpush3.bf16.msra.mxu1 %v4292_v15 }
  0xba   :  { %3048 = vmatprep.subr.bf16.mxu1 %v5020_v38 }
  0xbd   :  { %3049 = vmatpush3.bf16.msra.mxu1 %v4303_v16 }
  0xbe   :  { %3050 = vmatprep.subr.bf16.mxu1 %v5020_v38 }
  0xc1   :  { %3051 = vmatpush3.bf16.msra.mxu1 %v4311_v19 }
  0xc2   :  { %3052 = vmatprep.subr.bf16.mxu1 %v5020_v38 }
  0xc5   :  { %3053 = vmatpush3.bf16.msra.mxu1 %v4318_v26 }
  0xc6   :  { %3054 = vmatprep.subr.bf16.mxu1 %v5020_v38 }
  0xc9   :  { %3055 = vmatpush3.bf16.msra.mxu1 %v4325_v28 }
  0xca   :  { %3056 = vmatprep.subr.bf16.mxu1 %v5020_v38 }
  0xcd   :  { %3057 = vmatpush3.bf16.msra.mxu1 %v4332_v30 }
  0xce   :  { %3058 = vmatprep.subr.bf16.mxu1 %v5020_v38 }
  0xd1   :  { %3059 = vmatpush3.bf16.msra.mxu1 %v4339_v32 }
  0xd2   :  { %3064 = vmatprep.subr.bf16.mxu1 %v5020_v38 }
  0xd4   :  { %3061 = vmatmul.mubr.bf16.vlgmr.msra.gmra.mrb[20].mxu1 %v5022_v0 }
  0xd5   :  { %3065 = vmatpush3.bf16.msra.mxu1 %v4046_v36  ;;  %3080 = vmatprep.mubr.msk.bf16.mxu1 %vm3588_vm0, %v5020_v38 }
  0xd6   :  { %3066 = vmatprep.subr.bf16.mxu1 %v5020_v38 }
  0xd9   :  { %3067 = vmatpush3.bf16.msra.mxu1 %v4055_v39 }
  0xda   :  { %3068 = vmatprep.subr.bf16.mxu1 %v5020_v38 }
  0xdd   :  { %3069 = vmatpush3.bf16.msra.mxu1 %v4071_v42 }
  0xde   :  { %3070 = vmatprep.subr.bf16.mxu1 %v5020_v38 }
  0xe1   :  { %3071 = vmatpush3.bf16.msra.mxu1 %v4092_v47 }
  0xe2   :  { %3072 = vmatprep.subr.bf16.mxu1 %v5020_v38 }
  0xe5   :  { %3073 = vmatpush3.bf16.msra.mxu1 %v4109_v52 }
  0xe6   :  { %3074 = vmatprep.subr.bf16.mxu1 %v5020_v38 }
  0xe9   :  { %3075 = vmatpush3.bf16.msra.mxu1 %v4122_v55 }
  0xea   :  { %3076 = vmatprep.subr.bf16.mxu1 %v5020_v38 }
  0xed   :  { %3077 = vmatpush3.bf16.msra.mxu1 %v4136_v58 }
  0xee   :  { %3078 = vmatprep.subr.bf16.mxu1 %v5020_v38 }
  0xf1   :  { %3079 = vmatpush3.bf16.msra.mxu1 %v4149_v61 }
  0xf2   :  { %3084 = vmatprep.subr.bf16.mxu1 %v5020_v38 }
 0x127   :  { %v784_v45 = vpop.f32.mrb[0].mxu1 }
 0x128   :  { %v785_v49 = vadd.f32 %v784_v45, %v178_v43  ;;  %v786_v50 = vpop.f32.mrb[1].mxu1 }
 0x129   :  { %v787_v53 = vadd.f32 %v786_v50, %v182_v44  ;;  %v788_v54 = vpop.f32.mrb[2].mxu1  ;;  %v731_v14 = vpop.f32.mrb[0].mxu0 }
 0x12a   :  { %v789_v56 = vadd.f32 %v788_v54, %v178_v43  ;;  %v790_v57 = vpop.f32.mrb[3].mxu1  ;;  %v732_v41 = vadd.f32 %v731_v14, %v170_v62  ;;  %v733_v34 = vpop.f32.mrb[1].mxu0 }
 0x12b   :  { %v4386_v59 = vpack.c.bf16 %v787_v53, %v785_v49  ;;  %v791_v60 = vadd.f32 %v790_v57, %v182_v44  ;;  %v734_v0 = vadd.f32 %v733_v34, %v174_v5  ;;  %v735_v54 = vpop.f32.mrb[2].mxu0 }
 0x12c   :  { %v736_v53 = vadd.f32 %v735_v54, %v170_v62  ;;  %v737_v57 = vpop.f32.mrb[3].mxu0 }
 0x12d   :  { %5068 = vst [vmem:[#allocation20_spill] sm:$0xff] %v4386_v59  ;;  %v4392_v9 = vpack.c.bf16 %v791_v60, %v789_v56  ;;  %v2912_v31 = vpack.c.bf16 %v734_v0, %v732_v41  ;;  %v738_v58 = vadd.f32 %v737_v57, %v174_v5  ;;  %v5073_v0 = vmov 0  }
 0x12f   :  { %5069 = vst [vmem:[#allocation21_spill] sm:$0xff] %v4392_v9  ;;  %v794_v45 = vpop.f32.mrb[4].mxu1  ;;  %v4396_v60 = vpack.c.bf16 %v738_v58, %v736_v53  ;;  %v1482_v58 = vunpack.c.l.bf16 %v2912_v31 }
 0x130   :  { %v795_v38 = vadd.f32 %v794_v45, %v178_v43  ;;  %v796_v50 = vpop.f32.mrb[5].mxu1 }
 0x131   :  { %v797_v3 = vadd.f32 %v796_v50, %v182_v44  ;;  %v798_v49 = vpop.f32.mrb[6].mxu1  ;;  %v741_v14 = vpop.f32.mrb[4].mxu0 }
 0x132   :  { %v799_v61 = vadd.f32 %v798_v49, %v178_v43  ;;  %v800_v33 = vpop.f32.mrb[7].mxu1  ;;  %v742_v45 = vadd.f32 %v741_v14, %v170_v62  ;;  %v743_v27 = vpop.f32.mrb[5].mxu0 }
 0x133   :  { %v4394_v29 = vpack.c.bf16 %v797_v3, %v795_v38  ;;  %v801_v56 = vadd.f32 %v800_v33, %v182_v44  ;;  %v744_v34 = vadd.f32 %v743_v27, %v174_v5  ;;  %v745_v55 = vpop.f32.mrb[6].mxu0  ;;  %v1770_v33 = vsel %vm1768_vm3, 1, %v5073_v0  ;;  %v1028_v38 = vld [vmem:[%s5009_s7] sm:$0x7] }
 0x134   :  { %v746_v50 = vadd.f32 %v745_v55, %v170_v62  ;;  %v747_v25 = vpop.f32.mrb[7].mxu0  ;;  %1772 = vperm.xlu1 %3191, %v1770_v33   ;;  %v1778_v27 = vsel %vm1769_vm4, 1, %v5073_v0  ;;  %v4412_v55 = vrot.slane %v1028_v38, %v4381_v48  ;;  %v1483_v3 = vunpack.c.h.bf16 %v2912_v31 }
 0x135   :  { %v4398_v9 = vpack.c.bf16 %v801_v56, %v799_v61  ;;  %v4400_v54 = vpack.c.bf16 %v744_v34, %v742_v45  ;;  %v748_v43 = vadd.f32 %v747_v25, %v174_v5  ;;  %v4415_v25 = vrot.slane %v1028_v38, %v4384_v51 }
 0x136   :  { %5074 = vst [vmem:[#allocation25_spill] sm:$0xff] %v4412_v55 }
 0x137   :  { %5070 = vst [vmem:[#allocation22_spill] sm:$0xff] %v4398_v9  ;;  %5071 = vst [vmem:[#allocation23_spill] sm:$0xff] %v4400_v54  ;;  %v4402_v49 = vpack.c.bf16 %v748_v43, %v746_v50  ;;  %v4420_v43 = vrot.slane %v1028_v38, %v4367_v37 }
 0x138   :  { %5075 = vst [vmem:[#allocation26_spill] sm:$0xff] %v4415_v25  ;;  %1780 = vperm.xlu1 %3191, %v1778_v27  }
 0x139   :  { %5072 = vst [vmem:[#allocation24_spill] sm:$0xff] %v4402_v49 }
 0x147   :  { %v1208_v61 = vpop.f32.mrb[8].mxu1 }
 0x148   :  { %v1209_v46 = vadd.f32 %v1208_v61, %v4412_v55  ;;  %v1210_v41 = vpop.f32.mrb[9].mxu1 }
 0x149   :  { %v1211_v44 = vadd.f32 %v1210_v41, %v4415_v25  ;;  %v1212_v62 = vpop.f32.mrb[10].mxu1 }
 0x14a   :  { %v1491_v5 = vadd.f32 %v1482_v58, %v1209_v46  ;;  %v1213_v53 = vpop.f32.mrb[11].mxu1  ;;  %v1484_v46 = vunpack.c.l.bf16 %v4386_v59 }
 0x14b   :  { %v1498_v57 = vadd.f32 %v1483_v3, %v1211_v44  ;;  %v185_v3 = vsub.s32 4, %v4364_v35 }
 0x14c   :  { %v2865_v56 = vmul.f32 -1.442695, %v1491_v5  ;;  %v189_v5 = vsub.s32 5, %v4364_v35 }
 0x14d   :  { %v2866_v14 = vmul.f32 -1.442695, %v1498_v57  ;;  %v186_v38 = vrot.slane %v4372_v40, %v185_v3 }
 0x14e   :  { %3422 = vpow2.f32 %v2865_v56  ;;  %v190_v56 = vrot.slane %v4372_v40, %v189_v5 }
 0x14f   :  { %3424 = vpow2.f32 %v2866_v14 }
 0x158   :  { %v3423_v45 = vpop.eup %3422 }
 0x159   :  { %v1495_v34 = vadd.f32 1.0, %v3423_v45  ;;  %v3425_v50 = vpop.eup %3424 }
 0x15a   :  { %v1502_v31 = vadd.f32 1.0, %v3425_v50 }
 0x15b   :  { %3426 = vrcp.f32 %v1495_v34 }
 0x15c   :  { %3428 = vrcp.f32 %v1502_v31 }
 0x165   :  { %v3427_v41 = vpop.eup %3426 }
 0x167   :  { %v1249_v33 = vpop.f32.mrb[12].mxu1 }
 0x168   :  { %v1250_v27 = vadd.f32 %v1249_v33, %v4420_v43  ;;  %v3042_v61 = vpop.f32.mrb[13].mxu1 }
 0x169   :  { %v1252_v58 = vpop.f32.mrb[14].mxu1  ;;  %v837_v57 = vpop.f32.mrb[8].mxu0 }
 0x16a   :  { %v1505_v44 = vmul.f32 %v3427_v41, %v1250_v27  ;;  %v3043_v62 = vpop.f32.mrb[15].mxu1  ;;  %v838_v14 = vadd.f32 %v837_v57, %v186_v38  ;;  %v839_v45 = vpop.f32.mrb[9].mxu0 }
 0x16b   :  { %v840_v34 = vadd.f32 %v839_v45, %v190_v56  ;;  %v841_v50 = vpop.f32.mrb[10].mxu0  ;;  %v3429_v27 = vpop.eup %3428 }
 0x16c   :  { %v1506_v53 = vadd.f32 %v1505_v44, %v1484_v46  ;;  %v842_v33 = vadd.f32 %v841_v50, %v186_v38  ;;  %v843_v61 = vpop.f32.mrb[11].mxu0  ;;  %v4432_v62 = vpop.permute.xlu0 %1537  ;;  %v1508_v3 = vsub.f32 1.0, %v3429_v27  ;;  %v1510_v45 = vmul.f32 0.0, %v3429_v27 }
 0x16d   :  { %v4428_v58 = vpack.c.bf16 %v840_v34, %v838_v14  ;;  %v844_v31 = vadd.f32 %v843_v61, %v190_v56  ;;  %vm1539_vm5 = vcmp.eq.s32.totalorder %v4432_v62, 1 }
 0x16e   :  { %3430 = vtanh.f32 %v1506_v53  ;;  %vm2869_vm6 = vmpackc.low %vm1539_vm5, %vm1539_vm5 }
 0x16f   :  { %5076 = vst [vmem:[#allocation27_spill] sm:$0xff] %v4428_v58  ;;  %v4430_v41 = vpack.c.bf16 %v844_v31, %v842_v33 }
 0x170   :  { %v4504_v49 = vpop.permute.xlu0 %1544 }
 0x171   :  { %5077 = vst [vmem:[#allocation28_spill] sm:$0xff] %v4430_v41  ;;  %v847_v46 = vpop.f32.mrb[12].mxu0  ;;  %vm1546_vm7 = vcmp.eq.s32.totalorder %v4504_v49, 1 }
 0x172   :  { %v848_v44 = vadd.f32 %v847_v46, %v186_v38  ;;  %v849_v53 = vpop.f32.mrb[13].mxu0  ;;  %vm2875_vm8 = vmpackc.low %vm1546_vm7, %vm1546_vm7 }
 0x173   :  { %v850_v40 = vadd.f32 %v849_v53, %v190_v56  ;;  %v851_v5 = vpop.f32.mrb[14].mxu0 }
 0x174   :  { %v852_v50 = vadd.f32 %v851_v5, %v186_v38  ;;  %v853_v14 = vpop.f32.mrb[15].mxu0  ;;  %v5078_v38 = vmov 0.0  }
 0x175   :  { %v4435_v34 = vpack.c.bf16 %v850_v40, %v848_v44  ;;  %v854_v61 = vadd.f32 %v853_v14, %v190_v56  ;;  %v1488_v40 = vunpack.c.h.bf16 %v4398_v9 }
 0x177   :  { %v4442_v31 = vpack.c.bf16 %v854_v61, %v852_v50 }
 0x178   :  { %v3431_v35 = vpop.eup %3430 }
 0x179   :  { %v1509_v57 = vmul.f32 %v3431_v35, %v1508_v3  ;;  %v1029_v35 = vld [vmem:[%s5010_s8] sm:$0x7]  ;;  %v1489_v44 = vunpack.c.l.bf16 %v4442_v31 }
 0x17a   :  { %v4457_v56 = vrot.slane %v1029_v35, %v4381_v48  ;;  %v4462_v27 = vrot.slane %v1029_v35, %v4384_v51 }
 0x17b   :  { %v4437_v33 = vadd.f32 %v1510_v45, %v1509_v57 }
 0x17d   :  { %v2870_v46 = vpack.c.bf16 %v4437_v33, %v4437_v33 }
 0x17f   :  { %2871 = vmatmul.mubr.msk.bf16.vlgmr.msra.gmra.mrb[16].mxu0 %vm2869_vm6, %v2870_v46  ;;  %3081 = vmatmul.mubr.msk.bf16.vlgmr.msra.gmra.mrb[24].mxu1 %vm2869_vm6, %v2870_v46 }
 0x180   :  { %1634 = vmatpush1.bf16.msra.mxu0 %v4167_v8  ;;  %3085 = vmatpush3.bf16.msra.mxu1 %v4282_v13 }
 0x181   :  { %1635 = vmatprep.subr.bf16.mxu0 %v4176_v12  ;;  %3086 = vmatprep.subr.bf16.mxu1 %v5078_v38 }
 0x182   :  { %1665 = vmatprep.mubr.bf16.mxu0 %v5073_v0  ;;  %3100 = vmatprep.mubr.msk.bf16.mxu1 %vm3588_vm0, %v5078_v38 }
 0x184   :  { %1636 = vmatpush1.bf16.msra.mxu0 %v4186_v17  ;;  %3087 = vmatpush3.bf16.msra.mxu1 %v4292_v15 }
 0x185   :  { %1637 = vmatprep.subr.bf16.mxu0 %v4192_v18  ;;  %3088 = vmatprep.subr.bf16.mxu1 %v5078_v38 }
 0x187   :  { %v1433_v3 = vpop.f32.mrb[16].mxu1 }
 0x188   :  { %v1434_v53 = vadd.f32 %v1433_v3, %v4457_v56  ;;  %v1435_v5 = vpop.f32.mrb[17].mxu1  ;;  %1638 = vmatpush1.bf16.msra.mxu0 %v4199_v20  ;;  %3089 = vmatpush3.bf16.msra.mxu1 %v4303_v16 }
 0x189   :  { %v1436_v57 = vadd.f32 %v1435_v5, %v4462_v27  ;;  %v1437_v45 = vpop.f32.mrb[18].mxu1  ;;  %1639 = vmatprep.subr.bf16.mxu0 %v4206_v22  ;;  %3090 = vmatprep.subr.bf16.mxu1 %v5078_v38 }
 0x18a   :  { %v1512_v50 = vadd.f32 %v1488_v40, %v1434_v53  ;;  %v1438_v14 = vpop.f32.mrb[19].mxu1  ;;  %v4495_v40 = vld [vmem:[%s5006_s4 + $0x4] ss:$12 sps:$4 sm:$0xff]  }
 0x18b   :  { %v1519_v61 = vadd.f32 %v1489_v44, %v1436_v57  ;;  %v4500_v57 = vrot.slane %v1029_v35, %v4367_v37 }
 0x18c   :  { %v2867_v46 = vmul.f32 -1.442695, %v1512_v50  ;;  %1640 = vmatpush1.bf16.msra.mxu0 %v4215_v24  ;;  %3091 = vmatpush3.bf16.msra.mxu1 %v4311_v19 }
 0x18d   :  { %1641 = vmatprep.subr.bf16.mxu0 %v4222_v1  ;;  %3092 = vmatprep.subr.bf16.mxu1 %v5078_v38  ;;  %v2868_v3 = vmul.f32 -1.442695, %v1519_v61 }
 0x18e   :  { %3432 = vpow2.f32 %v2867_v46 }
 0x18f   :  { %3434 = vpow2.f32 %v2868_v3 }
 0x190   :  { %1642 = vmatpush1.bf16.msra.mxu0 %v4229_v63  ;;  %3093 = vmatpush3.bf16.msra.mxu1 %v4318_v26 }
 0x191   :  { %1643 = vmatprep.subr.bf16.mxu0 %v4236_v2  ;;  %3094 = vmatprep.subr.bf16.mxu1 %v5078_v38 }
 0x194   :  { %1644 = vmatpush1.bf16.msra.mxu0 %v4245_v4  ;;  %3095 = vmatpush3.bf16.msra.mxu1 %v4325_v28 }
 0x195   :  { %1645 = vmatprep.subr.bf16.mxu0 %v4252_v6  ;;  %3096 = vmatprep.subr.bf16.mxu1 %v5078_v38 }
 0x198   :  { %v3433_v44 = vpop.eup %3432  ;;  %1646 = vmatpush1.bf16.msra.mxu0 %v4259_v7  ;;  %3097 = vmatpush3.bf16.msra.mxu1 %v4332_v30 }
 0x199   :  { %1647 = vmatprep.subr.bf16.mxu0 %v4266_v10  ;;  %3098 = vmatprep.subr.bf16.mxu1 %v5078_v38  ;;  %v1516_v53 = vadd.f32 1.0, %v3433_v44  ;;  %v3435_v5 = vpop.eup %3434  ;;  %v1490_v44 = vunpack.c.h.bf16 %v4442_v31  ;;  %v5080_v31 = vld [vmem:[#allocation7_spill] sm:$0xff] }
 0x19a   :  { %v1523_v45 = vadd.f32 1.0, %v3435_v5 }
 0x19b   :  { %3436 = vrcp.f32 %v1516_v53 }
 0x19c   :  { %1648 = vmatpush1.bf16.msra.mxu0 %v4273_v11  ;;  %3099 = vmatpush3.bf16.msra.mxu1 %v4339_v32  ;;  %3438 = vrcp.f32 %v1523_v45  ;;  %v5082_v45 = vld [vmem:[#allocation8_spill] sm:$0xff] }
 0x19d   :  { %1789 = vmatprep.subr.bf16.mxu0 %v4495_v40  ;;  %3104 = vmatprep.subr.bf16.mxu1 %v5078_v38 }
 0x1a5   :  { %v3437_v46 = vpop.eup %3436 }
 0x1a6   :  { %v3439_v59 = vpop.eup %3438 }
 0x1a7   :  { %v1474_v50 = vpop.f32.mrb[20].mxu1  ;;  %v1529_v53 = vsub.f32 1.0, %v3439_v59  ;;  %v1531_v5 = vmul.f32 0.0, %v3439_v59  ;;  %v4534_v59 = vld [vmem:[%s5006_s4 + $0x18] ss:$12 sps:$4 sm:$0xff]  }
 0x1a8   :  { %v1475_v14 = vadd.f32 %v1474_v50, %v4500_v57  ;;  %v3062_v61 = vpop.f32.mrb[21].mxu1 }
 0x1a9   :  { %v1477_v3 = vpop.f32.mrb[22].mxu1 }
 0x1aa   :  { %v1526_v51 = vmul.f32 %v3437_v46, %v1475_v14  ;;  %v3063_v48 = vpop.f32.mrb[23].mxu1  ;;  %v5083_v14 = vld [vmem:[#allocation9_spill] sm:$0xff]  ;;  %v5085_v3 = vld [vmem:[#allocation10_spill] sm:$0xff] }
 0x1ab   :  { %v4517_v48 = vld [vmem:[%s5006_s4] ss:$12 sps:$4 sm:$0xff]   ;;  %v5084_v46 = vld [vmem:[#allocation13_spill] sm:$0xff] }
 0x1ac   :  { %v1527_v58 = vadd.f32 %v1526_v51, %v1490_v44  ;;  %v4524_v51 = vld [vmem:[%s5006_s4 + $0x1c] ss:$12 sps:$4 sm:$0xff]  }
 0x1ae   :  { %3440 = vtanh.f32 %v1527_v58  ;;  %v4562_v58 = vld [vmem:[%s5006_s4 + $0x48] ss:$12 sps:$4 sm:$0xff]  }
 0x1b8   :  { %v3441_v9 = vpop.eup %3440 }
 0x1b9   :  { %v1530_v35 = vmul.f32 %v3441_v9, %v1529_v53  ;;  %v4548_v9 = vld [vmem:[%s5006_s4 + $0x30] ss:$12 sps:$4 sm:$0xff]  }
 0x1bb   :  { %v4507_v50 = vadd.f32 %v1531_v5, %v1530_v35  ;;  %v1717_v5 = vunpack.c.l.bf16 %v4396_v60 }
 0x1bd   :  { %v2876_v61 = vpack.c.bf16 %v4507_v50, %v4507_v50 }
 0x1bf   :  { %2877 = vmatmul.mubr.msk.bf16.vlgmr.msra.gmra.mrb[20].mxu0 %vm2875_vm8, %v2876_v61  ;;  %3101 = vmatmul.mubr.msk.bf16.vlgmr.msra.gmra.mrb[28].mxu1 %vm2875_vm8, %v2876_v61 }
 0x1c0   :  { %1790 = vmatpush1.bf16.msra.mxu0 %v4517_v48  ;;  %3105 = vmatpush3.bf16.msra.mxu1 %v4046_v36  ;;  %v4541_v36 = vld [vmem:[%s5006_s4 + $0x34] ss:$12 sps:$4 sm:$0xff]  }
 0x1c1   :  { %1791 = vmatprep.subr.bf16.mxu0 %v4524_v51  ;;  %3106 = vmatprep.subr.bf16.mxu1 %v5078_v38 }
 0x1c2   :  { %1821 = vmatprep.mubr.bf16.mxu0 %v5073_v0  ;;  %3120 = vmatprep.mubr.msk.bf16.mxu1 %vm3588_vm0, %v5078_v38 }
 0x1c4   :  { %1792 = vmatpush1.bf16.msra.mxu0 %v4534_v59  ;;  %3107 = vmatpush3.bf16.msra.mxu1 %v4055_v39  ;;  %v4555_v39 = vld [vmem:[%s5006_s4 + $0x4c] ss:$12 sps:$4 sm:$0xff]  }
 0x1c5   :  { %1793 = vmatprep.subr.bf16.mxu0 %v4541_v36  ;;  %3108 = vmatprep.subr.bf16.mxu1 %v5078_v38 }
 0x1c8   :  { %1794 = vmatpush1.bf16.msra.mxu0 %v4548_v9  ;;  %3109 = vmatpush3.bf16.msra.mxu1 %v4071_v42  ;;  %v4569_v42 = vld [vmem:[%s5006_s4 + $0x64] ss:$12 sps:$4 sm:$0xff]  }
 0x1c9   :  { %1795 = vmatprep.subr.bf16.mxu0 %v4555_v39  ;;  %3110 = vmatprep.subr.bf16.mxu1 %v5078_v38  ;;  %5079 = vst [vmem:[#allocation29_spill] sm:$0xff] %v4569_v42 }
 0x1cc   :  { %1796 = vmatpush1.bf16.msra.mxu0 %v4562_v58  ;;  %3111 = vmatpush3.bf16.msra.mxu1 %v4092_v47  ;;  %v5081_v47 = vld [vmem:[#allocation12_spill] sm:$0xff] }
 0x1cd   :  { %1797 = vmatprep.subr.bf16.mxu0 %v4569_v42  ;;  %3112 = vmatprep.subr.bf16.mxu1 %v5078_v38 }
 0x1d0   :  { %1798 = vmatpush1.bf16.msra.mxu0 %v3977_v21  ;;  %3113 = vmatpush3.bf16.msra.mxu1 %v4109_v52  ;;  %v5086_v21 = vld [vmem:[#allocation11_spill] sm:$0xff] }
 0x1d1   :  { %1799 = vmatprep.subr.bf16.mxu0 %v3986_v23  ;;  %3114 = vmatprep.subr.bf16.mxu1 %v5078_v38  ;;  %v5087_v23 = vld [vmem:[#allocation14_spill] sm:$0xff]  ;;  %v5088_v52 = vld [vmem:[#allocation15_spill] sm:$0xff] }
 0x1d4   :  { %1800 = vmatpush1.bf16.msra.mxu0 %v5080_v31  ;;  %3115 = vmatpush3.bf16.msra.mxu1 %v5081_v47 }
 0x1d5   :  { %1801 = vmatprep.subr.bf16.mxu0 %v5082_v45  ;;  %3116 = vmatprep.subr.bf16.mxu1 %v5078_v38  ;;  %v1718_v45 = vunpack.c.h.bf16 %v4396_v60 }
 0x1d8   :  { %1802 = vmatpush1.bf16.msra.mxu0 %v5083_v14  ;;  %3117 = vmatpush3.bf16.msra.mxu1 %v5084_v46 }
 0x1d9   :  { %1803 = vmatprep.subr.bf16.mxu0 %v5085_v3  ;;  %3118 = vmatprep.subr.bf16.mxu1 %v5078_v38 }
 0x1dc   :  { %1804 = vmatpush1.bf16.msra.mxu0 %v5086_v21  ;;  %3119 = vmatpush3.bf16.msra.mxu1 %v5087_v23 }
 0x1dd   :  { %1871 = vmatprep.subr.bf16.mxu0 %v5088_v52  ;;  %3124 = vmatprep.subr.bf16.mxu1 %v5078_v38 }
 0x252   :  { %v1585_v44 = vpop.f32.mrb[16].mxu0  ;;  %v1626_v53 = vpop.f32.mrb[24].mxu1 }
 0x253   :  { %v1586_v35 = vadd.f32 %v1585_v44, %v4412_v55  ;;  %v1587_v61 = vpop.f32.mrb[17].mxu0  ;;  %v3082_v31 = vpop.f32.mrb[25].mxu1 }
 0x254   :  { %v1588_v47 = vadd.f32 %v1587_v61, %v4415_v25  ;;  %v1589_v14 = vpop.f32.mrb[18].mxu0  ;;  %v1629_v3 = vpop.f32.mrb[26].mxu1  ;;  %v1627_v31 = vadd.f32 %v1626_v53, %v4420_v43  ;;  %v5089_v25 = vld [vmem:[#allocation21_spill] sm:$0xff] }
 0x255   :  { %v1726_v21 = vadd.f32 %v1717_v5, %v1586_v35  ;;  %v1590_v37 = vpop.f32.mrb[19].mxu0  ;;  %v3083_v41 = vpop.f32.mrb[27].mxu1  ;;  %v1719_v60 = vunpack.c.l.bf16 %v5089_v25  ;;  %v1724_v3 = vunpack.c.l.bf16 %v4435_v34 }
 0x256   :  { %v1733_v54 = vadd.f32 %v1718_v45, %v1588_v47  ;;  %v4595_v41 = vpop.permute.xlu1 %1772 }
 0x257   :  { %v2881_v52 = vmul.f32 -1.442695, %v1726_v21  ;;  %vm1774_vm9 = vcmp.eq.s32.totalorder %v4595_v41, 1 }
 0x258   :  { %v2882_v23 = vmul.f32 -1.442695, %v1733_v54 }
 0x259   :  { %3442 = vpow2.f32 %v2881_v52 }
 0x25a   :  { %3444 = vpow2.f32 %v2882_v23 }
 0x263   :  { %v3443_v46 = vpop.eup %3442 }
 0x264   :  { %v1730_v44 = vadd.f32 1.0, %v3443_v46  ;;  %v3445_v55 = vpop.eup %3444  ;;  %v4600_v46 = vsel %vm1539_vm5, %v4437_v33, 0.0 }
 0x265   :  { %v1737_v42 = vadd.f32 1.0, %v3445_v55 }
 0x266   :  { %3446 = vrcp.f32 %v1730_v44 }
 0x267   :  { %3448 = vrcp.f32 %v1737_v42 }
 0x270   :  { %v3447_v61 = vpop.eup %3446 }
 0x271   :  { %v1740_v14 = vmul.f32 %v3447_v61, %v1627_v31  ;;  %v3449_v37 = vpop.eup %3448 }
 0x272   :  { %v1743_v52 = vsub.f32 1.0, %v3449_v37  ;;  %v1745_v23 = vmul.f32 %v3449_v37, %v4600_v46 }
 0x273   :  { %v1741_v35 = vadd.f32 %v1740_v14, %v1719_v60 }
 0x275   :  { %3450 = vtanh.f32 %v1741_v35 }
 0x27f   :  { %v3451_v54 = vpop.eup %3450 }
 0x280   :  { %v1744_v55 = vmul.f32 %v3451_v54, %v1743_v52  ;;  %v4660_v54 = vpop.permute.xlu1 %1780 }
 0x281   :  { %vm1782_vm10 = vcmp.eq.s32.totalorder %v4660_v54, 1 }
 0x282   :  { %v4604_v53 = vadd.f32 %v1745_v23, %v1744_v55 }
 0x284   :  { %v4610_v42 = vsel %vm1774_vm9, %v4604_v53, %v4600_v46 }
 0x285   :  { %v1788_v5 = vpack.c.bf16 %v4610_v42, %v4610_v42 }
 0x287   :  { %1822 = vmatmul.mubr.bf16.vlgmr.msra.gmra.mrb[24].mxu0 %v1788_v5  ;;  %3121 = vmatmul.mubr.bf16.vlgmr.msra.gmra.mrb[32].mxu1 %v1788_v5 }
 0x288   :  { %1872 = vmatpush1.bf16.msra.mxu0 %v4167_v8  ;;  %3125 = vmatpush3.bf16.msra.mxu1 %v4282_v13 }
 0x289   :  { %1873 = vmatprep.subr.bf16.mxu0 %v4176_v12  ;;  %3126 = vmatprep.subr.bf16.mxu1 %v5078_v38 }
 0x28a   :  { %1903 = vmatprep.mubr.bf16.mxu0 %v5073_v0  ;;  %3140 = vmatprep.mubr.msk.bf16.mxu1 %vm3588_vm0, %v5078_v38 }
 0x28c   :  { %1874 = vmatpush1.bf16.msra.mxu0 %v4186_v17  ;;  %3127 = vmatpush3.bf16.msra.mxu1 %v4292_v15  ;;  %v1723_v17 = vunpack.c.h.bf16 %v4394_v29 }
 0x28d   :  { %1875 = vmatprep.subr.bf16.mxu0 %v4192_v18  ;;  %3128 = vmatprep.subr.bf16.mxu1 %v5078_v38 }
 0x290   :  { %1876 = vmatpush1.bf16.msra.mxu0 %v4199_v20  ;;  %3129 = vmatpush3.bf16.msra.mxu1 %v4303_v16 }
 0x291   :  { %1877 = vmatprep.subr.bf16.mxu0 %v4206_v22  ;;  %3130 = vmatprep.subr.bf16.mxu1 %v5078_v38 }
 0x292   :  { %v1667_v8 = vpop.f32.mrb[20].mxu0  ;;  %v1708_v12 = vpop.f32.mrb[28].mxu1 }
 0x293   :  { %v1668_v33 = vadd.f32 %v1667_v8, %v4457_v56  ;;  %v1669_v47 = vpop.f32.mrb[21].mxu0  ;;  %v3102_v45 = vpop.f32.mrb[29].mxu1 }
 0x294   :  { %v1670_v18 = vadd.f32 %v1669_v47, %v4462_v27  ;;  %v1671_v21 = vpop.f32.mrb[22].mxu0  ;;  %v1711_v20 = vpop.f32.mrb[30].mxu1  ;;  %1878 = vmatpush1.bf16.msra.mxu0 %v4215_v24  ;;  %3131 = vmatpush3.bf16.msra.mxu1 %v4311_v19  ;;  %v3541_v47 = vld [vmem:[%s5006_s4 + $0x90] ss:$12 sps:$4 sm:$0xff]  }
 0x295   :  { %v1747_v22 = vadd.f32 %v1723_v17, %v1668_v33  ;;  %v1672_v44 = vpop.f32.mrb[23].mxu0  ;;  %v3103_v31 = vpop.f32.mrb[31].mxu1  ;;  %1879 = vmatprep.subr.bf16.mxu0 %v4222_v1  ;;  %3132 = vmatprep.subr.bf16.mxu1 %v5078_v38  ;;  %v3539_v33 = vld [vmem:[%s5006_s4 + $0x80] ss:$12 sps:$4 sm:$0xff]   ;;  %v5091_v45 = vld [vmem:[#allocation13_spill] sm:$0xff]  ;;  %v5092_v21 = vld [vmem:[#allocation14_spill] sm:$0xff] }
 0x296   :  { %v1754_v61 = vadd.f32 %v1724_v3, %v1670_v18  ;;  %v3540_v17 = vld [vmem:[%s5006_s4 + $0x94] ss:$12 sps:$4 sm:$0xff]   ;;  %v3542_v18 = vld [vmem:[%s5006_s4 + $0xac] ss:$12 sps:$4 sm:$0xff]  }
 0x297   :  { %v2883_v60 = vmul.f32 -1.442695, %v1747_v22  ;;  %v3543_v3 = vld [vmem:[%s5006_s4 + $0xa8] ss:$12 sps:$4 sm:$0xff]   ;;  %v5093_v20 = vld [vmem:[#allocation15_spill] sm:$0xff] }
 0x298   :  { %1880 = vmatpush1.bf16.msra.mxu0 %v4229_v63  ;;  %3133 = vmatpush3.bf16.msra.mxu1 %v4318_v26  ;;  %v2884_v24 = vmul.f32 -1.442695, %v1754_v61  ;;  %v5094_v31 = vld [vmem:[#allocation25_spill] sm:$0xff] }
 0x299   :  { %3452 = vpow2.f32 %v2883_v60  ;;  %1881 = vmatprep.subr.bf16.mxu0 %v4236_v2  ;;  %3134 = vmatprep.subr.bf16.mxu1 %v5078_v38  ;;  %v5095_v60 = vld [vmem:[#allocation23_spill] sm:$0xff] }
 0x29a   :  { %3454 = vpow2.f32 %v2884_v24  ;;  %v1954_v24 = vunpack.c.l.bf16 %v5095_v60 }
 0x29c   :  { %1882 = vmatpush1.bf16.msra.mxu0 %v4245_v4  ;;  %3135 = vmatpush3.bf16.msra.mxu1 %v4325_v28 }
 0x29d   :  { %1883 = vmatprep.subr.bf16.mxu0 %v4252_v6  ;;  %3136 = vmatprep.subr.bf16.mxu1 %v5078_v38  ;;  %v1709_v6 = vadd.f32 %v1708_v12, %v4500_v57  ;;  %v3538_v12 = vld [vmem:[%s5006_s4 + $0x78] ss:$12 sps:$4 sm:$0xff]  }
 0x2a0   :  { %1884 = vmatpush1.bf16.msra.mxu0 %v4259_v7  ;;  %3137 = vmatpush3.bf16.msra.mxu1 %v4332_v30 }
 0x2a1   :  { %1885 = vmatprep.subr.bf16.mxu0 %v4266_v10  ;;  %3138 = vmatprep.subr.bf16.mxu1 %v5078_v38  ;;  %v1725_v10 = vunpack.c.h.bf16 %v4435_v34 }
 0x2a3   :  { %v3453_v1 = vpop.eup %3452 }
 0x2a4   :  { %v1751_v63 = vadd.f32 1.0, %v3453_v1  ;;  %1886 = vmatpush1.bf16.msra.mxu0 %v4273_v11  ;;  %3139 = vmatpush3.bf16.msra.mxu1 %v4339_v32  ;;  %v3455_v2 = vpop.eup %3454 }
 0x2a5   :  { %2011 = vmatprep.subr.bf16.mxu0 %v4495_v40  ;;  %3144 = vmatprep.subr.bf16.mxu1 %v5078_v38  ;;  %v1758_v4 = vadd.f32 1.0, %v3455_v2  ;;  %v4658_v40 = vsel %vm1546_vm7, %v4507_v50, 0.0  ;;  %v3531_v50 = vld [vmem:[%s5006_s4 + $0x8] ss:$12 sps:$4 sm:$0xff]   ;;  %v5096_v2 = vld [vmem:[#allocation26_spill] sm:$0xff] }
 0x2a6   :  { %3456 = vrcp.f32 %v1751_v63 }
 0x2a7   :  { %3458 = vrcp.f32 %v1758_v4 }
 0x2b0   :  { %v3457_v7 = vpop.eup %3456 }
 0x2b1   :  { %v1761_v14 = vmul.f32 %v3457_v7, %v1709_v6  ;;  %v3459_v37 = vpop.eup %3458  ;;  %v1955_v6 = vunpack.c.h.bf16 %v5095_v60 }
 0x2b2   :  { %v1764_v11 = vsub.f32 1.0, %v3459_v37  ;;  %v1766_v23 = vmul.f32 %v3459_v37, %v4658_v40 }
 0x2b3   :  { %v1762_v35 = vadd.f32 %v1761_v14, %v1725_v10 }
 0x2b5   :  { %3460 = vtanh.f32 %v1762_v35 }
 0x2bf   :  { %v3461_v52 = vpop.eup %3460 }
 0x2c0   :  { %v1765_v55 = vmul.f32 %v3461_v52, %v1764_v11 }
 0x2c2   :  { %v4663_v5 = vadd.f32 %v1766_v23, %v1765_v55 }
 0x2c4   :  { %v4670_v34 = vsel %vm1782_vm10, %v4663_v5, %v4658_v40  ;;  %v4878_v62 = vsel %vm1782_vm10, %v4663_v5, 0.0 }
 0x2c5   :  { %v1870_v8 = vpack.c.bf16 %v4670_v34, %v4670_v34 }
 0x2c7   :  { %1904 = vmatmul.mubr.bf16.vlgmr.msra.gmra.mrb[28].mxu0 %v1870_v8  ;;  %3141 = vmatmul.mubr.bf16.vlgmr.msra.gmra.mrb[36].mxu1 %v1870_v8 }
 0x2c8   :  { %2012 = vmatpush1.bf16.msra.mxu0 %v4517_v48  ;;  %3145 = vmatpush3.bf16.msra.mxu1 %v3531_v50  ;;  %v3532_v48 = vld [vmem:[%s5006_s4 + $0x20] ss:$12 sps:$4 sm:$0xff]  }
 0x2c9   :  { %2013 = vmatprep.subr.bf16.mxu0 %v4524_v51  ;;  %3146 = vmatprep.subr.bf16.mxu1 %v5078_v38  ;;  %v3533_v51 = vld [vmem:[%s5006_s4 + $0x38] ss:$12 sps:$4 sm:$0xff]  }
 0x2ca   :  { %2043 = vmatprep.mubr.bf16.mxu0 %v5073_v0  ;;  %3160 = vmatprep.mubr.msk.bf16.mxu1 %vm3588_vm0, %v5078_v38 }
 0x2cc   :  { %2014 = vmatpush1.bf16.msra.mxu0 %v4534_v59  ;;  %3147 = vmatpush3.bf16.msra.mxu1 %v3532_v48  ;;  %v3534_v59 = vld [vmem:[%s5006_s4 + $0x50] ss:$12 sps:$4 sm:$0xff]  }
 0x2cd   :  { %2015 = vmatprep.subr.bf16.mxu0 %v4541_v36  ;;  %3148 = vmatprep.subr.bf16.mxu1 %v5078_v38  ;;  %v5090_v36 = vld [vmem:[#allocation29_spill] sm:$0xff] }
 0x2d0   :  { %2016 = vmatpush1.bf16.msra.mxu0 %v4548_v9  ;;  %3149 = vmatpush3.bf16.msra.mxu1 %v3533_v51  ;;  %v3535_v9 = vld [vmem:[%s5006_s4 + $0x60] ss:$12 sps:$4 sm:$0xff]  }
 0x2d1   :  { %2017 = vmatprep.subr.bf16.mxu0 %v4555_v39  ;;  %3150 = vmatprep.subr.bf16.mxu1 %v5078_v38  ;;  %v3536_v39 = vld [vmem:[%s5006_s4 + $0x68] ss:$12 sps:$4 sm:$0xff]  }
 0x2d4   :  { %2018 = vmatpush1.bf16.msra.mxu0 %v4562_v58  ;;  %3151 = vmatpush3.bf16.msra.mxu1 %v3534_v59  ;;  %v3537_v58 = vld [vmem:[%s5006_s4 + $0x7c] ss:$12 sps:$4 sm:$0xff]  }
 0x2d5   :  { %2019 = vmatprep.subr.bf16.mxu0 %v5090_v36  ;;  %3152 = vmatprep.subr.bf16.mxu1 %v5078_v38  ;;  %v1956_v36 = vunpack.c.l.bf16 %v4394_v29 }
 0x2d8   :  { %2020 = vmatpush1.bf16.msra.mxu0 %v3535_v9  ;;  %3153 = vmatpush3.bf16.msra.mxu1 %v3536_v39 }
 0x2d9   :  { %2021 = vmatprep.subr.bf16.mxu0 %v3537_v58  ;;  %3154 = vmatprep.subr.bf16.mxu1 %v5078_v38 }
 0x2dc   :  { %2022 = vmatpush1.bf16.msra.mxu0 %v3538_v12  ;;  %3155 = vmatpush3.bf16.msra.mxu1 %v3539_v33 }
 0x2dd   :  { %2023 = vmatprep.subr.bf16.mxu0 %v3540_v17  ;;  %3156 = vmatprep.subr.bf16.mxu1 %v5078_v38 }
 0x2e0   :  { %2024 = vmatpush1.bf16.msra.mxu0 %v3541_v47  ;;  %3157 = vmatpush3.bf16.msra.mxu1 %v5091_v45 }
 0x2e1   :  { %2025 = vmatprep.subr.bf16.mxu0 %v3542_v18  ;;  %3158 = vmatprep.subr.bf16.mxu1 %v5078_v38 }
 0x2e4   :  { %2026 = vmatpush1.bf16.msra.mxu0 %v3543_v3  ;;  %3159 = vmatpush3.bf16.msra.mxu1 %v5092_v21  ;;  %v3544_v3 = vld [vmem:[%s5007_s5] ss:$12 sps:$4 sm:$0xff]   ;;  %v3545_v21 = vld [vmem:[%s5007_s5 + $0x1c] ss:$12 sps:$4 sm:$0xff]  }
 0x2e5   :  { %2093 = vmatprep.subr.bf16.mxu0 %v5093_v20  ;;  %3164 = vmatprep.subr.bf16.mxu1 %v5078_v38  ;;  %v3549_v20 = vld [vmem:[%s5007_s5 + $0x4c] ss:$12 sps:$4 sm:$0xff]  }
 0x35a   :  { %v1823_v22 = vpop.f32.mrb[24].mxu0  ;;  %v1864_v44 = vpop.f32.mrb[32].mxu1 }
 0x35b   :  { %v1824_v61 = vadd.f32 %v1823_v22, %v5094_v31  ;;  %v1825_v1 = vpop.f32.mrb[25].mxu0  ;;  %v3122_v63 = vpop.f32.mrb[33].mxu1  ;;  %v1865_v51 = vadd.f32 %v1864_v44, %v4420_v43 }
 0x35c   :  { %v1826_v4 = vadd.f32 %v1825_v1, %v5096_v2  ;;  %v1827_v7 = vpop.f32.mrb[26].mxu0  ;;  %v1867_v10 = vpop.f32.mrb[34].mxu1  ;;  %v5097_v63 = vld [vmem:[#allocation28_spill] sm:$0xff] }
 0x35d   :  { %v1962_v14 = vadd.f32 %v1954_v24, %v1824_v61  ;;  %v1828_v35 = vpop.f32.mrb[27].mxu0  ;;  %v3123_v37 = vpop.f32.mrb[35].mxu1  ;;  %v1959_v61 = vunpack.c.h.bf16 %v5089_v25  ;;  %v3550_v7 = vld [vmem:[%s5007_s5 + $0x48] ss:$12 sps:$4 sm:$0xff]   ;;  %v3551_v25 = vld [vmem:[%s5007_s5 + $0x64] ss:$12 sps:$4 sm:$0xff]  }
 0x35e   :  { %v1969_v11 = vadd.f32 %v1955_v6, %v1826_v4  ;;  %v1960_v4 = vunpack.c.l.bf16 %v5097_v63 }
 0x35f   :  { %v2885_v52 = vmul.f32 -1.442695, %v1962_v14 }
 0x360   :  { %v2886_v55 = vmul.f32 -1.442695, %v1969_v11 }
 0x361   :  { %3462 = vpow2.f32 %v2885_v52  ;;  %v3552_v52 = vld [vmem:[%s5007_s5 + $0x60] ss:$12 sps:$4 sm:$0xff]  }
 0x362   :  { %3464 = vpow2.f32 %v2886_v55 }
 0x36b   :  { %v3463_v23 = vpop.eup %3462 }
 0x36c   :  { %v1966_v8 = vadd.f32 1.0, %v3463_v23  ;;  %v3465_v50 = vpop.eup %3464  ;;  %v3554_v23 = vld [vmem:[%s5007_s5 + $0x78] ss:$12 sps:$4 sm:$0xff]  }
 0x36d   :  { %v1973_v48 = vadd.f32 1.0, %v3465_v50  ;;  %v3557_v50 = vld [vmem:[%s5007_s5 + $0xac] ss:$12 sps:$4 sm:$0xff]  }
 0x36e   :  { %3466 = vrcp.f32 %v1966_v8  ;;  %v3556_v8 = vld [vmem:[%s5007_s5 + $0x90] ss:$12 sps:$4 sm:$0xff]  }
 0x36f   :  { %3468 = vrcp.f32 %v1973_v48 }
 0x378   :  { %v3467_v59 = vpop.eup %3466 }
 0x379   :  { %v1976_v9 = vmul.f32 %v3467_v59, %v1865_v51  ;;  %v3469_v58 = vpop.eup %3468  ;;  %v3558_v51 = vld [vmem:[%s5007_s5 + $0xa8] ss:$12 sps:$4 sm:$0xff]  }
 0x37a   :  { %v1979_v12 = vsub.f32 1.0, %v3469_v58  ;;  %v1981_v47 = vmul.f32 %v3469_v58, %v4610_v42 }
 0x37b   :  { %v1977_v39 = vadd.f32 %v1976_v9, %v1956_v36 }
 0x37d   :  { %3470 = vtanh.f32 %v1977_v39  ;;  %v1961_v39 = vunpack.c.h.bf16 %v5097_v63 }
 0x387   :  { %v3471_v33 = vpop.eup %3470 }
 0x388   :  { %v1980_v17 = vmul.f32 %v3471_v33, %v1979_v12 }
 0x38a   :  { %v4742_v45 = vadd.f32 %v1981_v47, %v1980_v17 }
 0x38c   :  { %v4748_v18 = vsel %vm1782_vm10, %v4742_v45, %v4610_v42  ;;  %v3546_v42 = vld [vmem:[%s5007_s5 + $0x18] ss:$12 sps:$4 sm:$0xff]  }
 0x38d   :  { %v2010_v29 = vpack.c.bf16 %v4748_v18, %v4748_v18 }
 0x38f   :  { %2044 = vmatmul.mubr.bf16.vlgmr.msra.gmra.mrb[32].mxu0 %v2010_v29  ;;  %3161 = vmatmul.mubr.bf16.vlgmr.msra.gmra.mrb[40].mxu1 %v2010_v29 }
 0x390   :  { %2094 = vmatpush1.bf16.msra.mxu0 %v3544_v3  ;;  %3165 = vmatpush3.bf16.msra.mxu1 %v4282_v13  ;;  %v3547_v13 = vld [vmem:[%s5007_s5 + $0x34] ss:$12 sps:$4 sm:$0xff]  }
 0x391   :  { %2095 = vmatprep.subr.bf16.mxu0 %v3545_v21  ;;  %3166 = vmatprep.subr.bf16.mxu1 %v5078_v38  ;;  %v4830_v21 = vsel %vm1774_vm9, %v4604_v53, 0.0 }
 0x392   :  { %2125 = vmatprep.mubr.bf16.mxu0 %v5073_v0  ;;  %3180 = vmatprep.mubr.msk.bf16.mxu1 %vm3588_vm0, %v5078_v38  ;;  %v3548_v0 = vld [vmem:[%s5007_s5 + $0x30] ss:$12 sps:$4 sm:$0xff]  }
 0x394   :  { %2096 = vmatpush1.bf16.msra.mxu0 %v3546_v42  ;;  %3167 = vmatpush3.bf16.msra.mxu1 %v4292_v15 }
 0x395   :  { %2097 = vmatprep.subr.bf16.mxu0 %v3547_v13  ;;  %3168 = vmatprep.subr.bf16.mxu1 %v5078_v38 }
 0x398   :  { %2098 = vmatpush1.bf16.msra.mxu0 %v3548_v0  ;;  %3169 = vmatpush3.bf16.msra.mxu1 %v4303_v16 }
 0x399   :  { %2099 = vmatprep.subr.bf16.mxu0 %v3549_v20  ;;  %3170 = vmatprep.subr.bf16.mxu1 %v5078_v38 }
 0x39a   :  { %v1905_v15 = vpop.f32.mrb[28].mxu0  ;;  %v1946_v22 = vpop.f32.mrb[36].mxu1 }
 0x39b   :  { %v1906_v44 = vadd.f32 %v1905_v15, %v4457_v56  ;;  %v1907_v60 = vpop.f32.mrb[29].mxu0  ;;  %v3142_v24 = vpop.f32.mrb[37].mxu1 }
 0x39c   :  { %v1908_v1 = vadd.f32 %v1907_v60, %v4462_v27  ;;  %v1909_v16 = vpop.f32.mrb[30].mxu0  ;;  %v1949_v6 = vpop.f32.mrb[38].mxu1  ;;  %2100 = vmatpush1.bf16.msra.mxu0 %v3550_v7  ;;  %3171 = vmatpush3.bf16.msra.mxu1 %v4311_v19  ;;  %v3553_v19 = vld [vmem:[%s5007_s5 + $0x7c] ss:$12 sps:$4 sm:$0xff]  }
 0x39d   :  { %v1983_v10 = vadd.f32 %v1959_v61, %v1906_v44  ;;  %v1910_v14 = vpop.f32.mrb[31].mxu0  ;;  %v3143_v35 = vpop.f32.mrb[39].mxu1  ;;  %2101 = vmatprep.subr.bf16.mxu0 %v3551_v25  ;;  %3172 = vmatprep.subr.bf16.mxu1 %v5078_v38 }
 0x39e   :  { %v1990_v37 = vadd.f32 %v1960_v4, %v1908_v1 }
 0x39f   :  { %v2887_v11 = vmul.f32 -1.442695, %v1983_v10 }
 0x3a0   :  { %2102 = vmatpush1.bf16.msra.mxu0 %v3552_v52  ;;  %3173 = vmatpush3.bf16.msra.mxu1 %v4318_v26  ;;  %v2888_v55 = vmul.f32 -1.442695, %v1990_v37  ;;  %v3555_v26 = vld [vmem:[%s5007_s5 + $0x94] ss:$12 sps:$4 sm:$0xff]  }
 0x3a1   :  { %3472 = vpow2.f32 %v2887_v11  ;;  %2103 = vmatprep.subr.bf16.mxu0 %v3553_v19  ;;  %3174 = vmatprep.subr.bf16.mxu1 %v5078_v38  ;;  %v5099_v11 = vld [vmem:[#allocation22_spill] sm:$0xff] }
 0x3a2   :  { %3474 = vpow2.f32 %v2888_v55  ;;  %v2178_v52 = vunpack.c.l.bf16 %v5099_v11 }
 0x3a4   :  { %2104 = vmatpush1.bf16.msra.mxu0 %v3554_v23  ;;  %3175 = vmatpush3.bf16.msra.mxu1 %v4325_v28 }
 0x3a5   :  { %2105 = vmatprep.subr.bf16.mxu0 %v3555_v26  ;;  %3176 = vmatprep.subr.bf16.mxu1 %v5078_v38 }
 0x3a8   :  { %2106 = vmatpush1.bf16.msra.mxu0 %v3556_v8  ;;  %3177 = vmatpush3.bf16.msra.mxu1 %v4332_v30  ;;  %v1947_v30 = vadd.f32 %v1946_v22, %v4500_v57  ;;  %v5098_v22 = vld [vmem:[#allocation24_spill] sm:$0xff] }
 0x3a9   :  { %2107 = vmatprep.subr.bf16.mxu0 %v3557_v50  ;;  %3178 = vmatprep.subr.bf16.mxu1 %v5078_v38  ;;  %v2176_v53 = vunpack.c.l.bf16 %v5098_v22  ;;  %v2177_v60 = vunpack.c.h.bf16 %v5098_v22 }
 0x3ab   :  { %v3473_v28 = vpop.eup %3472 }
 0x3ac   :  { %v1987_v48 = vadd.f32 1.0, %v3473_v28  ;;  %2108 = vmatpush1.bf16.msra.mxu0 %v3558_v51  ;;  %3179 = vmatpush3.bf16.msra.mxu1 %v4339_v32  ;;  %v3475_v59 = vpop.eup %3474 }
 0x3ad   :  { %v1994_v36 = vadd.f32 1.0, %v3475_v59 }
 0x3ae   :  { %3476 = vrcp.f32 %v1987_v48 }
 0x3af   :  { %3478 = vrcp.f32 %v1994_v36 }
 0x3b8   :  { %v3477_v9 = vpop.eup %3476 }
 0x3b9   :  { %v1997_v58 = vmul.f32 %v3477_v9, %v1947_v30  ;;  %v3479_v12 = vpop.eup %3478  ;;  %v5100_v30 = vld [vmem:[#allocation20_spill] sm:$0xff] }
 0x3ba   :  { %v2000_v33 = vsub.f32 1.0, %v3479_v12  ;;  %v2002_v29 = vmul.f32 %v3479_v12, %v4670_v34 }
 0x3bb   :  { %v1998_v38 = vadd.f32 %v1997_v58, %v1961_v39 }
 0x3bd   :  { %3480 = vtanh.f32 %v1998_v38  ;;  %v5101_v38 = vld [vmem:[#allocation27_spill] sm:$0xff] }
 0x3be   :  { %v2182_v12 = vunpack.c.l.bf16 %v5101_v38 }
 0x3c7   :  { %v3481_v17 = vpop.eup %3480 }
 0x3c8   :  { %v2001_v47 = vmul.f32 %v3481_v17, %v2000_v33 }
 0x3ca   :  { %v2003_v3 = vadd.f32 %v2002_v29, %v2001_v47 }
 0x3cc   :  { %v4825_v32 = vsel %vm1774_vm9, %v2003_v3, %v4670_v34  ;;  %v4834_v42 = vsel %vm1774_vm9, %v2003_v3, 0.0 }
 0x3cd   :  { %v2092_v13 = vpack.c.bf16 %v4825_v32, %v4825_v32  ;;  %v2270_v0 = vadd.f32 %v4834_v42, %v4830_v21 }
 0x3cf   :  { %2126 = vmatmul.mubr.bf16.vlgmr.msra.gmra.mrb[36].mxu0 %v2092_v13  ;;  %3181 = vmatmul.mubr.bf16.vlgmr.msra.gmra.mrb[44].mxu1 %v2092_v13 }
 0x3d0   :  { %2271 = vadd.xlane.f32.xlu1 %v2270_v0 }
 0x462   :  { %v2045_v34 = vpop.f32.mrb[32].mxu0  ;;  %v2086_v20 = vpop.f32.mrb[40].mxu1 }
 0x463   :  { %v2046_v15 = vadd.f32 %v2045_v34, %v5094_v31  ;;  %v2047_v44 = vpop.f32.mrb[33].mxu0  ;;  %v3162_v61 = vpop.f32.mrb[41].mxu1  ;;  %v2087_v37 = vadd.f32 %v2086_v20, %v4420_v43  ;;  %v2181_v43 = vunpack.c.h.bf16 %v5100_v30 }
 0x464   :  { %v2048_v41 = vadd.f32 %v2047_v44, %v5096_v2  ;;  %v2049_v24 = vpop.f32.mrb[34].mxu0  ;;  %v2089_v1 = vpop.f32.mrb[42].mxu1 }
 0x465   :  { %v2184_v63 = vadd.f32 %v2176_v53, %v2046_v15  ;;  %v2050_v4 = vpop.f32.mrb[35].mxu0  ;;  %v3163_v16 = vpop.f32.mrb[43].mxu1  ;;  %v2183_v53 = vunpack.c.h.bf16 %v5101_v38 }
 0x466   :  { %v2191_v6 = vadd.f32 %v2177_v60, %v2048_v41  ;;  %v2272_v1 = vpop.xlane.xlu1 %2271 }
 0x467   :  { %v2889_v7 = vmul.f32 -1.442695, %v2184_v63  ;;  %v5102_v63 = vlaneseq }
 0x468   :  { %v2890_v10 = vmul.f32 -1.442695, %v2191_v6 }
 0x469   :  { %3482 = vpow2.f32 %v2889_v7  ;;  %v4854_v4 = vand.u32 127, %v5102_v63  ;;  %v2280_v7 = vmul.f32 0.03125, %v2272_v1  ;;  %v3415_v1 = vld [vmem:[#allocation4 + $0x20] sm:$0xff]   ;;  %v3416_v63 = vld [vmem:[#allocation4 + $0x68] sm:$0xff]  }
 0x46a   :  { %3484 = vpow2.f32 %v2890_v10 }
 0x46b   :  { %vm2265_vm11 = vcmp.lt.s32.totalorder %v4854_v4, 16 }
 0x473   :  { %v3483_v14 = vpop.eup %3482 }
 0x474   :  { %v2188_v31 = vadd.f32 1.0, %v3483_v14  ;;  %v3485_v35 = vpop.eup %3484 }
 0x475   :  { %v2195_v25 = vadd.f32 1.0, %v3485_v35  ;;  %v4865_v35 = vsub.f32 %v4830_v21, %v2280_v7 }
 0x476   :  { %3486 = vrcp.f32 %v2188_v31 }
 0x477   :  { %3488 = vrcp.f32 %v2195_v25  ;;  %v4868_v25 = vsub.f32 %v4834_v42, %v2280_v7  ;;  %v3419_v7 = vld [vmem:[#allocation4 + $0x30] sm:$0xff]  }
 0x480   :  { %v3487_v2 = vpop.eup %3486 }
 0x481   :  { %v2198_v19 = vmul.f32 %v3487_v2, %v2087_v37  ;;  %v3489_v23 = vpop.eup %3488 }
 0x482   :  { %v2201_v26 = vsub.f32 1.0, %v3489_v23  ;;  %v2203_v28 = vmul.f32 %v3489_v23, %v4748_v18  ;;  %v3406_v23 = vld [vmem:[#allocation4 + $0x40] sm:$0xff]  }
 0x483   :  { %v2199_v55 = vadd.f32 %v2198_v19, %v2178_v52  ;;  %v2293_v52 = vmul.f32 %v4865_v35, %v4865_v35  ;;  %2996 = vmatprep.subr.bf16.mxu0 %v3406_v23 }
 0x485   :  { %3490 = vtanh.f32 %v2199_v55  ;;  %v2305_v49 = vsel %vm2265_vm11, %v2293_v52, 0.0 }
 0x48f   :  { %v3491_v8 = vpop.eup %3490 }
 0x490   :  { %v2202_v50 = vmul.f32 %v3491_v8, %v2201_v26  ;;  %v3407_v26 = vld [vmem:[#allocation4] sm:$0xff]   ;;  %v3408_v8 = vld [vmem:[#allocation4 + $0x48] sm:$0xff]  }
 0x491   :  { %2997 = vmatpush3.bf16.msra.mxu0 %v3407_v26 }
 0x492   :  { %v2204_v48 = vadd.f32 %v2203_v28, %v2202_v50  ;;  %v3409_v50 = vld [vmem:[#allocation4 + $0x8] sm:$0xff]   ;;  %2998 = vmatprep.subr.bf16.mxu0 %v3408_v8 }
 0x494   :  { %v4884_v11 = vsel %vm1546_vm7, %v2204_v48, 0.0 }
 0x495   :  { %v2276_v5 = vadd.f32 %v4884_v11, %v4658_v40  ;;  %2999 = vmatpush3.bf16.msra.mxu0 %v3409_v50  ;;  %v5105_v50 = vld [vmem:[#allocation18_spill] sm:$0xff] }
 0x4a2   :  { %v2127_v51 = vpop.f32.mrb[36].mxu0  ;;  %v2168_v59 = vpop.f32.mrb[44].mxu1 }
 0x4a3   :  { %v2128_v36 = vadd.f32 %v2127_v51, %v4457_v56  ;;  %v2129_v9 = vpop.f32.mrb[37].mxu0  ;;  %v3182_v39 = vpop.f32.mrb[45].mxu1  ;;  %v2169_v22 = vadd.f32 %v2168_v59, %v4500_v57  ;;  %v2240_v57 = vadd.s32 128, %v4854_v4 }
 0x4a4   :  { %v2130_v58 = vadd.f32 %v2129_v9, %v4462_v27  ;;  %v2131_v33 = vpop.f32.mrb[38].mxu0  ;;  %v2171_v17 = vpop.f32.mrb[46].mxu1 }
 0x4a5   :  { %v2205_v47 = vadd.f32 %v2181_v43, %v2128_v36  ;;  %v2132_v29 = vpop.f32.mrb[39].mxu0  ;;  %v3183_v3 = vpop.f32.mrb[47].mxu1  ;;  %v2252_v37 = vand.u32 127, %v2240_v57  ;;  %v3421_v57 = vld [vmem:[#allocation4 + $0x38] sm:$0xff]  }
 0x4a6   :  { %v2212_v13 = vadd.f32 %v2182_v12, %v2130_v58 }
 0x4a7   :  { %v2891_v18 = vmul.f32 -1.442695, %v2205_v47  ;;  %vm4891_vm12 = vcmp.lt.s32.totalorder %v2252_v37, 16 }
 0x4a8   :  { %v2892_v0 = vmul.f32 -1.442695, %v2212_v13 }
 0x4a9   :  { %3492 = vpow2.f32 %v2891_v18 }
 0x4aa   :  { %3494 = vpow2.f32 %v2892_v0 }
 0x4b3   :  { %v3493_v34 = vpop.eup %3492 }
 0x4b4   :  { %v2209_v56 = vadd.f32 1.0, %v3493_v34  ;;  %v3495_v20 = vpop.eup %3494 }
 0x4b5   :  { %v2216_v15 = vadd.f32 1.0, %v3495_v20 }
 0x4b6   :  { %3496 = vrcp.f32 %v2209_v56 }
 0x4b7   :  { %3498 = vrcp.f32 %v2216_v15 }
 0x4c0   :  { %v3497_v27 = vpop.eup %3496 }
 0x4c1   :  { %v2219_v44 = vmul.f32 %v3497_v27, %v2169_v22  ;;  %v3499_v41 = vpop.eup %3498 }
 0x4c2   :  { %v2222_v60 = vsub.f32 1.0, %v3499_v41  ;;  %v2224_v6 = vmul.f32 %v3499_v41, %v4825_v32  ;;  %v4873_v32 = vsel %vm1782_vm10, %v4742_v45, 0.0  ;;  %v2294_v45 = vmul.f32 %v4868_v25, %v4868_v25  ;;  %v3412_v41 = vld [vmem:[#allocation4 + $0x58] sm:$0xff]  }
 0x4c3   :  { %v2220_v61 = vadd.f32 %v2219_v44, %v2183_v53  ;;  %v2273_v2 = vadd.f32 %v4873_v32, %v4878_v62  ;;  %v3410_v44 = vld [vmem:[#allocation4 + $0x50] sm:$0xff]  }
 0x4c4   :  { %v2306_v19 = vsel %vm4891_vm12, %v2294_v45, 0.0  ;;  %3000 = vmatprep.subr.bf16.mxu0 %v3410_v44 }
 0x4c5   :  { %3500 = vtanh.f32 %v2220_v61  ;;  %v2314_v55 = vadd.f32 %v2306_v19, %v2305_v49  ;;  %v3411_v61 = vld [vmem:[#allocation4 + $0x10] sm:$0xff]  }
 0x4c6   :  { %3001 = vmatpush3.bf16.msra.mxu0 %v3411_v61 }
 0x4c7   :  { %3002 = vmatprep.subr.bf16.mxu0 %v3412_v41 }
 0x4cf   :  { %v3501_v24 = vpop.eup %3500 }
 0x4d0   :  { %v2223_v16 = vmul.f32 %v3501_v24, %v2222_v60  ;;  %v3413_v60 = vld [vmem:[#allocation4 + $0x18] sm:$0xff]   ;;  %v3414_v24 = vld [vmem:[#allocation4 + $0x60] sm:$0xff]  }
 0x4d1   :  { %3003 = vmatpush3.bf16.msra.mxu0 %v3413_v60 }
 0x4d2   :  { %v2225_v10 = vadd.f32 %v2224_v6, %v2223_v16  ;;  %3004 = vmatprep.subr.bf16.mxu0 %v3414_v24  ;;  %v3417_v16 = vld [vmem:[#allocation4 + $0x28] sm:$0xff]   ;;  %v3418_v6 = vld [vmem:[#allocation4 + $0x70] sm:$0xff]  }
 0x4d4   :  { %v4860_v14 = vsel %vm1539_vm5, %v2225_v10, 0.0  ;;  %v3420_v10 = vld [vmem:[#allocation4 + $0x78] sm:$0xff]  }
 0x4d5   :  { %v2267_v31 = vadd.f32 %v4860_v14, %v4600_v46  ;;  %3005 = vmatpush3.bf16.msra.mxu0 %v3415_v1 }
 0x4d6   :  { %3006 = vmatprep.subr.bf16.mxu0 %v3416_v63 }
 0x4d7   :  { %2268 = vadd.xlane.f32.xlu0 %v2267_v31 }
 0x4d9   :  { %3007 = vmatpush3.bf16.msra.mxu0 %v3417_v16 }
 0x4da   :  { %3008 = vmatprep.subr.bf16.mxu0 %v3418_v6 }
 0x4db   :  { %2274 = vadd.xlane.f32.xlu0 %v2273_v2 }
 0x4dd   :  { %3009 = vmatpush3.bf16.msra.mxu0 %v3419_v7 }
 0x4de   :  { %3010 = vmatprep.subr.bf16.mxu0 %v3420_v10 }
 0x4df   :  { %2277 = vadd.xlane.f32.xlu0 %v2276_v5 }
 0x4e1   :  { %3011 = vmatpush3.bf16.msra.mxu0 %v3421_v57 }
 0x4e3   :  { %2315 = vadd.xlane.f32.xlu0 %v2314_v55  ;;  %v2343_v55 = vld [vmem:[%s5011_s9] sm:$0x3] }
 0x564   :  { %v2269_v28 = vpop.xlane.xlu0 %2268 }
 0x565   :  { %v2279_v48 = vmul.f32 0.03125, %v2269_v28  ;;  %v2348_v28 = vrot.slane %v2343_v55, %v5105_v50 }
 0x567   :  { %v4902_v51 = vsub.f32 %v4600_v46, %v2279_v48  ;;  %v4905_v59 = vsub.f32 %v4860_v14, %v2279_v48 }
 0x568   :  { %v2275_v36 = vpop.xlane.xlu0 %2274 }
 0x569   :  { %v2281_v30 = vmul.f32 0.03125, %v2275_v36  ;;  %v2291_v43 = vmul.f32 %v4902_v51, %v4902_v51  ;;  %v2292_v9 = vmul.f32 %v4905_v59, %v4905_v59 }
 0x56b   :  { %v4912_v39 = vsub.f32 %v4873_v32, %v2281_v30  ;;  %v4915_v58 = vsub.f32 %v4878_v62, %v2281_v30  ;;  %v2303_v38 = vsel %vm2265_vm11, %v2291_v43, 0.0  ;;  %v2304_v12 = vsel %vm4891_vm12, %v2292_v9, 0.0  ;;  %v5106_v43 = vld [vmem:[#allocation19_spill] sm:$0xff] }
 0x56c   :  { %v2278_v33 = vpop.xlane.xlu0 %2277  ;;  %v2311_v17 = vadd.f32 %v2304_v12, %v2303_v38  ;;  %v2352_v9 = vrot.slane %v2343_v55, %v5106_v43  ;;  %v2363_v38 = vld [vmem:[%s5012_s10] sm:$0x3] }
 0x56d   :  { %v2282_v47 = vmul.f32 0.03125, %v2278_v33  ;;  %v2295_v29 = vmul.f32 %v4912_v39, %v4912_v39  ;;  %v2296_v3 = vmul.f32 %v4915_v58, %v4915_v58 }
 0x56e   :  { %2312 = vadd.xlane.f32.xlu1 %v2311_v17  ;;  %v2368_v17 = vrot.slane %v2363_v38, %v5105_v50 }
 0x56f   :  { %v4926_v13 = vsub.f32 %v4884_v11, %v2282_v47  ;;  %v4929_v18 = vsub.f32 %v4658_v40, %v2282_v47  ;;  %v2307_v0 = vsel %vm2265_vm11, %v2295_v29, 0.0  ;;  %v2308_v34 = vsel %vm4891_vm12, %v2296_v3, 0.0 }
 0x570   :  { %v2317_v56 = vadd.f32 %v2308_v34, %v2307_v0  ;;  %v2316_v31 = vpop.xlane.xlu0 %2315  ;;  %v2372_v47 = vrot.slane %v2363_v38, %v5106_v43 }
 0x571   :  { %v2297_v20 = vmul.f32 %v4926_v13, %v4926_v13  ;;  %v2298_v15 = vmul.f32 %v4929_v18, %v4929_v18  ;;  %v2324_v37 = vmul.f32 0.03125, %v2316_v31 }
 0x572   :  { %2318 = vadd.xlane.f32.xlu1 %v2317_v56 }
 0x573   :  { %v2309_v22 = vsel %vm2265_vm11, %v2297_v20, 0.0  ;;  %v2310_v27 = vsel %vm4891_vm12, %v2298_v15, 0.0  ;;  %v2328_v2 = vadd.f32 1e-05, %v2324_v37 }
 0x574   :  { %v2320_v53 = vadd.f32 %v2310_v27, %v2309_v22 }
 0x575   :  { %3502 = vrsqrt.f32 %v2328_v2 }
 0x576   :  { %2321 = vadd.xlane.f32.xlu0 %v2320_v53 }
 0x57f   :  { %v3503_v23 = vpop.eup %3502 }
 0x580   :  { %v2337_v48 = vmul.f32 %v3503_v23, %v4865_v35  ;;  %v2338_v30 = vmul.f32 %v3503_v23, %v4868_v25 }
 0x582   :  { %v2358_v33 = vmul.f32 %v2352_v9, %v2338_v30  ;;  %v2357_v29 = vmul.f32 %v2348_v28, %v2337_v48  ;;  %v2910_v48 = vld [vmem:[%s5015_s13] ss:$0 sm:$0xff] }
 0x584   :  { %v2378_v56 = vadd.f32 %v2372_v47, %v2358_v33  ;;  %v2377_v20 = vadd.f32 %v2368_v17, %v2357_v29 }
 0x5fb   :  { %v2313_v52 = vpop.xlane.xlu1 %2312 }
 0x5fc   :  { %v2323_v45 = vmul.f32 0.03125, %v2313_v52 }
 0x5fe   :  { %v2327_v54 = vadd.f32 1e-05, %v2323_v45 }
 0x5ff   :  { %v2319_v5 = vpop.xlane.xlu1 %2318 }
 0x600   :  { %3504 = vrsqrt.f32 %v2327_v54  ;;  %v2325_v49 = vmul.f32 0.03125, %v2319_v5 }
 0x602   :  { %v2329_v19 = vadd.f32 1e-05, %v2325_v49 }
 0x603   :  { %v2322_v26 = vpop.xlane.xlu0 %2321 }
 0x604   :  { %3506 = vrsqrt.f32 %v2329_v19  ;;  %v2326_v8 = vmul.f32 0.03125, %v2322_v26 }
 0x606   :  { %v2330_v36 = vadd.f32 1e-05, %v2326_v8 }
 0x608   :  { %3508 = vrsqrt.f32 %v2330_v36 }
 0x60a   :  { %v3505_v12 = vpop.eup %3504 }
 0x60b   :  { %v2335_v3 = vmul.f32 %v3505_v12, %v4902_v51  ;;  %v2336_v35 = vmul.f32 %v3505_v12, %v4905_v59 }
 0x60d   :  { %v2356_v0 = vmul.f32 %v2352_v9, %v2336_v35  ;;  %v2355_v25 = vmul.f32 %v2348_v28, %v2335_v3  ;;  %v5107_v3 = vld [vmem:[#allocation16_spill] sm:$0xff] }
 0x60e   :  { %v3507_v34 = vpop.eup %3506  ;;  %v2608_v35 = vsub.s32 %v4854_v4, %v5107_v3 }
 0x60f   :  { %v2376_v15 = vadd.f32 %v2372_v47, %v2356_v0  ;;  %v2375_v22 = vadd.f32 %v2368_v17, %v2355_v25  ;;  %v2340_v27 = vmul.f32 %v3507_v34, %v4915_v58  ;;  %v2339_v53 = vmul.f32 %v3507_v34, %v4912_v39 }
 0x611   :  { %v2384_v44 = vpack.c.bf16 %v2378_v56, %v2376_v15  ;;  %v2383_v61 = vpack.c.bf16 %v2377_v20, %v2375_v22  ;;  %v2360_v51 = vmul.f32 %v2352_v9, %v2340_v27  ;;  %v2359_v24 = vmul.f32 %v2348_v28, %v2339_v53  ;;  %v2911_v20 = vld [vmem:[%s5003_s1] ss:$0 sm:$0xff] }
 0x612   :  { %v3509_v41 = vpop.eup %3508  ;;  %vm2601_vm0 = vcmp.lt.s32.totalorder %v5107_v3, %v2911_v20 }
 0x613   :  { %2554 = vmatprep.mubr.bf16.mxu0 %v2384_v44  ;;  %v2342_v60 = vmul.f32 %v3509_v41, %v4929_v18  ;;  %v2341_v59 = vmul.f32 %v3509_v41, %v4926_v13  ;;  %v2380_v16 = vadd.f32 %v2372_v47, %v2360_v51  ;;  %v2379_v7 = vadd.f32 %v2368_v17, %v2359_v24  ;;  %v2893_v18 = vld [vmem:[%s5014_s12] ss:$0 sm:$0xff] }
 0x614   :  { %2555 = vmatmul.mubr.bf16.vlgmr.msra.gmra.mrb[40].mxu0 %v2383_v61 }
 0x615   :  { %v2362_v1 = vmul.f32 %v2352_v9, %v2342_v60  ;;  %v2361_v63 = vmul.f32 %v2348_v28, %v2341_v59 }
 0x617   :  { %v2382_v6 = vadd.f32 %v2372_v47, %v2362_v1  ;;  %v2381_v10 = vadd.f32 %v2368_v17, %v2361_v63 }
 0x619   :  { %v2386_v58 = vpack.c.bf16 %v2382_v6, %v2380_v16  ;;  %v2385_v57 = vpack.c.bf16 %v2381_v10, %v2379_v7 }
 0x61b   :  { %2562 = vmatprep.mubr.bf16.mxu0 %v2386_v58 }
 0x61c   :  { %2563 = vmatmul.mubr.bf16.gmra.mrb[44].mxu0 %v2385_v57 }
 0x6e7   :  { %v3012_v39 = vpop.f32.mrb[40].mxu0 }
 0x6e8   :  { %v3013_v31 = vpop.f32.mrb[41].mxu0 }
 0x6e9   :  { %v3014_v37 = vadd.f32 %v3013_v31, %v3012_v39  ;;  %v3015_v13 = vpop.f32.mrb[42].mxu0 }
 0x6ea   :  { %v3016_v2 = vpop.f32.mrb[43].mxu0 }
 0x6eb   :  { %v2557_v52 = vadd.f32 %v3014_v37, %v2893_v18  ;;  %v3017_v45 = vadd.f32 %v3016_v2, %v3015_v13 }
 0x6ed   :  { %3510 = vtanh.f32 %v2557_v52  ;;  %v2560_v54 = vadd.f32 %v3017_v45, %v2893_v18 }
 0x6ef   :  { %3512 = vtanh.f32 %v2560_v54  ;;  %v3018_v5 = vpop.f32.mrb[44].mxu0 }
 0x6f0   :  { %v3019_v49 = vpop.f32.mrb[45].mxu0 }
 0x6f1   :  { %v3020_v19 = vadd.f32 %v3019_v49, %v3018_v5  ;;  %v3021_v55 = vpop.f32.mrb[46].mxu0  ;;  %v5108_v5 = vld [vmem:[#allocation17_spill] sm:$0xff] }
 0x6f2   :  { %v3022_v23 = vpop.f32.mrb[47].mxu0 }
 0x6f3   :  { %v2565_v26 = vadd.f32 %v3020_v19, %v2893_v18  ;;  %v3023_v8 = vadd.f32 %v3022_v23, %v3021_v55  ;;  %v5109_v19 = vsub.s32 3, %v5107_v3 }
 0x6f5   :  { %3514 = vtanh.f32 %v2565_v26  ;;  %v2568_v28 = vadd.f32 %v3023_v8, %v2893_v18 }
 0x6f7   :  { %v3511_v36 = vpop.eup %3510  ;;  %3516 = vtanh.f32 %v2568_v28 }
 0x6f8   :  { %v2582_v30 = vmul.f32 %v3511_v36, %v2910_v48 }
 0x6f9   :  { %v3513_v9 = vpop.eup %3512 }
 0x6fa   :  { %2586 = vadd.xlane.f32.xlu1 %v2582_v30  ;;  %v2583_v38 = vmul.f32 %v3513_v9, %v2910_v48 }
 0x6fc   :  { %2588 = vadd.xlane.f32.xlu0 %v2583_v38 }
 0x6ff   :  { %v3515_v12 = vpop.eup %3514 }
 0x700   :  { %v2584_v33 = vmul.f32 %v3515_v12, %v2910_v48 }
 0x701   :  { %v3517_v17 = vpop.eup %3516 }
 0x702   :  { %2590 = vadd.xlane.f32.xlu1 %v2584_v33  ;;  %v2585_v47 = vmul.f32 %v3517_v17, %v2910_v48 }
 0x704   :  { %2592 = vadd.xlane.f32.xlu0 %v2585_v47 }
 0x787   :  { %v2587_v0 = vpop.xlane.xlu1 %2586 }
 0x788   :  { %v2609_v34 = vrot.slane %v2587_v0, %v2608_v35 }
 0x789   :  { %v2589_v29 = vpop.xlane.xlu0 %2588 }
 0x78a   :  { %v2613_v25 = vrot.slane %v2589_v29, %v2608_v35 }
 0x78c   :  { %v2623_v22 = vsel %vm2622_vm13, %v2613_v25, %v2609_v34 }
 0x78f   :  { %v2591_v56 = vpop.xlane.xlu1 %2590 }
 0x790   :  { %v2617_v15 = vrot.slane %v2591_v56, %v2608_v35 }
 0x791   :  { %v2593_v27 = vpop.xlane.xlu0 %2592 }
 0x792   :  { %v2625_v53 = vsel %vm2624_vm14, %v2617_v15, %v2623_v22  ;;  %v2621_v44 = vrot.slane %v2593_v27, %v2608_v35 }
 0x794   :  { %v2627_v4 = vsel %vm2626_vm15, %v2621_v44, %v2625_v53 }
 0x795   :  { %v2629_v61 = vsel %vm2601_vm0, %v2627_v4, -1e+30 }
 0x796   :  { %v2631_v41 = vsel %vm2630_vm1, %v2629_v61, -inf }
 0x797   :  { %v2632_v60 = vrot.slane %v2631_v41, 4 }
 0x799   :  { %v2633_v51 = vmax.f32 %v2631_v41, %v2632_v60 }
 0x79b   :  { %v2634_v59 = vrot.slane %v2633_v51, 2 }
 0x79d   :  { %v2635_v24 = vmax.f32 %v2633_v51, %v2634_v59 }
 0x79f   :  { %v2636_v1 = vrot.slane %v2635_v24, 1 }
 0x7a1   :  { %v2637_v63 = vmax.f32 %v2635_v24, %v2636_v1 }
 0x7a3   :  { %v2638_v16 = vsub.f32 %v2629_v61, %v2637_v63 }
 0x7a5   :  { %v2639_v6 = vmul.f32 1.442695, %v2638_v16 }
 0x7a7   :  { %3518 = vpow2.f32 %v2639_v6 }
 0x7b1   :  { %v3519_v7 = vpop.eup %3518 }
 0x7b2   :  { %v2641_v10 = vsel %vm2601_vm0, %v3519_v7, 0.0 }
 0x7b3   :  { %v2642_v58 = vsel %vm2630_vm1, %v2641_v10, 0.0 }
 0x7b4   :  { %v2643_v57 = vrot.slane %v2642_v58, 4 }
 0x7b6   :  { %v2644_v39 = vadd.f32 %v2643_v57, %v2642_v58 }
 0x7b8   :  { %v2645_v18 = vrot.slane %v2644_v39, 2 }
 0x7ba   :  { %v2646_v31 = vadd.f32 %v2645_v18, %v2644_v39 }
 0x7bc   :  { %v2647_v37 = vrot.slane %v2646_v31, 1 }
 0x7be   :  { %v2648_v13 = vadd.f32 %v2647_v37, %v2646_v31 }
 0x7c0   :  { %3520 = vrcp.f32 %v2648_v13 }
 0x7ca   :  { %v3521_v2 = vpop.eup %3520 }
 0x7cb   :  { %v2650_v52 = vmul.f32 %v3521_v2, %v2641_v10 }
 0x7cd   :  { %2651 = vst.msk [vmem:[%s5017_s15] sm:$0xf] %vm2630_vm1, %v2650_v52  ;;  %v2662_v45 = vrot.slane %v2650_v52, %v5106_v43  ;;  %v2655_v54 = vrot.slane %v2650_v52, %v5105_v50  ;;  %v2669_v49 = vrot.slane %v2650_v52, %v5108_v5  ;;  %v2676_v55 = vrot.slane %v2650_v52, %v5109_v19 }
 0x7cf   :  { %2664 = vbcast.lane.b32.xlu0 %v2662_v45, 256  ;;  %2657 = vbcast.lane.b32.xlu1 %v2655_v54, 256 }
 0x7d3   :  { %2671 = vbcast.lane.b32.xlu1 %v2669_v49, 256 }
 0x7d7   :  { %2678 = vbcast.lane.b32.xlu1 %v2676_v55, 256 }
 0x841   :  { %v2665_v23 = vpop.permute.xlu0 %2664  ;;  %v2658_v26 = vpop.permute.xlu1 %2657 }
 0x842   :  { %v2682_v8 = vmul.f32 %v2665_v23, %v4830_v21  ;;  %v2683_v28 = vmul.f32 %v2665_v23, %v4834_v42  ;;  %v2680_v48 = vmul.f32 %v2658_v26, %v4600_v46  ;;  %v2681_v43 = vmul.f32 %v2658_v26, %v4860_v14 }
 0x844   :  { %v2688_v9 = vadd.f32 %v2682_v8, %v2680_v48  ;;  %v2691_v38 = vadd.f32 %v2683_v28, %v2681_v43 }
 0x845   :  { %v2672_v50 = vpop.permute.xlu1 %2671 }
 0x846   :  { %v2684_v36 = vmul.f32 %v2672_v50, %v4873_v32  ;;  %v2685_v30 = vmul.f32 %v2672_v50, %v4878_v62 }
 0x848   :  { %v2689_v33 = vadd.f32 %v2688_v9, %v2684_v36  ;;  %v2692_v17 = vadd.f32 %v2691_v38, %v2685_v30 }
 0x849   :  { %v2679_v12 = vpop.permute.xlu1 %2678 }
 0x84a   :  { %v2686_v47 = vmul.f32 %v2679_v12, %v4884_v11  ;;  %v2687_v21 = vmul.f32 %v2679_v12, %v4658_v40 }
 0x84c   :  { %v2690_v29 = vadd.f32 %v2689_v33, %v2686_v47  ;;  %v2693_v42 = vadd.f32 %v2692_v17, %v2687_v21 }
 0x84e   :  { %2694 = vst [vmem:[%s5016_s14] sm:$0xff] %v2690_v29  ;;  %2695 = vst [vmem:[%s5016_s14 + $0x8] sm:$0xff] %v2693_v42 }
 0x84f   :  { %2704 = vsyncpa [#allocation5], 1 }

// kernel: block_attention_forward.2
= control target key start
LH: loop header
LB: loop body
LE: loop exit
PB: predicated region body
PF: predicated region fallthrough
CT: control target
= control target key end

     0   :  { %21 = vsyncpa [#allocation5], 0  ;;  %s6871_s0 = inlined_call_operand.vmem [shape: s32[8,1], index: 0, kind: input, shape index: {}]   ;;  %s6872_s1 = inlined_call_operand.vmem [shape: s32[1,8], index: 1, kind: input, shape index: {}]   ;;  %s6873_s2 = inlined_call_operand.vmem [shape: bf16[8,8,128], index: 2, kind: input, shape index: {}]   ;;  %s6874_s3 = inlined_call_operand.vmem [shape: bf16[128,768], index: 3, kind: input, shape index: {}]   ;;  %s6875_s4 = inlined_call_operand.hbm [shape: bf16[128,384], index: 4, kind: input, shape index: {}]   ;;  %s6876_s5 = inlined_call_operand.hbm [shape: bf16[128,384], index: 5, kind: input, shape index: {}]   ;;  %s6877_s6 = inlined_call_operand.vmem [shape: f32[1,768], index: 6, kind: input, shape index: {}]   ;;  %s6878_s7 = inlined_call_operand.vmem [shape: f32[1,384], index: 7, kind: input, shape index: {}]   ;;  %s6879_s8 = inlined_call_operand.vmem [shape: f32[1,384], index: 8, kind: input, shape index: {}]   ;;  %s6880_s9 = inlined_call_operand.vmem [shape: f32[1,1,256], index: 9, kind: input, shape index: {}]   ;;  %s6881_s10 = inlined_call_operand.vmem [shape: f32[1,1,256], index: 10, kind: input, shape index: {}]   ;;  %s6882_s11 = inlined_call_operand.hbm [shape: bf16[256,128], index: 11, kind: input, shape index: {}]   ;;  %s6883_s12 = inlined_call_operand.vmem [shape: f32[1,128], index: 12, kind: input, shape index: {}]   ;;  %s6884_s13 = inlined_call_operand.vmem [shape: f32[1,1,128], index: 13, kind: input, shape index: {}]   ;;  %s6885_s14 = inlined_call_operand.vmem [shape: f32[8,256], index: 14, kind: output, shape index: {0}]   ;;  %s6886_s15 = inlined_call_operand.vmem [shape: f32[8,8], index: 15, kind: output, shape index: {1}]  }
   0x1   :  { %22 = vsyncpa [#allocation7], 0  ;;  %s4990_s18 = smov [#allocation6]   ;;  %s4991_s20 = smov [#allocation4]  }
   0x2   :  { %s48_s19 = sshll.u32 %s4990_s18, 4  ;;  %s36_s21 = sshll.u32 %s4991_s20, 4  ;;  %s49_s19 = int_to_ptr.vmem [resolvable:$true] %s48_s19  ;;  %s5080_s21 = int_to_ptr.vmem [resolvable:$true] %s36_s21 }
   0x3   :  { %s4920_s24 = scalar_lea.hbm %s6876_s5, 3072 }
   0x4   :  { %p4921_p0 = scmp.ne.s32.totalorder %s6876_s5, %s4920_s24  ;;  %p4924_p1 = scmp.lt.u32.totalorder %s4920_s24, %s6876_s5 }
   0x6   :  { %p4926_p2 = pnand %p4924_p1, %p4921_p0 }
   0x8   :  { %4929 = shalt.err (!%p4926_p2)
}
   0x9   :  { %s4930_s29 = scalar_lea.vmem %s49_s19, 3072  ;;  %p4935_p4 = scmp.lt.s32.totalorder %s49_s19, %s49_s19 }
   0xa   :  { %p4931_p3 = scmp.ne.s32.totalorder %s49_s19, %s4930_s29  ;;  %p4936_p5 = scmp.lt.s32.totalorder %s4930_s29, %s4930_s29 }
   0xc   :  { %p4937_p6 = por %p4936_p5, %p4935_p4 }
   0xe   :  { %p4938_p7 = pnand %p4937_p6, %p4931_p3 }
  0x10   :  { %4941 = shalt.err (!%p4938_p7)
}
  0x11   :  { %s4992_s30 = smov 192   ;;  %s4993_s16 = smov 12  }
  0x12   :  { %54 = dma.hbm_to_vmem [thread:$0]  %s6876_s5, 3072, %s49_s19, [#allocation7], %s4992_s30, %s4992_s30, %s4993_s16  }
  0x13   :  { %s4942_s23 = scalar_lea.hbm %s6875_s4, 3072 }
  0x14   :  { %p4943_p8 = scmp.ne.s32.totalorder %s6875_s4, %s4942_s23  ;;  %p4946_p9 = scmp.lt.u32.totalorder %s4942_s23, %s6875_s4 }
  0x16   :  { %p4948_p10 = pnand %p4946_p9, %p4943_p8 }
  0x18   :  { %4951 = shalt.err (!%p4948_p10)
}
  0x19   :  { %s4952_s28 = scalar_lea.vmem %s5080_s21, 3072  ;;  %p4957_p12 = scmp.lt.s32.totalorder %s5080_s21, %s5080_s21 }
  0x1a   :  { %p4953_p11 = scmp.ne.s32.totalorder %s5080_s21, %s4952_s28  ;;  %p4958_p13 = scmp.lt.s32.totalorder %s4952_s28, %s4952_s28 }
  0x1c   :  { %p4959_p0 = por %p4958_p13, %p4957_p12 }
  0x1e   :  { %p4960_p1 = pnand %p4959_p0, %p4953_p11 }
  0x20   :  { %4963 = shalt.err (!%p4960_p1)
}
  0x21   :  { %42 = dma.hbm_to_vmem [thread:$0]  %s6875_s4, 3072, %s5080_s21, [#allocation5], %s4992_s30, %s4992_s30, %s4993_s16  }
  0x22   :  { %s4994_s29 = smov [#allocation8]   ;;  %s4964_s22 = scalar_lea.hbm %s6882_s11, 2048 }
  0x23   :  { %s70_s17 = sshll.u32 %s4994_s29, 4  ;;  %p4965_p2 = scmp.ne.s32.totalorder %s6882_s11, %s4964_s22  ;;  %s71_s17 = int_to_ptr.vmem [resolvable:$true] %s70_s17 }
  0x24   :  { %p4968_p3 = scmp.lt.u32.totalorder %s4964_s22, %s6882_s11 }
  0x26   :  { %p4970_p4 = pnand %p4968_p3, %p4965_p2 }
  0x28   :  { %4973 = shalt.err (!%p4970_p4)
}
  0x29   :  { %s4974_s27 = scalar_lea.vmem %s71_s17, 2048  ;;  %p4979_p6 = scmp.lt.s32.totalorder %s71_s17, %s71_s17 }
  0x2a   :  { %p4975_p5 = scmp.ne.s32.totalorder %s71_s17, %s4974_s27  ;;  %p4980_p7 = scmp.lt.s32.totalorder %s4974_s27, %s4974_s27 }
  0x2c   :  { %p4981_p8 = por %p4980_p7, %p4979_p6 }
  0x2e   :  { %p4982_p9 = pnand %p4981_p8, %p4975_p5 }
  0x30   :  { %4985 = shalt.err (!%p4982_p9)
}
  0x31   :  { %s4995_s4 = smov 64   ;;  %s4996_s21 = smov 4  }
  0x32   :  { %76 = dma.hbm_to_vmem [thread:$0]  %s6882_s11, 2048, %s71_s17, [#allocation7], %s4995_s4, %s4995_s4, %s4996_s21  }
  0x33   :  { %4986 = dma.done.wait [#allocation5], 3072  }
  0x34   :  { %4987 = vsyncadd [#allocation5], 4294964224 }
  0x35   :  { %4988 = dma.done.wait [#allocation7], 5120  }
  0x36   :  { %4989 = vsyncadd [#allocation7], 4294962176  ;;  %v6889_v0 = vmov 0   ;;  %v4472_v1 = vld [vmem:[%s6874_s3 + $0x4] ss:$24 sps:$4 sm:$0xff]   ;;  %v5263_v44 = vld [vmem:[%s6873_s2 + $0x8] sm:$0xff]  }
  0x37   :  { %476 = vmatprep.mubr.bf16.mxu0 %v6889_v0  ;;  %549 = vmatprep.mubr.bf16.mxu1 %v6889_v0  ;;  %v4474_v2 = vld [vmem:[%s6874_s3 + $0xc] ss:$24 sps:$4 sm:$0xff]   ;;  %v4476_v3 = vld [vmem:[%s6874_s3] ss:$24 sps:$4 sm:$0xff]   ;;  %v4480_v6 = vld [vmem:[%s6874_s3 + $0x3c] ss:$24 sps:$4 sm:$0xff]  }
  0x38   :  { %4470 = vset.pattern.permute.xlu0 %v6889_v0  ;;  %4471 = vset.pattern.permute.xlu1 %v6889_v0  ;;  %v4477_v4 = vld [vmem:[%s6874_s3 + $0x8] ss:$24 sps:$4 sm:$0xff]   ;;  %v4478_v5 = vld [vmem:[%s6874_s3 + $0x34] ss:$24 sps:$4 sm:$0xff]   ;;  %v4483_v8 = vld [vmem:[%s6874_s3 + $0x38] ss:$24 sps:$4 sm:$0xff]  }
  0x39   :  { %444 = vmatprep.subr.bf16.mxu0 %v4472_v1  ;;  %517 = vmatprep.subr.bf16.mxu1 %v4474_v2  ;;  %v4482_v7 = vld [vmem:[%s6874_s3 + $0x30] ss:$24 sps:$4 sm:$0xff]   ;;  %v4484_v9 = vld [vmem:[%s6874_s3 + $0x64] ss:$24 sps:$4 sm:$0xff]   ;;  %v4488_v11 = vld [vmem:[%s6874_s3 + $0x60] ss:$24 sps:$4 sm:$0xff]  }
  0x3a   :  { %445 = vmatpush1.bf16.msra.mxu0 %v4476_v3  ;;  %518 = vmatpush1.bf16.msra.mxu1 %v4477_v4  ;;  %v4486_v10 = vld [vmem:[%s6874_s3 + $0x6c] ss:$24 sps:$4 sm:$0xff]   ;;  %v4489_v12 = vld [vmem:[%s6874_s3 + $0x68] ss:$24 sps:$4 sm:$0xff]   ;;  %v4492_v14 = vld [vmem:[%s6874_s3 + $0x9c] ss:$24 sps:$4 sm:$0xff]  }
  0x3b   :  { %446 = vmatprep.subr.bf16.mxu0 %v4478_v5  ;;  %519 = vmatprep.subr.bf16.mxu1 %v4480_v6  ;;  %v4490_v13 = vld [vmem:[%s6874_s3 + $0x94] ss:$24 sps:$4 sm:$0xff]   ;;  %v4494_v15 = vld [vmem:[%s6874_s3 + $0x90] ss:$24 sps:$4 sm:$0xff]   ;;  %v4496_v17 = vld [vmem:[%s6874_s3 + $0xc4] ss:$24 sps:$4 sm:$0xff]  }
  0x3c   :  { %v4495_v16 = vld [vmem:[%s6874_s3 + $0x98] ss:$24 sps:$4 sm:$0xff]   ;;  %v4498_v18 = vld [vmem:[%s6874_s3 + $0xcc] ss:$24 sps:$4 sm:$0xff]   ;;  %v4501_v20 = vld [vmem:[%s6874_s3 + $0xc8] ss:$24 sps:$4 sm:$0xff]  }
  0x3d   :  { %v4500_v19 = vld [vmem:[%s6874_s3 + $0xc0] ss:$24 sps:$4 sm:$0xff]   ;;  %v4502_v21 = vld [vmem:[%s6874_s3 + $0xf4] ss:$24 sps:$4 sm:$0xff]   ;;  %v4506_v23 = vld [vmem:[%s6874_s3 + $0xf0] ss:$24 sps:$4 sm:$0xff]  }
  0x3e   :  { %447 = vmatpush1.bf16.msra.mxu0 %v4482_v7  ;;  %520 = vmatpush1.bf16.msra.mxu1 %v4483_v8  ;;  %v4504_v22 = vld [vmem:[%s6874_s3 + $0xfc] ss:$24 sps:$4 sm:$0xff]   ;;  %v4507_v24 = vld [vmem:[%s6874_s3 + $0xf8] ss:$24 sps:$4 sm:$0xff]   ;;  %v4510_v26 = vld [vmem:[%s6874_s3 + $0x12c] ss:$24 sps:$4 sm:$0xff]  }
  0x3f   :  { %448 = vmatprep.subr.bf16.mxu0 %v4484_v9  ;;  %521 = vmatprep.subr.bf16.mxu1 %v4486_v10  ;;  %v4508_v25 = vld [vmem:[%s6874_s3 + $0x124] ss:$24 sps:$4 sm:$0xff]   ;;  %v4512_v27 = vld [vmem:[%s6874_s3 + $0x120] ss:$24 sps:$4 sm:$0xff]   ;;  %v4514_v29 = vld [vmem:[%s6874_s3 + $0x154] ss:$24 sps:$4 sm:$0xff]  }
  0x40   :  { %v4513_v28 = vld [vmem:[%s6874_s3 + $0x128] ss:$24 sps:$4 sm:$0xff]   ;;  %v4516_v30 = vld [vmem:[%s6874_s3 + $0x15c] ss:$24 sps:$4 sm:$0xff]   ;;  %v4519_v32 = vld [vmem:[%s6874_s3 + $0x158] ss:$24 sps:$4 sm:$0xff]  }
  0x41   :  { %v4518_v31 = vld [vmem:[%s6874_s3 + $0x150] ss:$24 sps:$4 sm:$0xff]   ;;  %v4523_v33 = vld [vmem:[%s6874_s3 + $0x14] ss:$24 sps:$4 sm:$0xff]   ;;  %v5231_v35 = vld [vmem:[%s6873_s2] sm:$0xff]   ;;  %v6891_v9 = vmov 0.0  }
  0x42   :  { %449 = vmatpush1.bf16.msra.mxu0 %v4488_v11  ;;  %522 = vmatpush1.bf16.msra.mxu1 %v4489_v12  ;;  %v5226_v34 = vld [vmem:[#allocation4 + $0x4] ss:$12 sps:$4 sm:$0xff]   ;;  %v5236_v37 = vld [vmem:[#allocation4] ss:$12 sps:$4 sm:$0xff]   ;;  %v5242_v39 = vld [vmem:[#allocation4 + $0x1c] ss:$12 sps:$4 sm:$0xff]  }
  0x43   :  { %450 = vmatprep.subr.bf16.mxu0 %v4490_v13  ;;  %523 = vmatprep.subr.bf16.mxu1 %v4492_v14  ;;  %v4521_v36 = vld [vmem:[%s6874_s3 + $0x10] ss:$24 sps:$4 sm:$0xff]   ;;  %v4529_v38 = vld [vmem:[%s6874_s3 + $0x44] ss:$24 sps:$4 sm:$0xff]   ;;  %v4527_v40 = vld [vmem:[%s6874_s3 + $0x40] ss:$24 sps:$4 sm:$0xff]  }
  0x44   :  { %v5250_v41 = vld [vmem:[#allocation4 + $0x18] ss:$12 sps:$4 sm:$0xff]   ;;  %v4536_v42 = vld [vmem:[%s6874_s3 + $0x74] ss:$24 sps:$4 sm:$0xff]   ;;  %v4534_v45 = vld [vmem:[%s6874_s3 + $0x70] ss:$24 sps:$4 sm:$0xff]  }
  0x45   :  { %v5256_v43 = vld [vmem:[#allocation4 + $0x34] ss:$12 sps:$4 sm:$0xff]   ;;  %v5268_v46 = vld [vmem:[#allocation4 + $0x30] ss:$12 sps:$4 sm:$0xff]   ;;  %v5275_v48 = vld [vmem:[#allocation4 + $0x4c] ss:$12 sps:$4 sm:$0xff]  }
  0x46   :  { %451 = vmatpush1.bf16.msra.mxu0 %v4494_v15  ;;  %524 = vmatpush1.bf16.msra.mxu1 %v4495_v16  ;;  %v4542_v47 = vld [vmem:[%s6874_s3 + $0xa4] ss:$24 sps:$4 sm:$0xff]   ;;  %v4540_v49 = vld [vmem:[%s6874_s3 + $0xa0] ss:$24 sps:$4 sm:$0xff]   ;;  %v5282_v50 = vld [vmem:[#allocation4 + $0x48] ss:$12 sps:$4 sm:$0xff]  }
  0x47   :  { %452 = vmatprep.subr.bf16.mxu0 %v4496_v17  ;;  %525 = vmatprep.subr.bf16.mxu1 %v4498_v18  ;;  %v4549_v51 = vld [vmem:[%s6874_s3 + $0xd4] ss:$24 sps:$4 sm:$0xff]   ;;  %v5289_v52 = vld [vmem:[#allocation4 + $0x64] ss:$12 sps:$4 sm:$0xff]   ;;  %v5308_v57 = vld [vmem:[#allocation4 + $0x7c] ss:$12 sps:$4 sm:$0xff]  }
  0x48   :  { %v5296_v53 = vld [vmem:[%s6873_s2 + $0x10] sm:$0xff]   ;;  %v5302_v55 = vld [vmem:[#allocation4 + $0x60] ss:$12 sps:$4 sm:$0xff]   ;;  %v4555_v56 = vld [vmem:[%s6874_s3 + $0x104] ss:$24 sps:$4 sm:$0xff]   ;;  %vm4999_vm4 = vmmov 0  }
  0x49   :  { %v4547_v54 = vld [vmem:[%s6874_s3 + $0xd0] ss:$24 sps:$4 sm:$0xff]   ;;  %v4553_v58 = vld [vmem:[%s6874_s3 + $0x100] ss:$24 sps:$4 sm:$0xff]   ;;  %v4562_v60 = vld [vmem:[%s6874_s3 + $0x134] ss:$24 sps:$4 sm:$0xff]  }
  0x4a   :  { %453 = vmatpush1.bf16.msra.mxu0 %v4500_v19  ;;  %526 = vmatpush1.bf16.msra.mxu1 %v4501_v20  ;;  %v5316_v59 = vld [vmem:[#allocation4 + $0x78] ss:$12 sps:$4 sm:$0xff]   ;;  %v5322_v61 = vld [vmem:[#allocation4 + $0x94] ss:$12 sps:$4 sm:$0xff]   ;;  %v4560_v63 = vld [vmem:[%s6874_s3 + $0x130] ss:$24 sps:$4 sm:$0xff]  }
  0x4b   :  { %454 = vmatprep.subr.bf16.mxu0 %v4502_v21  ;;  %527 = vmatprep.subr.bf16.mxu1 %v4504_v22  ;;  %v5329_v62 = vld [vmem:[%s6873_s2 + $0x18] sm:$0xff]   ;;  %v5349_v5 = vld [vmem:[#allocation4 + $0xa8] ss:$12 sps:$4 sm:$0xff]   ;;  %v5352_v6 = vld [vmem:[#allocation6 + $0x4] ss:$12 sps:$4 sm:$0xff]  }
  0x4c   :  { %v5334_v1 = vld [vmem:[#allocation4 + $0x90] ss:$12 sps:$4 sm:$0xff]   ;;  %v5341_v3 = vld [vmem:[#allocation4 + $0xac] ss:$12 sps:$4 sm:$0xff]   ;;  %6972 = vst [vmem:[#allocation11_spill] sm:$0xff] %v5352_v6  ;;  %v5392_v17 = vld [vmem:[%s6871_s0] sm:$0xff] }
  0x4d   :  { %v4568_v2 = vld [vmem:[%s6874_s3 + $0x164] ss:$24 sps:$4 sm:$0xff]   ;;  %v4566_v4 = vld [vmem:[%s6874_s3 + $0x160] ss:$24 sps:$4 sm:$0xff]   ;;  %v5356_v7 = vld [vmem:[#allocation4 + $0x8] ss:$12 sps:$4 sm:$0xff]  }
  0x4e   :  { %455 = vmatpush1.bf16.msra.mxu0 %v4506_v23  ;;  %528 = vmatpush1.bf16.msra.mxu1 %v4507_v24  ;;  %v5359_v8 = vld [vmem:[#allocation6] ss:$12 sps:$4 sm:$0xff]   ;;  %v5363_v10 = vld [vmem:[#allocation6 + $0x1c] ss:$12 sps:$4 sm:$0xff]   ;;  %v5371_v12 = vld [vmem:[#allocation6 + $0x18] ss:$12 sps:$4 sm:$0xff]  }
  0x4f   :  { %456 = vmatprep.subr.bf16.mxu0 %v4508_v25  ;;  %529 = vmatprep.subr.bf16.mxu1 %v4510_v26  ;;  %v5367_v11 = vld [vmem:[#allocation4 + $0x20] ss:$12 sps:$4 sm:$0xff]   ;;  %v5379_v14 = vld [vmem:[#allocation4 + $0x38] ss:$12 sps:$4 sm:$0xff]   ;;  %v5383_v15 = vld [vmem:[#allocation6 + $0x30] ss:$12 sps:$4 sm:$0xff]  }
  0x50   :  { %v5375_v13 = vld [vmem:[#allocation6 + $0x34] ss:$12 sps:$4 sm:$0xff]   ;;  %v5387_v16 = vld [vmem:[#allocation6 + $0x4c] ss:$12 sps:$4 sm:$0xff]   ;;  %v5394_v18 = vld [vmem:[#allocation4 + $0x50] ss:$12 sps:$4 sm:$0xff]  }
  0x51   :  { %v5396_v19 = vld [vmem:[#allocation6 + $0x48] ss:$12 sps:$4 sm:$0xff]   ;;  %vm1448_vm0 = vcmp.gt.s32.totalorder %v5392_v17, 0  ;;  %vm1449_vm1 = vcmp.gt.s32.totalorder %v5392_v17, 7  ;;  %vm1921_vm2 = vcmp.gt.s32.totalorder %v5392_v17, 2  ;;  %vm2159_vm3 = vcmp.gt.s32.totalorder %v5392_v17, 3 }
  0x52   :  { %457 = vmatpush1.bf16.msra.mxu0 %v4512_v27  ;;  %530 = vmatpush1.bf16.msra.mxu1 %v4513_v28  ;;  %v5402_v20 = vld [vmem:[#allocation6 + $0x64] ss:$12 sps:$4 sm:$0xff]   ;;  %v1450_v21 = vsel %vm1448_vm0, 1, %v6889_v0  ;;  %v1457_v22 = vsel %vm1449_vm1, 1, %v6889_v0  ;;  %v1923_v23 = vsel %vm1921_vm2, 1, %v6889_v0  ;;  %vm1683_vm5 = vcmp.gt.s32.totalorder %v5392_v17, 1 }
  0x53   :  { %458 = vmatprep.subr.bf16.mxu0 %v4514_v29  ;;  %531 = vmatprep.subr.bf16.mxu1 %v4516_v30  ;;  %v5413_v24 = vld [vmem:[#allocation4 + $0x68] ss:$12 sps:$4 sm:$0xff]   ;;  %v5415_v25 = vld [vmem:[#allocation6 + $0x60] ss:$12 sps:$4 sm:$0xff]   ;;  %v5425_v28 = vld [vmem:[#allocation6 + $0x78] ss:$12 sps:$4 sm:$0xff]  }
  0x54   :  { %1452 = vperm.xlu0 %4470, %v1450_v21   ;;  %v5417_v26 = vld [vmem:[#allocation6 + $0x7c] ss:$12 sps:$4 sm:$0xff]   ;;  %v5423_v27 = vld [vmem:[#allocation4 + $0x80] ss:$12 sps:$4 sm:$0xff]   ;;  %v2161_v30 = vsel %vm2159_vm3, 1, %v6889_v0  ;;  %vm1684_vm6 = vcmp.gt.s32.totalorder %v5392_v17, 6 }
  0x55   :  { %v5428_v29 = vld [vmem:[#allocation6 + $0x94] ss:$12 sps:$4 sm:$0xff]   ;;  %vm1922_vm7 = vcmp.gt.s32.totalorder %v5392_v17, 5  ;;  %vm2160_vm8 = vcmp.gt.s32.totalorder %v5392_v17, 4 }
  0x56   :  { %459 = vmatpush1.bf16.msra.mxu0 %v4518_v31  ;;  %532 = vmatpush1.bf16.msra.mxu1 %v4519_v32  ;;  %v5440_v31 = vld [vmem:[#allocation4 + $0x98] ss:$12 sps:$4 sm:$0xff]   ;;  %v5442_v32 = vld [vmem:[#allocation6 + $0x90] ss:$12 sps:$4 sm:$0xff]   ;;  %v2169_v17 = vsel %vm2160_vm8, 1, %v6889_v0  ;;  %vm3615_vm8 = vcmask 1044484  }
  0x57   :  { %590 = vmatprep.subr.bf16.mxu0 %v4523_v33  ;;  %1089 = vmatprep.subr.bf16.mxu1 %v5226_v34  ;;  %v5446_v33 = vld [vmem:[#allocation6 + $0xac] ss:$12 sps:$4 sm:$0xff]  }
  0x58   :  { %1459 = vperm.xlu0 %4470, %v1457_v22  }
  0x59   :  { %477 = vmatmul.mubr.bf16.vlgmr.msra.gmra.mrb[0].mxu0 %v5231_v35  ;;  %550 = vmatmul.mubr.bf16.vlgmr.msra.gmra.mrb[0].mxu1 %v5231_v35 }
  0x5a   :  { %591 = vmatpush1.bf16.msra.mxu0 %v4521_v36  ;;  %1090 = vmatpush1.bf16.msra.mxu1 %v5236_v37  ;;  %v5453_v36 = vld [vmem:[#allocation6 + $0xa8] ss:$12 sps:$4 sm:$0xff]  }
  0x5b   :  { %592 = vmatprep.subr.bf16.mxu0 %v4529_v38  ;;  %1091 = vmatprep.subr.bf16.mxu1 %v5242_v39  ;;  %v5461_v38 = vld [vmem:[#allocation6 + $0x8] ss:$12 sps:$4 sm:$0xff]  }
  0x5c   :  { %486 = vmatprep.mubr.bf16.mxu0 %v6889_v0  ;;  %559 = vmatprep.mubr.bf16.mxu1 %v6889_v0 }
  0x5d   :  { %1925 = vperm.xlu0 %4470, %v1923_v23  }
  0x5e   :  { %593 = vmatpush1.bf16.msra.mxu0 %v4527_v40  ;;  %1092 = vmatpush1.bf16.msra.mxu1 %v5250_v41  ;;  %v5468_v40 = vld [vmem:[#allocation6 + $0x20] ss:$12 sps:$4 sm:$0xff]  }
  0x5f   :  { %594 = vmatprep.subr.bf16.mxu0 %v4536_v42  ;;  %1093 = vmatprep.subr.bf16.mxu1 %v5256_v43  ;;  %v5483_v42 = vld [vmem:[#allocation6 + $0x50] ss:$12 sps:$4 sm:$0xff]  }
  0x61   :  { %487 = vmatmul.mubr.bf16.gmra.mrb[4].mxu0 %v5263_v44  ;;  %560 = vmatmul.mubr.bf16.gmra.mrb[4].mxu1 %v5263_v44 }
  0x62   :  { %595 = vmatpush1.bf16.msra.mxu0 %v4534_v45  ;;  %1094 = vmatpush1.bf16.msra.mxu1 %v5268_v46 }
  0x63   :  { %596 = vmatprep.subr.bf16.mxu0 %v4542_v47  ;;  %1095 = vmatprep.subr.bf16.mxu1 %v5275_v48 }
  0x64   :  { %496 = vmatprep.mubr.bf16.mxu0 %v6889_v0  ;;  %569 = vmatprep.mubr.bf16.mxu1 %v6889_v0 }
  0x65   :  { %2163 = vperm.xlu0 %4470, %v2161_v30  }
  0x66   :  { %597 = vmatpush1.bf16.msra.mxu0 %v4540_v49  ;;  %1096 = vmatpush1.bf16.msra.mxu1 %v5282_v50  ;;  %v5550_v49 = vld [vmem:[%s6877_s6] sm:$0x3f] }
  0x67   :  { %598 = vmatprep.subr.bf16.mxu0 %v4549_v51  ;;  %1097 = vmatprep.subr.bf16.mxu1 %v5289_v52 }
  0x69   :  { %497 = vmatmul.mubr.bf16.gmra.mrb[8].mxu0 %v5296_v53  ;;  %570 = vmatmul.mubr.bf16.gmra.mrb[8].mxu1 %v5296_v53 }
  0x6a   :  { %599 = vmatpush1.bf16.msra.mxu0 %v4547_v54  ;;  %1098 = vmatpush1.bf16.msra.mxu1 %v5302_v55 }
  0x6b   :  { %600 = vmatprep.subr.bf16.mxu0 %v4555_v56  ;;  %1099 = vmatprep.subr.bf16.mxu1 %v5308_v57 }
  0x6c   :  { %506 = vmatprep.mubr.bf16.mxu0 %v6889_v0  ;;  %579 = vmatprep.mubr.bf16.mxu1 %v6889_v0 }
  0x6e   :  { %601 = vmatpush1.bf16.msra.mxu0 %v4553_v58  ;;  %1100 = vmatpush1.bf16.msra.mxu1 %v5316_v59 }
  0x6f   :  { %602 = vmatprep.subr.bf16.mxu0 %v4562_v60  ;;  %1101 = vmatprep.subr.bf16.mxu1 %v5322_v61 }
  0x71   :  { %507 = vmatmul.mubr.bf16.gmra.mrb[12].mxu0 %v5329_v62  ;;  %580 = vmatmul.mubr.bf16.gmra.mrb[12].mxu1 %v5329_v62 }
  0x72   :  { %603 = vmatpush1.bf16.msra.mxu0 %v4560_v63  ;;  %1102 = vmatpush1.bf16.msra.mxu1 %v5334_v1 }
  0x73   :  { %604 = vmatprep.subr.bf16.mxu0 %v4568_v2  ;;  %1103 = vmatprep.subr.bf16.mxu1 %v5341_v3 }
  0x74   :  { %622 = vmatprep.mubr.bf16.mxu0 %v6889_v0  ;;  %1121 = vmatprep.mubr.bf16.mxu1 %v6889_v0 }
  0x76   :  { %605 = vmatpush1.bf16.msra.mxu0 %v4566_v4  ;;  %1104 = vmatpush1.bf16.msra.mxu1 %v5349_v5 }
  0x77   :  { %4140 = vmatprep.subr.bf16.mxu0 %v6891_v9  ;;  %1314 = vmatprep.subr.bf16.mxu1 %v5352_v6 }
  0x79   :  { %623 = vmatmul.mubr.bf16.vlgmr.msra.gmra.mrb[16].mxu0 %v5231_v35  ;;  %1122 = vmatmul.mubr.bf16.vlgmr.msra.gmra.mrb[16].mxu1 %v6889_v0  ;;  %v5451_v35 = vld [vmem:[#allocation4 + $0xb0] ss:$12 sps:$4 sm:$0xff]  }
  0x7a   :  { %4141 = vmatpush3.bf16.msra.mxu0 %v5356_v7  ;;  %1315 = vmatpush1.bf16.msra.mxu1 %v5359_v8 }
  0x7b   :  { %4142 = vmatprep.subr.bf16.mxu0 %v6891_v9  ;;  %1316 = vmatprep.subr.bf16.mxu1 %v5363_v10 }
  0x7c   :  { %632 = vmatprep.mubr.bf16.mxu0 %v6889_v0  ;;  %1346 = vmatprep.mubr.bf16.mxu1 %v6889_v0 }
  0x7e   :  { %4143 = vmatpush3.bf16.msra.mxu0 %v5367_v11  ;;  %1317 = vmatpush1.bf16.msra.mxu1 %v5371_v12 }
  0x7f   :  { %4144 = vmatprep.subr.bf16.mxu0 %v6891_v9  ;;  %1318 = vmatprep.subr.bf16.mxu1 %v5375_v13 }
  0x81   :  { %633 = vmatmul.mubr.bf16.gmra.mrb[20].mxu0 %v5263_v44  ;;  %v6888_v44 = vlaneseq }
  0x82   :  { %4145 = vmatpush3.bf16.msra.mxu0 %v5379_v14  ;;  %1319 = vmatpush1.bf16.msra.mxu1 %v5383_v15 }
  0x83   :  { %4146 = vmatprep.subr.bf16.mxu0 %v6891_v9  ;;  %1320 = vmatprep.subr.bf16.mxu1 %v5387_v16  ;;  %v5536_v45 = vshrl.u32 %v6888_v44, 7 }
  0x84   :  { %642 = vmatprep.mubr.bf16.mxu0 %v6889_v0 }
  0x85   :  { %6973 = vst [vmem:[#allocation12_spill] sm:$0xff] %v5536_v45  ;;  %v5544_v47 = vsub.s32 2, %v5536_v45  ;;  %v6887_v51 = vsub.s32 3, %v5536_v45 }
  0x86   :  { %4147 = vmatpush3.bf16.msra.mxu0 %v5394_v18  ;;  %1321 = vmatpush1.bf16.msra.mxu1 %v5396_v19 }
  0x87   :  { %4148 = vmatprep.subr.bf16.mxu0 %v6891_v9  ;;  %1322 = vmatprep.subr.bf16.mxu1 %v5402_v20  ;;  %6975 = vst [vmem:[#allocation14_spill] sm:$0xff] %v5544_v47  ;;  %v5564_v54 = vrot.slane %v5550_v49, %v5544_v47  ;;  %v5573_v56 = vrot.slane %v5550_v49, %v6887_v51 }
  0x89   :  { %643 = vmatmul.mubr.bf16.gmra.mrb[24].mxu0 %v5296_v53 }
  0x8a   :  { %4149 = vmatpush3.bf16.msra.mxu0 %v5413_v24  ;;  %1323 = vmatpush1.bf16.msra.mxu1 %v5415_v25 }
  0x8b   :  { %4150 = vmatprep.subr.bf16.mxu0 %v6891_v9  ;;  %1324 = vmatprep.subr.bf16.mxu1 %v5417_v26 }
  0x8c   :  { %652 = vmatprep.mubr.bf16.mxu0 %v6889_v0 }
  0x8e   :  { %4151 = vmatpush3.bf16.msra.mxu0 %v5423_v27  ;;  %1325 = vmatpush1.bf16.msra.mxu1 %v5425_v28 }
  0x8f   :  { %4152 = vmatprep.subr.bf16.mxu0 %v6891_v9  ;;  %1326 = vmatprep.subr.bf16.mxu1 %v5428_v29 }
  0x91   :  { %653 = vmatmul.mubr.bf16.gmra.mrb[28].mxu0 %v5329_v62 }
  0x92   :  { %4153 = vmatpush3.bf16.msra.mxu0 %v5440_v31  ;;  %1327 = vmatpush1.bf16.msra.mxu1 %v5442_v32 }
  0x93   :  { %4154 = vmatprep.subr.bf16.mxu0 %v6891_v9  ;;  %1328 = vmatprep.subr.bf16.mxu1 %v5446_v33 }
  0x94   :  { %4156 = vmatprep.mubr.msk.bf16.mxu0 %vm4999_vm4, %v6891_v9 }
  0x96   :  { %4155 = vmatpush3.bf16.msra.mxu0 %v5451_v35  ;;  %1329 = vmatpush1.bf16.msra.mxu1 %v5453_v36 }
  0x97   :  { %4160 = vmatprep.subr.bf16.mxu0 %v6891_v9  ;;  %1466 = vmatprep.subr.bf16.mxu1 %v5226_v34  ;;  %v5477_v34 = vld [vmem:[#allocation6 + $0x38] ss:$12 sps:$4 sm:$0xff]  }
  0x99   :  { %4157 = vmatmul.mubr.bf16.vlgmr.msra.gmra.mrb[32].mxu0 %v6889_v0  ;;  %1347 = vmatmul.mubr.bf16.vlgmr.msra.gmra.mrb[20].mxu1 %v6889_v0 }
  0x9a   :  { %4161 = vmatpush3.bf16.msra.mxu0 %v5461_v38  ;;  %4176 = vmatprep.mubr.msk.bf16.mxu0 %vm4999_vm4, %v6891_v9 }
  0x9b   :  { %4162 = vmatprep.subr.bf16.mxu0 %v6891_v9  ;;  %1467 = vmatpush1.bf16.msra.mxu1 %v5236_v37  ;;  %v5489_v37 = vld [vmem:[#allocation6 + $0x68] ss:$12 sps:$4 sm:$0xff]  }
  0x9c   :  { %1468 = vmatprep.subr.bf16.mxu1 %v5242_v39  ;;  %1498 = vmatprep.mubr.bf16.mxu1 %v6889_v0  ;;  %v5495_v39 = vld [vmem:[#allocation6 + $0x80] ss:$12 sps:$4 sm:$0xff]  }
  0x9e   :  { %4163 = vmatpush3.bf16.msra.mxu0 %v5468_v40 }
  0x9f   :  { %4164 = vmatprep.subr.bf16.mxu0 %v6891_v9  ;;  %1469 = vmatpush1.bf16.msra.mxu1 %v5250_v41  ;;  %v5501_v41 = vld [vmem:[#allocation6 + $0x98] ss:$12 sps:$4 sm:$0xff]  }
  0xa0   :  { %1470 = vmatprep.subr.bf16.mxu1 %v5256_v43  ;;  %v5507_v43 = vld [vmem:[#allocation6 + $0xb0] ss:$12 sps:$4 sm:$0xff]  }
  0xa2   :  { %4165 = vmatpush3.bf16.msra.mxu0 %v5477_v34 }
  0xa3   :  { %4166 = vmatprep.subr.bf16.mxu0 %v6891_v9  ;;  %1471 = vmatpush1.bf16.msra.mxu1 %v5268_v46  ;;  %v5541_v46 = vsub.s32 0, %v5536_v45 }
  0xa4   :  { %1472 = vmatprep.subr.bf16.mxu1 %v5275_v48  ;;  %v1685_v48 = vsel %vm1683_vm5, 1, %v6889_v0  ;;  %vm3609_vm5 = vcmask 1041409  }
  0xa5   :  { %6974 = vst [vmem:[#allocation13_spill] sm:$0xff] %v5541_v46  ;;  %1687 = vperm.xlu1 %4471, %v1685_v48   ;;  %v5560_v53 = vrot.slane %v5550_v49, %v5541_v46 }
  0xa6   :  { %4167 = vmatpush3.bf16.msra.mxu0 %v5483_v42 }
  0xa7   :  { %4168 = vmatprep.subr.bf16.mxu0 %v6891_v9  ;;  %1473 = vmatpush1.bf16.msra.mxu1 %v5282_v50  ;;  %v5553_v50 = vsub.s32 1, %v5536_v45 }
  0xa8   :  { %1474 = vmatprep.subr.bf16.mxu1 %v5289_v52  ;;  %v1693_v52 = vsel %vm1684_vm6, 1, %v6889_v0  ;;  %vm3611_vm6 = vcmask 1042434  }
  0xa9   :  { %6976 = vst [vmem:[#allocation15_spill] sm:$0xff] %v5553_v50  ;;  %1695 = vperm.xlu1 %4471, %v1693_v52  }
  0xaa   :  { %4169 = vmatpush3.bf16.msra.mxu0 %v5489_v37 }
  0xab   :  { %4170 = vmatprep.subr.bf16.mxu0 %v6891_v9  ;;  %1475 = vmatpush1.bf16.msra.mxu1 %v5302_v55  ;;  %v5568_v55 = vrot.slane %v5550_v49, %v5553_v50 }
  0xac   :  { %1476 = vmatprep.subr.bf16.mxu1 %v5308_v57  ;;  %v1931_v57 = vsel %vm1922_vm7, 1, %v6889_v0  ;;  %vm3613_vm7 = vcmask 1043459  }
  0xad   :  { %1933 = vperm.xlu1 %4471, %v1931_v57  }
  0xae   :  { %4171 = vmatpush3.bf16.msra.mxu0 %v5495_v39 }
  0xaf   :  { %4172 = vmatprep.subr.bf16.mxu0 %v6891_v9  ;;  %1477 = vmatpush1.bf16.msra.mxu1 %v5316_v59 }
  0xb0   :  { %1478 = vmatprep.subr.bf16.mxu1 %v5322_v61 }
  0xb1   :  { %2171 = vperm.xlu1 %4471, %v2169_v17  }
  0xb2   :  { %4173 = vmatpush3.bf16.msra.mxu0 %v5501_v41 }
  0xb3   :  { %4174 = vmatprep.subr.bf16.mxu0 %v6891_v9  ;;  %1479 = vmatpush1.bf16.msra.mxu1 %v5334_v1 }
  0xb4   :  { %1480 = vmatprep.subr.bf16.mxu1 %v5341_v3 }
  0xb6   :  { %4175 = vmatpush3.bf16.msra.mxu0 %v5507_v43 }
  0xb7   :  { %4180 = vmatprep.subr.bf16.mxu0 %v6891_v9  ;;  %1481 = vmatpush1.bf16.msra.mxu1 %v5349_v5 }
  0xb8   :  { %1548 = vmatprep.subr.bf16.mxu1 %v5352_v6 }
  0xb9   :  { %4177 = vmatmul.mubr.bf16.vlgmr.msra.gmra.mrb[36].mxu0 %v6889_v0 }
  0xba   :  { %4181 = vmatpush3.bf16.msra.mxu0 %v5356_v7  ;;  %4196 = vmatprep.mubr.msk.bf16.mxu0 %vm4999_vm4, %v6891_v9 }
  0xbb   :  { %4182 = vmatprep.subr.bf16.mxu0 %v6891_v9 }
  0xbe   :  { %4183 = vmatpush3.bf16.msra.mxu0 %v5367_v11 }
  0xbf   :  { %4184 = vmatprep.subr.bf16.mxu0 %v6891_v9 }
  0xc2   :  { %4185 = vmatpush3.bf16.msra.mxu0 %v5379_v14 }
  0xc3   :  { %4186 = vmatprep.subr.bf16.mxu0 %v6891_v9 }
  0xc6   :  { %4187 = vmatpush3.bf16.msra.mxu0 %v5394_v18 }
  0xc7   :  { %4188 = vmatprep.subr.bf16.mxu0 %v6891_v9 }
  0xca   :  { %4189 = vmatpush3.bf16.msra.mxu0 %v5413_v24 }
  0xcb   :  { %4190 = vmatprep.subr.bf16.mxu0 %v6891_v9 }
  0xce   :  { %4191 = vmatpush3.bf16.msra.mxu0 %v5423_v27 }
  0xcf   :  { %4192 = vmatprep.subr.bf16.mxu0 %v6891_v9 }
  0xd2   :  { %4193 = vmatpush3.bf16.msra.mxu0 %v5440_v31 }
  0xd3   :  { %4194 = vmatprep.subr.bf16.mxu0 %v6891_v9 }
  0xd6   :  { %4195 = vmatpush3.bf16.msra.mxu0 %v5451_v35 }
  0xd7   :  { %4200 = vmatprep.subr.bf16.mxu0 %v6891_v9 }
 0x12c   :  { %v478_v58 = vpop.f32.mrb[0].mxu0  ;;  %v551_v59 = vpop.f32.mrb[0].mxu1 }
 0x12d   :  { %v479_v60 = vadd.f32 %v478_v58, %v5560_v53  ;;  %v480_v61 = vpop.f32.mrb[1].mxu0  ;;  %v552_v62 = vadd.f32 %v551_v59, %v5564_v54  ;;  %v553_v63 = vpop.f32.mrb[1].mxu1 }
 0x12e   :  { %v481_v1 = vadd.f32 %v480_v61, %v5568_v55  ;;  %v482_v2 = vpop.f32.mrb[2].mxu0  ;;  %v554_v3 = vadd.f32 %v553_v63, %v5573_v56  ;;  %v555_v4 = vpop.f32.mrb[2].mxu1 }
 0x12f   :  { %v483_v21 = vadd.f32 %v482_v2, %v5560_v53  ;;  %v484_v22 = vpop.f32.mrb[3].mxu0  ;;  %v556_v23 = vadd.f32 %v555_v4, %v5564_v54  ;;  %v557_v30 = vpop.f32.mrb[3].mxu1 }
 0x130   :  { %v5584_v48 = vpack.c.bf16 %v481_v1, %v479_v60  ;;  %v485_v52 = vadd.f32 %v484_v22, %v5568_v55  ;;  %v5587_v58 = vpack.c.bf16 %v554_v3, %v552_v62  ;;  %v558_v59 = vadd.f32 %v557_v30, %v5573_v56 }
 0x132   :  { %6977 = vst [vmem:[#allocation16_spill] sm:$0xff] %v5587_v58  ;;  %v5590_v61 = vpack.c.bf16 %v485_v52, %v483_v21  ;;  %v5592_v63 = vpack.c.bf16 %v558_v59, %v556_v23 }
 0x134   :  { %6978 = vst [vmem:[#allocation17_spill] sm:$0xff] %v5590_v61  ;;  %6979 = vst [vmem:[#allocation18_spill] sm:$0xff] %v5592_v63  ;;  %v488_v57 = vpop.f32.mrb[4].mxu0  ;;  %v561_v2 = vpop.f32.mrb[4].mxu1 }
 0x135   :  { %v489_v4 = vadd.f32 %v488_v57, %v5560_v53  ;;  %v490_v51 = vpop.f32.mrb[5].mxu0  ;;  %v562_v44 = vadd.f32 %v561_v2, %v5564_v54  ;;  %v563_v60 = vpop.f32.mrb[5].mxu1 }
 0x136   :  { %v491_v1 = vadd.f32 %v490_v51, %v5568_v55  ;;  %v492_v22 = vpop.f32.mrb[6].mxu0  ;;  %v564_v62 = vadd.f32 %v563_v60, %v5573_v56  ;;  %v565_v3 = vpop.f32.mrb[6].mxu1 }
 0x137   :  { %v493_v21 = vadd.f32 %v492_v22, %v5560_v53  ;;  %v494_v30 = vpop.f32.mrb[7].mxu0  ;;  %v566_v23 = vadd.f32 %v565_v3, %v5564_v54  ;;  %v567_v17 = vpop.f32.mrb[7].mxu1 }
 0x138   :  { %v5600_v52 = vpack.c.bf16 %v491_v1, %v489_v4  ;;  %v495_v59 = vadd.f32 %v494_v30, %v5568_v55  ;;  %v5603_v57 = vpack.c.bf16 %v564_v62, %v562_v44  ;;  %v568_v2 = vadd.f32 %v567_v17, %v5573_v56 }
 0x13a   :  { %6980 = vst [vmem:[#allocation19_spill] sm:$0xff] %v5600_v52  ;;  %6981 = vst [vmem:[#allocation20_spill] sm:$0xff] %v5603_v57  ;;  %v5606_v0 = vpack.c.bf16 %v495_v59, %v493_v21  ;;  %v5608_v51 = vpack.c.bf16 %v568_v2, %v566_v23 }
 0x13c   :  { %6982 = vst [vmem:[#allocation21_spill] sm:$0xff] %v5606_v0  ;;  %6983 = vst [vmem:[#allocation22_spill] sm:$0xff] %v5608_v51  ;;  %v498_v60 = vpop.f32.mrb[8].mxu0  ;;  %v571_v9 = vpop.f32.mrb[8].mxu1 }
 0x13d   :  { %v499_v22 = vadd.f32 %v498_v60, %v5560_v53  ;;  %v500_v63 = vpop.f32.mrb[9].mxu0  ;;  %v572_v3 = vadd.f32 %v571_v9, %v5564_v54  ;;  %v573_v61 = vpop.f32.mrb[9].mxu1 }
 0x13e   :  { %v501_v4 = vadd.f32 %v500_v63, %v5568_v55  ;;  %v502_v1 = vpop.f32.mrb[10].mxu0  ;;  %v574_v44 = vadd.f32 %v573_v61, %v5573_v56  ;;  %v575_v62 = vpop.f32.mrb[10].mxu1 }
 0x13f   :  { %v503_v30 = vadd.f32 %v502_v1, %v5560_v53  ;;  %v504_v21 = vpop.f32.mrb[11].mxu0  ;;  %v576_v23 = vadd.f32 %v575_v62, %v5564_v54  ;;  %v577_v17 = vpop.f32.mrb[11].mxu1 }
 0x140   :  { %v5616_v59 = vpack.c.bf16 %v501_v4, %v499_v22  ;;  %v505_v2 = vadd.f32 %v504_v21, %v5568_v55  ;;  %v5619_v60 = vpack.c.bf16 %v574_v44, %v572_v3  ;;  %v578_v9 = vadd.f32 %v577_v17, %v5573_v56 }
 0x142   :  { %6984 = vst [vmem:[#allocation23_spill] sm:$0xff] %v5616_v59  ;;  %6985 = vst [vmem:[#allocation24_spill] sm:$0xff] %v5619_v60  ;;  %v5622_v51 = vpack.c.bf16 %v505_v2, %v503_v30  ;;  %v5624_v63 = vpack.c.bf16 %v578_v9, %v576_v23  ;;  %v5634_v30 = vld [vmem:[%s6878_s7] sm:$0x7] }
 0x143   :  { %v5650_v23 = vrot.slane %v5634_v30, %v5541_v46 }
 0x144   :  { %6986 = vst [vmem:[#allocation25_spill] sm:$0xff] %v5622_v51  ;;  %6987 = vst [vmem:[#allocation26_spill] sm:$0xff] %v5624_v63  ;;  %v508_v61 = vpop.f32.mrb[12].mxu0  ;;  %v581_v0 = vpop.f32.mrb[12].mxu1  ;;  %v6990_v51 = vsub.s32 4, %v5536_v45 }
 0x145   :  { %v509_v1 = vadd.f32 %v508_v61, %v5560_v53  ;;  %v510_v57 = vpop.f32.mrb[13].mxu0  ;;  %v582_v62 = vadd.f32 %v581_v0, %v5564_v54  ;;  %v583_v52 = vpop.f32.mrb[13].mxu1  ;;  %6991 = vst [vmem:[#allocation29_spill] sm:$0xff] %v5650_v23 }
 0x146   :  { %v511_v4 = vadd.f32 %v510_v57, %v5568_v55  ;;  %v512_v3 = vpop.f32.mrb[14].mxu0  ;;  %v584_v44 = vadd.f32 %v583_v52, %v5573_v56  ;;  %v585_v21 = vpop.f32.mrb[14].mxu1  ;;  %v169_v59 = vrot.slane %v5550_v49, %v6990_v51 }
 0x147   :  { %v513_v17 = vadd.f32 %v512_v3, %v5560_v53  ;;  %v514_v2 = vpop.f32.mrb[15].mxu0  ;;  %v586_v0 = vadd.f32 %v585_v21, %v5564_v54  ;;  %v587_v9 = vpop.f32.mrb[15].mxu1 }
 0x148   :  { %v5639_v61 = vpack.c.bf16 %v511_v4, %v509_v1  ;;  %v515_v57 = vadd.f32 %v514_v2, %v5568_v55  ;;  %v5642_v22 = vpack.c.bf16 %v584_v44, %v582_v62  ;;  %v588_v52 = vadd.f32 %v587_v9, %v5573_v56 }
 0x149   :  { %v6994_v1 = vsub.s32 5, %v5536_v45  ;;  %v5661_v62 = vrot.slane %v5634_v30, %v5553_v50  ;;  %v1397_v44 = vunpack.c.l.bf16 %v5584_v48  ;;  %v1398_v9 = vunpack.c.h.bf16 %v5584_v48 }
 0x14a   :  { %6988 = vst [vmem:[#allocation27_spill] sm:$0xff] %v5639_v61  ;;  %6989 = vst [vmem:[#allocation28_spill] sm:$0xff] %v5642_v22  ;;  %v5652_v53 = vpack.c.bf16 %v515_v57, %v513_v17  ;;  %v5654_v54 = vpack.c.bf16 %v588_v52, %v586_v0 }
 0x14b   :  { %v173_v55 = vrot.slane %v5550_v49, %v6994_v1  ;;  %6995 = vst [vmem:[#allocation32_spill] sm:$0xff] %v5661_v62 }
 0x14c   :  { %6992 = vst [vmem:[#allocation30_spill] sm:$0xff] %v5652_v53  ;;  %6993 = vst [vmem:[#allocation31_spill] sm:$0xff] %v5654_v54  ;;  %v624_v56 = vpop.f32.mrb[16].mxu0  ;;  %v1123_v4 = vpop.f32.mrb[16].mxu1 }
 0x14d   :  { %v625_v3 = vadd.f32 %v624_v56, %v169_v59  ;;  %v1124_v51 = vadd.f32 %v1123_v4, %v5650_v23  ;;  %v626_v21 = vpop.f32.mrb[17].mxu0  ;;  %v1125_v17 = vpop.f32.mrb[17].mxu1 }
 0x14e   :  { %v627_v2 = vadd.f32 %v626_v21, %v173_v55  ;;  %v1126_v0 = vadd.f32 %v1125_v17, %v5661_v62  ;;  %v628_v57 = vpop.f32.mrb[18].mxu0  ;;  %v1127_v49 = vpop.f32.mrb[18].mxu1 }
 0x14f   :  { %v1406_v52 = vadd.f32 %v1397_v44, %v1124_v51  ;;  %v629_v1 = vadd.f32 %v628_v57, %v169_v59  ;;  %v630_v45 = vpop.f32.mrb[19].mxu0  ;;  %v1128_v53 = vpop.f32.mrb[19].mxu1 }
 0x150   :  { %v5667_v61 = vpack.c.bf16 %v627_v2, %v625_v3  ;;  %v1413_v56 = vadd.f32 %v1398_v9, %v1126_v0  ;;  %v631_v60 = vadd.f32 %v630_v45, %v173_v55 }
 0x151   :  { %v3869_v4 = vmul.f32 -1.442695, %v1406_v52 }
 0x152   :  { %6996 = vst [vmem:[#allocation33_spill] sm:$0xff] %v5667_v61  ;;  %v5669_v63 = vpack.c.bf16 %v631_v60, %v629_v1  ;;  %v3870_v44 = vmul.f32 -1.442695, %v1413_v56 }
 0x153   :  { %4628 = vpow2.f32 %v3869_v4 }
 0x154   :  { %6997 = vst [vmem:[#allocation34_spill] sm:$0xff] %v5669_v63  ;;  %v634_v22 = vpop.f32.mrb[20].mxu0  ;;  %4630 = vpow2.f32 %v3870_v44 }
 0x155   :  { %v635_v21 = vadd.f32 %v634_v22, %v169_v59  ;;  %v636_v23 = vpop.f32.mrb[21].mxu0 }
 0x156   :  { %v637_v17 = vadd.f32 %v636_v23, %v173_v55  ;;  %v638_v62 = vpop.f32.mrb[22].mxu0 }
 0x157   :  { %v639_v48 = vadd.f32 %v638_v62, %v169_v59  ;;  %v640_v6 = vpop.f32.mrb[23].mxu0 }
 0x158   :  { %v5671_v49 = vpack.c.bf16 %v637_v17, %v635_v21  ;;  %v641_v51 = vadd.f32 %v640_v6, %v173_v55 }
 0x15a   :  { %6998 = vst [vmem:[#allocation35_spill] sm:$0xff] %v5671_v49  ;;  %v5673_v53 = vpack.c.bf16 %v641_v51, %v639_v48  ;;  %v944_v48 = vld [vmem:[%s6879_s8] sm:$0x7] }
 0x15c   :  { %6999 = vst [vmem:[#allocation36_spill] sm:$0xff] %v5673_v53  ;;  %v644_v3 = vpop.f32.mrb[24].mxu0  ;;  %v5702_v53 = vpop.permute.xlu0 %1452 }
 0x15d   :  { %v4629_v2 = vpop.eup %4628  ;;  %v645_v45 = vadd.f32 %v644_v3, %v169_v59  ;;  %v646_v0 = vpop.f32.mrb[25].mxu0  ;;  %7004 = vst [vmem:[#allocation41_spill] sm:$0xff] %v5702_v53  ;;  %vm1454_vm9 = vcmp.eq.s32.totalorder %v5702_v53, 1 }
 0x15e   :  { %v647_v60 = vadd.f32 %v646_v0, %v173_v55  ;;  %v648_v9 = vpop.f32.mrb[26].mxu0  ;;  %v1410_v52 = vadd.f32 1.0, %v4629_v2  ;;  %v4631_v3 = vpop.eup %4630  ;;  %vm3873_vm10 = vmpackc.low %vm1454_vm9, %vm1454_vm9 }
 0x15f   :  { %v649_v57 = vadd.f32 %v648_v9, %v169_v59  ;;  %v650_v22 = vpop.f32.mrb[27].mxu0 }
 0x160   :  { %v5675_v23 = vpack.c.bf16 %v647_v60, %v645_v45  ;;  %v651_v62 = vadd.f32 %v650_v22, %v173_v55  ;;  %4632 = vrcp.f32 %v1410_v52  ;;  %v5686_v45 = vrot.slane %v5634_v30, %v5544_v47 }
 0x161   :  { %v5689_v60 = vrot.slane %v944_v48, %v5541_v46  ;;  %v1417_v22 = vadd.f32 1.0, %v4631_v3 }
 0x162   :  { %7000 = vst [vmem:[#allocation37_spill] sm:$0xff] %v5675_v23  ;;  %v5677_v1 = vpack.c.bf16 %v651_v62, %v649_v57  ;;  %7001 = vst [vmem:[#allocation38_spill] sm:$0xff] %v5686_v45  ;;  %v5694_v57 = vrot.slane %v944_v48, %v5553_v50 }
 0x163   :  { %7002 = vst [vmem:[#allocation39_spill] sm:$0xff] %v5689_v60  ;;  %4634 = vrcp.f32 %v1417_v22 }
 0x164   :  { %v654_v6 = vpop.f32.mrb[28].mxu0  ;;  %7003 = vst [vmem:[#allocation40_spill] sm:$0xff] %v5694_v57 }
 0x165   :  { %v655_v56 = vadd.f32 %v654_v6, %v169_v59  ;;  %v656_v4 = vpop.f32.mrb[29].mxu0 }
 0x166   :  { %v657_v21 = vadd.f32 %v656_v4, %v173_v55  ;;  %v658_v17 = vpop.f32.mrb[30].mxu0 }
 0x167   :  { %v659_v51 = vadd.f32 %v658_v17, %v169_v59  ;;  %v660_v44 = vpop.f32.mrb[31].mxu0 }
 0x168   :  { %v5682_v0 = vpack.c.bf16 %v657_v21, %v655_v56  ;;  %v661_v2 = vadd.f32 %v660_v44, %v173_v55  ;;  %v1403_v55 = vunpack.c.h.bf16 %v5654_v54 }
 0x16a   :  { %v5691_v9 = vpack.c.bf16 %v661_v2, %v659_v51  ;;  %v4633_v4 = vpop.eup %4632  ;;  %v1399_v2 = vunpack.c.l.bf16 %v5587_v58 }
 0x16c   :  { %v1164_v52 = vpop.f32.mrb[32].mxu0  ;;  %v1348_v59 = vpop.f32.mrb[20].mxu1  ;;  %v1404_v17 = vunpack.c.l.bf16 %v5691_v9 }
 0x16d   :  { %v1165_v62 = vadd.f32 %v1164_v52, %v5686_v45  ;;  %v1349_v6 = vadd.f32 %v1348_v59, %v5689_v60  ;;  %v4158_v56 = vpop.f32.mrb[33].mxu0  ;;  %v1350_v30 = vpop.f32.mrb[21].mxu1 }
 0x16e   :  { %v1351_v21 = vadd.f32 %v1350_v30, %v5694_v57  ;;  %v1167_v51 = vpop.f32.mrb[34].mxu0  ;;  %v1352_v44 = vpop.f32.mrb[22].mxu1 }
 0x16f   :  { %v1420_v3 = vmul.f32 %v4633_v4, %v1165_v62  ;;  %v1427_v50 = vadd.f32 %v1403_v55, %v1349_v6  ;;  %v4159_v46 = vpop.f32.mrb[35].mxu0  ;;  %v1353_v52 = vpop.f32.mrb[23].mxu1 }
 0x170   :  { %v1434_v61 = vadd.f32 %v1404_v17, %v1351_v21  ;;  %v4635_v56 = vpop.eup %4634  ;;  %v5757_v17 = vld [vmem:[#allocation4 + $0x4] ss:$12 sps:$4 sm:$0xff]  }
 0x171   :  { %v1421_v59 = vadd.f32 %v1420_v3, %v1399_v2  ;;  %v3871_v63 = vmul.f32 -1.442695, %v1427_v50  ;;  %v1423_v49 = vsub.f32 1.0, %v4635_v56  ;;  %v1425_v58 = vmul.f32 0.0, %v4635_v56  ;;  %v5764_v2 = vld [vmem:[#allocation4] ss:$12 sps:$4 sm:$0xff]  }
 0x172   :  { %v3872_v54 = vmul.f32 -1.442695, %v1434_v61  ;;  %v5768_v3 = vld [vmem:[#allocation4 + $0x1c] ss:$12 sps:$4 sm:$0xff]   ;;  %v5775_v52 = vld [vmem:[#allocation4 + $0x18] ss:$12 sps:$4 sm:$0xff]  }
 0x173   :  { %4636 = vtanh.f32 %v1421_v59  ;;  %v5779_v59 = vld [vmem:[#allocation4 + $0x34] ss:$12 sps:$4 sm:$0xff]   ;;  %v5787_v56 = vld [vmem:[#allocation4 + $0x4c] ss:$12 sps:$4 sm:$0xff]  }
 0x174   :  { %4638 = vpow2.f32 %v3871_v63  ;;  %v7005_v63 = vmov 0.0  }
 0x175   :  { %4640 = vpow2.f32 %v3872_v54  ;;  %v5722_v54 = vrot.slane %v944_v48, %v5544_v47  ;;  %v1405_v48 = vunpack.c.h.bf16 %v5691_v9  ;;  %v7019_v47 = vld [vmem:[#allocation18_spill] sm:$0xff] }
 0x17d   :  { %v4637_v30 = vpop.eup %4636 }
 0x17e   :  { %v4639_v51 = vpop.eup %4638  ;;  %v1424_v44 = vmul.f32 %v4637_v30, %v1423_v49  ;;  %v5791_v30 = vld [vmem:[#allocation4 + $0x48] ss:$12 sps:$4 sm:$0xff]  }
 0x17f   :  { %v1431_v22 = vadd.f32 1.0, %v4639_v51  ;;  %v4641_v61 = vpop.eup %4640  ;;  %v5799_v51 = vld [vmem:[#allocation4 + $0x60] ss:$12 sps:$4 sm:$0xff]  }
 0x180   :  { %v5705_v46 = vadd.f32 %v1425_v58, %v1424_v44  ;;  %v7006_v58 = vmov 0   ;;  %7009 = vst [vmem:[#allocation44_spill] sm:$0xff] %v5799_v51  ;;  %v5807_v44 = vld [vmem:[#allocation4 + $0x78] ss:$12 sps:$4 sm:$0xff]  }
 0x181   :  { %4642 = vrcp.f32 %v1431_v22  ;;  %7011 = vst [vmem:[#allocation46_spill] sm:$0xff] %v5807_v44  ;;  %v5815_v22 = vld [vmem:[#allocation4 + $0x90] ss:$12 sps:$4 sm:$0xff]  }
 0x182   :  { %v3874_v50 = vpack.c.bf16 %v5705_v46, %v5705_v46  ;;  %7013 = vst [vmem:[#allocation48_spill] sm:$0xff] %v5815_v22 }
 0x184   :  { %3875 = vmatmul.mubr.msk.bf16.vlgmr.msra.gmra.mrb[24].mxu1 %vm3873_vm10, %v3874_v50  ;;  %4197 = vmatmul.mubr.msk.bf16.vlgmr.msra.gmra.mrb[40].mxu0 %vm3873_vm10, %v3874_v50  ;;  %vm3619_vm10 = vcmask 1046534  }
 0x185   :  { %1549 = vmatpush1.bf16.msra.mxu1 %v5359_v8  ;;  %4201 = vmatpush3.bf16.msra.mxu0 %v5461_v38  ;;  %v1438_v8 = vadd.f32 1.0, %v4641_v61 }
 0x186   :  { %1550 = vmatprep.subr.bf16.mxu1 %v5363_v10  ;;  %4202 = vmatprep.subr.bf16.mxu0 %v7005_v63 }
 0x187   :  { %1580 = vmatprep.mubr.bf16.mxu1 %v7006_v58  ;;  %4216 = vmatprep.mubr.msk.bf16.mxu0 %vm4999_vm4, %v7005_v63  ;;  %4644 = vrcp.f32 %v1438_v8  ;;  %v7016_v8 = vld [vmem:[#allocation29_spill] sm:$0xff] }
 0x189   :  { %1551 = vmatpush1.bf16.msra.mxu1 %v5371_v12  ;;  %4203 = vmatpush3.bf16.msra.mxu0 %v5468_v40 }
 0x18a   :  { %1552 = vmatprep.subr.bf16.mxu1 %v5375_v13  ;;  %4204 = vmatprep.subr.bf16.mxu0 %v7005_v63 }
 0x18b   :  { %v4643_v6 = vpop.eup %4642 }
 0x18c   :  { %v1389_v10 = vpop.f32.mrb[36].mxu0 }
 0x18d   :  { %v1390_v49 = vadd.f32 %v1389_v10, %v5722_v54  ;;  %v4178_v62 = vpop.f32.mrb[37].mxu0  ;;  %1553 = vmatpush1.bf16.msra.mxu1 %v5383_v15  ;;  %4205 = vmatpush3.bf16.msra.mxu0 %v5477_v34 }
 0x18e   :  { %v1392_v12 = vpop.f32.mrb[38].mxu0  ;;  %1554 = vmatprep.subr.bf16.mxu1 %v5387_v16  ;;  %4206 = vmatprep.subr.bf16.mxu0 %v7005_v63 }
 0x18f   :  { %v1441_v13 = vmul.f32 %v4643_v6, %v1390_v49  ;;  %v4179_v55 = vpop.f32.mrb[39].mxu0  ;;  %v7017_v49 = vld [vmem:[#allocation17_spill] sm:$0xff]  ;;  %v7018_v12 = vld [vmem:[#allocation32_spill] sm:$0xff] }
 0x191   :  { %v1442_v4 = vadd.f32 %v1441_v13, %v1405_v48  ;;  %1555 = vmatpush1.bf16.msra.mxu1 %v5396_v19  ;;  %4207 = vmatpush3.bf16.msra.mxu0 %v5483_v42  ;;  %v4645_v15 = vpop.eup %4644  ;;  %v1633_v13 = vunpack.c.h.bf16 %v7017_v49 }
 0x192   :  { %1556 = vmatprep.subr.bf16.mxu1 %v5402_v20  ;;  %4208 = vmatprep.subr.bf16.mxu0 %v7005_v63  ;;  %v1444_v16 = vsub.f32 1.0, %v4645_v15 }
 0x193   :  { %4646 = vtanh.f32 %v1442_v4 }
 0x195   :  { %1557 = vmatpush1.bf16.msra.mxu1 %v5415_v25  ;;  %4209 = vmatpush3.bf16.msra.mxu0 %v5489_v37  ;;  %v1446_v25 = vmul.f32 0.0, %v4645_v15 }
 0x196   :  { %1558 = vmatprep.subr.bf16.mxu1 %v5417_v26  ;;  %4210 = vmatprep.subr.bf16.mxu0 %v7005_v63  ;;  %v5748_v26 = vpop.permute.xlu0 %1459 }
 0x197   :  { %7007 = vst [vmem:[#allocation42_spill] sm:$0xff] %v5748_v26  ;;  %vm1461_vm11 = vcmp.eq.s32.totalorder %v5748_v26, 1 }
 0x198   :  { %vm3879_vm12 = vmpackc.low %vm1461_vm11, %vm1461_vm11 }
 0x199   :  { %1559 = vmatpush1.bf16.msra.mxu1 %v5425_v28  ;;  %4211 = vmatpush3.bf16.msra.mxu0 %v5495_v39 }
 0x19a   :  { %1560 = vmatprep.subr.bf16.mxu1 %v5428_v29  ;;  %4212 = vmatprep.subr.bf16.mxu0 %v7005_v63 }
 0x19d   :  { %v4647_v19 = vpop.eup %4646  ;;  %1561 = vmatpush1.bf16.msra.mxu1 %v5442_v32  ;;  %4213 = vmatpush3.bf16.msra.mxu0 %v5501_v41 }
 0x19e   :  { %1562 = vmatprep.subr.bf16.mxu1 %v5446_v33  ;;  %4214 = vmatprep.subr.bf16.mxu0 %v7005_v63  ;;  %v1445_v20 = vmul.f32 %v4647_v19, %v1444_v16 }
 0x1a0   :  { %v5751_v9 = vadd.f32 %v1446_v25, %v1445_v20 }
 0x1a1   :  { %1563 = vmatpush1.bf16.msra.mxu1 %v5453_v36  ;;  %4215 = vmatpush3.bf16.msra.mxu0 %v5507_v43 }
 0x1a2   :  { %v3880_v21 = vpack.c.bf16 %v5751_v9, %v5751_v9  ;;  %1704 = vmatprep.subr.bf16.mxu1 %v5757_v17  ;;  %4220 = vmatprep.subr.bf16.mxu0 %v7005_v63 }
 0x1a4   :  { %3881 = vmatmul.mubr.msk.bf16.vlgmr.msra.gmra.mrb[28].mxu1 %vm3879_vm12, %v3880_v21  ;;  %4217 = vmatmul.mubr.msk.bf16.vlgmr.msra.gmra.mrb[44].mxu0 %vm3879_vm12, %v3880_v21 }
 0x1a5   :  { %1705 = vmatpush1.bf16.msra.mxu1 %v5764_v2  ;;  %4221 = vmatpush3.bf16.msra.mxu0 %v5356_v7  ;;  %v5783_v7 = vld [vmem:[#allocation4 + $0x30] ss:$12 sps:$4 sm:$0xff]  }
 0x1a6   :  { %1706 = vmatprep.subr.bf16.mxu1 %v5768_v3  ;;  %4222 = vmatprep.subr.bf16.mxu0 %v7005_v63 }
 0x1a7   :  { %1736 = vmatprep.mubr.bf16.mxu1 %v7006_v58  ;;  %4236 = vmatprep.mubr.msk.bf16.mxu0 %vm4999_vm4, %v7005_v63 }
 0x1a9   :  { %1707 = vmatpush1.bf16.msra.mxu1 %v5775_v52  ;;  %4223 = vmatpush3.bf16.msra.mxu0 %v5367_v11  ;;  %v5795_v11 = vld [vmem:[#allocation4 + $0x64] ss:$12 sps:$4 sm:$0xff]  }
 0x1aa   :  { %1708 = vmatprep.subr.bf16.mxu1 %v5779_v59  ;;  %4224 = vmatprep.subr.bf16.mxu0 %v7005_v63  ;;  %7008 = vst [vmem:[#allocation43_spill] sm:$0xff] %v5795_v11 }
 0x1ad   :  { %1709 = vmatpush1.bf16.msra.mxu1 %v5783_v7  ;;  %4225 = vmatpush3.bf16.msra.mxu0 %v5379_v14  ;;  %v5803_v14 = vld [vmem:[#allocation4 + $0x7c] ss:$12 sps:$4 sm:$0xff]  }
 0x1ae   :  { %1710 = vmatprep.subr.bf16.mxu1 %v5787_v56  ;;  %4226 = vmatprep.subr.bf16.mxu0 %v7005_v63  ;;  %7010 = vst [vmem:[#allocation45_spill] sm:$0xff] %v5803_v14 }
 0x1b1   :  { %1711 = vmatpush1.bf16.msra.mxu1 %v5791_v30  ;;  %4227 = vmatpush3.bf16.msra.mxu0 %v5394_v18  ;;  %v5811_v18 = vld [vmem:[#allocation4 + $0x94] ss:$12 sps:$4 sm:$0xff]  }
 0x1b2   :  { %1712 = vmatprep.subr.bf16.mxu1 %v5795_v11  ;;  %4228 = vmatprep.subr.bf16.mxu0 %v7005_v63  ;;  %7012 = vst [vmem:[#allocation47_spill] sm:$0xff] %v5811_v18 }
 0x1b5   :  { %1713 = vmatpush1.bf16.msra.mxu1 %v5799_v51  ;;  %4229 = vmatpush3.bf16.msra.mxu0 %v5413_v24  ;;  %v5819_v24 = vld [vmem:[#allocation4 + $0xac] ss:$12 sps:$4 sm:$0xff]  }
 0x1b6   :  { %1714 = vmatprep.subr.bf16.mxu1 %v5803_v14  ;;  %4230 = vmatprep.subr.bf16.mxu0 %v7005_v63  ;;  %7014 = vst [vmem:[#allocation49_spill] sm:$0xff] %v5819_v24 }
 0x1b9   :  { %1715 = vmatpush1.bf16.msra.mxu1 %v5807_v44  ;;  %4231 = vmatpush3.bf16.msra.mxu0 %v5423_v27  ;;  %v7015_v27 = vld [vmem:[#allocation11_spill] sm:$0xff] }
 0x1ba   :  { %1716 = vmatprep.subr.bf16.mxu1 %v5811_v18  ;;  %4232 = vmatprep.subr.bf16.mxu0 %v7005_v63 }
 0x1bd   :  { %1717 = vmatpush1.bf16.msra.mxu1 %v5815_v22  ;;  %4233 = vmatpush3.bf16.msra.mxu0 %v5440_v31  ;;  %v1632_v31 = vunpack.c.l.bf16 %v7017_v49  ;;  %v1634_v49 = vunpack.c.l.bf16 %v7019_v47 }
 0x1be   :  { %1718 = vmatprep.subr.bf16.mxu1 %v5819_v24  ;;  %4234 = vmatprep.subr.bf16.mxu0 %v7005_v63 }
 0x1c1   :  { %1719 = vmatpush1.bf16.msra.mxu1 %v5349_v5  ;;  %4235 = vmatpush3.bf16.msra.mxu0 %v5451_v35 }
 0x1c2   :  { %1786 = vmatprep.subr.bf16.mxu1 %v7015_v27  ;;  %4240 = vmatprep.subr.bf16.mxu0 %v7005_v63 }
 0x257   :  { %v1500_v50 = vpop.f32.mrb[24].mxu1  ;;  %v1541_v61 = vpop.f32.mrb[40].mxu0 }
 0x258   :  { %v1501_v10 = vadd.f32 %v1500_v50, %v7016_v8  ;;  %v1502_v62 = vpop.f32.mrb[25].mxu1  ;;  %v4198_v6 = vpop.f32.mrb[41].mxu0 }
 0x259   :  { %v1503_v48 = vadd.f32 %v1502_v62, %v7018_v12  ;;  %v1504_v55 = vpop.f32.mrb[26].mxu1  ;;  %v1544_v5 = vpop.f32.mrb[42].mxu0  ;;  %v1542_v6 = vadd.f32 %v1541_v61, %v5686_v45 }
 0x25a   :  { %v1641_v4 = vadd.f32 %v1632_v31, %v1501_v10  ;;  %v1505_v35 = vpop.f32.mrb[27].mxu1  ;;  %v4199_v15 = vpop.f32.mrb[43].mxu0 }
 0x25b   :  { %v1648_v16 = vadd.f32 %v1633_v13, %v1503_v48  ;;  %v7020_v13 = vld [vmem:[#allocation28_spill] sm:$0xff] }
 0x25c   :  { %v3885_v19 = vmul.f32 -1.442695, %v1641_v4  ;;  %v1638_v4 = vunpack.c.h.bf16 %v7020_v13 }
 0x25d   :  { %v3886_v20 = vmul.f32 -1.442695, %v1648_v16 }
 0x25e   :  { %4648 = vpow2.f32 %v3885_v19  ;;  %v1639_v19 = vunpack.c.l.bf16 %v5682_v0 }
 0x25f   :  { %4650 = vpow2.f32 %v3886_v20 }
 0x268   :  { %v4649_v25 = vpop.eup %4648 }
 0x269   :  { %v1645_v21 = vadd.f32 1.0, %v4649_v25  ;;  %v4651_v27 = vpop.eup %4650 }
 0x26a   :  { %v1652_v50 = vadd.f32 1.0, %v4651_v27 }
 0x26b   :  { %4652 = vrcp.f32 %v1645_v21 }
 0x26c   :  { %4654 = vrcp.f32 %v1652_v50 }
 0x275   :  { %v4653_v62 = vpop.eup %4652 }
 0x276   :  { %v1655_v55 = vmul.f32 %v4653_v62, %v1542_v6  ;;  %v4655_v62 = vpop.eup %4654 }
 0x277   :  { %v1582_v10 = vpop.f32.mrb[28].mxu1  ;;  %v1623_v31 = vpop.f32.mrb[44].mxu0 }
 0x278   :  { %v1656_v5 = vadd.f32 %v1655_v55, %v1634_v49  ;;  %v1583_v48 = vadd.f32 %v1582_v10, %v5689_v60  ;;  %v1584_v35 = vpop.f32.mrb[29].mxu1  ;;  %v4218_v15 = vpop.f32.mrb[45].mxu0  ;;  %v1658_v55 = vsub.f32 1.0, %v4655_v62 }
 0x279   :  { %v1585_v16 = vadd.f32 %v1584_v35, %v5694_v57  ;;  %v1586_v20 = vpop.f32.mrb[30].mxu1  ;;  %v1626_v61 = vpop.f32.mrb[46].mxu0  ;;  %v5840_v15 = vsel %vm1454_vm9, %v5705_v46, 0.0 }
 0x27a   :  { %4656 = vtanh.f32 %v1656_v5  ;;  %v1662_v25 = vadd.f32 %v1638_v4, %v1583_v48  ;;  %v1587_v21 = vpop.f32.mrb[31].mxu1  ;;  %v4219_v27 = vpop.f32.mrb[47].mxu0  ;;  %7021 = vst [vmem:[#allocation11_spill] sm:$0xff] %v5840_v15  ;;  %v1660_v5 = vmul.f32 %v4655_v62, %v5840_v15  ;;  %v5856_v61 = vld [vmem:[#allocation6] ss:$12 sps:$4 sm:$0xff]  }
 0x27b   :  { %v1669_v50 = vadd.f32 %v1639_v19, %v1585_v16  ;;  %v5842_v35 = vpop.permute.xlu1 %1687  ;;  %v5867_v27 = vld [vmem:[#allocation6 + $0x18] ss:$12 sps:$4 sm:$0xff]  }
 0x27c   :  { %v3887_v6 = vmul.f32 -1.442695, %v1662_v25  ;;  %7022 = vst [vmem:[#allocation17_spill] sm:$0xff] %v5842_v35  ;;  %vm1689_vm13 = vcmp.eq.s32.totalorder %v5842_v35, 1  ;;  %v5860_v25 = vld [vmem:[#allocation6 + $0x1c] ss:$12 sps:$4 sm:$0xff]  }
 0x27d   :  { %v3888_v49 = vmul.f32 -1.442695, %v1669_v50 }
 0x27e   :  { %4658 = vpow2.f32 %v3887_v6  ;;  %v1624_v6 = vadd.f32 %v1623_v31, %v5722_v54  ;;  %v5889_v31 = vld [vmem:[#allocation6 + $0x64] ss:$12 sps:$4 sm:$0xff]  }
 0x27f   :  { %4660 = vpow2.f32 %v3888_v49  ;;  %v5876_v49 = vld [vmem:[#allocation6 + $0x30] ss:$12 sps:$4 sm:$0xff]  }
 0x284   :  { %v4657_v10 = vpop.eup %4656 }
 0x285   :  { %v1659_v20 = vmul.f32 %v4657_v10, %v1658_v55  ;;  %v1640_v55 = vunpack.c.h.bf16 %v5682_v0  ;;  %v5897_v0 = vld [vmem:[#allocation6 + $0x7c] ss:$12 sps:$4 sm:$0xff]  }
 0x287   :  { %v5846_v48 = vadd.f32 %v1660_v5, %v1659_v20  ;;  %v5885_v5 = vld [vmem:[#allocation6 + $0x48] ss:$12 sps:$4 sm:$0xff]  }
 0x288   :  { %v4659_v4 = vpop.eup %4658 }
 0x289   :  { %7023 = vst [vmem:[#allocation50_spill] sm:$0xff] %v5846_v48  ;;  %v1666_v16 = vadd.f32 1.0, %v4659_v4  ;;  %v5852_v19 = vsel %vm1689_vm13, %v5846_v48, %v5840_v15  ;;  %v4661_v21 = vpop.eup %4660 }
 0x28a   :  { %v1703_v46 = vpack.c.bf16 %v5852_v19, %v5852_v19  ;;  %v1673_v50 = vadd.f32 1.0, %v4661_v21 }
 0x28b   :  { %4662 = vrcp.f32 %v1666_v16 }
 0x28c   :  { %1737 = vmatmul.mubr.bf16.vlgmr.msra.gmra.mrb[32].mxu1 %v1703_v46  ;;  %4237 = vmatmul.mubr.bf16.vlgmr.msra.gmra.mrb[48].mxu0 %v1703_v46  ;;  %4664 = vrcp.f32 %v1673_v50  ;;  %v5966_v50 = vld [vmem:[#allocation4 + $0x80] ss:$12 sps:$4 sm:$0xff]  }
 0x28d   :  { %1787 = vmatpush1.bf16.msra.mxu1 %v5856_v61  ;;  %4241 = vmatpush3.bf16.msra.mxu0 %v5461_v38  ;;  %v5871_v38 = vld [vmem:[#allocation6 + $0x34] ss:$12 sps:$4 sm:$0xff]   ;;  %7028 = vst [vmem:[#allocation55_spill] sm:$0xff] %v5966_v50 }
 0x28e   :  { %1788 = vmatprep.subr.bf16.mxu1 %v5860_v25  ;;  %4242 = vmatprep.subr.bf16.mxu0 %v7005_v63 }
 0x28f   :  { %1818 = vmatprep.mubr.bf16.mxu1 %v7006_v58  ;;  %4256 = vmatprep.mubr.msk.bf16.mxu0 %vm4999_vm4, %v7005_v63 }
 0x291   :  { %1789 = vmatpush1.bf16.msra.mxu1 %v5867_v27  ;;  %4243 = vmatpush3.bf16.msra.mxu0 %v5468_v40  ;;  %v5881_v40 = vld [vmem:[#allocation6 + $0x4c] ss:$12 sps:$4 sm:$0xff]  }
 0x292   :  { %1790 = vmatprep.subr.bf16.mxu1 %v5871_v38  ;;  %4244 = vmatprep.subr.bf16.mxu0 %v7005_v63 }
 0x295   :  { %v4663_v62 = vpop.eup %4662  ;;  %1791 = vmatpush1.bf16.msra.mxu1 %v5876_v49  ;;  %4245 = vmatpush3.bf16.msra.mxu0 %v5477_v34  ;;  %v5893_v34 = vld [vmem:[#allocation6 + $0x60] ss:$12 sps:$4 sm:$0xff]  }
 0x296   :  { %v1676_v10 = vmul.f32 %v4663_v62, %v1624_v6  ;;  %1792 = vmatprep.subr.bf16.mxu1 %v5881_v40  ;;  %4246 = vmatprep.subr.bf16.mxu0 %v7005_v63  ;;  %v5972_v6 = vld [vmem:[#allocation4 + $0x98] ss:$12 sps:$4 sm:$0xff]   ;;  %v5977_v62 = vld [vmem:[#allocation4 + $0xa8] ss:$12 sps:$4 sm:$0xff]  }
 0x297   :  { %7029 = vst [vmem:[#allocation56_spill] sm:$0xff] %v5972_v6  ;;  %7030 = vst [vmem:[#allocation57_spill] sm:$0xff] %v5977_v62 }
 0x298   :  { %v1677_v20 = vadd.f32 %v1676_v10, %v1640_v55  ;;  %v5980_v55 = vld [vmem:[#allocation4 + $0xb0] ss:$12 sps:$4 sm:$0xff]  }
 0x299   :  { %1793 = vmatpush1.bf16.msra.mxu1 %v5885_v5  ;;  %4247 = vmatpush3.bf16.msra.mxu0 %v5483_v42  ;;  %v4665_v42 = vpop.eup %4664  ;;  %7031 = vst [vmem:[#allocation58_spill] sm:$0xff] %v5980_v55  ;;  %v5983_v10 = vld [vmem:[#allocation6 + $0x4] ss:$12 sps:$4 sm:$0xff]  }
 0x29a   :  { %4666 = vtanh.f32 %v1677_v20  ;;  %1794 = vmatprep.subr.bf16.mxu1 %v5889_v31  ;;  %4248 = vmatprep.subr.bf16.mxu0 %v7005_v63  ;;  %v1679_v4 = vsub.f32 1.0, %v4665_v42  ;;  %7032 = vst [vmem:[#allocation59_spill] sm:$0xff] %v5983_v10 }
 0x29d   :  { %1795 = vmatpush1.bf16.msra.mxu1 %v5893_v34  ;;  %4249 = vmatpush3.bf16.msra.mxu0 %v5489_v37  ;;  %v5908_v37 = vsel %vm1461_vm11, %v5751_v9, 0.0  ;;  %v5960_v9 = vld [vmem:[#allocation4 + $0x68] ss:$12 sps:$4 sm:$0xff]  }
 0x29e   :  { %1796 = vmatprep.subr.bf16.mxu1 %v5897_v0  ;;  %4250 = vmatprep.subr.bf16.mxu0 %v7005_v63  ;;  %7024 = vst [vmem:[#allocation51_spill] sm:$0xff] %v5908_v37  ;;  %v1681_v21 = vmul.f32 %v4665_v42, %v5908_v37  ;;  %7027 = vst [vmem:[#allocation54_spill] sm:$0xff] %v5960_v9 }
 0x2a1   :  { %1797 = vmatpush1.bf16.msra.mxu1 %v5425_v28  ;;  %4251 = vmatpush3.bf16.msra.mxu0 %v5495_v39  ;;  %v5915_v28 = vpop.permute.xlu1 %1695 }
 0x2a2   :  { %1798 = vmatprep.subr.bf16.mxu1 %v5428_v29  ;;  %4252 = vmatprep.subr.bf16.mxu0 %v7005_v63  ;;  %7025 = vst [vmem:[#allocation52_spill] sm:$0xff] %v5915_v28  ;;  %vm1697_vm14 = vcmp.eq.s32.totalorder %v5915_v28, 1 }
 0x2a4   :  { %v4667_v16 = vpop.eup %4666 }
 0x2a5   :  { %v1680_v46 = vmul.f32 %v4667_v16, %v1679_v4  ;;  %1799 = vmatpush1.bf16.msra.mxu1 %v5442_v32  ;;  %4253 = vmatpush3.bf16.msra.mxu0 %v5501_v41  ;;  %v5948_v41 = vld [vmem:[#allocation4 + $0x38] ss:$12 sps:$4 sm:$0xff]  }
 0x2a6   :  { %1800 = vmatprep.subr.bf16.mxu1 %v5446_v33  ;;  %4254 = vmatprep.subr.bf16.mxu0 %v7005_v63  ;;  %v5933_v33 = vld [vmem:[#allocation4 + $0x8] ss:$12 sps:$4 sm:$0xff]   ;;  %v7033_v16 = vld [vmem:[#allocation19_spill] sm:$0xff] }
 0x2a7   :  { %v5917_v29 = vadd.f32 %v1681_v21, %v1680_v46  ;;  %v1870_v46 = vunpack.c.l.bf16 %v7033_v16  ;;  %v1871_v26 = vunpack.c.h.bf16 %v7033_v16 }
 0x2a9   :  { %7026 = vst [vmem:[#allocation53_spill] sm:$0xff] %v5917_v29  ;;  %v5924_v39 = vsel %vm1697_vm14, %v5917_v29, %v5908_v37  ;;  %1801 = vmatpush1.bf16.msra.mxu1 %v5453_v36  ;;  %4255 = vmatpush3.bf16.msra.mxu0 %v5507_v43  ;;  %v5942_v36 = vld [vmem:[#allocation4 + $0x20] ss:$12 sps:$4 sm:$0xff]   ;;  %v5954_v43 = vld [vmem:[#allocation4 + $0x50] ss:$12 sps:$4 sm:$0xff]  }
 0x2aa   :  { %v1785_v32 = vpack.c.bf16 %v5924_v39, %v5924_v39  ;;  %1942 = vmatprep.subr.bf16.mxu1 %v5757_v17  ;;  %4260 = vmatprep.subr.bf16.mxu0 %v7005_v63 }
 0x2ac   :  { %1819 = vmatmul.mubr.bf16.vlgmr.msra.gmra.mrb[36].mxu1 %v1785_v32  ;;  %4257 = vmatmul.mubr.bf16.vlgmr.msra.gmra.mrb[52].mxu0 %v1785_v32 }
 0x2ad   :  { %1943 = vmatpush1.bf16.msra.mxu1 %v5764_v2  ;;  %4261 = vmatpush3.bf16.msra.mxu0 %v5933_v33 }
 0x2ae   :  { %1944 = vmatprep.subr.bf16.mxu1 %v5768_v3  ;;  %4262 = vmatprep.subr.bf16.mxu0 %v7005_v63 }
 0x2af   :  { %1974 = vmatprep.mubr.bf16.mxu1 %v7006_v58  ;;  %4276 = vmatprep.mubr.msk.bf16.mxu0 %vm4999_vm4, %v7005_v63 }
 0x2b1   :  { %1945 = vmatpush1.bf16.msra.mxu1 %v5775_v52  ;;  %4263 = vmatpush3.bf16.msra.mxu0 %v5942_v36 }
 0x2b2   :  { %1946 = vmatprep.subr.bf16.mxu1 %v5779_v59  ;;  %4264 = vmatprep.subr.bf16.mxu0 %v7005_v63 }
 0x2b5   :  { %1947 = vmatpush1.bf16.msra.mxu1 %v5783_v7  ;;  %4265 = vmatpush3.bf16.msra.mxu0 %v5948_v41 }
 0x2b6   :  { %1948 = vmatprep.subr.bf16.mxu1 %v5787_v56  ;;  %4266 = vmatprep.subr.bf16.mxu0 %v7005_v63 }
 0x2b9   :  { %1949 = vmatpush1.bf16.msra.mxu1 %v5791_v30  ;;  %4267 = vmatpush3.bf16.msra.mxu0 %v5954_v43 }
 0x2ba   :  { %1950 = vmatprep.subr.bf16.mxu1 %v5795_v11  ;;  %4268 = vmatprep.subr.bf16.mxu0 %v7005_v63 }
 0x2bd   :  { %1951 = vmatpush1.bf16.msra.mxu1 %v5799_v51  ;;  %4269 = vmatpush3.bf16.msra.mxu0 %v5960_v9 }
 0x2be   :  { %1952 = vmatprep.subr.bf16.mxu1 %v5803_v14  ;;  %4270 = vmatprep.subr.bf16.mxu0 %v7005_v63 }
 0x2c1   :  { %1953 = vmatpush1.bf16.msra.mxu1 %v5807_v44  ;;  %4271 = vmatpush3.bf16.msra.mxu0 %v5966_v50 }
 0x2c2   :  { %1954 = vmatprep.subr.bf16.mxu1 %v5811_v18  ;;  %4272 = vmatprep.subr.bf16.mxu0 %v7005_v63 }
 0x2c5   :  { %1955 = vmatpush1.bf16.msra.mxu1 %v5815_v22  ;;  %4273 = vmatpush3.bf16.msra.mxu0 %v5972_v6 }
 0x2c6   :  { %1956 = vmatprep.subr.bf16.mxu1 %v5819_v24  ;;  %4274 = vmatprep.subr.bf16.mxu0 %v7005_v63 }
 0x2c9   :  { %1957 = vmatpush1.bf16.msra.mxu1 %v5977_v62  ;;  %4275 = vmatpush3.bf16.msra.mxu0 %v5980_v55 }
 0x2ca   :  { %2024 = vmatprep.subr.bf16.mxu1 %v5983_v10  ;;  %4280 = vmatprep.subr.bf16.mxu0 %v7005_v63 }
 0x35f   :  { %v1738_v20 = vpop.f32.mrb[32].mxu1  ;;  %v1779_v42 = vpop.f32.mrb[48].mxu0 }
 0x360   :  { %v1739_v4 = vadd.f32 %v1738_v20, %v7016_v8  ;;  %v1740_v21 = vpop.f32.mrb[33].mxu1  ;;  %v4238_v32 = vpop.f32.mrb[49].mxu0 }
 0x361   :  { %v1741_v37 = vadd.f32 %v1740_v21, %v7018_v12  ;;  %v1742_v15 = vpop.f32.mrb[34].mxu1  ;;  %v1782_v53 = vpop.f32.mrb[50].mxu0  ;;  %v1780_v32 = vadd.f32 %v1779_v42, %v5686_v45  ;;  %v7034_v12 = vld [vmem:[#allocation20_spill] sm:$0xff] }
 0x362   :  { %v1879_v29 = vadd.f32 %v1870_v46, %v1739_v4  ;;  %v1743_v35 = vpop.f32.mrb[35].mxu1  ;;  %v4239_v48 = vpop.f32.mrb[51].mxu0  ;;  %v1872_v16 = vunpack.c.l.bf16 %v7034_v12 }
 0x363   :  { %v1886_v28 = vadd.f32 %v1871_v26, %v1741_v37 }
 0x364   :  { %v3889_v47 = vmul.f32 -1.442695, %v1879_v29 }
 0x365   :  { %v3890_v13 = vmul.f32 -1.442695, %v1886_v28 }
 0x366   :  { %4668 = vpow2.f32 %v3889_v47  ;;  %v7035_v47 = vld [vmem:[#allocation26_spill] sm:$0xff] }
 0x367   :  { %4670 = vpow2.f32 %v3890_v13  ;;  %v1876_v37 = vunpack.c.h.bf16 %v7035_v47 }
 0x370   :  { %v4669_v23 = vpop.eup %4668 }
 0x371   :  { %v1883_v20 = vadd.f32 1.0, %v4669_v23  ;;  %v4671_v8 = vpop.eup %4670 }
 0x372   :  { %v1890_v10 = vadd.f32 1.0, %v4671_v8  ;;  %v1877_v8 = vunpack.c.l.bf16 %v5677_v1 }
 0x373   :  { %4672 = vrcp.f32 %v1883_v20 }
 0x374   :  { %4674 = vrcp.f32 %v1890_v10 }
 0x37d   :  { %v4673_v21 = vpop.eup %4672 }
 0x37e   :  { %v1893_v15 = vmul.f32 %v4673_v21, %v1780_v32  ;;  %v4675_v21 = vpop.eup %4674 }
 0x37f   :  { %v1820_v53 = vpop.f32.mrb[36].mxu1  ;;  %v1861_v35 = vpop.f32.mrb[52].mxu0 }
 0x380   :  { %v1894_v48 = vadd.f32 %v1893_v15, %v1872_v16  ;;  %v1821_v26 = vadd.f32 %v1820_v53, %v5689_v60  ;;  %v1822_v13 = vpop.f32.mrb[37].mxu1  ;;  %v4258_v28 = vpop.f32.mrb[53].mxu0  ;;  %v1896_v15 = vsub.f32 1.0, %v4675_v21 }
 0x381   :  { %v1823_v23 = vadd.f32 %v1822_v13, %v5694_v57  ;;  %v1824_v29 = vpop.f32.mrb[38].mxu1  ;;  %v1864_v42 = vpop.f32.mrb[54].mxu0  ;;  %v1898_v28 = vmul.f32 %v4675_v21, %v5852_v19  ;;  %v6035_v21 = vld [vmem:[#allocation6 + $0x50] ss:$12 sps:$4 sm:$0xff]  }
 0x382   :  { %4676 = vtanh.f32 %v1894_v48  ;;  %v1900_v4 = vadd.f32 %v1876_v37, %v1821_v26  ;;  %v1825_v46 = vpop.f32.mrb[39].mxu1  ;;  %v4259_v20 = vpop.f32.mrb[55].mxu0  ;;  %v1862_v42 = vadd.f32 %v1861_v35, %v5722_v54 }
 0x383   :  { %v1907_v10 = vadd.f32 %v1877_v8, %v1823_v23  ;;  %v5998_v13 = vpop.permute.xlu0 %1925  ;;  %v6028_v46 = vld [vmem:[#allocation6 + $0x38] ss:$12 sps:$4 sm:$0xff]   ;;  %v1878_v20 = vunpack.c.h.bf16 %v5677_v1  ;;  %v6041_v1 = vld [vmem:[#allocation6 + $0x68] ss:$12 sps:$4 sm:$0xff]  }
 0x384   :  { %v3891_v32 = vmul.f32 -1.442695, %v1900_v4  ;;  %7036 = vst [vmem:[#allocation19_spill] sm:$0xff] %v5998_v13  ;;  %vm1927_vm15 = vcmp.eq.s32.totalorder %v5998_v13, 1 }
 0x385   :  { %v3892_v16 = vmul.f32 -1.442695, %v1907_v10 }
 0x386   :  { %4678 = vpow2.f32 %v3891_v32 }
 0x387   :  { %4680 = vpow2.f32 %v3892_v16  ;;  %v6046_v16 = vld [vmem:[#allocation6 + $0x78] ss:$12 sps:$4 sm:$0xff]  }
 0x38c   :  { %v4677_v53 = vpop.eup %4676 }
 0x38d   :  { %v1897_v12 = vmul.f32 %v4677_v53, %v1896_v15  ;;  %v6049_v15 = vld [vmem:[#allocation6 + $0x80] ss:$12 sps:$4 sm:$0xff]  }
 0x38e   :  { %v6052_v53 = vld [vmem:[#allocation6 + $0x94] ss:$12 sps:$4 sm:$0xff]  }
 0x38f   :  { %v6000_v47 = vadd.f32 %v1898_v28, %v1897_v12  ;;  %v6012_v12 = vld [vmem:[#allocation6 + $0x8] ss:$12 sps:$4 sm:$0xff]  }
 0x390   :  { %v4679_v29 = vpop.eup %4678 }
 0x391   :  { %7037 = vst [vmem:[#allocation60_spill] sm:$0xff] %v6000_v47  ;;  %v1904_v48 = vadd.f32 1.0, %v4679_v29  ;;  %v6007_v26 = vsel %vm1927_vm15, %v6000_v47, %v5852_v19  ;;  %v4681_v23 = vpop.eup %4680  ;;  %v6021_v19 = vld [vmem:[#allocation6 + $0x20] ss:$12 sps:$4 sm:$0xff]  }
 0x392   :  { %v1941_v37 = vpack.c.bf16 %v6007_v26, %v6007_v26  ;;  %v1911_v8 = vadd.f32 1.0, %v4681_v23 }
 0x393   :  { %4682 = vrcp.f32 %v1904_v48  ;;  %v6056_v48 = vld [vmem:[#allocation6 + $0x90] ss:$12 sps:$4 sm:$0xff]  }
 0x394   :  { %1975 = vmatmul.mubr.bf16.vlgmr.msra.gmra.mrb[40].mxu1 %v1941_v37  ;;  %4277 = vmatmul.mubr.bf16.vlgmr.msra.gmra.mrb[56].mxu0 %v1941_v37  ;;  %4684 = vrcp.f32 %v1911_v8  ;;  %v6059_v37 = vld [vmem:[#allocation6 + $0x98] ss:$12 sps:$4 sm:$0xff]  }
 0x395   :  { %2025 = vmatpush1.bf16.msra.mxu1 %v5856_v61  ;;  %4281 = vmatpush3.bf16.msra.mxu0 %v6012_v12 }
 0x396   :  { %2026 = vmatprep.subr.bf16.mxu1 %v5860_v25  ;;  %4282 = vmatprep.subr.bf16.mxu0 %v7005_v63 }
 0x397   :  { %2056 = vmatprep.mubr.bf16.mxu1 %v7006_v58  ;;  %4296 = vmatprep.mubr.msk.bf16.mxu0 %vm4999_vm4, %v7005_v63 }
 0x399   :  { %2027 = vmatpush1.bf16.msra.mxu1 %v5867_v27  ;;  %4283 = vmatpush3.bf16.msra.mxu0 %v6021_v19 }
 0x39a   :  { %2028 = vmatprep.subr.bf16.mxu1 %v5871_v38  ;;  %4284 = vmatprep.subr.bf16.mxu0 %v7005_v63 }
 0x39d   :  { %v4683_v4 = vpop.eup %4682  ;;  %2029 = vmatpush1.bf16.msra.mxu1 %v5876_v49  ;;  %4285 = vmatpush3.bf16.msra.mxu0 %v6028_v46 }
 0x39e   :  { %v1914_v10 = vmul.f32 %v4683_v4, %v1862_v42  ;;  %2030 = vmatprep.subr.bf16.mxu1 %v5881_v40  ;;  %4286 = vmatprep.subr.bf16.mxu0 %v7005_v63  ;;  %v4685_v35 = vpop.eup %4684  ;;  %v6063_v42 = vld [vmem:[#allocation6 + $0xac] ss:$12 sps:$4 sm:$0xff]   ;;  %v6067_v4 = vpop.permute.xlu1 %1933 }
 0x39f   :  { %v1917_v28 = vsub.f32 1.0, %v4685_v35  ;;  %v1919_v8 = vmul.f32 %v4685_v35, %v5924_v39  ;;  %7038 = vst [vmem:[#allocation61_spill] sm:$0xff] %v6067_v4  ;;  %vm1935_vm0 = vcmp.eq.s32.totalorder %v6067_v4, 1 }
 0x3a0   :  { %v1915_v32 = vadd.f32 %v1914_v10, %v1878_v20  ;;  %v6072_v10 = vld [vmem:[#allocation6 + $0xa8] ss:$12 sps:$4 sm:$0xff]  }
 0x3a1   :  { %2031 = vmatpush1.bf16.msra.mxu1 %v5885_v5  ;;  %4287 = vmatpush3.bf16.msra.mxu0 %v6035_v21 }
 0x3a2   :  { %4686 = vtanh.f32 %v1915_v32  ;;  %2032 = vmatprep.subr.bf16.mxu1 %v5889_v31  ;;  %4288 = vmatprep.subr.bf16.mxu0 %v7005_v63  ;;  %v6075_v32 = vld [vmem:[#allocation6 + $0xb0] ss:$12 sps:$4 sm:$0xff]  }
 0x3a5   :  { %2033 = vmatpush1.bf16.msra.mxu1 %v5893_v34  ;;  %4289 = vmatpush3.bf16.msra.mxu0 %v6041_v1 }
 0x3a6   :  { %2034 = vmatprep.subr.bf16.mxu1 %v5897_v0  ;;  %4290 = vmatprep.subr.bf16.mxu0 %v7005_v63 }
 0x3a9   :  { %2035 = vmatpush1.bf16.msra.mxu1 %v6046_v16  ;;  %4291 = vmatpush3.bf16.msra.mxu0 %v6049_v15 }
 0x3aa   :  { %2036 = vmatprep.subr.bf16.mxu1 %v6052_v53  ;;  %4292 = vmatprep.subr.bf16.mxu0 %v7005_v63 }
 0x3ac   :  { %v4687_v29 = vpop.eup %4686 }
 0x3ad   :  { %2037 = vmatpush1.bf16.msra.mxu1 %v6056_v48  ;;  %4293 = vmatpush3.bf16.msra.mxu0 %v6059_v37  ;;  %v1918_v23 = vmul.f32 %v4687_v29, %v1917_v28 }
 0x3ae   :  { %2038 = vmatprep.subr.bf16.mxu1 %v6063_v42  ;;  %4294 = vmatprep.subr.bf16.mxu0 %v7005_v63 }
 0x3af   :  { %v6069_v20 = vadd.f32 %v1919_v8, %v1918_v23  ;;  %v7041_v8 = vld [vmem:[#allocation29_spill] sm:$0xff] }
 0x3b1   :  { %7039 = vst [vmem:[#allocation62_spill] sm:$0xff] %v6069_v20  ;;  %2039 = vmatpush1.bf16.msra.mxu1 %v6072_v10  ;;  %4295 = vmatpush3.bf16.msra.mxu0 %v6075_v32  ;;  %v6082_v35 = vsel %vm1935_vm0, %v6069_v20, %v5924_v39  ;;  %v7040_v39 = vld [vmem:[#allocation59_spill] sm:$0xff]  ;;  %v7042_v20 = vld [vmem:[#allocation21_spill] sm:$0xff] }
 0x3b2   :  { %v2023_v28 = vpack.c.bf16 %v6082_v35, %v6082_v35  ;;  %2180 = vmatprep.subr.bf16.mxu1 %v5757_v17  ;;  %4300 = vmatprep.subr.bf16.mxu0 %v7005_v63  ;;  %v2108_v47 = vunpack.c.l.bf16 %v7042_v20 }
 0x3b4   :  { %2057 = vmatmul.mubr.bf16.vlgmr.msra.gmra.mrb[44].mxu1 %v2023_v28  ;;  %4297 = vmatmul.mubr.bf16.vlgmr.msra.gmra.mrb[60].mxu0 %v2023_v28 }
 0x3b5   :  { %2181 = vmatpush1.bf16.msra.mxu1 %v5764_v2  ;;  %4301 = vmatpush3.bf16.msra.mxu0 %v5933_v33 }
 0x3b6   :  { %2182 = vmatprep.subr.bf16.mxu1 %v5768_v3  ;;  %4302 = vmatprep.subr.bf16.mxu0 %v7005_v63 }
 0x3b7   :  { %2212 = vmatprep.mubr.bf16.mxu1 %v7006_v58  ;;  %4316 = vmatprep.mubr.msk.bf16.mxu0 %vm4999_vm4, %v7005_v63 }
 0x3b9   :  { %2183 = vmatpush1.bf16.msra.mxu1 %v5775_v52  ;;  %4303 = vmatpush3.bf16.msra.mxu0 %v5942_v36 }
 0x3ba   :  { %2184 = vmatprep.subr.bf16.mxu1 %v5779_v59  ;;  %4304 = vmatprep.subr.bf16.mxu0 %v7005_v63 }
 0x3bd   :  { %2185 = vmatpush1.bf16.msra.mxu1 %v5783_v7  ;;  %4305 = vmatpush3.bf16.msra.mxu0 %v5948_v41 }
 0x3be   :  { %2186 = vmatprep.subr.bf16.mxu1 %v5787_v56  ;;  %4306 = vmatprep.subr.bf16.mxu0 %v7005_v63 }
 0x3c1   :  { %2187 = vmatpush1.bf16.msra.mxu1 %v5791_v30  ;;  %4307 = vmatpush3.bf16.msra.mxu0 %v5954_v43 }
 0x3c2   :  { %2188 = vmatprep.subr.bf16.mxu1 %v5795_v11  ;;  %4308 = vmatprep.subr.bf16.mxu0 %v7005_v63 }
 0x3c5   :  { %2189 = vmatpush1.bf16.msra.mxu1 %v5799_v51  ;;  %4309 = vmatpush3.bf16.msra.mxu0 %v5960_v9 }
 0x3c6   :  { %2190 = vmatprep.subr.bf16.mxu1 %v5803_v14  ;;  %4310 = vmatprep.subr.bf16.mxu0 %v7005_v63 }
 0x3c9   :  { %2191 = vmatpush1.bf16.msra.mxu1 %v5807_v44  ;;  %4311 = vmatpush3.bf16.msra.mxu0 %v5966_v50 }
 0x3ca   :  { %2192 = vmatprep.subr.bf16.mxu1 %v5811_v18  ;;  %4312 = vmatprep.subr.bf16.mxu0 %v7005_v63 }
 0x3cd   :  { %2193 = vmatpush1.bf16.msra.mxu1 %v5815_v22  ;;  %4313 = vmatpush3.bf16.msra.mxu0 %v5972_v6  ;;  %v7043_v6 = vld [vmem:[#allocation32_spill] sm:$0xff]  ;;  %v2109_v22 = vunpack.c.h.bf16 %v7042_v20 }
 0x3ce   :  { %2194 = vmatprep.subr.bf16.mxu1 %v5819_v24  ;;  %4314 = vmatprep.subr.bf16.mxu0 %v7005_v63 }
 0x3d1   :  { %2195 = vmatpush1.bf16.msra.mxu1 %v5977_v62  ;;  %4315 = vmatpush3.bf16.msra.mxu0 %v5980_v55 }
 0x3d2   :  { %2262 = vmatprep.subr.bf16.mxu1 %v7040_v39  ;;  %4320 = vmatprep.subr.bf16.mxu0 %v7005_v63 }
 0x467   :  { %v1976_v29 = vpop.f32.mrb[40].mxu1  ;;  %v2017_v23 = vpop.f32.mrb[56].mxu0 }
 0x468   :  { %v1977_v28 = vadd.f32 %v1976_v29, %v7041_v8  ;;  %v1978_v13 = vpop.f32.mrb[41].mxu1  ;;  %v4278_v4 = vpop.f32.mrb[57].mxu0 }
 0x469   :  { %v1979_v24 = vadd.f32 %v1978_v13, %v7043_v6  ;;  %v1980_v18 = vpop.f32.mrb[42].mxu1  ;;  %v2020_v62 = vpop.f32.mrb[58].mxu0  ;;  %v2018_v4 = vadd.f32 %v2017_v23, %v5686_v45  ;;  %v7044_v6 = vld [vmem:[#allocation22_spill] sm:$0xff] }
 0x46a   :  { %v2117_v50 = vadd.f32 %v2108_v47, %v1977_v28  ;;  %v1981_v55 = vpop.f32.mrb[43].mxu1  ;;  %v4279_v44 = vpop.f32.mrb[59].mxu0  ;;  %v2110_v20 = vunpack.c.l.bf16 %v7044_v6  ;;  %v7046_v47 = vld [vmem:[#allocation37_spill] sm:$0xff] }
 0x46b   :  { %v2124_v39 = vadd.f32 %v2109_v22, %v1979_v24 }
 0x46c   :  { %v3893_v14 = vmul.f32 -1.442695, %v2117_v50 }
 0x46d   :  { %v3894_v9 = vmul.f32 -1.442695, %v2124_v39  ;;  %v2115_v39 = vunpack.c.l.bf16 %v7046_v47 }
 0x46e   :  { %4688 = vpow2.f32 %v3893_v14  ;;  %v7045_v14 = vld [vmem:[#allocation24_spill] sm:$0xff] }
 0x46f   :  { %4690 = vpow2.f32 %v3894_v9  ;;  %v2114_v24 = vunpack.c.h.bf16 %v7045_v14 }
 0x478   :  { %v4689_v51 = vpop.eup %4688 }
 0x479   :  { %v2121_v29 = vadd.f32 1.0, %v4689_v51  ;;  %v4691_v8 = vpop.eup %4690 }
 0x47a   :  { %v2128_v11 = vadd.f32 1.0, %v4691_v8 }
 0x47b   :  { %4692 = vrcp.f32 %v2121_v29 }
 0x47c   :  { %4694 = vrcp.f32 %v2128_v11 }
 0x485   :  { %v4693_v13 = vpop.eup %4692 }
 0x486   :  { %v2131_v18 = vmul.f32 %v4693_v13, %v2018_v4 }
 0x487   :  { %v2058_v62 = vpop.f32.mrb[44].mxu1  ;;  %v2099_v55 = vpop.f32.mrb[60].mxu0 }
 0x488   :  { %v2132_v44 = vadd.f32 %v2131_v18, %v2110_v20  ;;  %v2059_v22 = vadd.f32 %v2058_v62, %v5689_v60  ;;  %v2060_v9 = vpop.f32.mrb[45].mxu1  ;;  %v4298_v50 = vpop.f32.mrb[61].mxu0 }
 0x489   :  { %v2061_v51 = vadd.f32 %v2060_v9, %v5694_v57  ;;  %v2062_v8 = vpop.f32.mrb[46].mxu1  ;;  %v2102_v23 = vpop.f32.mrb[62].mxu0 }
 0x48a   :  { %4696 = vtanh.f32 %v2132_v44  ;;  %v2138_v28 = vadd.f32 %v2114_v24, %v2059_v22  ;;  %v2063_v29 = vpop.f32.mrb[47].mxu1  ;;  %v4299_v4 = vpop.f32.mrb[63].mxu0  ;;  %v2116_v23 = vunpack.c.h.bf16 %v7046_v47 }
 0x48b   :  { %v2145_v11 = vadd.f32 %v2115_v39, %v2061_v51  ;;  %v4695_v20 = vpop.eup %4694  ;;  %v6133_v60 = vpop.permute.xlu0 %2163  ;;  %v2100_v51 = vadd.f32 %v2099_v55, %v5722_v54 }
 0x48c   :  { %v3895_v13 = vmul.f32 -1.442695, %v2138_v28  ;;  %v2134_v62 = vsub.f32 1.0, %v4695_v20  ;;  %v2136_v9 = vmul.f32 %v4695_v20, %v6007_v26  ;;  %vm2165_vm1 = vcmp.eq.s32.totalorder %v6133_v60, 1 }
 0x48d   :  { %v3896_v18 = vmul.f32 -1.442695, %v2145_v11  ;;  %v6176_v11 = vpop.permute.xlu1 %2171 }
 0x48e   :  { %4698 = vpow2.f32 %v3895_v13  ;;  %vm2173_vm2 = vcmp.eq.s32.totalorder %v6176_v11, 1 }
 0x48f   :  { %4700 = vpow2.f32 %v3896_v18 }
 0x494   :  { %v4697_v6 = vpop.eup %4696 }
 0x495   :  { %v2135_v50 = vmul.f32 %v4697_v6, %v2134_v62 }
 0x497   :  { %v6136_v57 = vadd.f32 %v2136_v9, %v2135_v50  ;;  %v7058_v9 = vld [vmem:[#allocation49_spill] sm:$0xff] }
 0x498   :  { %v4699_v8 = vpop.eup %4698 }
 0x499   :  { %7047 = vst [vmem:[#allocation21_spill] sm:$0xff] %v6136_v57  ;;  %v2142_v44 = vadd.f32 1.0, %v4699_v8  ;;  %v6143_v22 = vsel %vm2165_vm1, %v6136_v57, %v6007_v26  ;;  %v4701_v6 = vpop.eup %4700  ;;  %v7059_v8 = vld [vmem:[#allocation57_spill] sm:$0xff] }
 0x49a   :  { %v2179_v24 = vpack.c.bf16 %v6143_v22, %v6143_v22  ;;  %v2149_v26 = vadd.f32 1.0, %v4701_v6 }
 0x49b   :  { %4702 = vrcp.f32 %v2142_v44  ;;  %v7060_v44 = vld [vmem:[#allocation58_spill] sm:$0xff] }
 0x49c   :  { %2213 = vmatmul.mubr.bf16.vlgmr.msra.gmra.mrb[48].mxu1 %v2179_v24  ;;  %4317 = vmatmul.mubr.bf16.vlgmr.msra.gmra.mrb[64].mxu0 %v2179_v24  ;;  %4704 = vrcp.f32 %v2149_v26  ;;  %v7061_v24 = vld [vmem:[#allocation59_spill] sm:$0xff] }
 0x49d   :  { %2263 = vmatpush1.bf16.msra.mxu1 %v5856_v61  ;;  %4321 = vmatpush3.bf16.msra.mxu0 %v6012_v12 }
 0x49e   :  { %2264 = vmatprep.subr.bf16.mxu1 %v5860_v25  ;;  %4322 = vmatprep.subr.bf16.mxu0 %v7005_v63 }
 0x49f   :  { %2294 = vmatprep.mubr.bf16.mxu1 %v7006_v58  ;;  %4336 = vmatprep.mubr.msk.bf16.mxu0 %vm4999_vm4, %v7005_v63 }
 0x4a1   :  { %2265 = vmatpush1.bf16.msra.mxu1 %v5867_v27  ;;  %4323 = vmatpush3.bf16.msra.mxu0 %v6021_v19 }
 0x4a2   :  { %2266 = vmatprep.subr.bf16.mxu1 %v5871_v38  ;;  %4324 = vmatprep.subr.bf16.mxu0 %v7005_v63 }
 0x4a5   :  { %v4703_v39 = vpop.eup %4702  ;;  %2267 = vmatpush1.bf16.msra.mxu1 %v5876_v49  ;;  %4325 = vmatpush3.bf16.msra.mxu0 %v6028_v46 }
 0x4a6   :  { %v2152_v28 = vmul.f32 %v4703_v39, %v2100_v51  ;;  %2268 = vmatprep.subr.bf16.mxu1 %v5881_v40  ;;  %4326 = vmatprep.subr.bf16.mxu0 %v7005_v63  ;;  %v4705_v55 = vpop.eup %4704  ;;  %v7062_v51 = vld [vmem:[#allocation29_spill] sm:$0xff] }
 0x4a7   :  { %v2155_v47 = vsub.f32 1.0, %v4705_v55  ;;  %v2157_v20 = vmul.f32 %v4705_v55, %v6082_v35 }
 0x4a8   :  { %v2153_v29 = vadd.f32 %v2152_v28, %v2116_v23  ;;  %v7063_v23 = vld [vmem:[#allocation23_spill] sm:$0xff] }
 0x4a9   :  { %2269 = vmatpush1.bf16.msra.mxu1 %v5885_v5  ;;  %4327 = vmatpush3.bf16.msra.mxu0 %v6035_v21  ;;  %v2345_v28 = vunpack.c.l.bf16 %v7063_v23 }
 0x4aa   :  { %4706 = vtanh.f32 %v2153_v29  ;;  %2270 = vmatprep.subr.bf16.mxu1 %v5889_v31  ;;  %4328 = vmatprep.subr.bf16.mxu0 %v7005_v63 }
 0x4ad   :  { %2271 = vmatpush1.bf16.msra.mxu1 %v5893_v34  ;;  %4329 = vmatpush3.bf16.msra.mxu0 %v6041_v1 }
 0x4ae   :  { %2272 = vmatprep.subr.bf16.mxu1 %v5897_v0  ;;  %4330 = vmatprep.subr.bf16.mxu0 %v7005_v63 }
 0x4b1   :  { %2273 = vmatpush1.bf16.msra.mxu1 %v6046_v16  ;;  %4331 = vmatpush3.bf16.msra.mxu0 %v6049_v15 }
 0x4b2   :  { %2274 = vmatprep.subr.bf16.mxu1 %v6052_v53  ;;  %4332 = vmatprep.subr.bf16.mxu0 %v7005_v63 }
 0x4b4   :  { %v4707_v4 = vpop.eup %4706 }
 0x4b5   :  { %2275 = vmatpush1.bf16.msra.mxu1 %v6056_v48  ;;  %4333 = vmatpush3.bf16.msra.mxu0 %v6059_v37  ;;  %v2156_v13 = vmul.f32 %v4707_v4, %v2155_v47  ;;  %v7064_v47 = vld [vmem:[#allocation32_spill] sm:$0xff] }
 0x4b6   :  { %2276 = vmatprep.subr.bf16.mxu1 %v6063_v42  ;;  %4334 = vmatprep.subr.bf16.mxu0 %v7005_v63 }
 0x4b7   :  { %v6183_v18 = vadd.f32 %v2157_v20, %v2156_v13  ;;  %v2346_v13 = vunpack.c.h.bf16 %v7063_v23  ;;  %v2347_v23 = vunpack.c.l.bf16 %v7045_v14 }
 0x4b9   :  { %7048 = vst [vmem:[#allocation24_spill] sm:$0xff] %v6183_v18  ;;  %2277 = vmatpush1.bf16.msra.mxu1 %v6072_v10  ;;  %4335 = vmatpush3.bf16.msra.mxu0 %v6075_v32  ;;  %v6192_v62 = vsel %vm2173_vm2, %v6183_v18, %v6082_v35  ;;  %v7057_v35 = vld [vmem:[#allocation56_spill] sm:$0xff] }
 0x4ba   :  { %v2261_v50 = vpack.c.bf16 %v6192_v62, %v6192_v62  ;;  %2402 = vmatprep.subr.bf16.mxu1 %v5757_v17  ;;  %4340 = vmatprep.subr.bf16.mxu0 %v7005_v63  ;;  %v7049_v17 = vld [vmem:[#allocation43_spill] sm:$0xff] }
 0x4bc   :  { %2295 = vmatmul.mubr.bf16.vlgmr.msra.gmra.mrb[52].mxu1 %v2261_v50  ;;  %4337 = vmatmul.mubr.bf16.vlgmr.msra.gmra.mrb[68].mxu0 %v2261_v50 }
 0x4bd   :  { %2403 = vmatpush1.bf16.msra.mxu1 %v5764_v2  ;;  %4341 = vmatpush3.bf16.msra.mxu0 %v5933_v33  ;;  %v7050_v2 = vld [vmem:[#allocation44_spill] sm:$0xff] }
 0x4be   :  { %2404 = vmatprep.subr.bf16.mxu1 %v5768_v3  ;;  %4342 = vmatprep.subr.bf16.mxu0 %v7005_v63  ;;  %v7051_v3 = vld [vmem:[#allocation54_spill] sm:$0xff] }
 0x4bf   :  { %2434 = vmatprep.mubr.bf16.mxu1 %v7006_v58  ;;  %4356 = vmatprep.mubr.msk.bf16.mxu0 %vm4999_vm4, %v7005_v63 }
 0x4c1   :  { %2405 = vmatpush1.bf16.msra.mxu1 %v5775_v52  ;;  %4343 = vmatpush3.bf16.msra.mxu0 %v5942_v36  ;;  %v7052_v52 = vld [vmem:[#allocation45_spill] sm:$0xff] }
 0x4c2   :  { %2406 = vmatprep.subr.bf16.mxu1 %v5779_v59  ;;  %4344 = vmatprep.subr.bf16.mxu0 %v7005_v63  ;;  %v7053_v59 = vld [vmem:[#allocation46_spill] sm:$0xff] }
 0x4c5   :  { %2407 = vmatpush1.bf16.msra.mxu1 %v5783_v7  ;;  %4345 = vmatpush3.bf16.msra.mxu0 %v5948_v41  ;;  %v7054_v7 = vld [vmem:[#allocation55_spill] sm:$0xff] }
 0x4c6   :  { %2408 = vmatprep.subr.bf16.mxu1 %v5787_v56  ;;  %4346 = vmatprep.subr.bf16.mxu0 %v7005_v63  ;;  %v7055_v56 = vld [vmem:[#allocation47_spill] sm:$0xff] }
 0x4c9   :  { %2409 = vmatpush1.bf16.msra.mxu1 %v5791_v30  ;;  %4347 = vmatpush3.bf16.msra.mxu0 %v5954_v43  ;;  %v7056_v30 = vld [vmem:[#allocation48_spill] sm:$0xff] }
 0x4ca   :  { %2410 = vmatprep.subr.bf16.mxu1 %v7049_v17  ;;  %4348 = vmatprep.subr.bf16.mxu0 %v7005_v63 }
 0x4cd   :  { %2411 = vmatpush1.bf16.msra.mxu1 %v7050_v2  ;;  %4349 = vmatpush3.bf16.msra.mxu0 %v7051_v3 }
 0x4ce   :  { %2412 = vmatprep.subr.bf16.mxu1 %v7052_v52  ;;  %4350 = vmatprep.subr.bf16.mxu0 %v7005_v63 }
 0x4d1   :  { %2413 = vmatpush1.bf16.msra.mxu1 %v7053_v59  ;;  %4351 = vmatpush3.bf16.msra.mxu0 %v7054_v7 }
 0x4d2   :  { %2414 = vmatprep.subr.bf16.mxu1 %v7055_v56  ;;  %4352 = vmatprep.subr.bf16.mxu0 %v7005_v63 }
 0x4d5   :  { %2415 = vmatpush1.bf16.msra.mxu1 %v7056_v30  ;;  %4353 = vmatpush3.bf16.msra.mxu0 %v7057_v35 }
 0x4d6   :  { %2416 = vmatprep.subr.bf16.mxu1 %v7058_v9  ;;  %4354 = vmatprep.subr.bf16.mxu0 %v7005_v63 }
 0x4d9   :  { %2417 = vmatpush1.bf16.msra.mxu1 %v7059_v8  ;;  %4355 = vmatpush3.bf16.msra.mxu0 %v7060_v44 }
 0x4da   :  { %2484 = vmatprep.subr.bf16.mxu1 %v7061_v24  ;;  %4360 = vmatprep.subr.bf16.mxu0 %v7005_v63 }
 0x56f   :  { %v2214_v6 = vpop.f32.mrb[48].mxu1  ;;  %v2255_v26 = vpop.f32.mrb[64].mxu0 }
 0x570   :  { %v2215_v39 = vadd.f32 %v2214_v6, %v7062_v51  ;;  %v2216_v29 = vpop.f32.mrb[49].mxu1  ;;  %v4318_v55 = vpop.f32.mrb[65].mxu0 }
 0x571   :  { %v2217_v4 = vadd.f32 %v2216_v29, %v7064_v47  ;;  %v2218_v20 = vpop.f32.mrb[50].mxu1  ;;  %v2258_v50 = vpop.f32.mrb[66].mxu0  ;;  %v2256_v55 = vadd.f32 %v2255_v26, %v5686_v45 }
 0x572   :  { %v2353_v17 = vadd.f32 %v2345_v28, %v2215_v39  ;;  %v2219_v2 = vpop.f32.mrb[51].mxu1  ;;  %v4319_v52 = vpop.f32.mrb[67].mxu0 }
 0x573   :  { %v2360_v59 = vadd.f32 %v2346_v13, %v2217_v4  ;;  %v7065_v4 = vld [vmem:[#allocation39_spill] sm:$0xff] }
 0x574   :  { %v3897_v56 = vmul.f32 -1.442695, %v2353_v17  ;;  %v7066_v17 = vld [vmem:[#allocation22_spill] sm:$0xff] }
 0x575   :  { %v3898_v30 = vmul.f32 -1.442695, %v2360_v59  ;;  %v2350_v2 = vunpack.c.h.bf16 %v7066_v17 }
 0x576   :  { %4708 = vpow2.f32 %v3897_v56  ;;  %v7067_v56 = vld [vmem:[#allocation40_spill] sm:$0xff] }
 0x577   :  { %4710 = vpow2.f32 %v3898_v30 }
 0x580   :  { %v4709_v9 = vpop.eup %4708 }
 0x581   :  { %v2357_v6 = vadd.f32 1.0, %v4709_v9  ;;  %v4711_v57 = vpop.eup %4710  ;;  %v7068_v9 = vld [vmem:[#allocation36_spill] sm:$0xff] }
 0x582   :  { %v2364_v18 = vadd.f32 1.0, %v4711_v57  ;;  %v2351_v57 = vunpack.c.l.bf16 %v7068_v9 }
 0x583   :  { %4712 = vrcp.f32 %v2357_v6 }
 0x584   :  { %4714 = vrcp.f32 %v2364_v18 }
 0x58d   :  { %v4713_v29 = vpop.eup %4712 }
 0x58e   :  { %v2367_v20 = vmul.f32 %v4713_v29, %v2256_v55 }
 0x58f   :  { %v2296_v39 = vpop.f32.mrb[52].mxu1  ;;  %v2337_v28 = vpop.f32.mrb[68].mxu0 }
 0x590   :  { %v2368_v50 = vadd.f32 %v2367_v20, %v2347_v23  ;;  %v2297_v13 = vadd.f32 %v2296_v39, %v7065_v4  ;;  %v2298_v52 = vpop.f32.mrb[53].mxu1  ;;  %v4338_v59 = vpop.f32.mrb[69].mxu0 }
 0x591   :  { %v2299_v30 = vadd.f32 %v2298_v52, %v7067_v56  ;;  %v2300_v6 = vpop.f32.mrb[54].mxu1  ;;  %v2340_v26 = vpop.f32.mrb[70].mxu0 }
 0x592   :  { %4716 = vtanh.f32 %v2368_v50  ;;  %v2374_v45 = vadd.f32 %v2350_v2, %v2297_v13  ;;  %v2301_v14 = vpop.f32.mrb[55].mxu1  ;;  %v4339_v55 = vpop.f32.mrb[71].mxu0  ;;  %v2352_v13 = vunpack.c.h.bf16 %v7068_v9  ;;  %v6308_v9 = vld [vmem:[#allocation4 + $0x1c] ss:$12 sps:$4 sm:$0xff]   ;;  %v6327_v26 = vld [vmem:[#allocation4 + $0x4c] ss:$12 sps:$4 sm:$0xff]  }
 0x593   :  { %v2381_v18 = vadd.f32 %v2351_v57, %v2299_v30  ;;  %v4715_v23 = vpop.eup %4714  ;;  %v6304_v30 = vld [vmem:[#allocation4] ss:$12 sps:$4 sm:$0xff]   ;;  %v6331_v14 = vld [vmem:[#allocation4 + $0x48] ss:$12 sps:$4 sm:$0xff]  }
 0x594   :  { %v3899_v29 = vmul.f32 -1.442695, %v2374_v45  ;;  %v2370_v39 = vsub.f32 1.0, %v4715_v23  ;;  %v2372_v59 = vmul.f32 %v4715_v23, %v6143_v22  ;;  %v6319_v57 = vld [vmem:[#allocation4 + $0x34] ss:$12 sps:$4 sm:$0xff]  }
 0x595   :  { %v3900_v20 = vmul.f32 -1.442695, %v2381_v18  ;;  %v6339_v55 = vld [vmem:[#allocation4 + $0x60] ss:$12 sps:$4 sm:$0xff]   ;;  %v6347_v18 = vld [vmem:[#allocation4 + $0x78] ss:$12 sps:$4 sm:$0xff]  }
 0x596   :  { %4718 = vpow2.f32 %v3899_v29  ;;  %v6355_v29 = vld [vmem:[#allocation4 + $0x90] ss:$12 sps:$4 sm:$0xff]  }
 0x597   :  { %4720 = vpow2.f32 %v3900_v20 }
 0x59c   :  { %v4717_v4 = vpop.eup %4716 }
 0x59d   :  { %v2371_v17 = vmul.f32 %v4717_v4, %v2370_v39  ;;  %v7069_v39 = vld [vmem:[#allocation25_spill] sm:$0xff] }
 0x59f   :  { %v6244_v52 = vadd.f32 %v2372_v59, %v2371_v17 }
 0x5a0   :  { %v4719_v56 = vpop.eup %4718 }
 0x5a1   :  { %v2378_v6 = vadd.f32 1.0, %v4719_v56  ;;  %v6250_v50 = vsel %vm2173_vm2, %v6244_v52, %v6143_v22  ;;  %v4721_v4 = vpop.eup %4720  ;;  %v6300_v56 = vld [vmem:[#allocation4 + $0x4] ss:$12 sps:$4 sm:$0xff]  }
 0x5a2   :  { %v2401_v45 = vpack.c.bf16 %v6250_v50, %v6250_v50  ;;  %v2385_v22 = vadd.f32 1.0, %v4721_v4 }
 0x5a3   :  { %4722 = vrcp.f32 %v2378_v6 }
 0x5a4   :  { %2435 = vmatmul.mubr.bf16.vlgmr.msra.gmra.mrb[56].mxu1 %v2401_v45  ;;  %4357 = vmatmul.mubr.bf16.vlgmr.msra.gmra.mrb[72].mxu0 %v2401_v45  ;;  %4724 = vrcp.f32 %v2385_v22  ;;  %v2568_v45 = vunpack.c.h.bf16 %v7069_v39 }
 0x5a5   :  { %2485 = vmatpush1.bf16.msra.mxu1 %v5856_v61  ;;  %4361 = vmatpush3.bf16.msra.mxu0 %v6012_v12  ;;  %v2338_v61 = vadd.f32 %v2337_v28, %v5722_v54 }
 0x5a6   :  { %2486 = vmatprep.subr.bf16.mxu1 %v5860_v25  ;;  %4362 = vmatprep.subr.bf16.mxu0 %v7005_v63 }
 0x5a7   :  { %2516 = vmatprep.mubr.bf16.mxu1 %v7006_v58  ;;  %4376 = vmatprep.mubr.msk.bf16.mxu0 %vm4999_vm4, %v7005_v63 }
 0x5a9   :  { %2487 = vmatpush1.bf16.msra.mxu1 %v5867_v27  ;;  %4363 = vmatpush3.bf16.msra.mxu0 %v6021_v19 }
 0x5aa   :  { %2488 = vmatprep.subr.bf16.mxu1 %v5871_v38  ;;  %4364 = vmatprep.subr.bf16.mxu0 %v7005_v63 }
 0x5ad   :  { %v4723_v25 = vpop.eup %4722  ;;  %2489 = vmatpush1.bf16.msra.mxu1 %v5876_v49  ;;  %4365 = vmatpush3.bf16.msra.mxu0 %v6028_v46 }
 0x5ae   :  { %v2388_v2 = vmul.f32 %v4723_v25, %v2338_v61  ;;  %2490 = vmatprep.subr.bf16.mxu1 %v5881_v40  ;;  %4366 = vmatprep.subr.bf16.mxu0 %v7005_v63  ;;  %v4725_v38 = vpop.eup %4724 }
 0x5af   :  { %v2391_v49 = vsub.f32 1.0, %v4725_v38 }
 0x5b0   :  { %v2389_v27 = vadd.f32 %v2388_v2, %v2352_v13 }
 0x5b1   :  { %2491 = vmatpush1.bf16.msra.mxu1 %v5885_v5  ;;  %4367 = vmatpush3.bf16.msra.mxu0 %v6035_v21 }
 0x5b2   :  { %4726 = vtanh.f32 %v2389_v27  ;;  %2492 = vmatprep.subr.bf16.mxu1 %v5889_v31  ;;  %4368 = vmatprep.subr.bf16.mxu0 %v7005_v63  ;;  %v2393_v31 = vmul.f32 %v4725_v38, %v6192_v62 }
 0x5b5   :  { %2493 = vmatpush1.bf16.msra.mxu1 %v5893_v34  ;;  %4369 = vmatpush3.bf16.msra.mxu0 %v6041_v1 }
 0x5b6   :  { %2494 = vmatprep.subr.bf16.mxu1 %v5897_v0  ;;  %4370 = vmatprep.subr.bf16.mxu0 %v7005_v63 }
 0x5b9   :  { %2495 = vmatpush1.bf16.msra.mxu1 %v6046_v16  ;;  %4371 = vmatpush3.bf16.msra.mxu0 %v6049_v15 }
 0x5ba   :  { %2496 = vmatprep.subr.bf16.mxu1 %v6052_v53  ;;  %4372 = vmatprep.subr.bf16.mxu0 %v7005_v63 }
 0x5bc   :  { %v4727_v40 = vpop.eup %4726 }
 0x5bd   :  { %2497 = vmatpush1.bf16.msra.mxu1 %v6056_v48  ;;  %4373 = vmatpush3.bf16.msra.mxu0 %v6059_v37  ;;  %v2392_v5 = vmul.f32 %v4727_v40, %v2391_v49  ;;  %v7070_v40 = vld [vmem:[#allocation38_spill] sm:$0xff] }
 0x5be   :  { %2498 = vmatprep.subr.bf16.mxu1 %v6063_v42  ;;  %4374 = vmatprep.subr.bf16.mxu0 %v7005_v63 }
 0x5bf   :  { %v6288_v34 = vadd.f32 %v2393_v31, %v2392_v5 }
 0x5c1   :  { %2499 = vmatpush1.bf16.msra.mxu1 %v6072_v10  ;;  %4375 = vmatpush3.bf16.msra.mxu0 %v6075_v32  ;;  %v6296_v0 = vsel %vm2165_vm1, %v6288_v34, %v6192_v62  ;;  %v6315_v62 = vld [vmem:[#allocation4 + $0x18] ss:$12 sps:$4 sm:$0xff]  }
 0x5c2   :  { %v2483_v28 = vpack.c.bf16 %v6296_v0, %v6296_v0  ;;  %2624 = vmatprep.subr.bf16.mxu1 %v6300_v56  ;;  %4380 = vmatprep.subr.bf16.mxu0 %v7005_v63 }
 0x5c4   :  { %2517 = vmatmul.mubr.bf16.vlgmr.msra.gmra.mrb[60].mxu1 %v2483_v28  ;;  %4377 = vmatmul.mubr.bf16.vlgmr.msra.gmra.mrb[76].mxu0 %v2483_v28  ;;  %v7071_v28 = vld [vmem:[#allocation26_spill] sm:$0xff] }
 0x5c5   :  { %2625 = vmatpush1.bf16.msra.mxu1 %v6304_v30  ;;  %4381 = vmatpush3.bf16.msra.mxu0 %v5933_v33  ;;  %v6323_v33 = vld [vmem:[#allocation4 + $0x30] ss:$12 sps:$4 sm:$0xff]  }
 0x5c6   :  { %2626 = vmatprep.subr.bf16.mxu1 %v6308_v9  ;;  %4382 = vmatprep.subr.bf16.mxu0 %v7005_v63 }
 0x5c7   :  { %2656 = vmatprep.mubr.bf16.mxu1 %v7006_v58  ;;  %4396 = vmatprep.mubr.msk.bf16.mxu0 %vm4999_vm4, %v7005_v63 }
 0x5c9   :  { %2627 = vmatpush1.bf16.msra.mxu1 %v6315_v62  ;;  %4383 = vmatpush3.bf16.msra.mxu0 %v5942_v36  ;;  %v6335_v36 = vld [vmem:[#allocation4 + $0x64] ss:$12 sps:$4 sm:$0xff]  }
 0x5ca   :  { %2628 = vmatprep.subr.bf16.mxu1 %v6319_v57  ;;  %4384 = vmatprep.subr.bf16.mxu0 %v7005_v63 }
 0x5cd   :  { %2629 = vmatpush1.bf16.msra.mxu1 %v6323_v33  ;;  %4385 = vmatpush3.bf16.msra.mxu0 %v5948_v41  ;;  %v6343_v41 = vld [vmem:[#allocation4 + $0x7c] ss:$12 sps:$4 sm:$0xff]  }
 0x5ce   :  { %2630 = vmatprep.subr.bf16.mxu1 %v6327_v26  ;;  %4386 = vmatprep.subr.bf16.mxu0 %v7005_v63 }
 0x5d1   :  { %2631 = vmatpush1.bf16.msra.mxu1 %v6331_v14  ;;  %4387 = vmatpush3.bf16.msra.mxu0 %v5954_v43  ;;  %v6351_v43 = vld [vmem:[#allocation4 + $0x94] ss:$12 sps:$4 sm:$0xff]  }
 0x5d2   :  { %2632 = vmatprep.subr.bf16.mxu1 %v6335_v36  ;;  %4388 = vmatprep.subr.bf16.mxu0 %v7005_v63 }
 0x5d5   :  { %2633 = vmatpush1.bf16.msra.mxu1 %v6339_v55  ;;  %4389 = vmatpush3.bf16.msra.mxu0 %v7051_v3  ;;  %v6359_v3 = vld [vmem:[#allocation4 + $0xac] ss:$12 sps:$4 sm:$0xff]  }
 0x5d6   :  { %2634 = vmatprep.subr.bf16.mxu1 %v6343_v41  ;;  %4390 = vmatprep.subr.bf16.mxu0 %v7005_v63 }
 0x5d9   :  { %2635 = vmatpush1.bf16.msra.mxu1 %v6347_v18  ;;  %4391 = vmatpush3.bf16.msra.mxu0 %v7054_v7 }
 0x5da   :  { %2636 = vmatprep.subr.bf16.mxu1 %v6351_v43  ;;  %4392 = vmatprep.subr.bf16.mxu0 %v7005_v63 }
 0x5dd   :  { %2637 = vmatpush1.bf16.msra.mxu1 %v6355_v29  ;;  %4393 = vmatpush3.bf16.msra.mxu0 %v7057_v35  ;;  %v2567_v35 = vunpack.c.l.bf16 %v7069_v39 }
 0x5de   :  { %2638 = vmatprep.subr.bf16.mxu1 %v6359_v3  ;;  %4394 = vmatprep.subr.bf16.mxu0 %v7005_v63 }
 0x5e1   :  { %2639 = vmatpush1.bf16.msra.mxu1 %v7059_v8  ;;  %4395 = vmatpush3.bf16.msra.mxu0 %v7060_v44 }
 0x5e2   :  { %2706 = vmatprep.subr.bf16.mxu1 %v7061_v24  ;;  %4400 = vmatprep.subr.bf16.mxu0 %v7005_v63 }
 0x677   :  { %v2436_v7 = vpop.f32.mrb[56].mxu1  ;;  %v2477_v23 = vpop.f32.mrb[72].mxu0 }
 0x678   :  { %v2437_v20 = vadd.f32 %v2436_v7, %v7062_v51  ;;  %v2438_v17 = vpop.f32.mrb[57].mxu1  ;;  %v4358_v59 = vpop.f32.mrb[73].mxu0  ;;  %v2478_v5 = vadd.f32 %v2477_v23, %v7070_v40  ;;  %v2569_v7 = vunpack.c.l.bf16 %v7071_v28 }
 0x679   :  { %v2439_v6 = vadd.f32 %v2438_v17, %v7064_v47  ;;  %v2440_v4 = vpop.f32.mrb[58].mxu1  ;;  %v2480_v8 = vpop.f32.mrb[74].mxu0  ;;  %v7072_v59 = vld [vmem:[#allocation39_spill] sm:$0xff] }
 0x67a   :  { %v2575_v22 = vadd.f32 %v2567_v35, %v2437_v20  ;;  %v2441_v44 = vpop.f32.mrb[59].mxu1  ;;  %v4359_v61 = vpop.f32.mrb[75].mxu0 }
 0x67b   :  { %v2582_v24 = vadd.f32 %v2568_v45, %v2439_v6  ;;  %v7073_v45 = vld [vmem:[#allocation20_spill] sm:$0xff] }
 0x67c   :  { %v3901_v25 = vmul.f32 -1.442695, %v2575_v22  ;;  %v2572_v4 = vunpack.c.h.bf16 %v7073_v45  ;;  %v7074_v44 = vld [vmem:[#allocation40_spill] sm:$0xff] }
 0x67d   :  { %v3902_v13 = vmul.f32 -1.442695, %v2582_v24  ;;  %v7075_v24 = vld [vmem:[#allocation35_spill] sm:$0xff] }
 0x67e   :  { %4728 = vpow2.f32 %v3901_v25  ;;  %v2573_v25 = vunpack.c.l.bf16 %v7075_v24 }
 0x67f   :  { %4730 = vpow2.f32 %v3902_v13 }
 0x688   :  { %v4729_v2 = vpop.eup %4728 }
 0x689   :  { %v2579_v27 = vadd.f32 1.0, %v4729_v2  ;;  %v4731_v38 = vpop.eup %4730 }
 0x68a   :  { %v2586_v49 = vadd.f32 1.0, %v4731_v38 }
 0x68b   :  { %4732 = vrcp.f32 %v2579_v27 }
 0x68c   :  { %4734 = vrcp.f32 %v2586_v49 }
 0x695   :  { %v4733_v31 = vpop.eup %4732 }
 0x696   :  { %v2589_v39 = vmul.f32 %v4733_v31, %v2478_v5  ;;  %v4735_v31 = vpop.eup %4734 }
 0x697   :  { %v2518_v20 = vpop.f32.mrb[60].mxu1  ;;  %v2559_v35 = vpop.f32.mrb[76].mxu0  ;;  %v2594_v45 = vmul.f32 %v4735_v31, %v6250_v50 }
 0x698   :  { %v2590_v17 = vadd.f32 %v2589_v39, %v2569_v7  ;;  %v2519_v6 = vadd.f32 %v2518_v20, %v7072_v59  ;;  %v2520_v8 = vpop.f32.mrb[61].mxu1  ;;  %v4378_v22 = vpop.f32.mrb[77].mxu0  ;;  %v2592_v7 = vsub.f32 1.0, %v4735_v31 }
 0x699   :  { %v2521_v61 = vadd.f32 %v2520_v8, %v7074_v44  ;;  %v2522_v13 = vpop.f32.mrb[62].mxu1  ;;  %v2562_v23 = vpop.f32.mrb[78].mxu0 }
 0x69a   :  { %4736 = vtanh.f32 %v2590_v17  ;;  %v2596_v2 = vadd.f32 %v2572_v4, %v2519_v6  ;;  %v2523_v27 = vpop.f32.mrb[63].mxu1  ;;  %v4379_v38 = vpop.f32.mrb[79].mxu0  ;;  %v6399_v23 = vld [vmem:[#allocation6 + $0x18] ss:$12 sps:$4 sm:$0xff]   ;;  %v4624_v17 = vld [vmem:[#allocation8 + $0x70] sm:$0xff]  }
 0x69b   :  { %v2603_v49 = vadd.f32 %v2573_v25, %v2521_v61  ;;  %v6388_v61 = vld [vmem:[#allocation6] ss:$12 sps:$4 sm:$0xff]   ;;  %v6392_v25 = vld [vmem:[#allocation6 + $0x1c] ss:$12 sps:$4 sm:$0xff]   ;;  %v2560_v27 = vadd.f32 %v2559_v35, %v5722_v54  ;;  %v6421_v35 = vld [vmem:[#allocation6 + $0x64] ss:$12 sps:$4 sm:$0xff]  }
 0x69c   :  { %v3903_v5 = vmul.f32 -1.442695, %v2596_v2 }
 0x69d   :  { %v3904_v28 = vmul.f32 -1.442695, %v2603_v49  ;;  %v6408_v49 = vld [vmem:[#allocation6 + $0x30] ss:$12 sps:$4 sm:$0xff]  }
 0x69e   :  { %4738 = vpow2.f32 %v3903_v5  ;;  %v2574_v5 = vunpack.c.h.bf16 %v7075_v24  ;;  %v6429_v24 = vld [vmem:[#allocation6 + $0x7c] ss:$12 sps:$4 sm:$0xff]  }
 0x69f   :  { %4740 = vpow2.f32 %v3904_v28 }
 0x6a4   :  { %v4737_v39 = vpop.eup %4736 }
 0x6a5   :  { %v2593_v20 = vmul.f32 %v4737_v39, %v2592_v7  ;;  %v6417_v7 = vld [vmem:[#allocation6 + $0x48] ss:$12 sps:$4 sm:$0xff]  }
 0x6a7   :  { %v6378_v8 = vadd.f32 %v2594_v45, %v2593_v20 }
 0x6a8   :  { %v4739_v22 = vpop.eup %4738 }
 0x6a9   :  { %v2600_v13 = vadd.f32 1.0, %v4739_v22  ;;  %v6384_v6 = vsel %vm1935_vm0, %v6378_v8, %v6250_v50  ;;  %v4741_v50 = vpop.eup %4740 }
 0x6aa   :  { %v2623_v4 = vpack.c.bf16 %v6384_v6, %v6384_v6  ;;  %v2607_v2 = vadd.f32 1.0, %v4741_v50 }
 0x6ab   :  { %4742 = vrcp.f32 %v2600_v13 }
 0x6ac   :  { %2657 = vmatmul.mubr.bf16.vlgmr.msra.gmra.mrb[64].mxu1 %v2623_v4  ;;  %4397 = vmatmul.mubr.bf16.vlgmr.msra.gmra.mrb[80].mxu0 %v2623_v4  ;;  %4744 = vrcp.f32 %v2607_v2 }
 0x6ad   :  { %2707 = vmatpush1.bf16.msra.mxu1 %v6388_v61  ;;  %4401 = vmatpush3.bf16.msra.mxu0 %v6012_v12  ;;  %v6403_v12 = vld [vmem:[#allocation6 + $0x34] ss:$12 sps:$4 sm:$0xff]  }
 0x6ae   :  { %2708 = vmatprep.subr.bf16.mxu1 %v6392_v25  ;;  %4402 = vmatprep.subr.bf16.mxu0 %v7005_v63 }
 0x6af   :  { %2738 = vmatprep.mubr.bf16.mxu1 %v7006_v58  ;;  %4416 = vmatprep.mubr.msk.bf16.mxu0 %vm4999_vm4, %v7005_v63 }
 0x6b1   :  { %2709 = vmatpush1.bf16.msra.mxu1 %v6399_v23  ;;  %4403 = vmatpush3.bf16.msra.mxu0 %v6021_v19  ;;  %v6413_v19 = vld [vmem:[#allocation6 + $0x4c] ss:$12 sps:$4 sm:$0xff]  }
 0x6b2   :  { %2710 = vmatprep.subr.bf16.mxu1 %v6403_v12  ;;  %4404 = vmatprep.subr.bf16.mxu0 %v7005_v63 }
 0x6b5   :  { %v4743_v38 = vpop.eup %4742  ;;  %2711 = vmatpush1.bf16.msra.mxu1 %v6408_v49  ;;  %4405 = vmatpush3.bf16.msra.mxu0 %v6028_v46  ;;  %v6425_v46 = vld [vmem:[#allocation6 + $0x60] ss:$12 sps:$4 sm:$0xff]  }
 0x6b6   :  { %v2610_v31 = vmul.f32 %v4743_v38, %v2560_v27  ;;  %2712 = vmatprep.subr.bf16.mxu1 %v6413_v19  ;;  %4406 = vmatprep.subr.bf16.mxu0 %v7005_v63 }
 0x6b8   :  { %v2611_v28 = vadd.f32 %v2610_v31, %v2574_v5 }
 0x6b9   :  { %2713 = vmatpush1.bf16.msra.mxu1 %v6417_v7  ;;  %4407 = vmatpush3.bf16.msra.mxu0 %v6035_v21  ;;  %v4745_v21 = vpop.eup %4744 }
 0x6ba   :  { %4746 = vtanh.f32 %v2611_v28  ;;  %2714 = vmatprep.subr.bf16.mxu1 %v6421_v35  ;;  %4408 = vmatprep.subr.bf16.mxu0 %v7005_v63  ;;  %v2613_v39 = vsub.f32 1.0, %v4745_v21  ;;  %v2615_v45 = vmul.f32 %v4745_v21, %v6296_v0 }
 0x6bd   :  { %2715 = vmatpush1.bf16.msra.mxu1 %v6425_v46  ;;  %4409 = vmatpush3.bf16.msra.mxu0 %v6041_v1 }
 0x6be   :  { %2716 = vmatprep.subr.bf16.mxu1 %v6429_v24  ;;  %4410 = vmatprep.subr.bf16.mxu0 %v7005_v63 }
 0x6c1   :  { %2717 = vmatpush1.bf16.msra.mxu1 %v6046_v16  ;;  %4411 = vmatpush3.bf16.msra.mxu0 %v6049_v15 }
 0x6c2   :  { %2718 = vmatprep.subr.bf16.mxu1 %v6052_v53  ;;  %4412 = vmatprep.subr.bf16.mxu0 %v7005_v63 }
 0x6c4   :  { %v4747_v20 = vpop.eup %4746 }
 0x6c5   :  { %2719 = vmatpush1.bf16.msra.mxu1 %v6056_v48  ;;  %4413 = vmatpush3.bf16.msra.mxu0 %v6059_v37  ;;  %v2614_v1 = vmul.f32 %v4747_v20, %v2613_v39  ;;  %v4897_v37 = vld [vmem:[#allocation4 + $0x8] ss:$12 sps:$4 sm:$0xff]  }
 0x6c6   :  { %2720 = vmatprep.subr.bf16.mxu1 %v6063_v42  ;;  %4414 = vmatprep.subr.bf16.mxu0 %v7005_v63  ;;  %v4898_v42 = vld [vmem:[#allocation4 + $0x20] ss:$12 sps:$4 sm:$0xff]  }
 0x6c7   :  { %v6442_v16 = vadd.f32 %v2615_v45, %v2614_v1  ;;  %v7079_v1 = vld [vmem:[#allocation28_spill] sm:$0xff] }
 0x6c8   :  { %v2791_v45 = vunpack.c.l.bf16 %v7079_v1  ;;  %v4909_v1 = vld [vmem:[#allocation6 + $0x38] ss:$12 sps:$4 sm:$0xff]  }
 0x6c9   :  { %2721 = vmatpush1.bf16.msra.mxu1 %v6072_v10  ;;  %4415 = vmatpush3.bf16.msra.mxu0 %v6075_v32  ;;  %v6450_v53 = vsel %vm1927_vm15, %v6442_v16, %v6296_v0  ;;  %v4899_v10 = vld [vmem:[#allocation4 + $0x38] ss:$12 sps:$4 sm:$0xff]   ;;  %v4900_v32 = vld [vmem:[#allocation4 + $0x50] ss:$12 sps:$4 sm:$0xff]   ;;  %v4901_v0 = vld [vmem:[#allocation4 + $0x68] ss:$12 sps:$4 sm:$0xff]  }
 0x6ca   :  { %v2705_v48 = vpack.c.bf16 %v6450_v53, %v6450_v53  ;;  %2846 = vmatprep.subr.bf16.mxu1 %v6300_v56  ;;  %4420 = vmatprep.subr.bf16.mxu0 %v7005_v63  ;;  %v4902_v56 = vld [vmem:[#allocation4 + $0x80] ss:$12 sps:$4 sm:$0xff]  }
 0x6cc   :  { %2739 = vmatmul.mubr.bf16.vlgmr.msra.gmra.mrb[68].mxu1 %v2705_v48  ;;  %4417 = vmatmul.mubr.bf16.vlgmr.msra.gmra.mrb[84].mxu0 %v2705_v48 }
 0x6cd   :  { %2847 = vmatpush1.bf16.msra.mxu1 %v6304_v30  ;;  %4421 = vmatpush3.bf16.msra.mxu0 %v4897_v37  ;;  %v4903_v30 = vld [vmem:[#allocation4 + $0x98] ss:$12 sps:$4 sm:$0xff]  }
 0x6ce   :  { %2848 = vmatprep.subr.bf16.mxu1 %v6308_v9  ;;  %4422 = vmatprep.subr.bf16.mxu0 %v7005_v63  ;;  %v4904_v9 = vld [vmem:[#allocation4 + $0xa8] ss:$12 sps:$4 sm:$0xff]  }
 0x6cf   :  { %2878 = vmatprep.mubr.bf16.mxu1 %v7006_v58  ;;  %4436 = vmatprep.mubr.msk.bf16.mxu0 %vm4999_vm4, %v7005_v63 }
 0x6d1   :  { %2849 = vmatpush1.bf16.msra.mxu1 %v6315_v62  ;;  %4423 = vmatpush3.bf16.msra.mxu0 %v4898_v42  ;;  %v4905_v62 = vld [vmem:[#allocation4 + $0xb0] ss:$12 sps:$4 sm:$0xff]  }
 0x6d2   :  { %2850 = vmatprep.subr.bf16.mxu1 %v6319_v57  ;;  %4424 = vmatprep.subr.bf16.mxu0 %v7005_v63  ;;  %v4906_v57 = vld [vmem:[#allocation6 + $0x4] ss:$12 sps:$4 sm:$0xff]  }
 0x6d5   :  { %2851 = vmatpush1.bf16.msra.mxu1 %v6323_v33  ;;  %4425 = vmatpush3.bf16.msra.mxu0 %v4899_v10 }
 0x6d6   :  { %2852 = vmatprep.subr.bf16.mxu1 %v6327_v26  ;;  %4426 = vmatprep.subr.bf16.mxu0 %v7005_v63 }
 0x6d9   :  { %2853 = vmatpush1.bf16.msra.mxu1 %v6331_v14  ;;  %4427 = vmatpush3.bf16.msra.mxu0 %v4900_v32 }
 0x6da   :  { %2854 = vmatprep.subr.bf16.mxu1 %v6335_v36  ;;  %4428 = vmatprep.subr.bf16.mxu0 %v7005_v63  ;;  %v7078_v36 = vld [vmem:[#allocation27_spill] sm:$0xff] }
 0x6dd   :  { %2855 = vmatpush1.bf16.msra.mxu1 %v6339_v55  ;;  %4429 = vmatpush3.bf16.msra.mxu0 %v4901_v0  ;;  %v2789_v55 = vunpack.c.l.bf16 %v7078_v36  ;;  %v7080_v0 = vld [vmem:[#allocation18_spill] sm:$0xff] }
 0x6de   :  { %2856 = vmatprep.subr.bf16.mxu1 %v6343_v41  ;;  %4430 = vmatprep.subr.bf16.mxu0 %v7005_v63 }
 0x6e1   :  { %2857 = vmatpush1.bf16.msra.mxu1 %v6347_v18  ;;  %4431 = vmatpush3.bf16.msra.mxu0 %v4902_v56  ;;  %v2794_v56 = vunpack.c.h.bf16 %v7080_v0  ;;  %v4917_v0 = vld [vmem:[#allocation6 + $0xac] ss:$12 sps:$4 sm:$0xff]  }
 0x6e2   :  { %2858 = vmatprep.subr.bf16.mxu1 %v6351_v43  ;;  %4432 = vmatprep.subr.bf16.mxu0 %v7005_v63 }
 0x6e5   :  { %2859 = vmatpush1.bf16.msra.mxu1 %v6355_v29  ;;  %4433 = vmatpush3.bf16.msra.mxu0 %v4903_v30  ;;  %v2790_v29 = vunpack.c.h.bf16 %v7078_v36 }
 0x6e6   :  { %2860 = vmatprep.subr.bf16.mxu1 %v6359_v3  ;;  %4434 = vmatprep.subr.bf16.mxu0 %v7005_v63 }
 0x6e9   :  { %2861 = vmatpush1.bf16.msra.mxu1 %v4904_v9  ;;  %4435 = vmatpush3.bf16.msra.mxu0 %v4905_v62 }
 0x6ea   :  { %2928 = vmatprep.subr.bf16.mxu1 %v4906_v57  ;;  %4440 = vmatprep.subr.bf16.mxu0 %v7005_v63  ;;  %v7081_v57 = vld [vmem:[#allocation34_spill] sm:$0xff] }
 0x77f   :  { %v2658_v33 = vpop.f32.mrb[64].mxu1  ;;  %v2699_v26 = vpop.f32.mrb[80].mxu0 }
 0x780   :  { %v2659_v14 = vadd.f32 %v2658_v33, %v7062_v51  ;;  %v2660_v41 = vpop.f32.mrb[65].mxu1  ;;  %v4398_v18 = vpop.f32.mrb[81].mxu0  ;;  %v2700_v39 = vadd.f32 %v2699_v26, %v7070_v40  ;;  %v2795_v33 = vunpack.c.l.bf16 %v7081_v57 }
 0x781   :  { %v2661_v43 = vadd.f32 %v2660_v41, %v7064_v47  ;;  %v2662_v3 = vpop.f32.mrb[66].mxu1  ;;  %v2702_v22 = vpop.f32.mrb[82].mxu0 }
 0x782   :  { %v2797_v13 = vadd.f32 %v2789_v55, %v2659_v14  ;;  %v2663_v4 = vpop.f32.mrb[67].mxu1  ;;  %v4399_v50 = vpop.f32.mrb[83].mxu0 }
 0x783   :  { %v2804_v2 = vadd.f32 %v2790_v29, %v2661_v43 }
 0x784   :  { %v3905_v27 = vmul.f32 -1.442695, %v2797_v13 }
 0x785   :  { %v3906_v38 = vmul.f32 -1.442695, %v2804_v2 }
 0x786   :  { %4748 = vpow2.f32 %v3905_v27 }
 0x787   :  { %4750 = vpow2.f32 %v3906_v38 }
 0x790   :  { %v4749_v5 = vpop.eup %4748 }
 0x791   :  { %v2801_v31 = vadd.f32 1.0, %v4749_v5  ;;  %v4751_v28 = vpop.eup %4750 }
 0x792   :  { %v2808_v21 = vadd.f32 1.0, %v4751_v28 }
 0x793   :  { %4752 = vrcp.f32 %v2801_v31 }
 0x794   :  { %4754 = vrcp.f32 %v2808_v21  ;;  %v4907_v21 = vld [vmem:[#allocation6 + $0x8] ss:$12 sps:$4 sm:$0xff]  }
 0x79d   :  { %v4753_v20 = vpop.eup %4752 }
 0x79e   :  { %v2811_v48 = vmul.f32 %v4753_v20, %v2700_v39  ;;  %v4755_v29 = vpop.eup %4754 }
 0x79f   :  { %v2740_v37 = vpop.f32.mrb[68].mxu1  ;;  %v2781_v42 = vpop.f32.mrb[84].mxu0  ;;  %v2814_v22 = vsub.f32 1.0, %v4755_v29  ;;  %v2816_v50 = vmul.f32 %v4755_v29, %v6384_v6  ;;  %v7086_v29 = vld [vmem:[#allocation53_spill] sm:$0xff] }
 0x7a0   :  { %v2812_v10 = vadd.f32 %v2811_v48, %v2791_v45  ;;  %v2741_v32 = vadd.f32 %v2740_v37, %v7072_v59  ;;  %v2742_v30 = vpop.f32.mrb[69].mxu1  ;;  %v4418_v9 = vpop.f32.mrb[85].mxu0  ;;  %v4912_v48 = vld [vmem:[#allocation6 + $0x78] ss:$12 sps:$4 sm:$0xff]   ;;  %v4913_v37 = vld [vmem:[#allocation6 + $0x80] ss:$12 sps:$4 sm:$0xff]  }
 0x7a1   :  { %v2743_v62 = vadd.f32 %v2742_v30, %v7074_v44  ;;  %v2744_v14 = vpop.f32.mrb[70].mxu1  ;;  %v2784_v26 = vpop.f32.mrb[86].mxu0  ;;  %v4918_v30 = vld [vmem:[#allocation6 + $0xa8] ss:$12 sps:$4 sm:$0xff]   ;;  %v4919_v9 = vld [vmem:[#allocation6 + $0xb0] ss:$12 sps:$4 sm:$0xff]  }
 0x7a2   :  { %4756 = vtanh.f32 %v2812_v10  ;;  %v2818_v36 = vadd.f32 %v2794_v56, %v2741_v32  ;;  %v2745_v55 = vpop.f32.mrb[71].mxu1  ;;  %v4419_v41 = vpop.f32.mrb[87].mxu0  ;;  %v4915_v10 = vld [vmem:[#allocation6 + $0x90] ss:$12 sps:$4 sm:$0xff]  }
 0x7a3   :  { %v2825_v18 = vadd.f32 %v2795_v33, %v2743_v62  ;;  %v7083_v62 = vld [vmem:[#allocation50_spill] sm:$0xff]  ;;  %v6546_v55 = vsel %vm2173_vm2, %v6244_v52, 0.0  ;;  %v7085_v41 = vld [vmem:[#allocation24_spill] sm:$0xff]  ;;  %v6563_v52 = vsel %vm1697_vm14, %v7086_v29, 0.0 }
 0x7a4   :  { %v3907_v43 = vmul.f32 -1.442695, %v2818_v36  ;;  %v6528_v33 = vsel %vm1689_vm13, %v7083_v62, 0.0 }
 0x7a5   :  { %v3908_v3 = vmul.f32 -1.442695, %v2825_v18  ;;  %v6551_v18 = vsel %vm2173_vm2, %v7085_v41, 0.0 }
 0x7a6   :  { %4758 = vpow2.f32 %v3907_v43 }
 0x7a7   :  { %4760 = vpow2.f32 %v3908_v3 }
 0x7ac   :  { %v4757_v13 = vpop.eup %4756 }
 0x7ad   :  { %v2815_v4 = vmul.f32 %v4757_v13, %v2814_v22 }
 0x7af   :  { %v6492_v2 = vadd.f32 %v2816_v50, %v2815_v4  ;;  %v7087_v4 = vld [vmem:[#allocation30_spill] sm:$0xff] }
 0x7b0   :  { %v4759_v27 = vpop.eup %4758  ;;  %v3011_v50 = vunpack.c.l.bf16 %v7087_v4 }
 0x7b1   :  { %v2822_v38 = vadd.f32 1.0, %v4759_v27  ;;  %v6498_v31 = vsel %vm1697_vm14, %v6492_v2, %v6384_v6  ;;  %v4761_v39 = vpop.eup %4760  ;;  %v4908_v6 = vld [vmem:[#allocation6 + $0x20] ss:$12 sps:$4 sm:$0xff]   ;;  %v6558_v43 = vsel %vm1697_vm14, %v6492_v2, 0.0 }
 0x7b2   :  { %v2845_v28 = vpack.c.bf16 %v6498_v31, %v6498_v31  ;;  %v2829_v20 = vadd.f32 1.0, %v4761_v39  ;;  %v3128_v3 = vadd.f32 %v6558_v43, %v6563_v52 }
 0x7b3   :  { %4762 = vrcp.f32 %v2822_v38 }
 0x7b4   :  { %2879 = vmatmul.mubr.bf16.vlgmr.msra.gmra.mrb[72].mxu1 %v2845_v28  ;;  %4437 = vmatmul.mubr.bf16.vlgmr.msra.gmra.mrb[88].mxu0 %v2845_v28  ;;  %4764 = vrcp.f32 %v2829_v20  ;;  %v3012_v28 = vunpack.c.h.bf16 %v7087_v4 }
 0x7b5   :  { %2929 = vmatpush1.bf16.msra.mxu1 %v6388_v61  ;;  %4441 = vmatpush3.bf16.msra.mxu0 %v4907_v21  ;;  %v2782_v61 = vadd.f32 %v2781_v42, %v5722_v54 }
 0x7b6   :  { %2930 = vmatprep.subr.bf16.mxu1 %v6392_v25  ;;  %4442 = vmatprep.subr.bf16.mxu0 %v7005_v63 }
 0x7b7   :  { %2960 = vmatprep.mubr.bf16.mxu1 %v7006_v58  ;;  %4456 = vmatprep.mubr.msk.bf16.mxu0 %vm4999_vm4, %v7005_v63  ;;  %v2796_v58 = vunpack.c.h.bf16 %v7081_v57 }
 0x7b9   :  { %2931 = vmatpush1.bf16.msra.mxu1 %v6399_v23  ;;  %4443 = vmatpush3.bf16.msra.mxu0 %v4908_v6 }
 0x7ba   :  { %2932 = vmatprep.subr.bf16.mxu1 %v6403_v12  ;;  %4444 = vmatprep.subr.bf16.mxu0 %v7005_v63  ;;  %v4910_v12 = vld [vmem:[#allocation6 + $0x50] ss:$12 sps:$4 sm:$0xff]  }
 0x7bd   :  { %v4763_v25 = vpop.eup %4762  ;;  %2933 = vmatpush1.bf16.msra.mxu1 %v6408_v49  ;;  %4445 = vmatpush3.bf16.msra.mxu0 %v4909_v1  ;;  %v4911_v49 = vld [vmem:[#allocation6 + $0x68] ss:$12 sps:$4 sm:$0xff]  }
 0x7be   :  { %v2832_v45 = vmul.f32 %v4763_v25, %v2782_v61  ;;  %2934 = vmatprep.subr.bf16.mxu1 %v6413_v19  ;;  %4446 = vmatprep.subr.bf16.mxu0 %v7005_v63  ;;  %v4765_v19 = vpop.eup %4764 }
 0x7c0   :  { %v2833_v23 = vadd.f32 %v2832_v45, %v2796_v58 }
 0x7c1   :  { %2935 = vmatpush1.bf16.msra.mxu1 %v6417_v7  ;;  %4447 = vmatpush3.bf16.msra.mxu0 %v4910_v12  ;;  %v4914_v7 = vld [vmem:[#allocation6 + $0x94] ss:$12 sps:$4 sm:$0xff]  }
 0x7c2   :  { %4766 = vtanh.f32 %v2833_v23  ;;  %2936 = vmatprep.subr.bf16.mxu1 %v6421_v35  ;;  %4448 = vmatprep.subr.bf16.mxu0 %v7005_v63  ;;  %v2835_v35 = vsub.f32 1.0, %v4765_v19 }
 0x7c5   :  { %2937 = vmatpush1.bf16.msra.mxu1 %v6425_v46  ;;  %4449 = vmatpush3.bf16.msra.mxu0 %v4911_v49  ;;  %v4916_v46 = vld [vmem:[#allocation6 + $0x98] ss:$12 sps:$4 sm:$0xff]  }
 0x7c6   :  { %2938 = vmatprep.subr.bf16.mxu1 %v6429_v24  ;;  %4450 = vmatprep.subr.bf16.mxu0 %v7005_v63  ;;  %v2837_v24 = vmul.f32 %v4765_v19, %v6450_v53  ;;  %v7088_v49 = vld [vmem:[#allocation31_spill] sm:$0xff] }
 0x7c7   :  { %v3013_v19 = vunpack.c.l.bf16 %v7088_v49  ;;  %v7094_v49 = vld [vmem:[#allocation60_spill] sm:$0xff] }
 0x7c9   :  { %2939 = vmatpush1.bf16.msra.mxu1 %v4912_v48  ;;  %4451 = vmatpush3.bf16.msra.mxu0 %v4913_v37 }
 0x7ca   :  { %2940 = vmatprep.subr.bf16.mxu1 %v4914_v7  ;;  %4452 = vmatprep.subr.bf16.mxu0 %v7005_v63 }
 0x7cc   :  { %v4767_v42 = vpop.eup %4766 }
 0x7cd   :  { %2941 = vmatpush1.bf16.msra.mxu1 %v4915_v10  ;;  %4453 = vmatpush3.bf16.msra.mxu0 %v4916_v46  ;;  %v2836_v32 = vmul.f32 %v4767_v42, %v2835_v35  ;;  %v7089_v42 = vld [vmem:[#allocation16_spill] sm:$0xff] }
 0x7ce   :  { %2942 = vmatprep.subr.bf16.mxu1 %v4917_v0  ;;  %4454 = vmatprep.subr.bf16.mxu0 %v7005_v63  ;;  %v3016_v10 = vunpack.c.h.bf16 %v7089_v42  ;;  %v7090_v0 = vld [vmem:[#allocation33_spill] sm:$0xff] }
 0x7cf   :  { %v2838_v56 = vadd.f32 %v2837_v24, %v2836_v32 }
 0x7d1   :  { %2943 = vmatpush1.bf16.msra.mxu1 %v4918_v30  ;;  %4455 = vmatpush3.bf16.msra.mxu0 %v4919_v9  ;;  %v6532_v14 = vsel %vm1689_vm13, %v2838_v56, 0.0  ;;  %v6537_v26 = vsel %vm1689_vm13, %v2838_v56, %v6450_v53  ;;  %v3122_v53 = vadd.f32 %v6546_v55, %v6551_v18  ;;  %v3017_v56 = vunpack.c.l.bf16 %v7090_v0 }
 0x7d2   :  { %v3113_v63 = vadd.f32 %v6532_v14, %v6528_v33  ;;  %v2927_v36 = vpack.c.bf16 %v6537_v26, %v6537_v26  ;;  %vm3625_vm13 = vcmask 64512  }
 0x7d4   :  { %3114 = vadd.xlane.f32.xlu1 %v3113_v63  ;;  %2961 = vmatmul.mubr.bf16.vlgmr.msra.gmra.mrb[76].mxu1 %v2927_v36 }
 0x7d5   :  { %4457 = vmatmul.mubr.bf16.vlgmr.msra.gmra.mrb[92].mxu0 %v2927_v36 }
 0x7d8   :  { %3123 = vadd.xlane.f32.xlu1 %v3122_v53 }
 0x7dc   :  { %3129 = vadd.xlane.f32.xlu1 %v3128_v3 }
 0x887   :  { %v2880_v11 = vpop.f32.mrb[72].mxu1  ;;  %v2921_v22 = vpop.f32.mrb[88].mxu0 }
 0x888   :  { %v2881_v13 = vadd.f32 %v2880_v11, %v7062_v51  ;;  %v2882_v27 = vpop.f32.mrb[73].mxu1  ;;  %v4438_v38 = vpop.f32.mrb[89].mxu0  ;;  %v2922_v12 = vadd.f32 %v2921_v22, %v7070_v40 }
 0x889   :  { %v2883_v2 = vadd.f32 %v2882_v27, %v7064_v47  ;;  %v2884_v21 = vpop.f32.mrb[74].mxu1  ;;  %v2924_v5 = vpop.f32.mrb[90].mxu0 }
 0x88a   :  { %v3019_v39 = vadd.f32 %v3011_v50, %v2881_v13  ;;  %v2885_v6 = vpop.f32.mrb[75].mxu1  ;;  %v4439_v20 = vpop.f32.mrb[91].mxu0 }
 0x88b   :  { %v3026_v61 = vadd.f32 %v3012_v28, %v2883_v2  ;;  %v3018_v28 = vunpack.c.h.bf16 %v7090_v0 }
 0x88c   :  { %v3909_v25 = vmul.f32 -1.442695, %v3019_v39 }
 0x88d   :  { %v3910_v1 = vmul.f32 -1.442695, %v3026_v61 }
 0x88e   :  { %4768 = vpow2.f32 %v3909_v25 }
 0x88f   :  { %4770 = vpow2.f32 %v3910_v1 }
 0x898   :  { %v4769_v58 = vpop.eup %4768 }
 0x899   :  { %v3023_v51 = vadd.f32 1.0, %v4769_v58  ;;  %v4771_v45 = vpop.eup %4770 }
 0x89a   :  { %v3030_v23 = vadd.f32 1.0, %v4771_v45  ;;  %v6590_v45 = vsel %vm1927_vm15, %v6442_v16, 0.0 }
 0x89b   :  { %4772 = vrcp.f32 %v3023_v51  ;;  %v7092_v51 = vld [vmem:[#allocation11_spill] sm:$0xff] }
 0x89c   :  { %4774 = vrcp.f32 %v3030_v23  ;;  %v3115_v23 = vpop.xlane.xlu1 %3114 }
 0x8a5   :  { %v4773_v47 = vpop.eup %4772 }
 0x8a6   :  { %v3033_v48 = vmul.f32 %v4773_v47, %v2922_v12  ;;  %v4775_v53 = vpop.eup %4774  ;;  %v7093_v12 = vlaneseq }
 0x8a7   :  { %v2962_v37 = vpop.f32.mrb[76].mxu1  ;;  %v3036_v29 = vsub.f32 1.0, %v4775_v53 }
 0x8a8   :  { %v3034_v7 = vadd.f32 %v3033_v48, %v3013_v19  ;;  %v2963_v35 = vadd.f32 %v2962_v37, %v7072_v59  ;;  %v3003_v46 = vpop.f32.mrb[92].mxu0  ;;  %v2964_v32 = vpop.f32.mrb[77].mxu1  ;;  %v6593_v47 = vand.u32 127, %v7093_v12  ;;  %v3135_v48 = vmul.f32 0.03125, %v3115_v23 }
 0x8a9   :  { %v2965_v24 = vadd.f32 %v2964_v32, %v7074_v44  ;;  %v4458_v30 = vpop.f32.mrb[93].mxu0  ;;  %v2966_v9 = vpop.f32.mrb[78].mxu1  ;;  %v3038_v44 = vmul.f32 %v4775_v53, %v6498_v31  ;;  %v3004_v38 = vadd.f32 %v3003_v46, %v5722_v54  ;;  %v6605_v37 = vsel %vm2165_vm1, %v6288_v34, 0.0  ;;  %v7096_v32 = vld [vmem:[#allocation62_spill] sm:$0xff]  ;;  %v4614_v53 = vld [vmem:[#allocation8 + $0x48] sm:$0xff]  }
 0x8aa   :  { %4776 = vtanh.f32 %v3034_v7  ;;  %v3040_v40 = vadd.f32 %v3016_v10, %v2963_v35  ;;  %v3006_v62 = vpop.f32.mrb[94].mxu0  ;;  %v2967_v57 = vpop.f32.mrb[79].mxu1  ;;  %v3083_v16 = vadd.s32 128, %v6593_v47  ;;  %v7095_v7 = vld [vmem:[#allocation21_spill] sm:$0xff]  ;;  %v6616_v42 = vsub.f32 %v6528_v33, %v3135_v48  ;;  %v7100_v9 = vld [vmem:[#allocation51_spill] sm:$0xff] }
 0x8ab   :  { %v3047_v63 = vadd.f32 %v3017_v56, %v2965_v24  ;;  %v4459_v36 = vpop.f32.mrb[95].mxu0  ;;  %v6611_v35 = vsel %vm2165_vm1, %v7095_v7, 0.0  ;;  %v6619_v10 = vsub.f32 %v6532_v14, %v3135_v48  ;;  %v6624_v34 = vsel %vm1935_vm0, %v6378_v8, 0.0 }
 0x8ac   :  { %v3911_v41 = vmul.f32 -1.442695, %v3040_v40  ;;  %v3119_v15 = vadd.f32 %v6605_v37, %v6611_v35  ;;  %v3095_v46 = vand.u32 127, %v3083_v16  ;;  %v6629_v60 = vsel %vm1935_vm0, %v7096_v32, 0.0  ;;  %v4612_v36 = vld [vmem:[#allocation8 + $0x40] sm:$0xff]  }
 0x8ad   :  { %v3912_v59 = vmul.f32 -1.442695, %v3047_v63  ;;  %v3125_v24 = vadd.f32 %v6624_v34, %v6629_v60  ;;  %v3160_v30 = vmul.f32 %v6616_v42, %v6616_v42  ;;  %v3161_v8 = vmul.f32 %v6619_v10, %v6619_v10  ;;  %4100 = vmatprep.subr.bf16.mxu1 %v4612_v36 }
 0x8ae   :  { %4778 = vpow2.f32 %v3911_v41  ;;  %vm3108_vm3 = vcmp.lt.s32.totalorder %v6593_v47, 16  ;;  %vm6642_vm4 = vcmp.lt.s32.totalorder %v3095_v46, 16  ;;  %v4613_v41 = vld [vmem:[#allocation8] sm:$0xff]  }
 0x8af   :  { %4780 = vpow2.f32 %v3912_v59  ;;  %v3180_v62 = vsel %vm3108_vm3, %v3160_v30, 0.0  ;;  %v3181_v57 = vsel %vm6642_vm4, %v3161_v8, 0.0  ;;  %4101 = vmatpush3.bf16.msra.mxu1 %v4613_v41  ;;  %v4615_v59 = vld [vmem:[#allocation8 + $0x8] sm:$0xff]  }
 0x8b0   :  { %v3197_v63 = vadd.f32 %v3181_v57, %v3180_v62  ;;  %4102 = vmatprep.subr.bf16.mxu1 %v4614_v53 }
 0x8b3   :  { %4103 = vmatpush3.bf16.msra.mxu1 %v4615_v59 }
 0x8b4   :  { %v4777_v3 = vpop.eup %4776 }
 0x8b5   :  { %v3037_v11 = vmul.f32 %v4777_v3, %v3036_v29  ;;  %v3124_v29 = vpop.xlane.xlu1 %3123 }
 0x8b6   :  { %v3138_v3 = vmul.f32 0.03125, %v3124_v29 }
 0x8b7   :  { %v3039_v22 = vadd.f32 %v3038_v44, %v3037_v11 }
 0x8b8   :  { %v4779_v13 = vpop.eup %4778 }
 0x8b9   :  { %v3044_v4 = vadd.f32 1.0, %v4779_v13  ;;  %v4781_v50 = vpop.eup %4780  ;;  %v6635_v56 = vsel %vm1461_vm11, %v3039_v22, 0.0  ;;  %v3130_v44 = vpop.xlane.xlu1 %3129  ;;  %vm3621_vm11 = vcmask 1047559  }
 0x8ba   :  { %v3051_v27 = vadd.f32 1.0, %v4781_v50  ;;  %v3131_v40 = vadd.f32 %v6635_v56, %v7100_v9  ;;  %v6659_v50 = vsub.f32 %v6546_v55, %v3138_v3 }
 0x8bb   :  { %4782 = vrcp.f32 %v3044_v4 }
 0x8bc   :  { %4784 = vrcp.f32 %v3051_v27  ;;  %v6662_v27 = vsub.f32 %v6551_v18, %v3138_v3 }
 0x8be   :  { %v3167_v23 = vmul.f32 %v6662_v27, %v6662_v27 }
 0x8c0   :  { %v3187_v30 = vsel %vm6642_vm4, %v3167_v23, 0.0 }
 0x8c5   :  { %v4783_v2 = vpop.eup %4782 }
 0x8c6   :  { %v3054_v21 = vmul.f32 %v4783_v2, %v3004_v38  ;;  %v4785_v39 = vpop.eup %4784  ;;  %v3140_v38 = vmul.f32 0.03125, %v3130_v44 }
 0x8c7   :  { %v3057_v6 = vsub.f32 1.0, %v4785_v39  ;;  %v3059_v31 = vmul.f32 %v4785_v39, %v6537_v26  ;;  %v6598_v26 = vsel %vm1927_vm15, %v7094_v49, 0.0 }
 0x8c8   :  { %v3055_v5 = vadd.f32 %v3054_v21, %v3018_v28  ;;  %v3116_v19 = vadd.f32 %v6590_v45, %v6598_v26  ;;  %v6686_v12 = vsub.f32 %v6563_v52, %v3140_v38 }
 0x8ca   :  { %4786 = vtanh.f32 %v3055_v5 }
 0x8d4   :  { %v4787_v20 = vpop.eup %4786 }
 0x8d5   :  { %v3058_v61 = vmul.f32 %v4787_v20, %v3057_v6 }
 0x8d7   :  { %v3060_v25 = vadd.f32 %v3059_v31, %v3058_v61  ;;  %v6679_v31 = vsub.f32 %v6558_v43, %v3140_v38 }
 0x8d9   :  { %v6583_v58 = vsel %vm1454_vm9, %v3060_v25, 0.0  ;;  %v3170_v8 = vmul.f32 %v6679_v31, %v6679_v31  ;;  %vm3617_vm9 = vcmask 1045509  }
 0x8da   :  { %v3110_v54 = vadd.f32 %v6583_v58, %v7092_v51 }
 0x8db   :  { %v3190_v44 = vsel %vm3108_vm3, %v3170_v8, 0.0  ;;  %v4622_v8 = vld [vmem:[#allocation8 + $0x68] sm:$0xff]  }
 0x8dc   :  { %3111 = vadd.xlane.f32.xlu0 %v3110_v54  ;;  %v3166_v54 = vmul.f32 %v6659_v50, %v6659_v50 }
 0x8de   :  { %v3186_v0 = vsel %vm3108_vm3, %v3166_v54, 0.0 }
 0x8df   :  { %v3206_v3 = vadd.f32 %v3187_v30, %v3186_v0  ;;  %v4620_v0 = vld [vmem:[#allocation8 + $0x60] sm:$0xff]  }
 0x8e0   :  { %3117 = vadd.xlane.f32.xlu0 %v3116_v19  ;;  %v4621_v30 = vld [vmem:[#allocation8 + $0x20] sm:$0xff]  }
 0x8e4   :  { %3120 = vadd.xlane.f32.xlu0 %v3119_v15 }
 0x8e8   :  { %3126 = vadd.xlane.f32.xlu0 %v3125_v24 }
 0x8ec   :  { %3132 = vadd.xlane.f32.xlu0 %v3131_v40 }
 0x8f0   :  { %3198 = vadd.xlane.f32.xlu0 %v3197_v63  ;;  %v3171_v63 = vmul.f32 %v6686_v12, %v6686_v12 }
 0x8f2   :  { %v3191_v38 = vsel %vm6642_vm4, %v3171_v63, 0.0  ;;  %v4627_v63 = vld [vmem:[#allocation8 + $0x38] sm:$0xff]  }
 0x969   :  { %v3112_v11 = vpop.xlane.xlu0 %3111 }
 0x96a   :  { %v3134_v22 = vmul.f32 0.03125, %v3112_v11 }
 0x96c   :  { %v6653_v13 = vsub.f32 %v7092_v51, %v3134_v22  ;;  %v6656_v4 = vsub.f32 %v6583_v58, %v3134_v22 }
 0x96d   :  { %v3118_v2 = vpop.xlane.xlu0 %3117 }
 0x96e   :  { %v3136_v28 = vmul.f32 0.03125, %v3118_v2  ;;  %v3158_v21 = vmul.f32 %v6653_v13, %v6653_v13  ;;  %v3159_v5 = vmul.f32 %v6656_v4, %v6656_v4 }
 0x970   :  { %v6669_v39 = vsub.f32 %v6598_v26, %v3136_v28  ;;  %v6672_v6 = vsub.f32 %v6590_v45, %v3136_v28  ;;  %v3178_v20 = vsel %vm3108_vm3, %v3158_v21, 0.0  ;;  %v3179_v61 = vsel %vm6642_vm4, %v3159_v5, 0.0 }
 0x971   :  { %v3121_v25 = vpop.xlane.xlu0 %3120  ;;  %v3194_v1 = vadd.f32 %v3179_v61, %v3178_v20 }
 0x972   :  { %v3137_v49 = vmul.f32 0.03125, %v3121_v25  ;;  %v3162_v19 = vmul.f32 %v6669_v39, %v6669_v39  ;;  %v3163_v48 = vmul.f32 %v6672_v6, %v6672_v6  ;;  %v3212_v25 = vadd.f32 %v3191_v38, %v3190_v44 }
 0x973   :  { %3195 = vadd.xlane.f32.xlu1 %v3194_v1 }
 0x974   :  { %v6693_v16 = vsub.f32 %v6611_v35, %v3137_v49  ;;  %v6696_v7 = vsub.f32 %v6605_v37, %v3137_v49  ;;  %v3182_v15 = vsel %vm3108_vm3, %v3162_v19, 0.0  ;;  %v3183_v46 = vsel %vm6642_vm4, %v3163_v48, 0.0  ;;  %v4616_v48 = vld [vmem:[#allocation8 + $0x50] sm:$0xff]  }
 0x975   :  { %v3127_v32 = vpop.xlane.xlu0 %3126  ;;  %v3200_v24 = vadd.f32 %v3183_v46, %v3182_v15  ;;  %v4617_v46 = vld [vmem:[#allocation8 + $0x10] sm:$0xff]   ;;  %4104 = vmatprep.subr.bf16.mxu1 %v4616_v48 }
 0x976   :  { %v3139_v40 = vmul.f32 0.03125, %v3127_v32  ;;  %v3164_v62 = vmul.f32 %v6693_v16, %v6693_v16  ;;  %v3165_v57 = vmul.f32 %v6696_v7, %v6696_v7  ;;  %4105 = vmatpush3.bf16.msra.mxu1 %v4617_v46  ;;  %v4618_v32 = vld [vmem:[#allocation8 + $0x58] sm:$0xff]  }
 0x977   :  { %3201 = vadd.xlane.f32.xlu1 %v3200_v24  ;;  %v4619_v24 = vld [vmem:[#allocation8 + $0x18] sm:$0xff]   ;;  %4106 = vmatprep.subr.bf16.mxu1 %v4618_v32 }
 0x978   :  { %v6715_v36 = vsub.f32 %v6624_v34, %v3139_v40  ;;  %v6718_v41 = vsub.f32 %v6629_v60, %v3139_v40  ;;  %v3184_v53 = vsel %vm3108_vm3, %v3164_v62, 0.0  ;;  %v3185_v59 = vsel %vm6642_vm4, %v3165_v57, 0.0  ;;  %v4623_v40 = vld [vmem:[#allocation8 + $0x28] sm:$0xff]   ;;  %v4625_v62 = vld [vmem:[#allocation8 + $0x30] sm:$0xff]   ;;  %v4626_v57 = vld [vmem:[#allocation8 + $0x78] sm:$0xff]  }
 0x979   :  { %v3133_v29 = vpop.xlane.xlu0 %3132  ;;  %v3203_v11 = vadd.f32 %v3185_v59, %v3184_v53 }
 0x97a   :  { %v3141_v22 = vmul.f32 0.03125, %v3133_v29  ;;  %v3168_v2 = vmul.f32 %v6715_v36, %v6715_v36  ;;  %v3169_v28 = vmul.f32 %v6718_v41, %v6718_v41  ;;  %4107 = vmatpush3.bf16.msra.mxu1 %v4619_v24 }
 0x97b   :  { %3207 = vadd.xlane.f32.xlu1 %v3206_v3  ;;  %3204 = vadd.xlane.f32.xlu0 %v3203_v11 }
 0x97c   :  { %v6733_v21 = vsub.f32 %v6635_v56, %v3141_v22  ;;  %v6736_v5 = vsub.f32 %v7100_v9, %v3141_v22  ;;  %v3188_v20 = vsel %vm3108_vm3, %v3168_v2, 0.0  ;;  %v3189_v61 = vsel %vm6642_vm4, %v3169_v28, 0.0  ;;  %4108 = vmatprep.subr.bf16.mxu1 %v4620_v0  ;;  %v3258_v28 = vld [vmem:[%s6880_s9] sm:$0x3] }
 0x97d   :  { %v3209_v1 = vadd.f32 %v3189_v61, %v3188_v20  ;;  %v3199_v53 = vpop.xlane.xlu0 %3198  ;;  %v3286_v0 = vld [vmem:[%s6881_s10] sm:$0x3] }
 0x97e   :  { %v3172_v54 = vmul.f32 %v6733_v21, %v6733_v21  ;;  %v3173_v23 = vmul.f32 %v6736_v5, %v6736_v5  ;;  %4109 = vmatpush3.bf16.msra.mxu1 %v4621_v30  ;;  %v3219_v59 = vmul.f32 0.03125, %v3199_v53 }
 0x97f   :  { %3213 = vadd.xlane.f32.xlu1 %v3212_v25  ;;  %3210 = vadd.xlane.f32.xlu0 %v3209_v1 }
 0x980   :  { %v3192_v49 = vsel %vm3108_vm3, %v3172_v54, 0.0  ;;  %v3193_v19 = vsel %vm6642_vm4, %v3173_v23, 0.0  ;;  %4110 = vmatprep.subr.bf16.mxu1 %v4622_v8  ;;  %v3227_v29 = vadd.f32 1e-05, %v3219_v59  ;;  %v7101_v23 = vld [vmem:[#allocation13_spill] sm:$0xff] }
 0x981   :  { %v3215_v15 = vadd.f32 %v3193_v19, %v3192_v49  ;;  %v6754_v49 = vrot.slane %v3258_v28, %v7101_v23  ;;  %v7102_v19 = vld [vmem:[#allocation15_spill] sm:$0xff] }
 0x982   :  { %4111 = vmatpush3.bf16.msra.mxu1 %v4623_v40  ;;  %4788 = vrsqrt.f32 %v3227_v29  ;;  %v6757_v48 = vrot.slane %v3258_v28, %v7102_v19 }
 0x983   :  { %3216 = vadd.xlane.f32.xlu0 %v3215_v15  ;;  %4112 = vmatprep.subr.bf16.mxu1 %v4624_v17 }
 0x986   :  { %4113 = vmatpush3.bf16.msra.mxu1 %v4625_v62  ;;  %v6765_v62 = vrot.slane %v3286_v0, %v7101_v23 }
 0x987   :  { %4114 = vmatprep.subr.bf16.mxu1 %v4626_v57  ;;  %v6768_v57 = vrot.slane %v3286_v0, %v7102_v19 }
 0x98a   :  { %4115 = vmatpush3.bf16.msra.mxu1 %v4627_v63 }
 0x98c   :  { %v4789_v20 = vpop.eup %4788 }
 0x98d   :  { %v3244_v15 = vmul.f32 %v4789_v20, %v6616_v42  ;;  %v3245_v24 = vmul.f32 %v4789_v20, %v6619_v10 }
 0x98f   :  { %v3273_v10 = vmul.f32 %v6757_v48, %v3245_v24  ;;  %v3272_v59 = vmul.f32 %v6754_v49, %v3244_v15 }
 0x991   :  { %v3301_v20 = vadd.f32 %v6768_v57, %v3273_v10 }
 0xa00   :  { %v3196_v3 = vpop.xlane.xlu1 %3195 }
 0xa01   :  { %v3218_v11 = vmul.f32 0.03125, %v3196_v3 }
 0xa03   :  { %v3226_v44 = vadd.f32 1e-05, %v3218_v11 }
 0xa04   :  { %v3202_v22 = vpop.xlane.xlu1 %3201 }
 0xa05   :  { %4790 = vrsqrt.f32 %v3226_v44  ;;  %v3220_v38 = vmul.f32 0.03125, %v3202_v22 }
 0xa07   :  { %v3228_v2 = vadd.f32 1e-05, %v3220_v38 }
 0xa08   :  { %v3208_v61 = vpop.xlane.xlu1 %3207  ;;  %v3205_v25 = vpop.xlane.xlu0 %3204 }
 0xa09   :  { %4792 = vrsqrt.f32 %v3228_v2  ;;  %v3222_v1 = vmul.f32 0.03125, %v3208_v61  ;;  %v3221_v54 = vmul.f32 0.03125, %v3205_v25  ;;  %v3300_v61 = vadd.f32 %v6765_v62, %v3272_v59 }
 0xa0b   :  { %v3230_v46 = vadd.f32 1e-05, %v3222_v1  ;;  %v3229_v32 = vadd.f32 1e-05, %v3221_v54 }
 0xa0c   :  { %v3214_v30 = vpop.xlane.xlu1 %3213  ;;  %v3211_v8 = vpop.xlane.xlu0 %3210 }
 0xa0d   :  { %4794 = vrsqrt.f32 %v3230_v46  ;;  %v3224_v40 = vmul.f32 0.03125, %v3214_v30  ;;  %v3223_v17 = vmul.f32 0.03125, %v3211_v8 }
 0xa0e   :  { %4796 = vrsqrt.f32 %v3229_v32 }
 0xa0f   :  { %v4791_v42 = vpop.eup %4790  ;;  %v3232_v63 = vadd.f32 1e-05, %v3224_v40  ;;  %v3231_v53 = vadd.f32 1e-05, %v3223_v17 }
 0xa10   :  { %v3242_v29 = vmul.f32 %v4791_v42, %v6653_v13  ;;  %v3217_v3 = vpop.xlane.xlu0 %3216  ;;  %v3243_v11 = vmul.f32 %v4791_v42, %v6656_v4 }
 0xa11   :  { %4798 = vrsqrt.f32 %v3232_v63  ;;  %v3225_v44 = vmul.f32 0.03125, %v3217_v3 }
 0xa12   :  { %4800 = vrsqrt.f32 %v3231_v53  ;;  %v3271_v22 = vmul.f32 %v6757_v48, %v3243_v11  ;;  %v3270_v38 = vmul.f32 %v6754_v49, %v3242_v29 }
 0xa13   :  { %v4793_v2 = vpop.eup %4792  ;;  %v3233_v28 = vadd.f32 1e-05, %v3225_v44 }
 0xa14   :  { %v3299_v25 = vadd.f32 %v6768_v57, %v3271_v22  ;;  %v3298_v13 = vadd.f32 %v6765_v62, %v3270_v38  ;;  %v3247_v1 = vmul.f32 %v4793_v2, %v6672_v6  ;;  %v3246_v4 = vmul.f32 %v4793_v2, %v6669_v39 }
 0xa15   :  { %4802 = vrsqrt.f32 %v3233_v28 }
 0xa16   :  { %v3315_v54 = vpack.c.bf16 %v3301_v20, %v3299_v25  ;;  %v3314_v15 = vpack.c.bf16 %v3300_v61, %v3298_v13  ;;  %v3275_v24 = vmul.f32 %v6757_v48, %v3247_v1  ;;  %v3274_v0 = vmul.f32 %v6754_v49, %v3246_v4 }
 0xa17   :  { %v4795_v46 = vpop.eup %4794 }
 0xa18   :  { %v4797_v32 = vpop.eup %4796  ;;  %3489 = vmatprep.mubr.bf16.mxu1 %v3315_v54  ;;  %v3251_v30 = vmul.f32 %v4795_v46, %v6662_v27  ;;  %v3303_v63 = vadd.f32 %v6768_v57, %v3275_v24  ;;  %v3302_v53 = vadd.f32 %v6765_v62, %v3274_v0  ;;  %v3250_v29 = vmul.f32 %v4795_v46, %v6659_v50 }
 0xa19   :  { %3490 = vmatmul.mubr.bf16.vlgmr.msra.gmra.mrb[80].mxu1 %v3314_v15  ;;  %v3249_v8 = vmul.f32 %v4797_v32, %v6696_v7  ;;  %v3248_v40 = vmul.f32 %v4797_v32, %v6693_v16 }
 0xa1a   :  { %v3279_v10 = vmul.f32 %v6757_v48, %v3251_v30 }
 0xa1b   :  { %v4799_v6 = vpop.eup %4798  ;;  %v3277_v39 = vmul.f32 %v6757_v48, %v3249_v8  ;;  %v3276_v17 = vmul.f32 %v6754_v49, %v3248_v40 }
 0xa1c   :  { %v4801_v42 = vpop.eup %4800  ;;  %v3255_v38 = vmul.f32 %v4799_v6, %v6686_v12  ;;  %v3307_v20 = vadd.f32 %v6768_v57, %v3279_v10  ;;  %v3254_v4 = vmul.f32 %v4799_v6, %v6679_v31  ;;  %v3913_v31 = vld [vmem:[%s6883_s12] ss:$0 sm:$0xff] }
 0xa1d   :  { %v3305_v59 = vadd.f32 %v6768_v57, %v3277_v39  ;;  %v3304_v27 = vadd.f32 %v6765_v62, %v3276_v17  ;;  %v3253_v7 = vmul.f32 %v4801_v42, %v6718_v41  ;;  %v3252_v16 = vmul.f32 %v4801_v42, %v6715_v36 }
 0xa1e   :  { %v3278_v36 = vmul.f32 %v6754_v49, %v3250_v29  ;;  %v3283_v25 = vmul.f32 %v6757_v48, %v3255_v38 }
 0xa1f   :  { %v4803_v3 = vpop.eup %4802  ;;  %v3317_v11 = vpack.c.bf16 %v3305_v59, %v3303_v63  ;;  %v3316_v44 = vpack.c.bf16 %v3304_v27, %v3302_v53  ;;  %v3281_v22 = vmul.f32 %v6757_v48, %v3253_v7  ;;  %v3280_v2 = vmul.f32 %v6754_v49, %v3252_v16  ;;  %v3930_v7 = vld [vmem:[%s6884_s13] ss:$0 sm:$0xff] }
 0xa20   :  { %v3257_v28 = vmul.f32 %v4803_v3, %v6736_v5  ;;  %v3256_v12 = vmul.f32 %v4803_v3, %v6733_v21  ;;  %v3306_v1 = vadd.f32 %v6765_v62, %v3278_v36  ;;  %v3311_v54 = vadd.f32 %v6768_v57, %v3283_v25 }
 0xa21   :  { %3497 = vmatprep.mubr.bf16.mxu1 %v3317_v11  ;;  %v3309_v41 = vadd.f32 %v6768_v57, %v3281_v22  ;;  %v3308_v13 = vadd.f32 %v6765_v62, %v3280_v2 }
 0xa22   :  { %3498 = vmatmul.mubr.bf16.gmra.mrb[84].mxu1 %v3316_v44  ;;  %v3285_v50 = vmul.f32 %v6757_v48, %v3257_v28  ;;  %v3284_v46 = vmul.f32 %v6754_v49, %v3256_v12  ;;  %v3282_v48 = vmul.f32 %v6754_v49, %v3254_v4 }
 0xa23   :  { %v3319_v61 = vpack.c.bf16 %v3309_v41, %v3307_v20  ;;  %v3318_v15 = vpack.c.bf16 %v3308_v13, %v3306_v1 }
 0xa24   :  { %v3313_v5 = vadd.f32 %v6768_v57, %v3285_v50  ;;  %v3312_v24 = vadd.f32 %v6765_v62, %v3284_v46  ;;  %v3310_v21 = vadd.f32 %v6765_v62, %v3282_v48 }
 0xa25   :  { %3505 = vmatprep.mubr.bf16.mxu1 %v3319_v61 }
 0xa26   :  { %v3321_v32 = vpack.c.bf16 %v3313_v5, %v3311_v54  ;;  %v3320_v0 = vpack.c.bf16 %v3312_v24, %v3310_v21 }
 0xa2a   :  { %3506 = vmatmul.mubr.bf16.gmra.mrb[88].mxu1 %v3318_v15 }
 0xa2b   :  { %3513 = vmatprep.mubr.bf16.mxu1 %v3321_v32 }
 0xa32   :  { %3514 = vmatmul.mubr.bf16.gmra.mrb[92].mxu1 %v3320_v0 }
 0xaec   :  { %v4116_v30 = vpop.f32.mrb[80].mxu1 }
 0xaed   :  { %v4117_v57 = vpop.f32.mrb[81].mxu1 }
 0xaee   :  { %v4118_v8 = vadd.f32 %v4117_v57, %v4116_v30  ;;  %v4119_v40 = vpop.f32.mrb[82].mxu1 }
 0xaef   :  { %v4120_v6 = vpop.f32.mrb[83].mxu1 }
 0xaf0   :  { %v3492_v39 = vadd.f32 %v4118_v8, %v3913_v31  ;;  %v4121_v17 = vadd.f32 %v4120_v6, %v4119_v40 }
 0xaf2   :  { %4804 = vtanh.f32 %v3492_v39  ;;  %v3495_v49 = vadd.f32 %v4121_v17, %v3913_v31 }
 0xaf4   :  { %4806 = vtanh.f32 %v3495_v49  ;;  %v7103_v49 = vld [vmem:[#allocation12_spill] sm:$0xff] }
 0xaf5   :  { %v4122_v42 = vpop.f32.mrb[84].mxu1 }
 0xaf6   :  { %v4123_v63 = vpop.f32.mrb[85].mxu1 }
 0xaf7   :  { %v4124_v53 = vadd.f32 %v4123_v63, %v4122_v42  ;;  %v4125_v62 = vpop.f32.mrb[86].mxu1  ;;  %v3579_v42 = vsub.s32 %v6593_v47, %v7103_v49 }
 0xaf8   :  { %v4126_v10 = vpop.f32.mrb[87].mxu1 }
 0xaf9   :  { %v3500_v59 = vadd.f32 %v4124_v53, %v3913_v31  ;;  %v4127_v27 = vadd.f32 %v4126_v10, %v4125_v62 }
 0xafb   :  { %4808 = vtanh.f32 %v3500_v59  ;;  %v3503_v16 = vadd.f32 %v4127_v27, %v3913_v31 }
 0xafc   :  { %v4805_v29 = vpop.eup %4804 }
 0xafd   :  { %4810 = vtanh.f32 %v3503_v16  ;;  %v4128_v3 = vpop.f32.mrb[88].mxu1  ;;  %v3537_v11 = vmul.f32 %v4805_v29, %v3930_v7 }
 0xafe   :  { %v4807_v44 = vpop.eup %4806  ;;  %v4129_v22 = vpop.f32.mrb[89].mxu1 }
 0xaff   :  { %v4130_v38 = vadd.f32 %v4129_v22, %v4128_v3  ;;  %v4131_v2 = vpop.f32.mrb[90].mxu1  ;;  %3545 = vadd.xlane.f32.xlu1 %v3537_v11  ;;  %v3538_v28 = vmul.f32 %v4807_v44, %v3930_v7 }
 0xb00   :  { %v4132_v20 = vpop.f32.mrb[91].mxu1 }
 0xb01   :  { %v3508_v41 = vadd.f32 %v4130_v38, %v3913_v31  ;;  %v4133_v36 = vadd.f32 %v4132_v20, %v4131_v2  ;;  %3547 = vadd.xlane.f32.xlu0 %v3538_v28  ;;  %v3931_v38 = vld [vmem:[%s6872_s1] ss:$0 sm:$0xff] }
 0xb02   :  { %vm3568_vm12 = vcmp.lt.s32.totalorder %v7103_v49, %v3931_v38 }
 0xb03   :  { %4812 = vtanh.f32 %v3508_v41  ;;  %v3511_v50 = vadd.f32 %v4133_v36, %v3913_v31 }
 0xb05   :  { %v4809_v61 = vpop.eup %4808  ;;  %4814 = vtanh.f32 %v3511_v50  ;;  %v4134_v25 = vpop.f32.mrb[92].mxu1 }
 0xb06   :  { %v4135_v13 = vpop.f32.mrb[93].mxu1  ;;  %v3539_v12 = vmul.f32 %v4809_v61, %v3930_v7 }
 0xb07   :  { %v4811_v5 = vpop.eup %4810  ;;  %v4136_v1 = vadd.f32 %v4135_v13, %v4134_v25  ;;  %v4137_v4 = vpop.f32.mrb[94].mxu1 }
 0xb08   :  { %3549 = vadd.xlane.f32.xlu1 %v3539_v12  ;;  %v4138_v54 = vpop.f32.mrb[95].mxu1  ;;  %v3540_v15 = vmul.f32 %v4811_v5, %v3930_v7 }
 0xb09   :  { %v3516_v46 = vadd.f32 %v4136_v1, %v3913_v31  ;;  %v4139_v32 = vadd.f32 %v4138_v54, %v4137_v4 }
 0xb0a   :  { %3551 = vadd.xlane.f32.xlu0 %v3540_v15 }
 0xb0b   :  { %4816 = vtanh.f32 %v3516_v46  ;;  %v3519_v48 = vadd.f32 %v4139_v32, %v3913_v31 }
 0xb0d   :  { %v4813_v24 = vpop.eup %4812  ;;  %4818 = vtanh.f32 %v3519_v48 }
 0xb0e   :  { %v3541_v21 = vmul.f32 %v4813_v24, %v3930_v7 }
 0xb0f   :  { %v4815_v0 = vpop.eup %4814 }
 0xb10   :  { %3553 = vadd.xlane.f32.xlu1 %v3541_v21  ;;  %v3542_v30 = vmul.f32 %v4815_v0, %v3930_v7 }
 0xb12   :  { %3555 = vadd.xlane.f32.xlu0 %v3542_v30 }
 0xb15   :  { %v4817_v57 = vpop.eup %4816 }
 0xb16   :  { %v3543_v8 = vmul.f32 %v4817_v57, %v3930_v7 }
 0xb17   :  { %v4819_v40 = vpop.eup %4818 }
 0xb18   :  { %3557 = vadd.xlane.f32.xlu1 %v3543_v8  ;;  %v3544_v6 = vmul.f32 %v4819_v40, %v3930_v7 }
 0xb1a   :  { %3559 = vadd.xlane.f32.xlu0 %v3544_v6 }
 0xb8c   :  { %v3546_v39 = vpop.xlane.xlu1 %3545 }
 0xb8d   :  { %v3580_v10 = vrot.slane %v3546_v39, %v3579_v42 }
 0xb8e   :  { %v3548_v17 = vpop.xlane.xlu0 %3547 }
 0xb8f   :  { %v3584_v31 = vrot.slane %v3548_v17, %v3579_v42 }
 0xb91   :  { %v3610_v27 = vsel %vm3609_vm5, %v3584_v31, %v3580_v10  ;;  %v3691_v10 = vsub.s32 6, %v7103_v49 }
 0xb95   :  { %v3550_v63 = vpop.xlane.xlu1 %3549 }
 0xb96   :  { %v3588_v53 = vrot.slane %v3550_v63, %v3579_v42  ;;  %v7104_v63 = vsub.s32 4, %v7103_v49 }
 0xb97   :  { %v3552_v62 = vpop.xlane.xlu0 %3551 }
 0xb98   :  { %v3592_v16 = vrot.slane %v3552_v62, %v3579_v42  ;;  %v3612_v29 = vsel %vm3611_vm6, %v3588_v53, %v3610_v27  ;;  %v7105_v53 = vld [vmem:[#allocation14_spill] sm:$0xff]  ;;  %v7106_v27 = vsub.s32 3, %v7103_v49 }
 0xb9a   :  { %v3614_v11 = vsel %vm3613_vm7, %v3592_v16, %v3612_v29  ;;  %v3698_v29 = vsub.s32 7, %v7103_v49 }
 0xb9d   :  { %v3554_v59 = vpop.xlane.xlu1 %3553 }
 0xb9e   :  { %v3596_v3 = vrot.slane %v3554_v59, %v3579_v42 }
 0xb9f   :  { %v3556_v7 = vpop.xlane.xlu0 %3555 }
 0xba0   :  { %v3600_v44 = vrot.slane %v3556_v7, %v3579_v42  ;;  %v3616_v22 = vsel %vm3615_vm8, %v3596_v3, %v3614_v11 }
 0xba2   :  { %v3618_v28 = vsel %vm3617_vm9, %v3600_v44, %v3616_v22 }
 0xba5   :  { %v3558_v47 = vpop.xlane.xlu1 %3557 }
 0xba6   :  { %v3604_v2 = vrot.slane %v3558_v47, %v3579_v42 }
 0xba7   :  { %v3560_v20 = vpop.xlane.xlu0 %3559 }
 0xba8   :  { %v3620_v41 = vsel %vm3619_vm10, %v3604_v2, %v3618_v28  ;;  %v3608_v36 = vrot.slane %v3560_v20, %v3579_v42 }
 0xbaa   :  { %v3622_v50 = vsel %vm3621_vm11, %v3608_v36, %v3620_v41 }
 0xbab   :  { %v3624_v61 = vsel %vm3568_vm12, %v3622_v50, -1e+30 }
 0xbac   :  { %v3626_v25 = vsel %vm3625_vm13, %v3624_v61, -inf }
 0xbad   :  { %v3627_v13 = vrot.slane %v3626_v25, 4 }
 0xbaf   :  { %v3628_v12 = vmax.f32 %v3626_v25, %v3627_v13 }
 0xbb1   :  { %v3629_v5 = vrot.slane %v3628_v12, 2 }
 0xbb3   :  { %v3630_v1 = vmax.f32 %v3628_v12, %v3629_v5 }
 0xbb5   :  { %v3631_v4 = vrot.slane %v3630_v1, 1 }
 0xbb7   :  { %v3632_v54 = vmax.f32 %v3630_v1, %v3631_v4 }
 0xbb9   :  { %v3633_v15 = vsub.f32 %v3624_v61, %v3632_v54 }
 0xbbb   :  { %v3634_v46 = vmul.f32 1.442695, %v3633_v15 }
 0xbbd   :  { %4820 = vpow2.f32 %v3634_v46 }
 0xbc7   :  { %v4821_v32 = vpop.eup %4820 }
 0xbc8   :  { %v3636_v48 = vsel %vm3568_vm12, %v4821_v32, 0.0 }
 0xbc9   :  { %v3637_v24 = vsel %vm3625_vm13, %v3636_v48, 0.0 }
 0xbca   :  { %v3638_v21 = vrot.slane %v3637_v24, 4 }
 0xbcc   :  { %v3639_v0 = vadd.f32 %v3638_v21, %v3637_v24 }
 0xbce   :  { %v3640_v30 = vrot.slane %v3639_v0, 2 }
 0xbd0   :  { %v3641_v57 = vadd.f32 %v3640_v30, %v3639_v0 }
 0xbd2   :  { %v3642_v8 = vrot.slane %v3641_v57, 1 }
 0xbd4   :  { %v3643_v40 = vadd.f32 %v3642_v8, %v3641_v57 }
 0xbd6   :  { %4822 = vrcp.f32 %v3643_v40 }
 0xbe0   :  { %v4823_v6 = vpop.eup %4822 }
 0xbe1   :  { %v3645_v39 = vmul.f32 %v4823_v6, %v3636_v48 }
 0xbe3   :  { %3646 = vst.msk [vmem:[%s6886_s15] sm:$0xff] %vm3625_vm13, %v3645_v39  ;;  %v3657_v17 = vrot.slane %v3645_v39, %v7102_v19  ;;  %v3650_v42 = vrot.slane %v3645_v39, %v7101_v23  ;;  %v3678_v31 = vrot.slane %v3645_v39, %v7104_v63  ;;  %v3664_v62 = vrot.slane %v3645_v39, %v7105_v53 }
 0xbe4   :  { %v3692_v59 = vrot.slane %v3645_v39, %v3691_v10  ;;  %v3671_v16 = vrot.slane %v3645_v39, %v7106_v27  ;;  %v7107_v19 = vsub.s32 5, %v7103_v49  ;;  %v3699_v3 = vrot.slane %v3645_v39, %v3698_v29 }
 0xbe5   :  { %3659 = vbcast.lane.b32.xlu0 %v3657_v17, 256  ;;  %3652 = vbcast.lane.b32.xlu1 %v3650_v42, 256 }
 0xbe6   :  { %v3685_v23 = vrot.slane %v3645_v39, %v7107_v19 }
 0xbe9   :  { %3680 = vbcast.lane.b32.xlu0 %v3678_v31, 256  ;;  %3666 = vbcast.lane.b32.xlu1 %v3664_v62, 256 }
 0xbed   :  { %3694 = vbcast.lane.b32.xlu0 %v3692_v59, 256  ;;  %3673 = vbcast.lane.b32.xlu1 %v3671_v16, 256 }
 0xbf1   :  { %3687 = vbcast.lane.b32.xlu1 %v3685_v23, 256 }
 0xbf5   :  { %3701 = vbcast.lane.b32.xlu1 %v3699_v3, 256 }
 0xc57   :  { %v3660_v7 = vpop.permute.xlu0 %3659  ;;  %v3653_v11 = vpop.permute.xlu1 %3652 }
 0xc58   :  { %v3705_v44 = vmul.f32 %v3660_v7, %v6528_v33  ;;  %v3706_v22 = vmul.f32 %v3660_v7, %v6532_v14  ;;  %v3703_v47 = vmul.f32 %v3653_v11, %v7092_v51  ;;  %v3704_v38 = vmul.f32 %v3653_v11, %v6583_v58 }
 0xc5a   :  { %v3719_v49 = vadd.f32 %v3705_v44, %v3703_v47  ;;  %v3726_v36 = vadd.f32 %v3706_v22, %v3704_v38 }
 0xc5b   :  { %v3667_v2 = vpop.permute.xlu1 %3666  ;;  %v3681_v41 = vpop.permute.xlu0 %3680 }
 0xc5c   :  { %v3707_v28 = vmul.f32 %v3667_v2, %v6598_v26  ;;  %v3708_v20 = vmul.f32 %v3667_v2, %v6590_v45  ;;  %v3711_v14 = vmul.f32 %v3681_v41, %v6546_v55  ;;  %v3712_v51 = vmul.f32 %v3681_v41, %v6551_v18 }
 0xc5e   :  { %v3720_v61 = vadd.f32 %v3719_v49, %v3707_v28  ;;  %v3727_v25 = vadd.f32 %v3726_v36, %v3708_v20 }
 0xc5f   :  { %v3674_v50 = vpop.permute.xlu1 %3673  ;;  %v3695_v5 = vpop.permute.xlu0 %3694 }
 0xc60   :  { %v3709_v13 = vmul.f32 %v3674_v50, %v6611_v35  ;;  %v3710_v33 = vmul.f32 %v3674_v50, %v6605_v37  ;;  %v3715_v15 = vmul.f32 %v3695_v5, %v6558_v43  ;;  %v3716_v35 = vmul.f32 %v3695_v5, %v6563_v52 }
 0xc62   :  { %v3721_v58 = vadd.f32 %v3720_v61, %v3709_v13  ;;  %v3728_v12 = vadd.f32 %v3727_v25, %v3710_v33 }
 0xc63   :  { %v3688_v26 = vpop.permute.xlu1 %3687 }
 0xc64   :  { %v3722_v1 = vadd.f32 %v3721_v58, %v3711_v14  ;;  %v3729_v45 = vadd.f32 %v3728_v12, %v3712_v51  ;;  %v3713_v4 = vmul.f32 %v3688_v26, %v6624_v34  ;;  %v3714_v54 = vmul.f32 %v3688_v26, %v6629_v60 }
 0xc66   :  { %v3723_v46 = vadd.f32 %v3722_v1, %v3713_v4  ;;  %v3730_v37 = vadd.f32 %v3729_v45, %v3714_v54 }
 0xc67   :  { %v3702_v32 = vpop.permute.xlu1 %3701 }
 0xc68   :  { %v3724_v55 = vadd.f32 %v3723_v46, %v3715_v15  ;;  %v3731_v48 = vadd.f32 %v3730_v37, %v3716_v35  ;;  %v3717_v18 = vmul.f32 %v3702_v32, %v6635_v56  ;;  %v3718_v24 = vmul.f32 %v3702_v32, %v7100_v9 }
 0xc6a   :  { %v3725_v21 = vadd.f32 %v3724_v55, %v3717_v18  ;;  %v3732_v0 = vadd.f32 %v3731_v48, %v3718_v24 }
 0xc6c   :  { %3733 = vst [vmem:[%s6885_s14] sm:$0xff] %v3725_v21  ;;  %3734 = vst [vmem:[%s6885_s14 + $0x8] sm:$0xff] %v3732_v0 }
 0xc6d   :  { %3743 = vsyncpa [#allocation5], 1 }
 0xc6e   :  { %3744 = vsyncpa [#allocation7], 1 }

</bundles_post_ra>
